<compile_context>
chip_gen: v7x
topology: tpu7x:2x2x1
jax: 0.10.0
libtpu: 0.0.40
codegen_flags: <defaults>
</compile_context>

<pallas_src>
import functools

import jax
import jax.numpy as jnp
from jax import lax
from jax.experimental import pallas as pl
from jax.experimental.pallas import tpu as pltpu

NUM_FEAS = 128         # backbone stand-in channels (native 128 -> lane-dense)
EMB_DIM = 512          # emd_fc output
TARGET_SIZE = 11       # RANZCR classes
NCLS_PAD = 128         # lane-dense padded class count for the head matmul
CBAM_REDUCTION = 16
KP = 32                # im2col depth: 3*3*3 = 27, zero-padded to 32


def _sigmoid(v):
    return 1.0 / (1.0 + jnp.exp(-v))


@functools.lru_cache(maxsize=1)
def _vmem_limit_bytes():
    # Generation-aware VMEM budget: ~75% of physical, capped at 100 MiB
    # (v5e/v6e: 128 MiB physical -> 96 MiB budget; v7x: 64 MiB -> 48 MiB).
    try:
        cap = int(getattr(pltpu.get_tpu_info(), "vmem_capacity_bytes",
                          64 * 1024 * 1024))
    except Exception:
        cap = 64 * 1024 * 1024
    return int(min(cap * 3 // 4, 100 * 1024 * 1024))


# -----------------------------------------------------------------------------
# Fused kernel: backbone conv + ReLU (streamed over row tiles, feature map kept
# resident in VMEM) -> CBAM channel attention -> CBAM spatial attention (7x7
# conv on a padded VMEM scratch) -> attention-weighted global avg pool ->
# FC(512) -> ArcMargin cosine head, finalized on the last row tile per image.
# -----------------------------------------------------------------------------
def _fused_kernel(p_ref, bbw_ref, bbb_ref, w1_ref, b1_ref, w2_ref, b2_ref,
                  saw_ref, sab_ref, fcw_ref, fcb_ref, arcw_ref,
                  out_ref, feas_sc, cstat_sc, mpad_sc, xpad_sc,
                  *, toh, oh, ow, inv_hw):
    t = pl.program_id(1)
    tpix = toh * ow                                    # flattened pixels / tile

    # ---- per row tile: backbone conv + ReLU, stash into VMEM-resident
    #      per-image feature scratch, accumulate channel-attention stats ----
    y = jnp.dot(p_ref[0], bbw_ref[...], preferred_element_type=jnp.float32)
    y = jnp.maximum(y + bbb_ref[...], 0.0)             # (tpix, C) f32

    r0 = pl.multiple_of(t * tpix, tpix)
    feas_sc[pl.ds(r0, tpix), :] = y.astype(feas_sc.dtype)

    @pl.when(t == 0)
    def _():
        # row 0: running spatial mean, row 1: running spatial max.
        # Post-ReLU features are >= 0, so 0 is a safe max identity.
        cstat_sc[...] = jnp.zeros_like(cstat_sc)

    cstat_sc[0:1, :] += jnp.sum(y, axis=0, keepdims=True) * inv_hw
    cstat_sc[1:2, :] = jnp.maximum(cstat_sc[1:2, :],
                                   jnp.max(y, axis=0, keepdims=True))

    # ---- last row tile of each image: CBAM + pool + FC + ArcMargin head ----
    @pl.when(t == pl.num_programs(1) - 1)
    def _():
        # CBAM channel attention: one shared-MLP pass over stacked [avg; max].
        stk = cstat_sc[...]                                        # (2, C)
        h = jnp.dot(stk.astype(w1_ref.dtype), w1_ref[...],
                    preferred_element_type=jnp.float32)
        h = jnp.maximum(h + b1_ref[...], 0.0)                      # (2, cr)
        z = jnp.dot(h.astype(w2_ref.dtype), w2_ref[...],
                    preferred_element_type=jnp.float32) + b2_ref[...]
        att_c = _sigmoid(z[0:1, :] + z[1:2, :])                    # (1, C)

        # Channel-attended features; whole image is VMEM resident (no HBM).
        fc = feas_sc[...].astype(jnp.float32) * att_c              # (HW, C)
        fc3 = fc.reshape(oh, ow, fc.shape[-1])                     # free split

        # CBAM spatial attention: per-pixel channel mean/max -> 7x7 "same"
        # conv over zero-padded VMEM scratch maps (no im2col, no HBM stats).
        # NUM_FEAS == true channel count, so mean over the last axis is exact.
        # TODO(synk): for large images switch these tiny maps to lane-dense
        # (oh, ow) planes; here they never leave VMEM so layout is off-roofline.
        mpad_sc[...] = jnp.zeros_like(mpad_sc)
        xpad_sc[...] = jnp.zeros_like(xpad_sc)
        mpad_sc[3:3 + oh, 3:3 + ow, :] = jnp.mean(fc3, axis=-1, keepdims=True)
        xpad_sc[3:3 + oh, 3:3 + ow, :] = jnp.max(fc3, axis=-1, keepdims=True)

        acc = jnp.full((oh, ow, 1), sab_ref[0], jnp.float32)
        for dy in range(7):                    # static 49-tap unroll (VPU only)
            for dx in range(7):
                k = 2 * (dy * 7 + dx)
                acc = acc + mpad_sc[dy:dy + oh, dx:dx + ow, :] * saw_ref[k]
                acc = acc + xpad_sc[dy:dy + oh, dx:dx + ow, :] * saw_ref[k + 1]
        att_s = _sigmoid(acc)                                      # (oh, ow, 1)

        # Attention-weighted global average pool.
        weighted = (fc3 * att_s).reshape(fc.shape)                 # (HW, C)
        pooled = jnp.sum(weighted, axis=0, keepdims=True) * inv_hw  # (1, C)

        # FC(512) + ArcMargin cosine head (pre-normalized, 128-padded weight).
        emb = jnp.dot(pooled.astype(fcw_ref.dtype), fcw_ref[...],
                      preferred_element_type=jnp.float32) + fcb_ref[...]
        en = emb * lax.rsqrt(jnp.sum(emb * emb, axis=-1, keepdims=True) + 1e-12)
        logits = jnp.dot(en.astype(arcw_ref.dtype), arcw_ref[...],
                         preferred_element_type=jnp.float32)       # (1, 128)
        out_ref[0] = jnp.broadcast_to(logits, out_ref.shape[1:])


def _fused_forward(patches, bb_w, bb_b, ca_w1, ca_b1, ca_w2, ca_b2,
                   sa_w, sa_b, fc_w, fc_b, arc_wn_t, *, toh, oh, ow):
    B, HW, Kp = patches.shape
    C = bb_w.shape[1]
    cr = ca_w1.shape[1]
    n_t = oh // toh
    tpix = toh * ow
    kern = functools.partial(_fused_kernel, toh=toh, oh=oh, ow=ow,
                             inv_hw=1.0 / HW)
    full = lambda b, t: (0, 0)
    return pl.pallas_call(
        kern,
        out_shape=jax.ShapeDtypeStruct((B, 8, NCLS_PAD), jnp.float32),
        grid_spec=pltpu.PrefetchScalarGridSpec(
            num_scalar_prefetch=0,
            grid=(B, n_t),
            in_specs=[
                pl.BlockSpec((1, tpix, Kp), lambda b, t: (b, t, 0)),
                pl.BlockSpec((Kp, C), full),
                pl.BlockSpec((1, C), full),
                pl.BlockSpec((C, cr), full),
                pl.BlockSpec((1, cr), full),
                pl.BlockSpec((cr, C), full),
                pl.BlockSpec((1, C), full),
                pl.BlockSpec(memory_space=pltpu.MemorySpace.SMEM),
                pl.BlockSpec(memory_space=pltpu.MemorySpace.SMEM),
                pl.BlockSpec((C, EMB_DIM), full),
                pl.BlockSpec((1, EMB_DIM), full),
                pl.BlockSpec((EMB_DIM, NCLS_PAD), full),
            ],
            out_specs=pl.BlockSpec((1, 8, NCLS_PAD), lambda b, t: (b, 0, 0)),
            scratch_shapes=[
                pltpu.VMEM((HW, C), jnp.bfloat16),        # resident feature map
                pltpu.VMEM((2, C), jnp.float32),          # [avg; max] channel stats
                pltpu.VMEM((oh + 6, ow + 6, 1), jnp.float32),  # padded mean map
                pltpu.VMEM((oh + 6, ow + 6, 1), jnp.float32),  # padded max map
            ],
        ),
        compiler_params=pltpu.CompilerParams(
            dimension_semantics=("parallel", "arbitrary"),
            vmem_limit_bytes=_vmem_limit_bytes()),
    )(patches, bb_w, bb_b, ca_w1, ca_b1, ca_w2, ca_b2,
      sa_w, sa_b, fc_w, fc_b, arc_wn_t)


# -----------------------------------------------------------------------------
# Plain-JAX glue: im2col for the backbone stand-in conv only.
# -----------------------------------------------------------------------------
def extract_patches(x_nhwc, kh, kw, stride, pad):
    B, H, W, C = x_nhwc.shape
    xp = jnp.pad(x_nhwc, ((0, 0), (pad, pad), (pad, pad), (0, 0)))
    out_h = (H + 2 * pad - kh) // stride + 1
    out_w = (W + 2 * pad - kw) // stride + 1
    cols = []
    for dy in range(kh):
        for dx in range(kw):
            cols.append(xp[:, dy:dy + stride * out_h:stride,
                           dx:dx + stride * out_w:stride, :])
    return jnp.concatenate(cols, axis=-1)   # (B, out_h, out_w, kh*kw*C)


def _pick_row_tile(oh, ow):
    # ~4096 flattened pixels per grid step (amortizes ~0.35us per-step cost),
    # aligned to full rows, dividing oh, with toh*ow a multiple of 8.
    target = max(8, 4096 // max(ow, 1))
    for cand in range(min(oh, target), 0, -1):
        if oh % cand == 0 and (cand * ow) % 8 == 0:
            return cand
    return oh


# -----------------------------------------------------------------------------
# Parameters & forward
# -----------------------------------------------------------------------------
def init_params(key):
    ks = jax.random.split(key, 8)
    cr = max(NUM_FEAS // CBAM_REDUCTION, 1)
    return {
        "bb_w": 0.1 * jax.random.normal(ks[0], (3 * 3 * 3, NUM_FEAS), jnp.float32),
        "bb_b": jnp.zeros((NUM_FEAS,), jnp.float32),
        "ca_w1": 0.1 * jax.random.normal(ks[1], (NUM_FEAS, cr), jnp.float32),
        "ca_b1": jnp.zeros((cr,), jnp.float32),
        "ca_w2": 0.1 * jax.random.normal(ks[2], (cr, NUM_FEAS), jnp.float32),
        "ca_b2": jnp.zeros((NUM_FEAS,), jnp.float32),
        "sa_w": 0.1 * jax.random.normal(ks[3], (7 * 7 * 2,), jnp.float32),
        "sa_b": jnp.zeros((1,), jnp.float32),
        "fc_w": 0.05 * jax.random.normal(ks[4], (NUM_FEAS, EMB_DIM), jnp.float32),
        "fc_b": jnp.zeros((EMB_DIM,), jnp.float32),
        "arc_w": 0.05 * jax.random.normal(ks[5], (TARGET_SIZE, EMB_DIM), jnp.float32),
    }


@jax.jit
def custom_model_forward(x_nchw, params):
    x = jnp.transpose(x_nchw, (0, 2, 3, 1)).astype(jnp.float32)   # NCHW -> NHWC

    # ---- backbone stand-in front-end: 3x3 stride-2 im2col
    patches = extract_patches(x, 3, 3, stride=2, pad=1)           # (B, oh, ow, 27)
    B, oh, ow, kdim = patches.shape
    HW = oh * ow
    toh = _pick_row_tile(oh, ow)

    patches = jnp.pad(patches, ((0, 0), (0, 0), (0, 0), (0, KP - kdim)))
    patches = patches.reshape(B, HW, KP).astype(jnp.bfloat16)
    bb_w = jnp.pad(params["bb_w"], ((0, KP - kdim), (0, 0))).astype(jnp.bfloat16)

    # ---- ArcMargin weight is constant at inference: row-normalize, transpose
    #      and zero-pad to a lane-dense 128-class head outside the kernel.
    arc_w = params["arc_w"]
    arc_wn = arc_w * lax.rsqrt(jnp.sum(arc_w * arc_w, axis=1, keepdims=True)
                               + 1e-12)
    arc_wn_t = jnp.zeros((EMB_DIM, NCLS_PAD), jnp.float32)
    arc_wn_t = arc_wn_t.at[:, :TARGET_SIZE].set(arc_wn.T).astype(jnp.bfloat16)

    # ---- single fused kernel: conv + CBAM + pool + FC + ArcMargin head
    out_pad = _fused_forward(
        patches, bb_w, params["bb_b"].reshape(1, -1),
        params["ca_w1"].astype(jnp.bfloat16), params["ca_b1"].reshape(1, -1),
        params["ca_w2"].astype(jnp.bfloat16), params["ca_b2"].reshape(1, -1),
        params["sa_w"].reshape(-1), params["sa_b"].reshape(-1),
        params["fc_w"].astype(jnp.bfloat16), params["fc_b"].reshape(1, -1),
        arc_wn_t, toh=toh, oh=oh, ow=ow)

    # Raw ArcMargin cosine logits for the real classes.
    # TODO(synk): verify against the PyTorch ArcMarginHead whether the scale
    # factor s multiplies the cosine at inference.
    return out_pad[:, 0, :TARGET_SIZE]


if __name__ == "__main__":
    key = jax.random.PRNGKey(0)
    pkey, xkey = jax.random.split(key)
    params = init_params(pkey)

    # PyTorch NCHW convention: (batch=2, channels=3, 16x16)
    x = jax.random.normal(xkey, (2, 3, 16, 16), jnp.float32)

    out = custom_model_forward(x, params)
    out = jax.block_until_ready(out)
    assert out.shape == (2, TARGET_SIZE), out.shape
    assert bool(jnp.all(jnp.isfinite(out)))
    print("KERNEL_OK")
</pallas_src>

<mosaic_0001>
module attributes {stable_mosaic.version = 11 : i64} {
  func.func @_fused_kernel(%arg0: i32, %arg1: i32, %arg2: memref<1x64x32xbf16, #tpu.memory_space<vmem>>, %arg3: memref<32x128xbf16, #tpu.memory_space<vmem>>, %arg4: memref<1x128xf32, #tpu.memory_space<vmem>>, %arg5: memref<128x8xbf16, #tpu.memory_space<vmem>>, %arg6: memref<1x8xf32, #tpu.memory_space<vmem>>, %arg7: memref<8x128xbf16, #tpu.memory_space<vmem>>, %arg8: memref<1x128xf32, #tpu.memory_space<vmem>>, %arg9: memref<98xf32, #tpu.memory_space<smem>>, %arg10: memref<1xf32, #tpu.memory_space<smem>>, %arg11: memref<128x512xbf16, #tpu.memory_space<vmem>>, %arg12: memref<1x512xf32, #tpu.memory_space<vmem>>, %arg13: memref<512x128xbf16, #tpu.memory_space<vmem>>, %arg14: memref<1x8x128xf32, #tpu.memory_space<vmem>>, %arg15: memref<64x128xbf16, #tpu.memory_space<vmem>>, %arg16: memref<2x128xf32, #tpu.memory_space<vmem>>, %arg17: memref<14x14x1xf32, #tpu.memory_space<vmem>>, %arg18: memref<14x14x1xf32, #tpu.memory_space<vmem>>) attributes {dimension_semantics = [#tpu.dimension_semantics<parallel>, #tpu.dimension_semantics<arbitrary>], iteration_bounds = array<i64: 2, 1>, scalar_prefetch = 0 : i64, scratch_operands = 4 : i64, tpu.core_type = #tpu.core_type<tc>, window_params = [{transform_indices = @transform_0, window_bounds = array<i64: 1, 64, 32>}, {pipeline_mode = #tpu.pipeline_mode<synchronous>, transform_indices = @transform_1, window_bounds = array<i64: 32, 128>}, {pipeline_mode = #tpu.pipeline_mode<synchronous>, transform_indices = @transform_2, window_bounds = array<i64: 1, 128>}, {pipeline_mode = #tpu.pipeline_mode<synchronous>, transform_indices = @transform_3, window_bounds = array<i64: 128, 8>}, {pipeline_mode = #tpu.pipeline_mode<synchronous>, transform_indices = @transform_4, window_bounds = array<i64: 1, 8>}, {pipeline_mode = #tpu.pipeline_mode<synchronous>, transform_indices = @transform_5, window_bounds = array<i64: 8, 128>}, {pipeline_mode = #tpu.pipeline_mode<synchronous>, transform_indices = @transform_6, window_bounds = array<i64: 1, 128>}, {transform_indices = @transform_7, window_bounds = array<i64: 98>}, {transform_indices = @transform_8, window_bounds = array<i64: 1>}, {pipeline_mode = #tpu.pipeline_mode<synchronous>, transform_indices = @transform_9, window_bounds = array<i64: 128, 512>}, {pipeline_mode = #tpu.pipeline_mode<synchronous>, transform_indices = @transform_10, window_bounds = array<i64: 1, 512>}, {pipeline_mode = #tpu.pipeline_mode<synchronous>, transform_indices = @transform_11, window_bounds = array<i64: 512, 128>}, {transform_indices = @transform_12, window_bounds = array<i64: 1, 8, 128>}]} {
    %c0 = arith.constant 0 : index
    %c0_0 = arith.constant 0 : index
    %c0_1 = arith.constant 0 : index
    %0 = vector.load %arg2[%c0, %c0_0, %c0_1] : memref<1x64x32xbf16, #tpu.memory_space<vmem>>, vector<1x64x32xbf16>
    %1 = vector.shape_cast %0 : vector<1x64x32xbf16> to vector<64x32xbf16>
    %c0_2 = arith.constant 0 : index
    %c0_3 = arith.constant 0 : index
    %2 = vector.load %arg3[%c0_2, %c0_3] : memref<32x128xbf16, #tpu.memory_space<vmem>>, vector<32x128xbf16>
    %cst = arith.constant dense<0.000000e+00> : vector<64x128xf32>
    %3 = tpu.matmul %1, %2, %cst {dimension_numbers = #tpu.dot_dimension_numbers<[1], [0], [0], [1], [0, 0, 1, 1], [], []>} : vector<64x32xbf16>, vector<32x128xbf16>, vector<64x128xf32> -> vector<64x128xf32>
    %c0_4 = arith.constant 0 : index
    %c0_5 = arith.constant 0 : index
    %4 = vector.load %arg4[%c0_4, %c0_5] : memref<1x128xf32, #tpu.memory_space<vmem>>, vector<1x128xf32>
    %5 = vector.broadcast %4 : vector<1x128xf32> to vector<64x128xf32>
    %6 = arith.addf %3, %5 : vector<64x128xf32>
    %cst_6 = arith.constant 0.000000e+00 : f32
    %7 = vector.broadcast %cst_6 : f32 to vector<64x128xf32>
    %8 = arith.maximumf %6, %7 : vector<64x128xf32>
    %c64_i32 = arith.constant 64 : i32
    %9 = arith.muli %arg1, %c64_i32 : i32
    %10 = tpu.assume_multiple %9, 64 : i32
    %11 = arith.truncf %8 : vector<64x128xf32> to vector<64x128xbf16>
    %12 = arith.index_cast %10 : i32 to index
    %c0_7 = arith.constant 0 : index
    %13 = vector.load %arg15[%12, %c0_7] : memref<64x128xbf16, #tpu.memory_space<vmem>>, vector<64x128xbf16>
    tpu.vector_store %arg15[%12, %c0_7], %11 {strides = array<i32>} : memref<64x128xbf16, #tpu.memory_space<vmem>>, vector<64x128xbf16>,
    %c0_i32 = arith.constant 0 : i32
    %14 = arith.cmpi eq, %arg1, %c0_i32 : i32
    %15 = arith.extui %14 : i1 to i32
    %c0_i32_8 = arith.constant 0 : i32
    %16 = arith.cmpi ne, %15, %c0_i32_8 : i32
    scf.if %16 {
      %cst_21 = arith.constant 0.000000e+00 : f32
      %32 = vector.broadcast %cst_21 : f32 to vector<2x128xf32>
      %c0_22 = arith.constant 0 : index
      %c0_23 = arith.constant 0 : index
      %33 = vector.load %arg16[%c0_22, %c0_23] : memref<2x128xf32, #tpu.memory_space<vmem>>, vector<2x128xf32>
      tpu.vector_store %arg16[%c0_22, %c0_23], %32 {strides = array<i32>} : memref<2x128xf32, #tpu.memory_space<vmem>>, vector<2x128xf32>,
    } else {
    }
    %c0_9 = arith.constant 0 : index
    %c0_10 = arith.constant 0 : index
    %17 = vector.load %arg16[%c0_9, %c0_10] : memref<2x128xf32, #tpu.memory_space<vmem>>, vector<1x128xf32>
    %cst_11 = arith.constant dense<0.000000e+00> : vector<128xf32>
    %18 = vector.multi_reduction <add>, %8, %cst_11 [0] : vector<64x128xf32> to vector<128xf32>
    %19 = vector.shape_cast %18 : vector<128xf32> to vector<1x128xf32>
    %cst_12 = arith.constant 1.562500e-02 : f32
    %20 = vector.broadcast %cst_12 : f32 to vector<1x128xf32>
    %21 = arith.mulf %19, %20 : vector<1x128xf32>
    %22 = arith.addf %17, %21 : vector<1x128xf32>
    %c0_13 = arith.constant 0 : index
    %c0_14 = arith.constant 0 : index
    %23 = vector.load %arg16[%c0_13, %c0_14] : memref<2x128xf32, #tpu.memory_space<vmem>>, vector<1x128xf32>
    tpu.vector_store %arg16[%c0_13, %c0_14], %22 {strides = array<i32>} : memref<2x128xf32, #tpu.memory_space<vmem>>, vector<1x128xf32>,
    %c1 = arith.constant 1 : index
    %c0_15 = arith.constant 0 : index
    %24 = vector.load %arg16[%c1, %c0_15] : memref<2x128xf32, #tpu.memory_space<vmem>>, vector<1x128xf32>
    %cst_16 = arith.constant dense<0xFF800000> : vector<128xf32>
    %25 = vector.multi_reduction <maximumf>, %8, %cst_16 [0] : vector<64x128xf32> to vector<128xf32>
    %26 = vector.shape_cast %25 : vector<128xf32> to vector<1x128xf32>
    %27 = arith.maximumf %24, %26 : vector<1x128xf32>
    %c1_17 = arith.constant 1 : index
    %c0_18 = arith.constant 0 : index
    %28 = vector.load %arg16[%c1_17, %c0_18] : memref<2x128xf32, #tpu.memory_space<vmem>>, vector<1x128xf32>
    tpu.vector_store %arg16[%c1_17, %c0_18], %27 {strides = array<i32>} : memref<2x128xf32, #tpu.memory_space<vmem>>, vector<1x128xf32>,
    %c0_i32_19 = arith.constant 0 : i32
    %29 = arith.cmpi eq, %arg1, %c0_i32_19 : i32
    %30 = arith.extui %29 : i1 to i32
    %c0_i32_20 = arith.constant 0 : i32
    %31 = arith.cmpi ne, %30, %c0_i32_20 : i32
    scf.if %31 {
      %c0_21 = arith.constant 0 : index
      %c0_22 = arith.constant 0 : index
      %32 = vector.load %arg16[%c0_21, %c0_22] : memref<2x128xf32, #tpu.memory_space<vmem>>, vector<2x128xf32>
      %33 = arith.truncf %32 : vector<2x128xf32> to vector<2x128xbf16>
      %c0_23 = arith.constant 0 : index
      %c0_24 = arith.constant 0 : index
      %34 = vector.load %arg5[%c0_23, %c0_24] : memref<128x8xbf16, #tpu.memory_space<vmem>>, vector<128x8xbf16>
      %cst_25 = arith.constant dense<0.000000e+00> : vector<2x8xf32>
      %35 = tpu.matmul %33, %34, %cst_25 {dimension_numbers = #tpu.dot_dimension_numbers<[1], [0], [0], [1], [0, 0, 1, 1], [], []>} : vector<2x128xbf16>, vector<128x8xbf16>, vector<2x8xf32> -> vector<2x8xf32>
      %c0_26 = arith.constant 0 : index
      %c0_27 = arith.constant 0 : index
      %36 = vector.load %arg6[%c0_26, %c0_27] : memref<1x8xf32, #tpu.memory_space<vmem>>, vector<1x8xf32>
      %37 = vector.broadcast %36 : vector<1x8xf32> to vector<2x8xf32>
      %38 = arith.addf %35, %37 : vector<2x8xf32>
      %cst_28 = arith.constant 0.000000e+00 : f32
      %39 = vector.broadcast %cst_28 : f32 to vector<2x8xf32>
      %40 = arith.maximumf %38, %39 : vector<2x8xf32>
      %41 = arith.truncf %40 : vector<2x8xf32> to vector<2x8xbf16>
      %c0_29 = arith.constant 0 : index
      %c0_30 = arith.constant 0 : index
      %42 = vector.load %arg7[%c0_29, %c0_30] : memref<8x128xbf16, #tpu.memory_space<vmem>>, vector<8x128xbf16>
      %cst_31 = arith.constant dense<0.000000e+00> : vector<2x128xf32>
      %43 = tpu.matmul %41, %42, %cst_31 {dimension_numbers = #tpu.dot_dimension_numbers<[1], [0], [0], [1], [0, 0, 1, 1], [], []>} : vector<2x8xbf16>, vector<8x128xbf16>, vector<2x128xf32> -> vector<2x128xf32>
      %c0_32 = arith.constant 0 : index
      %c0_33 = arith.constant 0 : index
      %44 = vector.load %arg8[%c0_32, %c0_33] : memref<1x128xf32, #tpu.memory_space<vmem>>, vector<1x128xf32>
      %45 = vector.broadcast %44 : vector<1x128xf32> to vector<2x128xf32>
      %46 = arith.addf %43, %45 : vector<2x128xf32>
      %47 = vector.extract_strided_slice %46 {offsets = [0, 0], sizes = [1, 128], strides = [1, 1]} : vector<2x128xf32> to vector<1x128xf32>
      %48 = vector.extract_strided_slice %46 {offsets = [1, 0], sizes = [1, 128], strides = [1, 1]} : vector<2x128xf32> to vector<1x128xf32>
      %49 = arith.addf %47, %48 : vector<1x128xf32>
      %cst_34 = arith.constant 0.000000e+00 : f32
      %50 = vector.broadcast %cst_34 : f32 to vector<1x128xf32>
      %51 = arith.subf %50, %49 : vector<1x128xf32>
      %52 = math.exp %51 : vector<1x128xf32>
      %cst_35 = arith.constant 1.000000e+00 : f32
      %53 = vector.broadcast %cst_35 : f32 to vector<1x128xf32>
      %54 = arith.addf %53, %52 : vector<1x128xf32>
      %cst_36 = arith.constant 1.000000e+00 : f32
      %55 = vector.broadcast %cst_36 : f32 to vector<1x128xf32>
      %56 = arith.divf %55, %54 : vector<1x128xf32>
      %c0_37 = arith.constant 0 : index
      %c0_38 = arith.constant 0 : index
      %57 = vector.load %arg15[%c0_37, %c0_38] : memref<64x128xbf16, #tpu.memory_space<vmem>>, vector<64x128xbf16>
      %58 = arith.extf %57 : vector<64x128xbf16> to vector<64x128xf32>
      %59 = vector.broadcast %56 : vector<1x128xf32> to vector<64x128xf32>
      %60 = arith.mulf %58, %59 : vector<64x128xf32>
      %61 = vector.shape_cast %60 : vector<64x128xf32> to vector<8x8x128xf32>
      %cst_39 = arith.constant 0.000000e+00 : f32
      %62 = vector.broadcast %cst_39 : f32 to vector<14x14x1xf32>
      %c0_40 = arith.constant 0 : index
      %c0_41 = arith.constant 0 : index
      %c0_42 = arith.constant 0 : index
      %63 = vector.load %arg17[%c0_40, %c0_41, %c0_42] : memref<14x14x1xf32, #tpu.memory_space<vmem>>, vector<14x14x1xf32>
      tpu.vector_store %arg17[%c0_40, %c0_41, %c0_42], %62 {strides = array<i32>} : memref<14x14x1xf32, #tpu.memory_space<vmem>>, vector<14x14x1xf32>,
      %cst_43 = arith.constant 0.000000e+00 : f32
      %64 = vector.broadcast %cst_43 : f32 to vector<14x14x1xf32>
      %c0_44 = arith.constant 0 : index
      %c0_45 = arith.constant 0 : index
      %c0_46 = arith.constant 0 : index
      %65 = vector.load %arg18[%c0_44, %c0_45, %c0_46] : memref<14x14x1xf32, #tpu.memory_space<vmem>>, vector<14x14x1xf32>
      tpu.vector_store %arg18[%c0_44, %c0_45, %c0_46], %64 {strides = array<i32>} : memref<14x14x1xf32, #tpu.memory_space<vmem>>, vector<14x14x1xf32>,
      %cst_47 = arith.constant dense<0.000000e+00> : vector<8x8xf32>
      %66 = vector.multi_reduction <add>, %61, %cst_47 [2] : vector<8x8x128xf32> to vector<8x8xf32>
      %67 = vector.shape_cast %66 : vector<8x8xf32> to vector<8x8x1xf32>
      %cst_48 = arith.constant 1.280000e+02 : f32
      %68 = vector.broadcast %cst_48 : f32 to vector<8x8x1xf32>
      %69 = arith.divf %67, %68 : vector<8x8x1xf32>
      %c3 = arith.constant 3 : index
      %c3_49 = arith.constant 3 : index
      %c0_50 = arith.constant 0 : index
      %70 = vector.load %arg17[%c3, %c3_49, %c0_50] : memref<14x14x1xf32, #tpu.memory_space<vmem>>, vector<8x8x1xf32>
      tpu.vector_store %arg17[%c3, %c3_49, %c0_50], %69 {strides = array<i32>} : memref<14x14x1xf32, #tpu.memory_space<vmem>>, vector<8x8x1xf32>,
      %cst_51 = arith.constant dense<0xFF800000> : vector<8x8xf32>
      %71 = vector.multi_reduction <maximumf>, %61, %cst_51 [2] : vector<8x8x128xf32> to vector<8x8xf32>
      %72 = vector.shape_cast %71 : vector<8x8xf32> to vector<8x8x1xf32>
      %c3_52 = arith.constant 3 : index
      %c3_53 = arith.constant 3 : index
      %c0_54 = arith.constant 0 : index
      %73 = vector.load %arg18[%c3_52, %c3_53, %c0_54] : memref<14x14x1xf32, #tpu.memory_space<vmem>>, vector<8x8x1xf32>
      tpu.vector_store %arg18[%c3_52, %c3_53, %c0_54], %72 {strides = array<i32>} : memref<14x14x1xf32, #tpu.memory_space<vmem>>, vector<8x8x1xf32>,
      %c0_55 = arith.constant 0 : index
      %74 = memref.load %arg10[%c0_55] : memref<1xf32, #tpu.memory_space<smem>>
      %75 = vector.broadcast %74 : f32 to vector<8x8x1xf32>
      %c0_56 = arith.constant 0 : index
      %c0_57 = arith.constant 0 : index
      %c0_58 = arith.constant 0 : index
      %76 = vector.load %arg17[%c0_56, %c0_57, %c0_58] : memref<14x14x1xf32, #tpu.memory_space<vmem>>, vector<8x8x1xf32>
      %c0_59 = arith.constant 0 : index
      %77 = memref.load %arg9[%c0_59] : memref<98xf32, #tpu.memory_space<smem>>
      %78 = vector.broadcast %77 : f32 to vector<8x8x1xf32>
      %79 = arith.mulf %76, %78 : vector<8x8x1xf32>
      %80 = arith.addf %75, %79 : vector<8x8x1xf32>
      %c0_60 = arith.constant 0 : index
      %c0_61 = arith.constant 0 : index
      %c0_62 = arith.constant 0 : index
      %81 = vector.load %arg18[%c0_60, %c0_61, %c0_62] : memref<14x14x1xf32, #tpu.memory_space<vmem>>, vector<8x8x1xf32>
      %c1_63 = arith.constant 1 : index
      %82 = memref.load %arg9[%c1_63] : memref<98xf32, #tpu.memory_space<smem>>
      %83 = vector.broadcast %82 : f32 to vector<8x8x1xf32>
      %84 = arith.mulf %81, %83 : vector<8x8x1xf32>
      %85 = arith.addf %80, %84 : vector<8x8x1xf32>
      %c0_64 = arith.constant 0 : index
      %c1_65 = arith.constant 1 : index
      %c0_66 = arith.constant 0 : index
      %86 = vector.load %arg17[%c0_64, %c1_65, %c0_66] : memref<14x14x1xf32, #tpu.memory_space<vmem>>, vector<8x8x1xf32>
      %c2 = arith.constant 2 : index
      %87 = memref.load %arg9[%c2] : memref<98xf32, #tpu.memory_space<smem>>
      %88 = vector.broadcast %87 : f32 to vector<8x8x1xf32>
      %89 = arith.mulf %86, %88 : vector<8x8x1xf32>
      %90 = arith.addf %85, %89 : vector<8x8x1xf32>
      %c0_67 = arith.constant 0 : index
      %c1_68 = arith.constant 1 : index
      %c0_69 = arith.constant 0 : index
      %91 = vector.load %arg18[%c0_67, %c1_68, %c0_69] : memref<14x14x1xf32, #tpu.memory_space<vmem>>, vector<8x8x1xf32>
      %c3_70 = arith.constant 3 : index
      %92 = memref.load %arg9[%c3_70] : memref<98xf32, #tpu.memory_space<smem>>
      %93 = vector.broadcast %92 : f32 to vector<8x8x1xf32>
      %94 = arith.mulf %91, %93 : vector<8x8x1xf32>
      %95 = arith.addf %90, %94 : vector<8x8x1xf32>
      %c0_71 = arith.constant 0 : index
      %c2_72 = arith.constant 2 : index
      %c0_73 = arith.constant 0 : index
      %96 = vector.load %arg17[%c0_71, %c2_72, %c0_73] : memref<14x14x1xf32, #tpu.memory_space<vmem>>, vector<8x8x1xf32>
      %c4 = arith.constant 4 : index
      %97 = memref.load %arg9[%c4] : memref<98xf32, #tpu.memory_space<smem>>
      %98 = vector.broadcast %97 : f32 to vector<8x8x1xf32>
      %99 = arith.mulf %96, %98 : vector<8x8x1xf32>
      %100 = arith.addf %95, %99 : vector<8x8x1xf32>
      %c0_74 = arith.constant 0 : index
      %c2_75 = arith.constant 2 : index
      %c0_76 = arith.constant 0 : index
      %101 = vector.load %arg18[%c0_74, %c2_75, %c0_76] : memref<14x14x1xf32, #tpu.memory_space<vmem>>, vector<8x8x1xf32>
      %c5 = arith.constant 5 : index
      %102 = memref.load %arg9[%c5] : memref<98xf32, #tpu.memory_space<smem>>
      %103 = vector.broadcast %102 : f32 to vector<8x8x1xf32>
      %104 = arith.mulf %101, %103 : vector<8x8x1xf32>
      %105 = arith.addf %100, %104 : vector<8x8x1xf32>
      %c0_77 = arith.constant 0 : index
      %c3_78 = arith.constant 3 : index
      %c0_79 = arith.constant 0 : index
      %106 = vector.load %arg17[%c0_77, %c3_78, %c0_79] : memref<14x14x1xf32, #tpu.memory_space<vmem>>, vector<8x8x1xf32>
      %c6 = arith.constant 6 : index
      %107 = memref.load %arg9[%c6] : memref<98xf32, #tpu.memory_space<smem>>
      %108 = vector.broadcast %107 : f32 to vector<8x8x1xf32>
      %109 = arith.mulf %106, %108 : vector<8x8x1xf32>
      %110 = arith.addf %105, %109 : vector<8x8x1xf32>
      %c0_80 = arith.constant 0 : index
      %c3_81 = arith.constant 3 : index
      %c0_82 = arith.constant 0 : index
      %111 = vector.load %arg18[%c0_80, %c3_81, %c0_82] : memref<14x14x1xf32, #tpu.memory_space<vmem>>, vector<8x8x1xf32>
      %c7 = arith.constant 7 : index
      %112 = memref.load %arg9[%c7] : memref<98xf32, #tpu.memory_space<smem>>
      %113 = vector.broadcast %112 : f32 to vector<8x8x1xf32>
      %114 = arith.mulf %111, %113 : vector<8x8x1xf32>
      %115 = arith.addf %110, %114 : vector<8x8x1xf32>
      %c0_83 = arith.constant 0 : index
      %c4_84 = arith.constant 4 : index
      %c0_85 = arith.constant 0 : index
      %116 = vector.load %arg17[%c0_83, %c4_84, %c0_85] : memref<14x14x1xf32, #tpu.memory_space<vmem>>, vector<8x8x1xf32>
      %c8 = arith.constant 8 : index
      %117 = memref.load %arg9[%c8] : memref<98xf32, #tpu.memory_space<smem>>
      %118 = vector.broadcast %117 : f32 to vector<8x8x1xf32>
      %119 = arith.mulf %116, %118 : vector<8x8x1xf32>
      %120 = arith.addf %115, %119 : vector<8x8x1xf32>
      %c0_86 = arith.constant 0 : index
      %c4_87 = arith.constant 4 : index
      %c0_88 = arith.constant 0 : index
      %121 = vector.load %arg18[%c0_86, %c4_87, %c0_88] : memref<14x14x1xf32, #tpu.memory_space<vmem>>, vector<8x8x1xf32>
      %c9 = arith.constant 9 : index
      %122 = memref.load %arg9[%c9] : memref<98xf32, #tpu.memory_space<smem>>
      %123 = vector.broadcast %122 : f32 to vector<8x8x1xf32>
      %124 = arith.mulf %121, %123 : vector<8x8x1xf32>
      %125 = arith.addf %120, %124 : vector<8x8x1xf32>
      %c0_89 = arith.constant 0 : index
      %c5_90 = arith.constant 5 : index
      %c0_91 = arith.constant 0 : index
      %126 = vector.load %arg17[%c0_89, %c5_90, %c0_91] : memref<14x14x1xf32, #tpu.memory_space<vmem>>, vector<8x8x1xf32>
      %c10 = arith.constant 10 : index
      %127 = memref.load %arg9[%c10] : memref<98xf32, #tpu.memory_space<smem>>
      %128 = vector.broadcast %127 : f32 to vector<8x8x1xf32>
      %129 = arith.mulf %126, %128 : vector<8x8x1xf32>
      %130 = arith.addf %125, %129 : vector<8x8x1xf32>
      %c0_92 = arith.constant 0 : index
      %c5_93 = arith.constant 5 : index
      %c0_94 = arith.constant 0 : index
      %131 = vector.load %arg18[%c0_92, %c5_93, %c0_94] : memref<14x14x1xf32, #tpu.memory_space<vmem>>, vector<8x8x1xf32>
      %c11 = arith.constant 11 : index
      %132 = memref.load %arg9[%c11] : memref<98xf32, #tpu.memory_space<smem>>
      %133 = vector.broadcast %132 : f32 to vector<8x8x1xf32>
      %134 = arith.mulf %131, %133 : vector<8x8x1xf32>
      %135 = arith.addf %130, %134 : vector<8x8x1xf32>
      %c0_95 = arith.constant 0 : index
      %c6_96 = arith.constant 6 : index
      %c0_97 = arith.constant 0 : index
      %136 = vector.load %arg17[%c0_95, %c6_96, %c0_97] : memref<14x14x1xf32, #tpu.memory_space<vmem>>, vector<8x8x1xf32>
      %c12 = arith.constant 12 : index
      %137 = memref.load %arg9[%c12] : memref<98xf32, #tpu.memory_space<smem>>
      %138 = vector.broadcast %137 : f32 to vector<8x8x1xf32>
      %139 = arith.mulf %136, %138 : vector<8x8x1xf32>
      %140 = arith.addf %135, %139 : vector<8x8x1xf32>
      %c0_98 = arith.constant 0 : index
      %c6_99 = arith.constant 6 : index
      %c0_100 = arith.constant 0 : index
      %141 = vector.load %arg18[%c0_98, %c6_99, %c0_100] : memref<14x14x1xf32, #tpu.memory_space<vmem>>, vector<8x8x1xf32>
      %c13 = arith.constant 13 : index
      %142 = memref.load %arg9[%c13] : memref<98xf32, #tpu.memory_space<smem>>
      %143 = vector.broadcast %142 : f32 to vector<8x8x1xf32>
      %144 = arith.mulf %141, %143 : vector<8x8x1xf32>
      %145 = arith.addf %140, %144 : vector<8x8x1xf32>
      %c1_101 = arith.constant 1 : index
      %c0_102 = arith.constant 0 : index
      %c0_103 = arith.constant 0 : index
      %146 = vector.load %arg17[%c1_101, %c0_102, %c0_103] : memref<14x14x1xf32, #tpu.memory_space<vmem>>, vector<8x8x1xf32>
      %c14 = arith.constant 14 : index
      %147 = memref.load %arg9[%c14] : memref<98xf32, #tpu.memory_space<smem>>
      %148 = vector.broadcast %147 : f32 to vector<8x8x1xf32>
      %149 = arith.mulf %146, %148 : vector<8x8x1xf32>
      %150 = arith.addf %145, %149 : vector<8x8x1xf32>
      %c1_104 = arith.constant 1 : index
      %c0_105 = arith.constant 0 : index
      %c0_106 = arith.constant 0 : index
      %151 = vector.load %arg18[%c1_104, %c0_105, %c0_106] : memref<14x14x1xf32, #tpu.memory_space<vmem>>, vector<8x8x1xf32>
      %c15 = arith.constant 15 : index
      %152 = memref.load %arg9[%c15] : memref<98xf32, #tpu.memory_space<smem>>
      %153 = vector.broadcast %152 : f32 to vector<8x8x1xf32>
      %154 = arith.mulf %151, %153 : vector<8x8x1xf32>
      %155 = arith.addf %150, %154 : vector<8x8x1xf32>
      %c1_107 = arith.constant 1 : index
      %c1_108 = arith.constant 1 : index
      %c0_109 = arith.constant 0 : index
      %156 = vector.load %arg17[%c1_107, %c1_108, %c0_109] : memref<14x14x1xf32, #tpu.memory_space<vmem>>, vector<8x8x1xf32>
      %c16 = arith.constant 16 : index
      %157 = memref.load %arg9[%c16] : memref<98xf32, #tpu.memory_space<smem>>
      %158 = vector.broadcast %157 : f32 to vector<8x8x1xf32>
      %159 = arith.mulf %156, %158 : vector<8x8x1xf32>
      %160 = arith.addf %155, %159 : vector<8x8x1xf32>
      %c1_110 = arith.constant 1 : index
      %c1_111 = arith.constant 1 : index
      %c0_112 = arith.constant 0 : index
      %161 = vector.load %arg18[%c1_110, %c1_111, %c0_112] : memref<14x14x1xf32, #tpu.memory_space<vmem>>, vector<8x8x1xf32>
      %c17 = arith.constant 17 : index
      %162 = memref.load %arg9[%c17] : memref<98xf32, #tpu.memory_space<smem>>
      %163 = vector.broadcast %162 : f32 to vector<8x8x1xf32>
      %164 = arith.mulf %161, %163 : vector<8x8x1xf32>
      %165 = arith.addf %160, %164 : vector<8x8x1xf32>
      %c1_113 = arith.constant 1 : index
      %c2_114 = arith.constant 2 : index
      %c0_115 = arith.constant 0 : index
      %166 = vector.load %arg17[%c1_113, %c2_114, %c0_115] : memref<14x14x1xf32, #tpu.memory_space<vmem>>, vector<8x8x1xf32>
      %c18 = arith.constant 18 : index
      %167 = memref.load %arg9[%c18] : memref<98xf32, #tpu.memory_space<smem>>
      %168 = vector.broadcast %167 : f32 to vector<8x8x1xf32>
      %169 = arith.mulf %166, %168 : vector<8x8x1xf32>
      %170 = arith.addf %165, %169 : vector<8x8x1xf32>
      %c1_116 = arith.constant 1 : index
      %c2_117 = arith.constant 2 : index
      %c0_118 = arith.constant 0 : index
      %171 = vector.load %arg18[%c1_116, %c2_117, %c0_118] : memref<14x14x1xf32, #tpu.memory_space<vmem>>, vector<8x8x1xf32>
      %c19 = arith.constant 19 : index
      %172 = memref.load %arg9[%c19] : memref<98xf32, #tpu.memory_space<smem>>
      %173 = vector.broadcast %172 : f32 to vector<8x8x1xf32>
      %174 = arith.mulf %171, %173 : vector<8x8x1xf32>
      %175 = arith.addf %170, %174 : vector<8x8x1xf32>
      %c1_119 = arith.constant 1 : index
      %c3_120 = arith.constant 3 : index
      %c0_121 = arith.constant 0 : index
      %176 = vector.load %arg17[%c1_119, %c3_120, %c0_121] : memref<14x14x1xf32, #tpu.memory_space<vmem>>, vector<8x8x1xf32>
      %c20 = arith.constant 20 : index
      %177 = memref.load %arg9[%c20] : memref<98xf32, #tpu.memory_space<smem>>
      %178 = vector.broadcast %177 : f32 to vector<8x8x1xf32>
      %179 = arith.mulf %176, %178 : vector<8x8x1xf32>
      %180 = arith.addf %175, %179 : vector<8x8x1xf32>
      %c1_122 = arith.constant 1 : index
      %c3_123 = arith.constant 3 : index
      %c0_124 = arith.constant 0 : index
      %181 = vector.load %arg18[%c1_122, %c3_123, %c0_124] : memref<14x14x1xf32, #tpu.memory_space<vmem>>, vector<8x8x1xf32>
      %c21 = arith.constant 21 : index
      %182 = memref.load %arg9[%c21] : memref<98xf32, #tpu.memory_space<smem>>
      %183 = vector.broadcast %182 : f32 to vector<8x8x1xf32>
      %184 = arith.mulf %181, %183 : vector<8x8x1xf32>
      %185 = arith.addf %180, %184 : vector<8x8x1xf32>
      %c1_125 = arith.constant 1 : index
      %c4_126 = arith.constant 4 : index
      %c0_127 = arith.constant 0 : index
      %186 = vector.load %arg17[%c1_125, %c4_126, %c0_127] : memref<14x14x1xf32, #tpu.memory_space<vmem>>, vector<8x8x1xf32>
      %c22 = arith.constant 22 : index
      %187 = memref.load %arg9[%c22] : memref<98xf32, #tpu.memory_space<smem>>
      %188 = vector.broadcast %187 : f32 to vector<8x8x1xf32>
      %189 = arith.mulf %186, %188 : vector<8x8x1xf32>
      %190 = arith.addf %185, %189 : vector<8x8x1xf32>
      %c1_128 = arith.constant 1 : index
      %c4_129 = arith.constant 4 : index
      %c0_130 = arith.constant 0 : index
      %191 = vector.load %arg18[%c1_128, %c4_129, %c0_130] : memref<14x14x1xf32, #tpu.memory_space<vmem>>, vector<8x8x1xf32>
      %c23 = arith.constant 23 : index
      %192 = memref.load %arg9[%c23] : memref<98xf32, #tpu.memory_space<smem>>
      %193 = vector.broadcast %192 : f32 to vector<8x8x1xf32>
      %194 = arith.mulf %191, %193 : vector<8x8x1xf32>
      %195 = arith.addf %190, %194 : vector<8x8x1xf32>
      %c1_131 = arith.constant 1 : index
      %c5_132 = arith.constant 5 : index
      %c0_133 = arith.constant 0 : index
      %196 = vector.load %arg17[%c1_131, %c5_132, %c0_133] : memref<14x14x1xf32, #tpu.memory_space<vmem>>, vector<8x8x1xf32>
      %c24 = arith.constant 24 : index
      %197 = memref.load %arg9[%c24] : memref<98xf32, #tpu.memory_space<smem>>
      %198 = vector.broadcast %197 : f32 to vector<8x8x1xf32>
      %199 = arith.mulf %196, %198 : vector<8x8x1xf32>
      %200 = arith.addf %195, %199 : vector<8x8x1xf32>
      %c1_134 = arith.constant 1 : index
      %c5_135 = arith.constant 5 : index
      %c0_136 = arith.constant 0 : index
      %201 = vector.load %arg18[%c1_134, %c5_135, %c0_136] : memref<14x14x1xf32, #tpu.memory_space<vmem>>, vector<8x8x1xf32>
      %c25 = arith.constant 25 : index
      %202 = memref.load %arg9[%c25] : memref<98xf32, #tpu.memory_space<smem>>
      %203 = vector.broadcast %202 : f32 to vector<8x8x1xf32>
      %204 = arith.mulf %201, %203 : vector<8x8x1xf32>
      %205 = arith.addf %200, %204 : vector<8x8x1xf32>
      %c1_137 = arith.constant 1 : index
      %c6_138 = arith.constant 6 : index
      %c0_139 = arith.constant 0 : index
      %206 = vector.load %arg17[%c1_137, %c6_138, %c0_139] : memref<14x14x1xf32, #tpu.memory_space<vmem>>, vector<8x8x1xf32>
      %c26 = arith.constant 26 : index
      %207 = memref.load %arg9[%c26] : memref<98xf32, #tpu.memory_space<smem>>
      %208 = vector.broadcast %207 : f32 to vector<8x8x1xf32>
      %209 = arith.mulf %206, %208 : vector<8x8x1xf32>
      %210 = arith.addf %205, %209 : vector<8x8x1xf32>
      %c1_140 = arith.constant 1 : index
      %c6_141 = arith.constant 6 : index
      %c0_142 = arith.constant 0 : index
      %211 = vector.load %arg18[%c1_140, %c6_141, %c0_142] : memref<14x14x1xf32, #tpu.memory_space<vmem>>, vector<8x8x1xf32>
      %c27 = arith.constant 27 : index
      %212 = memref.load %arg9[%c27] : memref<98xf32, #tpu.memory_space<smem>>
      %213 = vector.broadcast %212 : f32 to vector<8x8x1xf32>
      %214 = arith.mulf %211, %213 : vector<8x8x1xf32>
      %215 = arith.addf %210, %214 : vector<8x8x1xf32>
      %c2_143 = arith.constant 2 : index
      %c0_144 = arith.constant 0 : index
      %c0_145 = arith.constant 0 : index
      %216 = vector.load %arg17[%c2_143, %c0_144, %c0_145] : memref<14x14x1xf32, #tpu.memory_space<vmem>>, vector<8x8x1xf32>
      %c28 = arith.constant 28 : index
      %217 = memref.load %arg9[%c28] : memref<98xf32, #tpu.memory_space<smem>>
      %218 = vector.broadcast %217 : f32 to vector<8x8x1xf32>
      %219 = arith.mulf %216, %218 : vector<8x8x1xf32>
      %220 = arith.addf %215, %219 : vector<8x8x1xf32>
      %c2_146 = arith.constant 2 : index
      %c0_147 = arith.constant 0 : index
      %c0_148 = arith.constant 0 : index
      %221 = vector.load %arg18[%c2_146, %c0_147, %c0_148] : memref<14x14x1xf32, #tpu.memory_space<vmem>>, vector<8x8x1xf32>
      %c29 = arith.constant 29 : index
      %222 = memref.load %arg9[%c29] : memref<98xf32, #tpu.memory_space<smem>>
      %223 = vector.broadcast %222 : f32 to vector<8x8x1xf32>
      %224 = arith.mulf %221, %223 : vector<8x8x1xf32>
      %225 = arith.addf %220, %224 : vector<8x8x1xf32>
      %c2_149 = arith.constant 2 : index
      %c1_150 = arith.constant 1 : index
      %c0_151 = arith.constant 0 : index
      %226 = vector.load %arg17[%c2_149, %c1_150, %c0_151] : memref<14x14x1xf32, #tpu.memory_space<vmem>>, vector<8x8x1xf32>
      %c30 = arith.constant 30 : index
      %227 = memref.load %arg9[%c30] : memref<98xf32, #tpu.memory_space<smem>>
      %228 = vector.broadcast %227 : f32 to vector<8x8x1xf32>
      %229 = arith.mulf %226, %228 : vector<8x8x1xf32>
      %230 = arith.addf %225, %229 : vector<8x8x1xf32>
      %c2_152 = arith.constant 2 : index
      %c1_153 = arith.constant 1 : index
      %c0_154 = arith.constant 0 : index
      %231 = vector.load %arg18[%c2_152, %c1_153, %c0_154] : memref<14x14x1xf32, #tpu.memory_space<vmem>>, vector<8x8x1xf32>
      %c31 = arith.constant 31 : index
      %232 = memref.load %arg9[%c31] : memref<98xf32, #tpu.memory_space<smem>>
      %233 = vector.broadcast %232 : f32 to vector<8x8x1xf32>
      %234 = arith.mulf %231, %233 : vector<8x8x1xf32>
      %235 = arith.addf %230, %234 : vector<8x8x1xf32>
      %c2_155 = arith.constant 2 : index
      %c2_156 = arith.constant 2 : index
      %c0_157 = arith.constant 0 : index
      %236 = vector.load %arg17[%c2_155, %c2_156, %c0_157] : memref<14x14x1xf32, #tpu.memory_space<vmem>>, vector<8x8x1xf32>
      %c32 = arith.constant 32 : index
      %237 = memref.load %arg9[%c32] : memref<98xf32, #tpu.memory_space<smem>>
      %238 = vector.broadcast %237 : f32 to vector<8x8x1xf32>
      %239 = arith.mulf %236, %238 : vector<8x8x1xf32>
      %240 = arith.addf %235, %239 : vector<8x8x1xf32>
      %c2_158 = arith.constant 2 : index
      %c2_159 = arith.constant 2 : index
      %c0_160 = arith.constant 0 : index
      %241 = vector.load %arg18[%c2_158, %c2_159, %c0_160] : memref<14x14x1xf32, #tpu.memory_space<vmem>>, vector<8x8x1xf32>
      %c33 = arith.constant 33 : index
      %242 = memref.load %arg9[%c33] : memref<98xf32, #tpu.memory_space<smem>>
      %243 = vector.broadcast %242 : f32 to vector<8x8x1xf32>
      %244 = arith.mulf %241, %243 : vector<8x8x1xf32>
      %245 = arith.addf %240, %244 : vector<8x8x1xf32>
      %c2_161 = arith.constant 2 : index
      %c3_162 = arith.constant 3 : index
      %c0_163 = arith.constant 0 : index
      %246 = vector.load %arg17[%c2_161, %c3_162, %c0_163] : memref<14x14x1xf32, #tpu.memory_space<vmem>>, vector<8x8x1xf32>
      %c34 = arith.constant 34 : index
      %247 = memref.load %arg9[%c34] : memref<98xf32, #tpu.memory_space<smem>>
      %248 = vector.broadcast %247 : f32 to vector<8x8x1xf32>
      %249 = arith.mulf %246, %248 : vector<8x8x1xf32>
      %250 = arith.addf %245, %249 : vector<8x8x1xf32>
      %c2_164 = arith.constant 2 : index
      %c3_165 = arith.constant 3 : index
      %c0_166 = arith.constant 0 : index
      %251 = vector.load %arg18[%c2_164, %c3_165, %c0_166] : memref<14x14x1xf32, #tpu.memory_space<vmem>>, vector<8x8x1xf32>
      %c35 = arith.constant 35 : index
      %252 = memref.load %arg9[%c35] : memref<98xf32, #tpu.memory_space<smem>>
      %253 = vector.broadcast %252 : f32 to vector<8x8x1xf32>
      %254 = arith.mulf %251, %253 : vector<8x8x1xf32>
      %255 = arith.addf %250, %254 : vector<8x8x1xf32>
      %c2_167 = arith.constant 2 : index
      %c4_168 = arith.constant 4 : index
      %c0_169 = arith.constant 0 : index
      %256 = vector.load %arg17[%c2_167, %c4_168, %c0_169] : memref<14x14x1xf32, #tpu.memory_space<vmem>>, vector<8x8x1xf32>
      %c36 = arith.constant 36 : index
      %257 = memref.load %arg9[%c36] : memref<98xf32, #tpu.memory_space<smem>>
      %258 = vector.broadcast %257 : f32 to vector<8x8x1xf32>
      %259 = arith.mulf %256, %258 : vector<8x8x1xf32>
      %260 = arith.addf %255, %259 : vector<8x8x1xf32>
      %c2_170 = arith.constant 2 : index
      %c4_171 = arith.constant 4 : index
      %c0_172 = arith.constant 0 : index
      %261 = vector.load %arg18[%c2_170, %c4_171, %c0_172] : memref<14x14x1xf32, #tpu.memory_space<vmem>>, vector<8x8x1xf32>
      %c37 = arith.constant 37 : index
      %262 = memref.load %arg9[%c37] : memref<98xf32, #tpu.memory_space<smem>>
      %263 = vector.broadcast %262 : f32 to vector<8x8x1xf32>
      %264 = arith.mulf %261, %263 : vector<8x8x1xf32>
      %265 = arith.addf %260, %264 : vector<8x8x1xf32>
      %c2_173 = arith.constant 2 : index
      %c5_174 = arith.constant 5 : index
      %c0_175 = arith.constant 0 : index
      %266 = vector.load %arg17[%c2_173, %c5_174, %c0_175] : memref<14x14x1xf32, #tpu.memory_space<vmem>>, vector<8x8x1xf32>
      %c38 = arith.constant 38 : index
      %267 = memref.load %arg9[%c38] : memref<98xf32, #tpu.memory_space<smem>>
      %268 = vector.broadcast %267 : f32 to vector<8x8x1xf32>
      %269 = arith.mulf %266, %268 : vector<8x8x1xf32>
      %270 = arith.addf %265, %269 : vector<8x8x1xf32>
      %c2_176 = arith.constant 2 : index
      %c5_177 = arith.constant 5 : index
      %c0_178 = arith.constant 0 : index
      %271 = vector.load %arg18[%c2_176, %c5_177, %c0_178] : memref<14x14x1xf32, #tpu.memory_space<vmem>>, vector<8x8x1xf32>
      %c39 = arith.constant 39 : index
      %272 = memref.load %arg9[%c39] : memref<98xf32, #tpu.memory_space<smem>>
      %273 = vector.broadcast %272 : f32 to vector<8x8x1xf32>
      %274 = arith.mulf %271, %273 : vector<8x8x1xf32>
      %275 = arith.addf %270, %274 : vector<8x8x1xf32>
      %c2_179 = arith.constant 2 : index
      %c6_180 = arith.constant 6 : index
      %c0_181 = arith.constant 0 : index
      %276 = vector.load %arg17[%c2_179, %c6_180, %c0_181] : memref<14x14x1xf32, #tpu.memory_space<vmem>>, vector<8x8x1xf32>
      %c40 = arith.constant 40 : index
      %277 = memref.load %arg9[%c40] : memref<98xf32, #tpu.memory_space<smem>>
      %278 = vector.broadcast %277 : f32 to vector<8x8x1xf32>
      %279 = arith.mulf %276, %278 : vector<8x8x1xf32>
      %280 = arith.addf %275, %279 : vector<8x8x1xf32>
      %c2_182 = arith.constant 2 : index
      %c6_183 = arith.constant 6 : index
      %c0_184 = arith.constant 0 : index
      %281 = vector.load %arg18[%c2_182, %c6_183, %c0_184] : memref<14x14x1xf32, #tpu.memory_space<vmem>>, vector<8x8x1xf32>
      %c41 = arith.constant 41 : index
      %282 = memref.load %arg9[%c41] : memref<98xf32, #tpu.memory_space<smem>>
      %283 = vector.broadcast %282 : f32 to vector<8x8x1xf32>
      %284 = arith.mulf %281, %283 : vector<8x8x1xf32>
      %285 = arith.addf %280, %284 : vector<8x8x1xf32>
      %c3_185 = arith.constant 3 : index
      %c0_186 = arith.constant 0 : index
      %c0_187 = arith.constant 0 : index
      %286 = vector.load %arg17[%c3_185, %c0_186, %c0_187] : memref<14x14x1xf32, #tpu.memory_space<vmem>>, vector<8x8x1xf32>
      %c42 = arith.constant 42 : index
      %287 = memref.load %arg9[%c42] : memref<98xf32, #tpu.memory_space<smem>>
      %288 = vector.broadcast %287 : f32 to vector<8x8x1xf32>
      %289 = arith.mulf %286, %288 : vector<8x8x1xf32>
      %290 = arith.addf %285, %289 : vector<8x8x1xf32>
      %c3_188 = arith.constant 3 : index
      %c0_189 = arith.constant 0 : index
      %c0_190 = arith.constant 0 : index
      %291 = vector.load %arg18[%c3_188, %c0_189, %c0_190] : memref<14x14x1xf32, #tpu.memory_space<vmem>>, vector<8x8x1xf32>
      %c43 = arith.constant 43 : index
      %292 = memref.load %arg9[%c43] : memref<98xf32, #tpu.memory_space<smem>>
      %293 = vector.broadcast %292 : f32 to vector<8x8x1xf32>
      %294 = arith.mulf %291, %293 : vector<8x8x1xf32>
      %295 = arith.addf %290, %294 : vector<8x8x1xf32>
      %c3_191 = arith.constant 3 : index
      %c1_192 = arith.constant 1 : index
      %c0_193 = arith.constant 0 : index
      %296 = vector.load %arg17[%c3_191, %c1_192, %c0_193] : memref<14x14x1xf32, #tpu.memory_space<vmem>>, vector<8x8x1xf32>
      %c44 = arith.constant 44 : index
      %297 = memref.load %arg9[%c44] : memref<98xf32, #tpu.memory_space<smem>>
      %298 = vector.broadcast %297 : f32 to vector<8x8x1xf32>
      %299 = arith.mulf %296, %298 : vector<8x8x1xf32>
      %300 = arith.addf %295, %299 : vector<8x8x1xf32>
      %c3_194 = arith.constant 3 : index
      %c1_195 = arith.constant 1 : index
      %c0_196 = arith.constant 0 : index
      %301 = vector.load %arg18[%c3_194, %c1_195, %c0_196] : memref<14x14x1xf32, #tpu.memory_space<vmem>>, vector<8x8x1xf32>
      %c45 = arith.constant 45 : index
      %302 = memref.load %arg9[%c45] : memref<98xf32, #tpu.memory_space<smem>>
      %303 = vector.broadcast %302 : f32 to vector<8x8x1xf32>
      %304 = arith.mulf %301, %303 : vector<8x8x1xf32>
      %305 = arith.addf %300, %304 : vector<8x8x1xf32>
      %c3_197 = arith.constant 3 : index
      %c2_198 = arith.constant 2 : index
      %c0_199 = arith.constant 0 : index
      %306 = vector.load %arg17[%c3_197, %c2_198, %c0_199] : memref<14x14x1xf32, #tpu.memory_space<vmem>>, vector<8x8x1xf32>
      %c46 = arith.constant 46 : index
      %307 = memref.load %arg9[%c46] : memref<98xf32, #tpu.memory_space<smem>>
      %308 = vector.broadcast %307 : f32 to vector<8x8x1xf32>
      %309 = arith.mulf %306, %308 : vector<8x8x1xf32>
      %310 = arith.addf %305, %309 : vector<8x8x1xf32>
      %c3_200 = arith.constant 3 : index
      %c2_201 = arith.constant 2 : index
      %c0_202 = arith.constant 0 : index
      %311 = vector.load %arg18[%c3_200, %c2_201, %c0_202] : memref<14x14x1xf32, #tpu.memory_space<vmem>>, vector<8x8x1xf32>
      %c47 = arith.constant 47 : index
      %312 = memref.load %arg9[%c47] : memref<98xf32, #tpu.memory_space<smem>>
      %313 = vector.broadcast %312 : f32 to vector<8x8x1xf32>
      %314 = arith.mulf %311, %313 : vector<8x8x1xf32>
      %315 = arith.addf %310, %314 : vector<8x8x1xf32>
      %c3_203 = arith.constant 3 : index
      %c3_204 = arith.constant 3 : index
      %c0_205 = arith.constant 0 : index
      %316 = vector.load %arg17[%c3_203, %c3_204, %c0_205] : memref<14x14x1xf32, #tpu.memory_space<vmem>>, vector<8x8x1xf32>
      %c48 = arith.constant 48 : index
      %317 = memref.load %arg9[%c48] : memref<98xf32, #tpu.memory_space<smem>>
      %318 = vector.broadcast %317 : f32 to vector<8x8x1xf32>
      %319 = arith.mulf %316, %318 : vector<8x8x1xf32>
      %320 = arith.addf %315, %319 : vector<8x8x1xf32>
      %c3_206 = arith.constant 3 : index
      %c3_207 = arith.constant 3 : index
      %c0_208 = arith.constant 0 : index
      %321 = vector.load %arg18[%c3_206, %c3_207, %c0_208] : memref<14x14x1xf32, #tpu.memory_space<vmem>>, vector<8x8x1xf32>
      %c49 = arith.constant 49 : index
      %322 = memref.load %arg9[%c49] : memref<98xf32, #tpu.memory_space<smem>>
      %323 = vector.broadcast %322 : f32 to vector<8x8x1xf32>
      %324 = arith.mulf %321, %323 : vector<8x8x1xf32>
      %325 = arith.addf %320, %324 : vector<8x8x1xf32>
      %c3_209 = arith.constant 3 : index
      %c4_210 = arith.constant 4 : index
      %c0_211 = arith.constant 0 : index
      %326 = vector.load %arg17[%c3_209, %c4_210, %c0_211] : memref<14x14x1xf32, #tpu.memory_space<vmem>>, vector<8x8x1xf32>
      %c50 = arith.constant 50 : index
      %327 = memref.load %arg9[%c50] : memref<98xf32, #tpu.memory_space<smem>>
      %328 = vector.broadcast %327 : f32 to vector<8x8x1xf32>
      %329 = arith.mulf %326, %328 : vector<8x8x1xf32>
      %330 = arith.addf %325, %329 : vector<8x8x1xf32>
      %c3_212 = arith.constant 3 : index
      %c4_213 = arith.constant 4 : index
      %c0_214 = arith.constant 0 : index
      %331 = vector.load %arg18[%c3_212, %c4_213, %c0_214] : memref<14x14x1xf32, #tpu.memory_space<vmem>>, vector<8x8x1xf32>
      %c51 = arith.constant 51 : index
      %332 = memref.load %arg9[%c51] : memref<98xf32, #tpu.memory_space<smem>>
      %333 = vector.broadcast %332 : f32 to vector<8x8x1xf32>
      %334 = arith.mulf %331, %333 : vector<8x8x1xf32>
      %335 = arith.addf %330, %334 : vector<8x8x1xf32>
      %c3_215 = arith.constant 3 : index
      %c5_216 = arith.constant 5 : index
      %c0_217 = arith.constant 0 : index
      %336 = vector.load %arg17[%c3_215, %c5_216, %c0_217] : memref<14x14x1xf32, #tpu.memory_space<vmem>>, vector<8x8x1xf32>
      %c52 = arith.constant 52 : index
      %337 = memref.load %arg9[%c52] : memref<98xf32, #tpu.memory_space<smem>>
      %338 = vector.broadcast %337 : f32 to vector<8x8x1xf32>
      %339 = arith.mulf %336, %338 : vector<8x8x1xf32>
      %340 = arith.addf %335, %339 : vector<8x8x1xf32>
      %c3_218 = arith.constant 3 : index
      %c5_219 = arith.constant 5 : index
      %c0_220 = arith.constant 0 : index
      %341 = vector.load %arg18[%c3_218, %c5_219, %c0_220] : memref<14x14x1xf32, #tpu.memory_space<vmem>>, vector<8x8x1xf32>
      %c53 = arith.constant 53 : index
      %342 = memref.load %arg9[%c53] : memref<98xf32, #tpu.memory_space<smem>>
      %343 = vector.broadcast %342 : f32 to vector<8x8x1xf32>
      %344 = arith.mulf %341, %343 : vector<8x8x1xf32>
      %345 = arith.addf %340, %344 : vector<8x8x1xf32>
      %c3_221 = arith.constant 3 : index
      %c6_222 = arith.constant 6 : index
      %c0_223 = arith.constant 0 : index
      %346 = vector.load %arg17[%c3_221, %c6_222, %c0_223] : memref<14x14x1xf32, #tpu.memory_space<vmem>>, vector<8x8x1xf32>
      %c54 = arith.constant 54 : index
      %347 = memref.load %arg9[%c54] : memref<98xf32, #tpu.memory_space<smem>>
      %348 = vector.broadcast %347 : f32 to vector<8x8x1xf32>
      %349 = arith.mulf %346, %348 : vector<8x8x1xf32>
      %350 = arith.addf %345, %349 : vector<8x8x1xf32>
      %c3_224 = arith.constant 3 : index
      %c6_225 = arith.constant 6 : index
      %c0_226 = arith.constant 0 : index
      %351 = vector.load %arg18[%c3_224, %c6_225, %c0_226] : memref<14x14x1xf32, #tpu.memory_space<vmem>>, vector<8x8x1xf32>
      %c55 = arith.constant 55 : index
      %352 = memref.load %arg9[%c55] : memref<98xf32, #tpu.memory_space<smem>>
      %353 = vector.broadcast %352 : f32 to vector<8x8x1xf32>
      %354 = arith.mulf %351, %353 : vector<8x8x1xf32>
      %355 = arith.addf %350, %354 : vector<8x8x1xf32>
      %c4_227 = arith.constant 4 : index
      %c0_228 = arith.constant 0 : index
      %c0_229 = arith.constant 0 : index
      %356 = vector.load %arg17[%c4_227, %c0_228, %c0_229] : memref<14x14x1xf32, #tpu.memory_space<vmem>>, vector<8x8x1xf32>
      %c56 = arith.constant 56 : index
      %357 = memref.load %arg9[%c56] : memref<98xf32, #tpu.memory_space<smem>>
      %358 = vector.broadcast %357 : f32 to vector<8x8x1xf32>
      %359 = arith.mulf %356, %358 : vector<8x8x1xf32>
      %360 = arith.addf %355, %359 : vector<8x8x1xf32>
      %c4_230 = arith.constant 4 : index
      %c0_231 = arith.constant 0 : index
      %c0_232 = arith.constant 0 : index
      %361 = vector.load %arg18[%c4_230, %c0_231, %c0_232] : memref<14x14x1xf32, #tpu.memory_space<vmem>>, vector<8x8x1xf32>
      %c57 = arith.constant 57 : index
      %362 = memref.load %arg9[%c57] : memref<98xf32, #tpu.memory_space<smem>>
      %363 = vector.broadcast %362 : f32 to vector<8x8x1xf32>
      %364 = arith.mulf %361, %363 : vector<8x8x1xf32>
      %365 = arith.addf %360, %364 : vector<8x8x1xf32>
      %c4_233 = arith.constant 4 : index
      %c1_234 = arith.constant 1 : index
      %c0_235 = arith.constant 0 : index
      %366 = vector.load %arg17[%c4_233, %c1_234, %c0_235] : memref<14x14x1xf32, #tpu.memory_space<vmem>>, vector<8x8x1xf32>
      %c58 = arith.constant 58 : index
      %367 = memref.load %arg9[%c58] : memref<98xf32, #tpu.memory_space<smem>>
      %368 = vector.broadcast %367 : f32 to vector<8x8x1xf32>
      %369 = arith.mulf %366, %368 : vector<8x8x1xf32>
      %370 = arith.addf %365, %369 : vector<8x8x1xf32>
      %c4_236 = arith.constant 4 : index
      %c1_237 = arith.constant 1 : index
      %c0_238 = arith.constant 0 : index
      %371 = vector.load %arg18[%c4_236, %c1_237, %c0_238] : memref<14x14x1xf32, #tpu.memory_space<vmem>>, vector<8x8x1xf32>
      %c59 = arith.constant 59 : index
      %372 = memref.load %arg9[%c59] : memref<98xf32, #tpu.memory_space<smem>>
      %373 = vector.broadcast %372 : f32 to vector<8x8x1xf32>
      %374 = arith.mulf %371, %373 : vector<8x8x1xf32>
      %375 = arith.addf %370, %374 : vector<8x8x1xf32>
      %c4_239 = arith.constant 4 : index
      %c2_240 = arith.constant 2 : index
      %c0_241 = arith.constant 0 : index
      %376 = vector.load %arg17[%c4_239, %c2_240, %c0_241] : memref<14x14x1xf32, #tpu.memory_space<vmem>>, vector<8x8x1xf32>
      %c60 = arith.constant 60 : index
      %377 = memref.load %arg9[%c60] : memref<98xf32, #tpu.memory_space<smem>>
      %378 = vector.broadcast %377 : f32 to vector<8x8x1xf32>
      %379 = arith.mulf %376, %378 : vector<8x8x1xf32>
      %380 = arith.addf %375, %379 : vector<8x8x1xf32>
      %c4_242 = arith.constant 4 : index
      %c2_243 = arith.constant 2 : index
      %c0_244 = arith.constant 0 : index
      %381 = vector.load %arg18[%c4_242, %c2_243, %c0_244] : memref<14x14x1xf32, #tpu.memory_space<vmem>>, vector<8x8x1xf32>
      %c61 = arith.constant 61 : index
      %382 = memref.load %arg9[%c61] : memref<98xf32, #tpu.memory_space<smem>>
      %383 = vector.broadcast %382 : f32 to vector<8x8x1xf32>
      %384 = arith.mulf %381, %383 : vector<8x8x1xf32>
      %385 = arith.addf %380, %384 : vector<8x8x1xf32>
      %c4_245 = arith.constant 4 : index
      %c3_246 = arith.constant 3 : index
      %c0_247 = arith.constant 0 : index
      %386 = vector.load %arg17[%c4_245, %c3_246, %c0_247] : memref<14x14x1xf32, #tpu.memory_space<vmem>>, vector<8x8x1xf32>
      %c62 = arith.constant 62 : index
      %387 = memref.load %arg9[%c62] : memref<98xf32, #tpu.memory_space<smem>>
      %388 = vector.broadcast %387 : f32 to vector<8x8x1xf32>
      %389 = arith.mulf %386, %388 : vector<8x8x1xf32>
      %390 = arith.addf %385, %389 : vector<8x8x1xf32>
      %c4_248 = arith.constant 4 : index
      %c3_249 = arith.constant 3 : index
      %c0_250 = arith.constant 0 : index
      %391 = vector.load %arg18[%c4_248, %c3_249, %c0_250] : memref<14x14x1xf32, #tpu.memory_space<vmem>>, vector<8x8x1xf32>
      %c63 = arith.constant 63 : index
      %392 = memref.load %arg9[%c63] : memref<98xf32, #tpu.memory_space<smem>>
      %393 = vector.broadcast %392 : f32 to vector<8x8x1xf32>
      %394 = arith.mulf %391, %393 : vector<8x8x1xf32>
      %395 = arith.addf %390, %394 : vector<8x8x1xf32>
      %c4_251 = arith.constant 4 : index
      %c4_252 = arith.constant 4 : index
      %c0_253 = arith.constant 0 : index
      %396 = vector.load %arg17[%c4_251, %c4_252, %c0_253] : memref<14x14x1xf32, #tpu.memory_space<vmem>>, vector<8x8x1xf32>
      %c64 = arith.constant 64 : index
      %397 = memref.load %arg9[%c64] : memref<98xf32, #tpu.memory_space<smem>>
      %398 = vector.broadcast %397 : f32 to vector<8x8x1xf32>
      %399 = arith.mulf %396, %398 : vector<8x8x1xf32>
      %400 = arith.addf %395, %399 : vector<8x8x1xf32>
      %c4_254 = arith.constant 4 : index
      %c4_255 = arith.constant 4 : index
      %c0_256 = arith.constant 0 : index
      %401 = vector.load %arg18[%c4_254, %c4_255, %c0_256] : memref<14x14x1xf32, #tpu.memory_space<vmem>>, vector<8x8x1xf32>
      %c65 = arith.constant 65 : index
      %402 = memref.load %arg9[%c65] : memref<98xf32, #tpu.memory_space<smem>>
      %403 = vector.broadcast %402 : f32 to vector<8x8x1xf32>
      %404 = arith.mulf %401, %403 : vector<8x8x1xf32>
      %405 = arith.addf %400, %404 : vector<8x8x1xf32>
      %c4_257 = arith.constant 4 : index
      %c5_258 = arith.constant 5 : index
      %c0_259 = arith.constant 0 : index
      %406 = vector.load %arg17[%c4_257, %c5_258, %c0_259] : memref<14x14x1xf32, #tpu.memory_space<vmem>>, vector<8x8x1xf32>
      %c66 = arith.constant 66 : index
      %407 = memref.load %arg9[%c66] : memref<98xf32, #tpu.memory_space<smem>>
      %408 = vector.broadcast %407 : f32 to vector<8x8x1xf32>
      %409 = arith.mulf %406, %408 : vector<8x8x1xf32>
      %410 = arith.addf %405, %409 : vector<8x8x1xf32>
      %c4_260 = arith.constant 4 : index
      %c5_261 = arith.constant 5 : index
      %c0_262 = arith.constant 0 : index
      %411 = vector.load %arg18[%c4_260, %c5_261, %c0_262] : memref<14x14x1xf32, #tpu.memory_space<vmem>>, vector<8x8x1xf32>
      %c67 = arith.constant 67 : index
      %412 = memref.load %arg9[%c67] : memref<98xf32, #tpu.memory_space<smem>>
      %413 = vector.broadcast %412 : f32 to vector<8x8x1xf32>
      %414 = arith.mulf %411, %413 : vector<8x8x1xf32>
      %415 = arith.addf %410, %414 : vector<8x8x1xf32>
      %c4_263 = arith.constant 4 : index
      %c6_264 = arith.constant 6 : index
      %c0_265 = arith.constant 0 : index
      %416 = vector.load %arg17[%c4_263, %c6_264, %c0_265] : memref<14x14x1xf32, #tpu.memory_space<vmem>>, vector<8x8x1xf32>
      %c68 = arith.constant 68 : index
      %417 = memref.load %arg9[%c68] : memref<98xf32, #tpu.memory_space<smem>>
      %418 = vector.broadcast %417 : f32 to vector<8x8x1xf32>
      %419 = arith.mulf %416, %418 : vector<8x8x1xf32>
      %420 = arith.addf %415, %419 : vector<8x8x1xf32>
      %c4_266 = arith.constant 4 : index
      %c6_267 = arith.constant 6 : index
      %c0_268 = arith.constant 0 : index
      %421 = vector.load %arg18[%c4_266, %c6_267, %c0_268] : memref<14x14x1xf32, #tpu.memory_space<vmem>>, vector<8x8x1xf32>
      %c69 = arith.constant 69 : index
      %422 = memref.load %arg9[%c69] : memref<98xf32, #tpu.memory_space<smem>>
      %423 = vector.broadcast %422 : f32 to vector<8x8x1xf32>
      %424 = arith.mulf %421, %423 : vector<8x8x1xf32>
      %425 = arith.addf %420, %424 : vector<8x8x1xf32>
      %c5_269 = arith.constant 5 : index
      %c0_270 = arith.constant 0 : index
      %c0_271 = arith.constant 0 : index
      %426 = vector.load %arg17[%c5_269, %c0_270, %c0_271] : memref<14x14x1xf32, #tpu.memory_space<vmem>>, vector<8x8x1xf32>
      %c70 = arith.constant 70 : index
      %427 = memref.load %arg9[%c70] : memref<98xf32, #tpu.memory_space<smem>>
      %428 = vector.broadcast %427 : f32 to vector<8x8x1xf32>
      %429 = arith.mulf %426, %428 : vector<8x8x1xf32>
      %430 = arith.addf %425, %429 : vector<8x8x1xf32>
      %c5_272 = arith.constant 5 : index
      %c0_273 = arith.constant 0 : index
      %c0_274 = arith.constant 0 : index
      %431 = vector.load %arg18[%c5_272, %c0_273, %c0_274] : memref<14x14x1xf32, #tpu.memory_space<vmem>>, vector<8x8x1xf32>
      %c71 = arith.constant 71 : index
      %432 = memref.load %arg9[%c71] : memref<98xf32, #tpu.memory_space<smem>>
      %433 = vector.broadcast %432 : f32 to vector<8x8x1xf32>
      %434 = arith.mulf %431, %433 : vector<8x8x1xf32>
      %435 = arith.addf %430, %434 : vector<8x8x1xf32>
      %c5_275 = arith.constant 5 : index
      %c1_276 = arith.constant 1 : index
      %c0_277 = arith.constant 0 : index
      %436 = vector.load %arg17[%c5_275, %c1_276, %c0_277] : memref<14x14x1xf32, #tpu.memory_space<vmem>>, vector<8x8x1xf32>
      %c72 = arith.constant 72 : index
      %437 = memref.load %arg9[%c72] : memref<98xf32, #tpu.memory_space<smem>>
      %438 = vector.broadcast %437 : f32 to vector<8x8x1xf32>
      %439 = arith.mulf %436, %438 : vector<8x8x1xf32>
      %440 = arith.addf %435, %439 : vector<8x8x1xf32>
      %c5_278 = arith.constant 5 : index
      %c1_279 = arith.constant 1 : index
      %c0_280 = arith.constant 0 : index
      %441 = vector.load %arg18[%c5_278, %c1_279, %c0_280] : memref<14x14x1xf32, #tpu.memory_space<vmem>>, vector<8x8x1xf32>
      %c73 = arith.constant 73 : index
      %442 = memref.load %arg9[%c73] : memref<98xf32, #tpu.memory_space<smem>>
      %443 = vector.broadcast %442 : f32 to vector<8x8x1xf32>
      %444 = arith.mulf %441, %443 : vector<8x8x1xf32>
      %445 = arith.addf %440, %444 : vector<8x8x1xf32>
      %c5_281 = arith.constant 5 : index
      %c2_282 = arith.constant 2 : index
      %c0_283 = arith.constant 0 : index
      %446 = vector.load %arg17[%c5_281, %c2_282, %c0_283] : memref<14x14x1xf32, #tpu.memory_space<vmem>>, vector<8x8x1xf32>
      %c74 = arith.constant 74 : index
      %447 = memref.load %arg9[%c74] : memref<98xf32, #tpu.memory_space<smem>>
      %448 = vector.broadcast %447 : f32 to vector<8x8x1xf32>
      %449 = arith.mulf %446, %448 : vector<8x8x1xf32>
      %450 = arith.addf %445, %449 : vector<8x8x1xf32>
      %c5_284 = arith.constant 5 : index
      %c2_285 = arith.constant 2 : index
      %c0_286 = arith.constant 0 : index
      %451 = vector.load %arg18[%c5_284, %c2_285, %c0_286] : memref<14x14x1xf32, #tpu.memory_space<vmem>>, vector<8x8x1xf32>
      %c75 = arith.constant 75 : index
      %452 = memref.load %arg9[%c75] : memref<98xf32, #tpu.memory_space<smem>>
      %453 = vector.broadcast %452 : f32 to vector<8x8x1xf32>
      %454 = arith.mulf %451, %453 : vector<8x8x1xf32>
      %455 = arith.addf %450, %454 : vector<8x8x1xf32>
      %c5_287 = arith.constant 5 : index
      %c3_288 = arith.constant 3 : index
      %c0_289 = arith.constant 0 : index
      %456 = vector.load %arg17[%c5_287, %c3_288, %c0_289] : memref<14x14x1xf32, #tpu.memory_space<vmem>>, vector<8x8x1xf32>
      %c76 = arith.constant 76 : index
      %457 = memref.load %arg9[%c76] : memref<98xf32, #tpu.memory_space<smem>>
      %458 = vector.broadcast %457 : f32 to vector<8x8x1xf32>
      %459 = arith.mulf %456, %458 : vector<8x8x1xf32>
      %460 = arith.addf %455, %459 : vector<8x8x1xf32>
      %c5_290 = arith.constant 5 : index
      %c3_291 = arith.constant 3 : index
      %c0_292 = arith.constant 0 : index
      %461 = vector.load %arg18[%c5_290, %c3_291, %c0_292] : memref<14x14x1xf32, #tpu.memory_space<vmem>>, vector<8x8x1xf32>
      %c77 = arith.constant 77 : index
      %462 = memref.load %arg9[%c77] : memref<98xf32, #tpu.memory_space<smem>>
      %463 = vector.broadcast %462 : f32 to vector<8x8x1xf32>
      %464 = arith.mulf %461, %463 : vector<8x8x1xf32>
      %465 = arith.addf %460, %464 : vector<8x8x1xf32>
      %c5_293 = arith.constant 5 : index
      %c4_294 = arith.constant 4 : index
      %c0_295 = arith.constant 0 : index
      %466 = vector.load %arg17[%c5_293, %c4_294, %c0_295] : memref<14x14x1xf32, #tpu.memory_space<vmem>>, vector<8x8x1xf32>
      %c78 = arith.constant 78 : index
      %467 = memref.load %arg9[%c78] : memref<98xf32, #tpu.memory_space<smem>>
      %468 = vector.broadcast %467 : f32 to vector<8x8x1xf32>
      %469 = arith.mulf %466, %468 : vector<8x8x1xf32>
      %470 = arith.addf %465, %469 : vector<8x8x1xf32>
      %c5_296 = arith.constant 5 : index
      %c4_297 = arith.constant 4 : index
      %c0_298 = arith.constant 0 : index
      %471 = vector.load %arg18[%c5_296, %c4_297, %c0_298] : memref<14x14x1xf32, #tpu.memory_space<vmem>>, vector<8x8x1xf32>
      %c79 = arith.constant 79 : index
      %472 = memref.load %arg9[%c79] : memref<98xf32, #tpu.memory_space<smem>>
      %473 = vector.broadcast %472 : f32 to vector<8x8x1xf32>
      %474 = arith.mulf %471, %473 : vector<8x8x1xf32>
      %475 = arith.addf %470, %474 : vector<8x8x1xf32>
      %c5_299 = arith.constant 5 : index
      %c5_300 = arith.constant 5 : index
      %c0_301 = arith.constant 0 : index
      %476 = vector.load %arg17[%c5_299, %c5_300, %c0_301] : memref<14x14x1xf32, #tpu.memory_space<vmem>>, vector<8x8x1xf32>
      %c80 = arith.constant 80 : index
      %477 = memref.load %arg9[%c80] : memref<98xf32, #tpu.memory_space<smem>>
      %478 = vector.broadcast %477 : f32 to vector<8x8x1xf32>
      %479 = arith.mulf %476, %478 : vector<8x8x1xf32>
      %480 = arith.addf %475, %479 : vector<8x8x1xf32>
      %c5_302 = arith.constant 5 : index
      %c5_303 = arith.constant 5 : index
      %c0_304 = arith.constant 0 : index
      %481 = vector.load %arg18[%c5_302, %c5_303, %c0_304] : memref<14x14x1xf32, #tpu.memory_space<vmem>>, vector<8x8x1xf32>
      %c81 = arith.constant 81 : index
      %482 = memref.load %arg9[%c81] : memref<98xf32, #tpu.memory_space<smem>>
      %483 = vector.broadcast %482 : f32 to vector<8x8x1xf32>
      %484 = arith.mulf %481, %483 : vector<8x8x1xf32>
      %485 = arith.addf %480, %484 : vector<8x8x1xf32>
      %c5_305 = arith.constant 5 : index
      %c6_306 = arith.constant 6 : index
      %c0_307 = arith.constant 0 : index
      %486 = vector.load %arg17[%c5_305, %c6_306, %c0_307] : memref<14x14x1xf32, #tpu.memory_space<vmem>>, vector<8x8x1xf32>
      %c82 = arith.constant 82 : index
      %487 = memref.load %arg9[%c82] : memref<98xf32, #tpu.memory_space<smem>>
      %488 = vector.broadcast %487 : f32 to vector<8x8x1xf32>
      %489 = arith.mulf %486, %488 : vector<8x8x1xf32>
      %490 = arith.addf %485, %489 : vector<8x8x1xf32>
      %c5_308 = arith.constant 5 : index
      %c6_309 = arith.constant 6 : index
      %c0_310 = arith.constant 0 : index
      %491 = vector.load %arg18[%c5_308, %c6_309, %c0_310] : memref<14x14x1xf32, #tpu.memory_space<vmem>>, vector<8x8x1xf32>
      %c83 = arith.constant 83 : index
      %492 = memref.load %arg9[%c83] : memref<98xf32, #tpu.memory_space<smem>>
      %493 = vector.broadcast %492 : f32 to vector<8x8x1xf32>
      %494 = arith.mulf %491, %493 : vector<8x8x1xf32>
      %495 = arith.addf %490, %494 : vector<8x8x1xf32>
      %c6_311 = arith.constant 6 : index
      %c0_312 = arith.constant 0 : index
      %c0_313 = arith.constant 0 : index
      %496 = vector.load %arg17[%c6_311, %c0_312, %c0_313] : memref<14x14x1xf32, #tpu.memory_space<vmem>>, vector<8x8x1xf32>
      %c84 = arith.constant 84 : index
      %497 = memref.load %arg9[%c84] : memref<98xf32, #tpu.memory_space<smem>>
      %498 = vector.broadcast %497 : f32 to vector<8x8x1xf32>
      %499 = arith.mulf %496, %498 : vector<8x8x1xf32>
      %500 = arith.addf %495, %499 : vector<8x8x1xf32>
      %c6_314 = arith.constant 6 : index
      %c0_315 = arith.constant 0 : index
      %c0_316 = arith.constant 0 : index
      %501 = vector.load %arg18[%c6_314, %c0_315, %c0_316] : memref<14x14x1xf32, #tpu.memory_space<vmem>>, vector<8x8x1xf32>
      %c85 = arith.constant 85 : index
      %502 = memref.load %arg9[%c85] : memref<98xf32, #tpu.memory_space<smem>>
      %503 = vector.broadcast %502 : f32 to vector<8x8x1xf32>
      %504 = arith.mulf %501, %503 : vector<8x8x1xf32>
      %505 = arith.addf %500, %504 : vector<8x8x1xf32>
      %c6_317 = arith.constant 6 : index
      %c1_318 = arith.constant 1 : index
      %c0_319 = arith.constant 0 : index
      %506 = vector.load %arg17[%c6_317, %c1_318, %c0_319] : memref<14x14x1xf32, #tpu.memory_space<vmem>>, vector<8x8x1xf32>
      %c86 = arith.constant 86 : index
      %507 = memref.load %arg9[%c86] : memref<98xf32, #tpu.memory_space<smem>>
      %508 = vector.broadcast %507 : f32 to vector<8x8x1xf32>
      %509 = arith.mulf %506, %508 : vector<8x8x1xf32>
      %510 = arith.addf %505, %509 : vector<8x8x1xf32>
      %c6_320 = arith.constant 6 : index
      %c1_321 = arith.constant 1 : index
      %c0_322 = arith.constant 0 : index
      %511 = vector.load %arg18[%c6_320, %c1_321, %c0_322] : memref<14x14x1xf32, #tpu.memory_space<vmem>>, vector<8x8x1xf32>
      %c87 = arith.constant 87 : index
      %512 = memref.load %arg9[%c87] : memref<98xf32, #tpu.memory_space<smem>>
      %513 = vector.broadcast %512 : f32 to vector<8x8x1xf32>
      %514 = arith.mulf %511, %513 : vector<8x8x1xf32>
      %515 = arith.addf %510, %514 : vector<8x8x1xf32>
      %c6_323 = arith.constant 6 : index
      %c2_324 = arith.constant 2 : index
      %c0_325 = arith.constant 0 : index
      %516 = vector.load %arg17[%c6_323, %c2_324, %c0_325] : memref<14x14x1xf32, #tpu.memory_space<vmem>>, vector<8x8x1xf32>
      %c88 = arith.constant 88 : index
      %517 = memref.load %arg9[%c88] : memref<98xf32, #tpu.memory_space<smem>>
      %518 = vector.broadcast %517 : f32 to vector<8x8x1xf32>
      %519 = arith.mulf %516, %518 : vector<8x8x1xf32>
      %520 = arith.addf %515, %519 : vector<8x8x1xf32>
      %c6_326 = arith.constant 6 : index
      %c2_327 = arith.constant 2 : index
      %c0_328 = arith.constant 0 : index
      %521 = vector.load %arg18[%c6_326, %c2_327, %c0_328] : memref<14x14x1xf32, #tpu.memory_space<vmem>>, vector<8x8x1xf32>
      %c89 = arith.constant 89 : index
      %522 = memref.load %arg9[%c89] : memref<98xf32, #tpu.memory_space<smem>>
      %523 = vector.broadcast %522 : f32 to vector<8x8x1xf32>
      %524 = arith.mulf %521, %523 : vector<8x8x1xf32>
      %525 = arith.addf %520, %524 : vector<8x8x1xf32>
      %c6_329 = arith.constant 6 : index
      %c3_330 = arith.constant 3 : index
      %c0_331 = arith.constant 0 : index
      %526 = vector.load %arg17[%c6_329, %c3_330, %c0_331] : memref<14x14x1xf32, #tpu.memory_space<vmem>>, vector<8x8x1xf32>
      %c90 = arith.constant 90 : index
      %527 = memref.load %arg9[%c90] : memref<98xf32, #tpu.memory_space<smem>>
      %528 = vector.broadcast %527 : f32 to vector<8x8x1xf32>
      %529 = arith.mulf %526, %528 : vector<8x8x1xf32>
      %530 = arith.addf %525, %529 : vector<8x8x1xf32>
      %c6_332 = arith.constant 6 : index
      %c3_333 = arith.constant 3 : index
      %c0_334 = arith.constant 0 : index
      %531 = vector.load %arg18[%c6_332, %c3_333, %c0_334] : memref<14x14x1xf32, #tpu.memory_space<vmem>>, vector<8x8x1xf32>
      %c91 = arith.constant 91 : index
      %532 = memref.load %arg9[%c91] : memref<98xf32, #tpu.memory_space<smem>>
      %533 = vector.broadcast %532 : f32 to vector<8x8x1xf32>
      %534 = arith.mulf %531, %533 : vector<8x8x1xf32>
      %535 = arith.addf %530, %534 : vector<8x8x1xf32>
      %c6_335 = arith.constant 6 : index
      %c4_336 = arith.constant 4 : index
      %c0_337 = arith.constant 0 : index
      %536 = vector.load %arg17[%c6_335, %c4_336, %c0_337] : memref<14x14x1xf32, #tpu.memory_space<vmem>>, vector<8x8x1xf32>
      %c92 = arith.constant 92 : index
      %537 = memref.load %arg9[%c92] : memref<98xf32, #tpu.memory_space<smem>>
      %538 = vector.broadcast %537 : f32 to vector<8x8x1xf32>
      %539 = arith.mulf %536, %538 : vector<8x8x1xf32>
      %540 = arith.addf %535, %539 : vector<8x8x1xf32>
      %c6_338 = arith.constant 6 : index
      %c4_339 = arith.constant 4 : index
      %c0_340 = arith.constant 0 : index
      %541 = vector.load %arg18[%c6_338, %c4_339, %c0_340] : memref<14x14x1xf32, #tpu.memory_space<vmem>>, vector<8x8x1xf32>
      %c93 = arith.constant 93 : index
      %542 = memref.load %arg9[%c93] : memref<98xf32, #tpu.memory_space<smem>>
      %543 = vector.broadcast %542 : f32 to vector<8x8x1xf32>
      %544 = arith.mulf %541, %543 : vector<8x8x1xf32>
      %545 = arith.addf %540, %544 : vector<8x8x1xf32>
      %c6_341 = arith.constant 6 : index
      %c5_342 = arith.constant 5 : index
      %c0_343 = arith.constant 0 : index
      %546 = vector.load %arg17[%c6_341, %c5_342, %c0_343] : memref<14x14x1xf32, #tpu.memory_space<vmem>>, vector<8x8x1xf32>
      %c94 = arith.constant 94 : index
      %547 = memref.load %arg9[%c94] : memref<98xf32, #tpu.memory_space<smem>>
      %548 = vector.broadcast %547 : f32 to vector<8x8x1xf32>
      %549 = arith.mulf %546, %548 : vector<8x8x1xf32>
      %550 = arith.addf %545, %549 : vector<8x8x1xf32>
      %c6_344 = arith.constant 6 : index
      %c5_345 = arith.constant 5 : index
      %c0_346 = arith.constant 0 : index
      %551 = vector.load %arg18[%c6_344, %c5_345, %c0_346] : memref<14x14x1xf32, #tpu.memory_space<vmem>>, vector<8x8x1xf32>
      %c95 = arith.constant 95 : index
      %552 = memref.load %arg9[%c95] : memref<98xf32, #tpu.memory_space<smem>>
      %553 = vector.broadcast %552 : f32 to vector<8x8x1xf32>
      %554 = arith.mulf %551, %553 : vector<8x8x1xf32>
      %555 = arith.addf %550, %554 : vector<8x8x1xf32>
      %c6_347 = arith.constant 6 : index
      %c6_348 = arith.constant 6 : index
      %c0_349 = arith.constant 0 : index
      %556 = vector.load %arg17[%c6_347, %c6_348, %c0_349] : memref<14x14x1xf32, #tpu.memory_space<vmem>>, vector<8x8x1xf32>
      %c96 = arith.constant 96 : index
      %557 = memref.load %arg9[%c96] : memref<98xf32, #tpu.memory_space<smem>>
      %558 = vector.broadcast %557 : f32 to vector<8x8x1xf32>
      %559 = arith.mulf %556, %558 : vector<8x8x1xf32>
      %560 = arith.addf %555, %559 : vector<8x8x1xf32>
      %c6_350 = arith.constant 6 : index
      %c6_351 = arith.constant 6 : index
      %c0_352 = arith.constant 0 : index
      %561 = vector.load %arg18[%c6_350, %c6_351, %c0_352] : memref<14x14x1xf32, #tpu.memory_space<vmem>>, vector<8x8x1xf32>
      %c97 = arith.constant 97 : index
      %562 = memref.load %arg9[%c97] : memref<98xf32, #tpu.memory_space<smem>>
      %563 = vector.broadcast %562 : f32 to vector<8x8x1xf32>
      %564 = arith.mulf %561, %563 : vector<8x8x1xf32>
      %565 = arith.addf %560, %564 : vector<8x8x1xf32>
      %cst_353 = arith.constant 0.000000e+00 : f32
      %566 = vector.broadcast %cst_353 : f32 to vector<8x8x1xf32>
      %567 = arith.subf %566, %565 : vector<8x8x1xf32>
      %568 = math.exp %567 : vector<8x8x1xf32>
      %cst_354 = arith.constant 1.000000e+00 : f32
      %569 = vector.broadcast %cst_354 : f32 to vector<8x8x1xf32>
      %570 = arith.addf %569, %568 : vector<8x8x1xf32>
      %cst_355 = arith.constant 1.000000e+00 : f32
      %571 = vector.broadcast %cst_355 : f32 to vector<8x8x1xf32>
      %572 = arith.divf %571, %570 : vector<8x8x1xf32>
      %573 = vector.broadcast %572 : vector<8x8x1xf32> to vector<8x8x128xf32>
      %574 = arith.mulf %61, %573 : vector<8x8x128xf32>
      %575 = vector.shape_cast %574 : vector<8x8x128xf32> to vector<64x128xf32>
      %cst_356 = arith.constant dense<0.000000e+00> : vector<128xf32>
      %576 = vector.multi_reduction <add>, %575, %cst_356 [0] : vector<64x128xf32> to vector<128xf32>
      %577 = vector.shape_cast %576 : vector<128xf32> to vector<1x128xf32>
      %cst_357 = arith.constant 1.562500e-02 : f32
      %578 = vector.broadcast %cst_357 : f32 to vector<1x128xf32>
      %579 = arith.mulf %577, %578 : vector<1x128xf32>
      %580 = arith.truncf %579 : vector<1x128xf32> to vector<1x128xbf16>
      %c0_358 = arith.constant 0 : index
      %c0_359 = arith.constant 0 : index
      %581 = vector.load %arg11[%c0_358, %c0_359] : memref<128x512xbf16, #tpu.memory_space<vmem>>, vector<128x512xbf16>
      %cst_360 = arith.constant dense<0.000000e+00> : vector<1x512xf32>
      %582 = tpu.matmul %580, %581, %cst_360 {dimension_numbers = #tpu.dot_dimension_numbers<[1], [0], [0], [1], [0, 0, 1, 1], [], []>} : vector<1x128xbf16>, vector<128x512xbf16>, vector<1x512xf32> -> vector<1x512xf32>
      %c0_361 = arith.constant 0 : index
      %c0_362 = arith.constant 0 : index
      %583 = vector.load %arg12[%c0_361, %c0_362] : memref<1x512xf32, #tpu.memory_space<vmem>>, vector<1x512xf32>
      %584 = arith.addf %582, %583 : vector<1x512xf32>
      %585 = arith.mulf %584, %584 : vector<1x512xf32>
      %cst_363 = arith.constant dense<0.000000e+00> : vector<1xf32>
      %586 = vector.multi_reduction <add>, %585, %cst_363 [1] : vector<1x512xf32> to vector<1xf32>
      %587 = vector.shape_cast %586 : vector<1xf32> to vector<1x1xf32>
      %cst_364 = arith.constant 9.99999996E-13 : f32
      %588 = vector.broadcast %cst_364 : f32 to vector<1x1xf32>
      %589 = arith.addf %587, %588 : vector<1x1xf32>
      %590 = math.rsqrt %589 : vector<1x1xf32>
      %591 = vector.broadcast %590 : vector<1x1xf32> to vector<1x512xf32>
      %592 = arith.mulf %584, %591 : vector<1x512xf32>
      %593 = arith.truncf %592 : vector<1x512xf32> to vector<1x512xbf16>
      %c0_365 = arith.constant 0 : index
      %c0_366 = arith.constant 0 : index
      %594 = vector.load %arg13[%c0_365, %c0_366] : memref<512x128xbf16, #tpu.memory_space<vmem>>, vector<512x128xbf16>
      %cst_367 = arith.constant dense<0.000000e+00> : vector<1x128xf32>
      %595 = tpu.matmul %593, %594, %cst_367 {dimension_numbers = #tpu.dot_dimension_numbers<[1], [0], [0], [1], [0, 0, 1, 1], [], []>} : vector<1x512xbf16>, vector<512x128xbf16>, vector<1x128xf32> -> vector<1x128xf32>
      %596 = vector.shape_cast %595 : vector<1x128xf32> to vector<1x128xf32>
      %597 = vector.broadcast %596 : vector<1x128xf32> to vector<8x128xf32>
      %c0_368 = arith.constant 0 : index
      %c0_369 = arith.constant 0 : index
      %c0_370 = arith.constant 0 : index
      %598 = vector.load %arg14[%c0_368, %c0_369, %c0_370] : memref<1x8x128xf32, #tpu.memory_space<vmem>>, vector<1x8x128xf32>
      %599 = vector.shape_cast %598 : vector<1x8x128xf32> to vector<8x128xf32>
      %600 = vector.shape_cast %597 : vector<8x128xf32> to vector<1x8x128xf32>
      tpu.vector_store %arg14[%c0_368, %c0_369, %c0_370], %600 {strides = array<i32>} : memref<1x8x128xf32, #tpu.memory_space<vmem>>, vector<1x8x128xf32>,
    } else {
    }
    return
  }
  func.func @transform_0(%arg0: i32, %arg1: i32) -> (i32, i32, i32) {
    %c0_i32 = arith.constant 0 : i32
    %c0_i32_0 = arith.constant 0 : i32
    return %arg0, %arg1, %c0_i32 : i32, i32, i32
  }
  func.func @transform_1(%arg0: i32, %arg1: i32) -> (i32, i32) {
    %c0_i32 = arith.constant 0 : i32
    %c0_i32_0 = arith.constant 0 : i32
    %c0_i32_1 = arith.constant 0 : i32
    return %c0_i32, %c0_i32_0 : i32, i32
  }
  func.func @transform_2(%arg0: i32, %arg1: i32) -> (i32, i32) {
    %c0_i32 = arith.constant 0 : i32
    %c0_i32_0 = arith.constant 0 : i32
    %c0_i32_1 = arith.constant 0 : i32
    return %c0_i32, %c0_i32_0 : i32, i32
  }
  func.func @transform_3(%arg0: i32, %arg1: i32) -> (i32, i32) {
    %c0_i32 = arith.constant 0 : i32
    %c0_i32_0 = arith.constant 0 : i32
    %c0_i32_1 = arith.constant 0 : i32
    return %c0_i32, %c0_i32_0 : i32, i32
  }
  func.func @transform_4(%arg0: i32, %arg1: i32) -> (i32, i32) {
    %c0_i32 = arith.constant 0 : i32
    %c0_i32_0 = arith.constant 0 : i32
    %c0_i32_1 = arith.constant 0 : i32
    return %c0_i32, %c0_i32_0 : i32, i32
  }
  func.func @transform_5(%arg0: i32, %arg1: i32) -> (i32, i32) {
    %c0_i32 = arith.constant 0 : i32
    %c0_i32_0 = arith.constant 0 : i32
    %c0_i32_1 = arith.constant 0 : i32
    return %c0_i32, %c0_i32_0 : i32, i32
  }
  func.func @transform_6(%arg0: i32, %arg1: i32) -> (i32, i32) {
    %c0_i32 = arith.constant 0 : i32
    %c0_i32_0 = arith.constant 0 : i32
    %c0_i32_1 = arith.constant 0 : i32
    return %c0_i32, %c0_i32_0 : i32, i32
  }
  func.func @transform_7(%arg0: i32, %arg1: i32) -> i32 {
    %c0_i32 = arith.constant 0 : i32
    %c0_i32_0 = arith.constant 0 : i32
    return %c0_i32 : i32
  }
  func.func @transform_8(%arg0: i32, %arg1: i32) -> i32 {
    %c0_i32 = arith.constant 0 : i32
    %c0_i32_0 = arith.constant 0 : i32
    return %c0_i32 : i32
  }
  func.func @transform_9(%arg0: i32, %arg1: i32) -> (i32, i32) {
    %c0_i32 = arith.constant 0 : i32
    %c0_i32_0 = arith.constant 0 : i32
    %c0_i32_1 = arith.constant 0 : i32
    return %c0_i32, %c0_i32_0 : i32, i32
  }
  func.func @transform_10(%arg0: i32, %arg1: i32) -> (i32, i32) {
    %c0_i32 = arith.constant 0 : i32
    %c0_i32_0 = arith.constant 0 : i32
    %c0_i32_1 = arith.constant 0 : i32
    return %c0_i32, %c0_i32_0 : i32, i32
  }
  func.func @transform_11(%arg0: i32, %arg1: i32) -> (i32, i32) {
    %c0_i32 = arith.constant 0 : i32
    %c0_i32_0 = arith.constant 0 : i32
    %c0_i32_1 = arith.constant 0 : i32
    return %c0_i32, %c0_i32_0 : i32, i32
  }
  func.func @transform_12(%arg0: i32, %arg1: i32) -> (i32, i32, i32) {
    %c0_i32 = arith.constant 0 : i32
    %c0_i32_0 = arith.constant 0 : i32
    %c0_i32_1 = arith.constant 0 : i32
    return %arg0, %c0_i32, %c0_i32_0 : i32, i32, i32
  }
}

</mosaic_0001>

<bundles_post_ra>
// kernel: custom_model_forward.1
= control target key start
LH: loop header
LB: loop body
LE: loop exit
PB: predicated region body
PF: predicated region fallthrough
CT: control target
= control target key end

     0   :  { %s8581_s0 = inlined_call_operand.vmem [shape: bf16[2,64,32], index: 0, kind: input, shape index: {}]   ;;  %s8582_s1 = inlined_call_operand.vmem [shape: bf16[32,128], index: 1, kind: input, shape index: {}]   ;;  %s8583_s2 = inlined_call_operand.vmem [shape: f32[1,128], index: 2, kind: input, shape index: {}]   ;;  %s8584_s3 = inlined_call_operand.vmem [shape: bf16[128,8], index: 3, kind: input, shape index: {}]   ;;  %s8585_s4 = inlined_call_operand.vmem [shape: f32[1,8], index: 4, kind: input, shape index: {}]   ;;  %s8586_s5 = inlined_call_operand.vmem [shape: bf16[8,128], index: 5, kind: input, shape index: {}]   ;;  %s8587_s6 = inlined_call_operand.vmem [shape: f32[1,128], index: 6, kind: input, shape index: {}]   ;;  %s8588_s7 = inlined_call_operand.vmem [shape: f32[98], index: 7, kind: input, shape index: {}]   ;;  %s8589_s8 = inlined_call_operand.<no memory space> [shape: f32[1], index: 8, kind: input, shape index: {}]   ;;  %s8590_s9 = inlined_call_operand.vmem [shape: bf16[128,512], index: 9, kind: input, shape index: {}]   ;;  %s8591_s10 = inlined_call_operand.vmem [shape: f32[1,512], index: 10, kind: input, shape index: {}]   ;;  %s8592_s11 = inlined_call_operand.vmem [shape: bf16[512,128], index: 11, kind: input, shape index: {}]   ;;  %s8593_s12 = inlined_call_operand.vmem [shape: f32[2,8,128], index: 12, kind: output, shape index: {}]  }
   0x1   :  { %8831 = sst [smem:[#allocation298_spill]] %s8581_s0 }
   0x2   :  { %8832 = sst [smem:[#allocation299_spill]] %s8582_s1 }
   0x3   :  { %8833 = sst [smem:[#allocation300_spill]] %s8583_s2 }
   0x4   :  { %8834 = sst [smem:[#allocation301_spill]] %s8584_s3 }
   0x5   :  { %8835 = sst [smem:[#allocation302_spill]] %s8585_s4 }
   0x6   :  { %8836 = sst [smem:[#allocation303_spill]] %s8586_s5 }
   0x7   :  { %8837 = sst [smem:[#allocation304_spill]] %s8587_s6 }
   0x8   :  { %8838 = sst [smem:[#allocation305_spill]] %s8588_s7 }
   0x9   :  { %8839 = sst [smem:[#allocation306_spill]] %s8590_s9 }
   0xa   :  { %8840 = sst [smem:[#allocation307_spill]] %s8591_s10 }
   0xb   :  { %8841 = sst [smem:[#allocation308_spill]] %s8592_s11 }
   0xc   :  { %8842 = sst [smem:[#allocation309_spill]] %s8593_s12 }
   0xd   :  { %17 = sst [smem:[#allocation6]] %s8589_s8 }
   0xe   :  { %18 = vsyncpa [#allocation8], 0  ;;  %s4969_s23 = smov 0   ;;  %s4971_s24 = smov 0  }
   0xf   :  { %s4973_s25 = smov 0  }
  0x10 LB: > { %8843 = sst [smem:[#allocation10_spill]] %s4891_s24  ;;  %s4383_s8 = sadd.s32 4294967295, %s4895_s25   ;;  %s4895_s25 = sphi %s4973_s25, %s24_s25   ;;  %s4891_s24 = sphi %s4971_s24, %s9897_s24   ;;  %s4887_s23 = sphi %s4969_s23, %s9896_s23  }
  0x11   : > { %8844 = sst [smem:[#allocation11_spill]] %s4895_s25  ;;  %s36_s26 = sadd.s32 1, %s4891_s24 }
  0x12   : > { %p38_p0 = scmp.ge.s32.totalorder %s36_s26, 2  ;;  %p4385_p1 = scmp.ge.s32.totalorder %s4895_s25, 1 }
  0x13   : > { %p326_p2 = scmp.lt.s32.totalorder %s4895_s25, 3  ;;  %p4994_p4 = scmp.eq.s32.totalorder %s4383_s8, 0 }
  0x14   : > { %s9899_s26 = smov (%p38_p0, %s36_s26), 0  ;;  %s8848_s7 = sld [smem:[#allocation305_spill]] }
  0x15   : > { %8845 = sst [smem:[#allocation12_spill]] %s9899_s26  ;;  %p4990_p3 = pnand %p4385_p1, %p326_p2 }
  0x17   : > { %p4682_p5 = pneg %p4990_p3 }
  0x19   : > { %p4683_p6 = pnand %p4994_p4, %p4682_p5 }
  0x1a   : > { %s357_s13 = sshll.u32 %s8848_s7, 4  ;;  %s358_s13 = int_to_ptr.vmem [resolvable:$true] %s357_s13 }
  0x1b   : > { %s4854_s14 = scalar_lea.vmem %s358_s13, 16  ;;  %p4856_p8 = pneg %p4683_p6 }
  0x1c   : > { %p4855_p7 = scmp.ne.s32.totalorder %s358_s13, %s4854_s14  ;;  %p4862_p11 = scmp.lt.s32.totalorder %s358_s13, %s358_s13 }
  0x1d   : > { %p4863_p12 = scmp.lt.s32.totalorder %s4854_s14, %s4854_s14 }
  0x1e   : > { %p4857_p9 = pnand %p4856_p8, %p4855_p7 }
  0x1f   : > { %p4864_p13 = por %p4863_p12, %p4862_p11 }
  0x20   : > { %p4858_p10 = pneg %p4857_p9 }
  0x22   : > { %p4865_p0 = pnand %p4864_p13, %p4858_p10 }
  0x24   : > { %4868 = shalt.err (!%p4865_p0)
}
  0x25   : > { %s4897_s15 = smov [#allocation7]   ;;  %395 = sbr.rel (%p4990_p3) target bundleno = 2202 (0x89a), region = 68 }
  0x26   : > { %4685 = dma.vmem_to_smem (!%p4683_p6), %s358_s13, 16, %s4897_s15, [#allocation8]  }
  0x2c   : > { %4882 = dma.done.wait (%p4994_p4), [#allocation8], 16  }
  0x2d   : > { %4884 = vsyncadd (%p4994_p4), [#allocation8], 4294967280 }
  0x2e   : > { %401 = sfence }
  0x2f   : > { %s8849_s1 = sld [smem:[#allocation299_spill]]  ;;  %p442_p1 = scmp.lt.s32.totalorder %s4887_s23, 1  ;;  %vm507_vm0 = vcmask 261120   ;;  %v4898_v7 = vmov 0.0   ;;  %vm4899_vm1 = vmmov 0   ;;  %vm774_vm2 = vcmask 1043456  }
  0x30   : > { %s8851_s0 = sld [smem:[#allocation298_spill]]  ;;  %s8852_s3 = sld [smem:[#allocation301_spill]]  ;;  %610 = vst [vmem:[#allocation3] sm:$0x3] %v4898_v7  ;;  %4652 = vmatprep.subr.bf16.mxu1 %v4898_v7  ;;  %4668 = vmatprep.mubr.msk.bf16.mxu1 %vm4899_vm1, %v4898_v7  ;;  %vm770_vm3 = vcmask 64512   ;;  %vm852_vm4 = vcmask 7168  }
  0x31   : > { %s9901_s23 = smov (!%p442_p1, %s4887_s23), 1  ;;  %s8853_s5 = sld [smem:[#allocation303_spill]]  ;;  %vm854_vm5 = vcmask 5120   ;;  %864 = vst.msk [vmem:[#allocation4 + $0x50] sm:$0xff] %vm852_vm4, %v4898_v7  ;;  %853 = vst.msk [vmem:[#allocation4] sm:$0xff] %vm852_vm4, %v4898_v7  ;;  %vm3940_vm6 = vcmask 1040384  }
  0x32   : > { %8850 = sst [smem:[#allocation13_spill]] %s9901_s23  ;;  %s4578_s20 = sshll.u32 %s9901_s23, 5  ;;  %865 = vst.msk [vmem:[#allocation4 + $0x58] sm:$0x3f] %vm854_vm5, %v4898_v7  ;;  %855 = vst.msk [vmem:[#allocation4 + $0x8] sm:$0x3f] %vm854_vm5, %v4898_v7 }
  0x33   : > { %s8854_s2 = sld [smem:[#allocation300_spill]]  ;;  %s8855_s4 = sld [smem:[#allocation302_spill]]  ;;  %856 = vst.msk [vmem:[#allocation4 + $0x10] sm:$0xff] %vm852_vm4, %v4898_v7  ;;  %858 = vst.msk [vmem:[#allocation4 + $0x20] sm:$0xff] %vm852_vm4, %v4898_v7 }
  0x34   : > { %857 = vst.msk [vmem:[#allocation4 + $0x18] sm:$0x3f] %vm854_vm5, %v4898_v7  ;;  %859 = vst.msk [vmem:[#allocation4 + $0x28] sm:$0x3f] %vm854_vm5, %v4898_v7  ;;  %s8856_s6 = sld [smem:[#allocation304_spill]]  ;;  %s979_s18 = sld [smem:[#allocation7]] }
  0x35   : > { %v4718_v0 = vld [vmem:[%s8849_s1] sm:$0xff]   ;;  %v4719_v1 = vld [vmem:[%s8849_s1 + $0x8] sm:$0xff]   ;;  %860 = vst.msk [vmem:[#allocation4 + $0x30] sm:$0xff] %vm852_vm4, %v4898_v7  ;;  %862 = vst.msk [vmem:[#allocation4 + $0x40] sm:$0xff] %vm852_vm4, %v4898_v7  ;;  %s969_s19 = sld [smem:[#allocation6]]  ;;  %s4416_s21 = sld [smem:[#allocation7 + $0x2]] }
  0x36   : > { %4640 = vmatprep.subr.bf16.mxu0 %v4718_v0  ;;  %s449_s8 = scalar_lea.vmem %s8851_s0, %s4578_s20  ;;  %v4724_v6 = vld [vmem:[%s8852_s3] sm:$0xff]   ;;  %v4725_v8 = vld [vmem:[%s8852_s3 + $0x8] sm:$0xff]   ;;  %v4726_v9 = vld [vmem:[%s8852_s3 + $0x10] sm:$0xff]   ;;  %861 = vst.msk [vmem:[#allocation4 + $0x38] sm:$0x3f] %vm854_vm5, %v4898_v7  ;;  %s4415_s20 = sld [smem:[#allocation7 + $0x1]] }
  0x37   : > { %4641 = vmatpush3.bf16.msra.mxu0 %v4718_v0  ;;  %v4720_v2 = vld [vmem:[%s449_s8] sm:$0xff]   ;;  %v4721_v3 = vld [vmem:[%s449_s8 + $0x8] sm:$0xff]   ;;  %v4722_v4 = vld [vmem:[%s449_s8 + $0x10] sm:$0xff]   ;;  %4653 = vmatpush3.bf16.msra.mxu1 %v4724_v6  ;;  %863 = vst.msk [vmem:[#allocation4 + $0x48] sm:$0x3f] %vm854_vm5, %v4898_v7  ;;  %s4417_s22 = sld [smem:[#allocation7 + $0x3]] }
  0x38   : > { %4642 = vmatprep.subr.bf16.mxu0 %v4719_v1  ;;  %4644 = vmatprep.mubr.msk.bf16.mxu0 %vm507_vm0, %v4720_v2  ;;  %v4723_v5 = vld [vmem:[%s449_s8 + $0x18] sm:$0xff]   ;;  %v4728_v11 = vld [vmem:[%s8852_s3 + $0x20] sm:$0xff]   ;;  %v4729_v12 = vld [vmem:[%s8852_s3 + $0x28] sm:$0xff]   ;;  %866 = vst.msk [vmem:[#allocation4 + $0x60] sm:$0xff] %vm852_vm4, %v4898_v7  ;;  %s4418_s8 = sld [smem:[#allocation7 + $0x4]]  ;;  %s4419_s27 = sld [smem:[#allocation7 + $0x5]] }
  0x39   : > { %4654 = vmatprep.subr.bf16.mxu1 %v4898_v7  ;;  %v4727_v10 = vld [vmem:[%s8852_s3 + $0x18] sm:$0xff]   ;;  %v4730_v13 = vld [vmem:[%s8852_s3 + $0x30] sm:$0xff]   ;;  %v762_v15 = vld [vmem:[%s8853_s5] sm:$0xf]  ;;  %867 = vst.msk [vmem:[#allocation4 + $0x68] sm:$0x3f] %vm854_vm5, %v4898_v7 }
  0x3a   : > { %v4731_v14 = vld [vmem:[%s8852_s3 + $0x38] sm:$0xff]   ;;  %v776_v16 = vsel %vm774_vm2, %v762_v15, 0  ;;  %v4393_v17 = vld [vmem:[%s8854_s2] ss:$0 sm:$0xff]  ;;  %v628_v6 = vld [vmem:[#allocation3 + $0x1] sm:$0x1] }
  0x3b   : > { %4643 = vmatpush3.bf16.msra.mxu0 %v4719_v1  ;;  %4655 = vmatpush3.bf16.msra.mxu1 %v4725_v8  ;;  %868 = vst.msk [vmem:[#allocation4 + $0x70] sm:$0xff] %vm852_vm4, %v4898_v7  ;;  %870 = vst.msk [vmem:[#allocation4 + $0x80] sm:$0xff] %vm852_vm4, %v4898_v7  ;;  %s4420_s28 = sld [smem:[#allocation7 + $0x6]]  ;;  %s4421_s29 = sld [smem:[#allocation7 + $0x7]] }
  0x3c   : > { %4672 = vmatprep.subr.bf16.mxu0 %v4898_v7  ;;  %4656 = vmatprep.subr.bf16.mxu1 %v4898_v7  ;;  %869 = vst.msk [vmem:[#allocation4 + $0x78] sm:$0x3f] %vm854_vm5, %v4898_v7  ;;  %871 = vst.msk [vmem:[#allocation4 + $0x88] sm:$0x3f] %vm854_vm5, %v4898_v7  ;;  %s4422_s30 = sld [smem:[#allocation7 + $0x8]]  ;;  %s4423_s13 = sld [smem:[#allocation7 + $0x9]] }
  0x3d   : > { %872 = vst.msk [vmem:[#allocation4 + $0x90] sm:$0xff] %vm852_vm4, %v4898_v7  ;;  %874 = vst.msk [vmem:[#allocation4 + $0xa0] sm:$0xff] %vm852_vm4, %v4898_v7  ;;  %s4424_s14 = sld [smem:[#allocation7 + $0xa]]  ;;  %s4425_s15 = sld [smem:[#allocation7 + $0xb]] }
  0x3e   : > { %4645 = vmatmul.mubr.msk.bf16.vlgmr.msra.gmra.mrb[0].mxu0 %vm507_vm0, %v4721_v3  ;;  %873 = vst.msk [vmem:[#allocation4 + $0x98] sm:$0x3f] %vm854_vm5, %v4898_v7  ;;  %875 = vst.msk [vmem:[#allocation4 + $0xa8] sm:$0x3f] %vm854_vm5, %v4898_v7  ;;  %s4426_s16 = sld [smem:[#allocation7 + $0xc]]  ;;  %s4427_s17 = sld [smem:[#allocation7 + $0xd]] }
  0x3f   : > { %4648 = vmatprep.mubr.msk.bf16.mxu0 %vm507_vm0, %v4722_v4  ;;  %4657 = vmatpush3.bf16.msra.mxu1 %v4726_v9  ;;  %876 = vst.msk [vmem:[#allocation4 + $0xb0] sm:$0xff] %vm852_vm4, %v4898_v7  ;;  %878 = vst.msk [vmem:[#allocation4 + $0xc0] sm:$0xff] %vm852_vm4, %v4898_v7  ;;  %s5429_s0 = sld [smem:[#allocation7 + $0x31]]  ;;  %s5431_s1 = sld [smem:[#allocation7 + $0x33]] }
  0x40   : > { %4658 = vmatprep.subr.bf16.mxu1 %v4898_v7  ;;  %4673 = vmatpush3.bf16.msra.mxu0 %v776_v16  ;;  %v4404_v16 = vld [vmem:[%s8855_s4] ss:$0 sm:$0xff]  ;;  %877 = vst.msk [vmem:[#allocation4 + $0xb8] sm:$0x3f] %vm854_vm5, %v4898_v7  ;;  %879 = vst.msk [vmem:[#allocation4 + $0xc8] sm:$0x3f] %vm854_vm5, %v4898_v7 }
  0x41   : > { %880 = vst.msk [vmem:[#allocation4 + $0xd0] sm:$0xff] %vm852_vm4, %v4898_v7  ;;  %882 = vst.msk [vmem:[#allocation5] sm:$0xff] %vm852_vm4, %v4898_v7  ;;  %s5433_s2 = sld [smem:[#allocation7 + $0x35]]  ;;  %s5435_s3 = sld [smem:[#allocation7 + $0x37]] }
  0x42   : > { %881 = vst.msk [vmem:[#allocation4 + $0xd8] sm:$0x3f] %vm854_vm5, %v4898_v7  ;;  %883 = vst.msk [vmem:[#allocation5 + $0x8] sm:$0x3f] %vm854_vm5, %v4898_v7  ;;  %s5437_s4 = sld [smem:[#allocation7 + $0x3c]]  ;;  %s5439_s5 = sld [smem:[#allocation7 + $0x3e]] }
  0x43   : > { %4659 = vmatpush3.bf16.msra.mxu1 %v4727_v10  ;;  %v611_v10 = vld [vmem:[#allocation3] sm:$0x1]  ;;  %884 = vst.msk [vmem:[#allocation5 + $0x10] sm:$0xff] %vm852_vm4, %v4898_v7  ;;  %886 = vst.msk [vmem:[#allocation5 + $0x20] sm:$0xff] %vm852_vm4, %v4898_v7  ;;  %s5451_s7 = sld [smem:[#allocation7 + $0x3d]]  ;;  %s5453_s26 = sld [smem:[#allocation7 + $0x40]] }
  0x44   : > { %4660 = vmatprep.subr.bf16.mxu1 %v4898_v7  ;;  %885 = vst.msk [vmem:[#allocation5 + $0x18] sm:$0x3f] %vm854_vm5, %v4898_v7  ;;  %887 = vst.msk [vmem:[#allocation5 + $0x28] sm:$0x3f] %vm854_vm5, %v4898_v7  ;;  %s5455_s24 = sld [smem:[#allocation7 + $0x3f]]  ;;  %s5457_s25 = sld [smem:[#allocation7 + $0x41]] }
  0x45   : > { %888 = vst.msk [vmem:[#allocation5 + $0x30] sm:$0xff] %vm852_vm4, %v4898_v7  ;;  %890 = vst.msk [vmem:[#allocation5 + $0x40] sm:$0xff] %vm852_vm4, %v4898_v7  ;;  %s5459_s12 = sld [smem:[#allocation7 + $0x43]]  ;;  %s5466_s23 = sld [smem:[#allocation7 + $0x47]] }
  0x46   : > { %4649 = vmatmul.mubr.msk.bf16.gmra.mrb[4].mxu0 %vm507_vm0, %v4723_v5  ;;  %889 = vst.msk [vmem:[#allocation5 + $0x38] sm:$0x3f] %vm854_vm5, %v4898_v7  ;;  %891 = vst.msk [vmem:[#allocation5 + $0x48] sm:$0x3f] %vm854_vm5, %v4898_v7  ;;  %s5468_s10 = sld [smem:[#allocation7 + $0x49]]  ;;  %s5475_s11 = sld [smem:[#allocation7 + $0x4b]] }
  0x47   : > { %4661 = vmatpush3.bf16.msra.mxu1 %v4728_v11  ;;  %4674 = vmatprep.mubr.msk.bf16.mxu0 %vm4899_vm1, %v4898_v7  ;;  %892 = vst.msk [vmem:[#allocation5 + $0x50] sm:$0xff] %vm852_vm4, %v4898_v7  ;;  %894 = vst.msk [vmem:[#allocation5 + $0x60] sm:$0xff] %vm852_vm4, %v4898_v7  ;;  %s5477_s9 = sld [smem:[#allocation7 + $0x4d]] }
  0x48   : > { %4662 = vmatprep.subr.bf16.mxu1 %v4898_v7  ;;  %893 = vst.msk [vmem:[#allocation5 + $0x58] sm:$0x3f] %vm854_vm5, %v4898_v7  ;;  %895 = vst.msk [vmem:[#allocation5 + $0x68] sm:$0x3f] %vm854_vm5, %v4898_v7 }
  0x49   : > { %896 = vst.msk [vmem:[#allocation5 + $0x70] sm:$0xff] %vm852_vm4, %v4898_v7  ;;  %898 = vst.msk [vmem:[#allocation5 + $0x80] sm:$0xff] %vm852_vm4, %v4898_v7 }
  0x4a   : > { %897 = vst.msk [vmem:[#allocation5 + $0x78] sm:$0x3f] %vm854_vm5, %v4898_v7  ;;  %899 = vst.msk [vmem:[#allocation5 + $0x88] sm:$0x3f] %vm854_vm5, %v4898_v7 }
  0x4b   : > { %4663 = vmatpush3.bf16.msra.mxu1 %v4729_v12  ;;  %900 = vst.msk [vmem:[#allocation5 + $0x90] sm:$0xff] %vm852_vm4, %v4898_v7  ;;  %902 = vst.msk [vmem:[#allocation5 + $0xa0] sm:$0xff] %vm852_vm4, %v4898_v7  ;;  %8909 = sst [smem:[#allocation66_spill]] %s5466_s23  ;;  %s5482_s23 = sld [smem:[#allocation7 + $0x51]] }
  0x4c   : > { %4664 = vmatprep.subr.bf16.mxu1 %v4898_v7  ;;  %901 = vst.msk [vmem:[#allocation5 + $0x98] sm:$0x3f] %vm854_vm5, %v4898_v7  ;;  %903 = vst.msk [vmem:[#allocation5 + $0xa8] sm:$0x3f] %vm854_vm5, %v4898_v7  ;;  %8910 = sst [smem:[#allocation67_spill]] %s5468_s10  ;;  %s5480_s10 = sld [smem:[#allocation7 + $0x4f]] }
  0x4d   : > { %904 = vst.msk [vmem:[#allocation5 + $0xb0] sm:$0xff] %vm852_vm4, %v4898_v7  ;;  %906 = vst.msk [vmem:[#allocation5 + $0xc0] sm:$0xff] %vm852_vm4, %v4898_v7  ;;  %8912 = sst [smem:[#allocation69_spill]] %s5477_s9  ;;  %s5498_s9 = sld [smem:[#allocation7 + $0x55]] }
  0x4e   : > { %905 = vst.msk [vmem:[#allocation5 + $0xb8] sm:$0x3f] %vm854_vm5, %v4898_v7  ;;  %907 = vst.msk [vmem:[#allocation5 + $0xc8] sm:$0x3f] %vm854_vm5, %v4898_v7 }
  0x4f   : > { %4665 = vmatpush3.bf16.msra.mxu1 %v4730_v13  ;;  %908 = vst.msk [vmem:[#allocation5 + $0xd0] sm:$0xff] %vm852_vm4, %v4898_v7 }
  0x50   : > { %4666 = vmatprep.subr.bf16.mxu1 %v4898_v7  ;;  %909 = vst.msk [vmem:[#allocation5 + $0xd8] sm:$0x3f] %vm854_vm5, %v4898_v7  ;;  %v971_v7 = vld [vmem:[#allocation4] sm:$0xff] }
  0x53   : > { %4667 = vmatpush3.bf16.msra.mxu1 %v4731_v14 }
 0x111   : > { %v4646_v18 = vpop.f32.mrb[0].mxu0 }
 0x112   : > { %v563_v19 = vadd.f32 %v4646_v18, %v4393_v17  ;;  %v554_v20 = vpop.f32.mrb[1].mxu0 }
 0x113   : > { %v555_v21 = vadd.f32 %v4393_v17, %v554_v20  ;;  %v4647_v22 = vpop.f32.mrb[2].mxu0 }
 0x114   : > { %v566_v23 = vadd.f32 %v4647_v22, %v4393_v17  ;;  %v557_v24 = vpop.f32.mrb[3].mxu0  ;;  %v587_v26 = vmax.f32 %v563_v19, 0.0 }
 0x115   : > { %v558_v25 = vadd.f32 %v4393_v17, %v557_v24  ;;  %v585_v28 = vmax.f32 %v555_v21, 0.0  ;;  %v4413_v24 = vld [vmem:[%s8856_s6] ss:$0 sm:$0xff]  ;;  %s5445_s6 = sld [smem:[#allocation7 + $0x3b]] }
 0x116   : > { %v588_v27 = vmax.f32 %v566_v23, 0.0 }
 0x117   : > { %v586_v29 = vmax.f32 %v558_v25, 0.0 }
 0x118   : > { %v5067_v30 = vpack.c.bf16 %v588_v27, %v587_v26 }
 0x119   : > { %v5069_v31 = vpack.c.bf16 %v586_v29, %v585_v28  ;;  %v612_v32 = vadd.f32 %v586_v29, %v585_v28  ;;  %v4650_v33 = vpop.f32.mrb[4].mxu0 }
 0x11a   : > { %v579_v34 = vadd.f32 %v4650_v33, %v4393_v17  ;;  %v570_v35 = vpop.f32.mrb[5].mxu0 }
 0x11b   : > { %v613_v36 = vadd.f32 %v612_v32, %v587_v26  ;;  %v571_v37 = vadd.f32 %v4393_v17, %v570_v35  ;;  %v4651_v38 = vpop.f32.mrb[6].mxu0 }
 0x11c   : > { %v591_v39 = vmax.f32 %v579_v34, 0.0  ;;  %v582_v40 = vadd.f32 %v4651_v38, %v4393_v17  ;;  %v573_v41 = vpop.f32.mrb[7].mxu0 }
 0x11d   : > { %v589_v42 = vmax.f32 %v571_v37, 0.0  ;;  %v614_v43 = vadd.f32 %v613_v36, %v588_v27  ;;  %v574_v44 = vadd.f32 %v4393_v17, %v573_v41  ;;  %v5193_v36 = vstv %s979_s18  ;;  %s4428_s18 = sld [smem:[#allocation7 + $0xe]] }
 0x11e   : > { %v631_v45 = vmax.f32 %v587_v26, %v591_v39  ;;  %v592_v46 = vmax.f32 %v582_v40, 0.0  ;;  %8857 = vst [vmem:[#allocation14_spill] sm:$0xff] %v5193_v36  ;;  %v981_v40 = vmul.f32 %v5193_v36, %v971_v7  ;;  %v5196_v41 = vstv %s969_s19  ;;  %v1231_v7 = vld [vmem:[#allocation4 + $0x5] sm:$0xff]  ;;  %s4429_s19 = sld [smem:[#allocation7 + $0xf]] }
 0x11f   : > { %v615_v47 = vadd.f32 %v614_v43, %v589_v42  ;;  %v629_v48 = vmax.f32 %v585_v28, %v589_v42  ;;  %v590_v49 = vmax.f32 %v574_v44, 0.0  ;;  %8858 = vst [vmem:[#allocation15_spill] sm:$0xff] %v5196_v41  ;;  %v5198_v43 = vstv %s4415_s20  ;;  %s4430_s20 = sld [smem:[#allocation7 + $0x10]] }
 0x120   : > { %v5071_v50 = vpack.c.bf16 %v592_v46, %v591_v39  ;;  %v632_v51 = vmax.f32 %v588_v27, %v592_v46  ;;  %8859 = vst [vmem:[#allocation16_spill] sm:$0xff] %v5198_v43 }
 0x121   : > { %v5073_v52 = vpack.c.bf16 %v590_v49, %v589_v42  ;;  %v616_v53 = vadd.f32 %v615_v47, %v590_v49  ;;  %v630_v54 = vmax.f32 %v586_v29, %v590_v49  ;;  %v997_v42 = vld [vmem:[#allocation5] sm:$0xff]  ;;  %v5204_v47 = vstv %s4416_s21  ;;  %s4431_s21 = sld [smem:[#allocation7 + $0x11]] }
 0x122   : > { %v634_v55 = vmax.f32 %v631_v45, %v632_v51  ;;  %v989_v45 = vadd.f32 %v981_v40, %v5196_v41  ;;  %8861 = vst [vmem:[#allocation18_spill] sm:$0xff] %v5204_v47  ;;  %v5273_v40 = vstv %s4425_s15  ;;  %s4440_s15 = sld [smem:[#allocation7 + $0x1a]] }
 0x123   : > { %v617_v56 = vadd.f32 %v616_v53, %v591_v39  ;;  %v633_v57 = vmax.f32 %v629_v48, %v630_v54  ;;  %v840_v39 = vlaneseq  ;;  %v1023_v48 = vld [vmem:[#allocation4 + $0x1] sm:$0xff]  ;;  %8879 = vst [vmem:[#allocation36_spill] sm:$0xff] %v5273_v40 }
 0x124   : > { %v1033_v53 = vmul.f32 %v5204_v47, %v1023_v48  ;;  %v1049_v54 = vld [vmem:[#allocation5 + $0x1] sm:$0xff] }
 0x125   : > { %v618_v58 = vadd.f32 %v617_v56, %v592_v46  ;;  %v635_v59 = vmax.f32 %v633_v57, %v634_v55  ;;  %v5200_v44 = vshrl.u32 %v840_v39, 7  ;;  %v1007_v46 = vmul.f32 %v5198_v43, %v997_v42  ;;  %v1257_v39 = vld [vmem:[#allocation5 + $0x5] sm:$0xff] }
 0x126   : > { %v5210_v55 = vstv %s4417_s22  ;;  %v834_v57 = vunpack.c.l.bf16 %v5067_v30  ;;  %v1283_v48 = vld [vmem:[#allocation4 + $0x6] sm:$0xff]  ;;  %s4432_s22 = sld [smem:[#allocation7 + $0x12]] }
 0x127   : > { %v619_v60 = vrot.slane %v618_v58, 4  ;;  %v636_v61 = vrot.slane %v635_v59, 4  ;;  %8860 = vst [vmem:[#allocation17_spill] sm:$0xff] %v5200_v44  ;;  %v5207_v49 = vsub.s32 0, %v5200_v44  ;;  %v1015_v51 = vadd.f32 %v1007_v46, %v989_v45  ;;  %8863 = vst [vmem:[#allocation20_spill] sm:$0xff] %v5210_v55  ;;  %v1181_v44 = vld [vmem:[#allocation4 + $0x24] sm:$0xff] }
 0x128   : > { %v1267_v45 = vmul.f32 %v5273_v40, %v1257_v39  ;;  %v5278_v46 = vstv %s4426_s16  ;;  %s4441_s16 = sld [smem:[#allocation7 + $0x1b]] }
 0x129   : > { %v620_v62 = vadd.f32 %v619_v60, %v618_v58  ;;  %v637_v63 = vmax.f32 %v635_v59, %v636_v61  ;;  %8862 = vst [vmem:[#allocation19_spill] sm:$0xff] %v5207_v49  ;;  %v832_v58 = vunpack.c.l.bf16 %v5069_v31  ;;  %v833_v59 = vunpack.c.h.bf16 %v5069_v31  ;;  %8880 = vst [vmem:[#allocation37_spill] sm:$0xff] %v5278_v46 }
 0x12a   : > { %v835_v60 = vunpack.c.h.bf16 %v5067_v30 }
 0x12b   : > { %v621_v0 = vrot.slane %v620_v62, 2  ;;  %v638_v1 = vrot.slane %v637_v63, 2 }
 0x12d   : > { %v622_v2 = vadd.f32 %v621_v0, %v620_v62  ;;  %v639_v3 = vmax.f32 %v637_v63, %v638_v1  ;;  %v838_v62 = vunpack.c.l.bf16 %v5071_v50  ;;  %v1041_v63 = vadd.f32 %v1033_v53, %v1015_v51 }
 0x12e   : > { %v1059_v0 = vmul.f32 %v5210_v55, %v1049_v54  ;;  %v836_v1 = vunpack.c.l.bf16 %v5073_v52  ;;  %v1293_v53 = vmul.f32 %v5278_v46, %v1283_v48  ;;  %v1309_v54 = vld [vmem:[#allocation5 + $0x6] sm:$0xff]  ;;  %v1128_v48 = vld [vmem:[#allocation4 + $0x13] sm:$0xff] }
 0x12f   : > { %v623_v4 = vrot.slane %v622_v2, 1  ;;  %v640_v5 = vrot.slane %v639_v3, 1 }
 0x131   : > { %v624_v8 = vadd.f32 %v623_v4, %v622_v2  ;;  %v641_v9 = vmax.f32 %v639_v3, %v640_v5  ;;  %v837_v2 = vunpack.c.h.bf16 %v5073_v52  ;;  %v839_v3 = vunpack.c.h.bf16 %v5071_v50  ;;  %v1075_v5 = vld [vmem:[#allocation4 + $0x2] sm:$0xff] }
 0x132   : > { %v5222_v4 = vstv %s4418_s8  ;;  %v1067_v50 = vadd.f32 %v1059_v0, %v1041_v63  ;;  %s4433_s8 = sld [smem:[#allocation7 + $0x13]] }
 0x133   : > { %v625_v11 = vmul.f32 0.015625, %v624_v8  ;;  %v642_v12 = vmax.f32 %v628_v6, %v641_v9  ;;  %8864 = vst [vmem:[#allocation21_spill] sm:$0xff] %v5222_v4 }
 0x135   : > { %v626_v13 = vadd.f32 %v625_v11, %v611_v10  ;;  %643 = vst [vmem:[#allocation3 + $0x1] sm:$0x1] %v642_v12  ;;  %v1085_v12 = vmul.f32 %v5222_v4, %v1075_v5  ;;  %v1024_v5 = vld [vmem:[#allocation4 + $0x11] sm:$0xff] }
 0x137   : > { %627 = vst [vmem:[#allocation3] sm:$0x1] %v626_v13  ;;  %v1101_v13 = vld [vmem:[#allocation5 + $0x2] sm:$0xff] }
 0x13e   : > { %v647_v14 = vld [vmem:[#allocation3] sm:$0x3] }
 0x13f   : > { %v648_v15 = vpack.c.bf16 %v647_v14, %v647_v14  ;;  %v5243_v14 = vstv %s4419_s27  ;;  %s4434_s27 = sld [smem:[#allocation7 + $0x14]] }
 0x140   : > { %8873 = vst [vmem:[#allocation30_spill] sm:$0xff] %v5243_v14 }
 0x141   : > { %4669 = vmatmul.mubr.bf16.vlgmr.msra.gmra.mrb[0].mxu1 %v648_v15  ;;  %v1093_v15 = vadd.f32 %v1085_v12, %v1067_v50 }
 0x214   : > { %v754_v17 = vpop.f32.mrb[0].mxu1 }
 0x215   : > { %v755_v18 = vadd.f32 %v4404_v16, %v754_v17  ;;  %v4670_v19 = vpop.f32.mrb[1].mxu1  ;;  %v1111_v16 = vmul.f32 %v5243_v14, %v1101_v13  ;;  %v5248_v17 = vstv %s4420_s28  ;;  %v5293_v13 = vstv %s4430_s20  ;;  %s4435_s28 = sld [smem:[#allocation7 + $0x15]]  ;;  %s4445_s20 = sld [smem:[#allocation7 + $0x1f]] }
 0x216   : > { %v757_v20 = vpop.f32.mrb[2].mxu1  ;;  %8874 = vst [vmem:[#allocation31_spill] sm:$0xff] %v5248_v17  ;;  %8884 = vst [vmem:[#allocation41_spill] sm:$0xff] %v5293_v13 }
 0x217   : > { %v760_v21 = vmax.f32 %v755_v18, 0.0  ;;  %v4671_v22 = vpop.f32.mrb[3].mxu1  ;;  %v1127_v18 = vld [vmem:[#allocation4 + $0x3] sm:$0xff]  ;;  %v1119_v19 = vadd.f32 %v1111_v16, %v1093_v15  ;;  %v1034_v16 = vmul.f32 %v5204_v47, %v1024_v5 }
 0x218   : > { %v1137_v20 = vmul.f32 %v5248_v17, %v1127_v18  ;;  %v5253_v22 = vstv %s4421_s29  ;;  %v1050_v18 = vld [vmem:[#allocation5 + $0x11] sm:$0xff]  ;;  %s4436_s29 = sld [smem:[#allocation7 + $0x16]] }
 0x219   : > { %v761_v23 = vpack.c.bf16 %v760_v21, %v760_v21  ;;  %v1153_v21 = vld [vmem:[#allocation5 + $0x3] sm:$0xff]  ;;  %8875 = vst [vmem:[#allocation32_spill] sm:$0xff] %v5253_v22 }
 0x21b   : > { %4675 = vmatmul.mubr.msk.bf16.vlgmr.msra.gmra.mrb[8].mxu0 %vm770_vm3, %v761_v23  ;;  %v1145_v23 = vadd.f32 %v1137_v20, %v1119_v19  ;;  %v1399_v20 = vmul.f32 %v5293_v13, %v1024_v5 }
 0x2ee   : > { %v812_v25 = vpop.f32.mrb[8].mxu0 }
 0x2ef   : > { %v813_v26 = vadd.f32 %v4413_v24, %v812_v25  ;;  %v4676_v27 = vpop.f32.mrb[9].mxu0  ;;  %v1163_v24 = vmul.f32 %v5253_v22, %v1153_v21  ;;  %v5258_v25 = vstv %s4422_s30  ;;  %s4437_s30 = sld [smem:[#allocation7 + $0x17]] }
 0x2f0   : > { %v815_v28 = vpop.f32.mrb[10].mxu0  ;;  %8876 = vst [vmem:[#allocation33_spill] sm:$0xff] %v5258_v25 }
 0x2f1   : > { %v819_v29 = vrot.slane %v813_v26, 1  ;;  %v4677_v32 = vpop.f32.mrb[11].mxu0  ;;  %v1171_v27 = vadd.f32 %v1163_v24, %v1145_v23  ;;  %v1060_v23 = vmul.f32 %v5210_v55, %v1050_v18  ;;  %v5298_v24 = vstv %s4431_s21  ;;  %s4446_s21 = sld [smem:[#allocation7 + $0x20]] }
 0x2f2   : > { %v5263_v32 = vstv %s4423_s13  ;;  %8885 = vst [vmem:[#allocation42_spill] sm:$0xff] %v5298_v24  ;;  %s4438_s13 = sld [smem:[#allocation7 + $0x18]] }
 0x2f3   : > { %v821_v33 = vadd.f32 %v819_v29, %v813_v26  ;;  %v1179_v26 = vld [vmem:[#allocation4 + $0x4] sm:$0xff]  ;;  %8877 = vst [vmem:[#allocation34_spill] sm:$0xff] %v5263_v32 }
 0x2f4   : > { %v1189_v28 = vmul.f32 %v5258_v25, %v1179_v26  ;;  %v1205_v29 = vld [vmem:[#allocation5 + $0x4] sm:$0xff]  ;;  %v1076_v26 = vld [vmem:[#allocation4 + $0x12] sm:$0xff] }
 0x2f5   : > { %v822_v34 = vsub.f32 0.0, %v821_v33 }
 0x2f6   : > { %v1197_v33 = vadd.f32 %v1189_v28, %v1171_v27  ;;  %v1425_v28 = vmul.f32 %v5298_v24, %v1050_v18  ;;  %v1206_v18 = vld [vmem:[#allocation5 + $0x14] sm:$0xff] }
 0x2f7   : > { %v823_v35 = vmul.f32 1.442695, %v822_v34  ;;  %v1215_v34 = vmul.f32 %v5263_v32, %v1205_v29  ;;  %v5301_v29 = vstv %s4432_s22  ;;  %s4447_s22 = sld [smem:[#allocation7 + $0x21]] }
 0x2f8   : > { %8886 = vst [vmem:[#allocation43_spill] sm:$0xff] %v5301_v29 }
 0x2f9   : > { %4812 = vpow2.f32 %v823_v35  ;;  %v5268_v35 = vstv %s4424_s14  ;;  %s4439_s14 = sld [smem:[#allocation7 + $0x19]] }
 0x2fa   : > { %8878 = vst [vmem:[#allocation35_spill] sm:$0xff] %v5268_v35 }
 0x303   : > { %v4813_v37 = vpop.eup %4812 }
 0x304   : > { %v825_v38 = vadd.f32 1.0, %v4813_v37  ;;  %v1223_v37 = vadd.f32 %v1215_v34, %v1197_v33  ;;  %v1086_v34 = vmul.f32 %v5222_v4, %v1076_v26 }
 0x306   : > { %4814 = vrcp.f32 %v825_v38  ;;  %v1241_v38 = vmul.f32 %v5268_v35, %v1231_v7  ;;  %v1102_v7 = vld [vmem:[#allocation5 + $0x12] sm:$0xff] }
 0x308   : > { %v1249_v42 = vadd.f32 %v1241_v38, %v1223_v37  ;;  %v1451_v38 = vmul.f32 %v5301_v29, %v1076_v26  ;;  %v5322_v26 = vstv %s4437_s30  ;;  %s4452_s30 = sld [smem:[#allocation7 + $0x26]] }
 0x309   : > { %8891 = vst [vmem:[#allocation48_spill] sm:$0xff] %v5322_v26 }
 0x30a   : > { %v1275_v51 = vadd.f32 %v1267_v45, %v1249_v42  ;;  %v1112_v42 = vmul.f32 %v5243_v14, %v1102_v7  ;;  %v5306_v45 = vstv %s4433_s8  ;;  %s4448_s8 = sld [smem:[#allocation7 + $0x22]] }
 0x30b   : > { %8887 = vst [vmem:[#allocation44_spill] sm:$0xff] %v5306_v45 }
 0x310   : > { %v4815_v56 = vpop.eup %4814 }
 0x311   : > { %v843_v61 = vrot.slane %v4815_v56, %v5207_v49  ;;  %v5281_v56 = vstv %s4427_s17  ;;  %s4442_s17 = sld [smem:[#allocation7 + $0x1c]] }
 0x312   : > { %8881 = vst [vmem:[#allocation38_spill] sm:$0xff] %v5281_v56 }
 0x313   : > { %v5224_v31 = vmul.f32 %v843_v61, %v834_v57  ;;  %v5226_v30 = vmul.f32 %v843_v61, %v832_v58  ;;  %v5228_v6 = vmul.f32 %v843_v61, %v833_v59  ;;  %v5230_v8 = vmul.f32 %v843_v61, %v835_v60  ;;  %v972_v57 = vld [vmem:[#allocation4 + $0x10] sm:$0xff] }
 0x314   : > { %v5232_v9 = vmul.f32 %v843_v61, %v836_v1  ;;  %v5234_v10 = vmul.f32 %v843_v61, %v837_v2  ;;  %v5236_v11 = vmul.f32 %v843_v61, %v838_v62  ;;  %v5238_v52 = vmul.f32 %v843_v61, %v839_v3  ;;  %v998_v62 = vld [vmem:[#allocation5 + $0x10] sm:$0xff] }
 0x315   : > { %8865 = vst [vmem:[#allocation22_spill] sm:$0xff] %v5224_v31  ;;  %8866 = vst [vmem:[#allocation23_spill] sm:$0xff] %v5226_v30  ;;  %914 = vadd.xlane.f32.xlu1 %v5224_v31  ;;  %910 = vadd.xlane.f32.xlu0 %v5226_v30  ;;  %v1301_v58 = vadd.f32 %v1293_v53, %v1275_v51  ;;  %v1319_v59 = vmul.f32 %v5281_v56, %v1309_v54  ;;  %v5284_v60 = vstv %s4428_s18  ;;  %s4443_s18 = sld [smem:[#allocation7 + $0x1d]] }
 0x316   : > { %8867 = vst [vmem:[#allocation24_spill] sm:$0xff] %v5228_v6  ;;  %8868 = vst [vmem:[#allocation25_spill] sm:$0xff] %v5230_v8  ;;  %v982_v61 = vmul.f32 %v5193_v36, %v972_v57  ;;  %v1346_v0 = vmul.f32 %v5284_v60, %v972_v57  ;;  %v1008_v2 = vmul.f32 %v5198_v43, %v998_v62  ;;  %v5290_v3 = vstv %s4429_s19  ;;  %s4444_s19 = sld [smem:[#allocation7 + $0x1e]] }
 0x317   : > { %8869 = vst [vmem:[#allocation26_spill] sm:$0xff] %v5232_v9  ;;  %8870 = vst [vmem:[#allocation27_spill] sm:$0xff] %v5234_v10  ;;  %v1327_v63 = vadd.f32 %v1319_v59, %v1301_v58  ;;  %v1373_v12 = vmul.f32 %v5290_v3, %v998_v62  ;;  %v1477_v53 = vmul.f32 %v5306_v45, %v1102_v7  ;;  %v5309_v54 = vstv %s4434_s27  ;;  %v1154_v59 = vld [vmem:[#allocation5 + $0x13] sm:$0xff]  ;;  %s4449_s27 = sld [smem:[#allocation7 + $0x23]] }
 0x318   : > { %8871 = vst [vmem:[#allocation28_spill] sm:$0xff] %v5236_v11  ;;  %8872 = vst [vmem:[#allocation29_spill] sm:$0xff] %v5238_v52  ;;  %v990_v1 = vadd.f32 %v982_v61, %v5196_v41  ;;  %v1138_v58 = vmul.f32 %v5248_v17, %v1128_v48  ;;  %v1503_v62 = vmul.f32 %v5309_v54, %v1128_v48 }
 0x319   : > { %944 = vmax.xlane.f32.xlu1 %v5226_v30  ;;  %912 = vadd.xlane.f32.xlu0 %v5228_v6  ;;  %8882 = vst [vmem:[#allocation39_spill] sm:$0xff] %v5284_v60  ;;  %8883 = vst [vmem:[#allocation40_spill] sm:$0xff] %v5290_v3  ;;  %v1354_v50 = vadd.f32 %v1346_v0, %v1327_v63  ;;  %v1164_v0 = vmul.f32 %v5253_v22, %v1154_v59  ;;  %v5540_v30 = vstv %s5429_s0  ;;  %s8932_s0 = sld [smem:[#allocation67_spill]] }
 0x31a   : > { %v1016_v15 = vadd.f32 %v1008_v2, %v990_v1  ;;  %8888 = vst [vmem:[#allocation45_spill] sm:$0xff] %v5309_v54  ;;  %v5314_v1 = vstv %s4435_s28  ;;  %v1180_v2 = vld [vmem:[#allocation4 + $0x14] sm:$0xff]  ;;  %s4450_s28 = sld [smem:[#allocation7 + $0x24]]  ;;  %8925 = vst [vmem:[#allocation82_spill] sm:$0xff] %v5540_v30 }
 0x31b   : > { %v1381_v19 = vadd.f32 %v1373_v12, %v1354_v50  ;;  %8889 = vst [vmem:[#allocation46_spill] sm:$0xff] %v5314_v1  ;;  %v1529_v50 = vmul.f32 %v5314_v1, %v1154_v59  ;;  %v5317_v12 = vstv %s4436_s29  ;;  %s4451_s29 = sld [smem:[#allocation7 + $0x25]] }
 0x31c   : > { %v1042_v21 = vadd.f32 %v1034_v16, %v1016_v15  ;;  %8890 = vst [vmem:[#allocation47_spill] sm:$0xff] %v5317_v12  ;;  %v1190_v16 = vmul.f32 %v5258_v25, %v1180_v2 }
 0x31d   : > { %946 = vmax.xlane.f32.xlu1 %v5228_v6  ;;  %916 = vadd.xlane.f32.xlu0 %v5230_v8  ;;  %v1407_v27 = vadd.f32 %v1399_v20, %v1381_v19  ;;  %v1555_v20 = vmul.f32 %v5317_v12, %v1180_v2  ;;  %v5543_v6 = vstv %s5431_s1  ;;  %s8935_s1 = sld [smem:[#allocation69_spill]] }
 0x31e   : > { %v1068_v33 = vadd.f32 %v1060_v23, %v1042_v21  ;;  %v1216_v23 = vmul.f32 %v5263_v32, %v1206_v18  ;;  %8926 = vst [vmem:[#allocation83_spill] sm:$0xff] %v5543_v6  ;;  %v5564_v6 = vstv %s5445_s6  ;;  %s7692_s6 = sld [smem:[#allocation7 + $0x4a]] }
 0x31f   : > { %v1433_v37 = vadd.f32 %v1425_v28, %v1407_v27  ;;  %v1232_v27 = vld [vmem:[#allocation4 + $0x15] sm:$0xff]  ;;  %8934 = vst [vmem:[#allocation89_spill] sm:$0xff] %v5564_v6 }
 0x320   : > { %v1094_v39 = vadd.f32 %v1086_v34, %v1068_v33  ;;  %v1581_v33 = vmul.f32 %v5322_v26, %v1206_v18  ;;  %v5325_v34 = vstv %s4438_s13  ;;  %v5338_v18 = vstv %s4441_s16  ;;  %s4453_s13 = sld [smem:[#allocation7 + $0x27]]  ;;  %s5395_s16 = sld [smem:[#allocation7 + $0x2c]] }
 0x321   : > { %948 = vmax.xlane.f32.xlu1 %v5224_v31  ;;  %918 = vadd.xlane.f32.xlu0 %v5232_v9  ;;  %v1459_v51 = vadd.f32 %v1451_v38, %v1433_v37  ;;  %8892 = vst [vmem:[#allocation49_spill] sm:$0xff] %v5325_v34  ;;  %v1242_v37 = vmul.f32 %v5268_v35, %v1232_v27  ;;  %v1258_v38 = vld [vmem:[#allocation5 + $0x15] sm:$0xff]  ;;  %8895 = vst [vmem:[#allocation52_spill] sm:$0xff] %v5338_v18 }
 0x322   : > { %v1120_v57 = vadd.f32 %v1112_v42, %v1094_v39  ;;  %v1607_v42 = vmul.f32 %v5325_v34, %v1232_v27  ;;  %v999_v27 = vld [vmem:[#allocation5 + $0x20] sm:$0xff] }
 0x323   : > { %v1485_v61 = vadd.f32 %v1477_v53, %v1459_v51  ;;  %v1268_v51 = vmul.f32 %v5273_v40, %v1258_v38  ;;  %v5330_v53 = vstv %s4439_s14  ;;  %s5391_s14 = sld [smem:[#allocation7 + $0x28]] }
 0x324   : > { %v1146_v63 = vadd.f32 %v1138_v58, %v1120_v57  ;;  %8893 = vst [vmem:[#allocation50_spill] sm:$0xff] %v5330_v53  ;;  %v1284_v57 = vld [vmem:[#allocation4 + $0x16] sm:$0xff]  ;;  %v1633_v59 = vmul.f32 %v5330_v53, %v1258_v38 }
 0x325   : > { %952 = vmax.xlane.f32.xlu1 %v5232_v9  ;;  %950 = vmax.xlane.f32.xlu0 %v5230_v8  ;;  %v1511_v5 = vadd.f32 %v1503_v62, %v1485_v61  ;;  %v5333_v61 = vstv %s4440_s15  ;;  %s5393_s15 = sld [smem:[#allocation7 + $0x2a]] }
 0x326   : > { %v1172_v15 = vadd.f32 %v1164_v0, %v1146_v63  ;;  %8894 = vst [vmem:[#allocation51_spill] sm:$0xff] %v5333_v61  ;;  %v1294_v63 = vmul.f32 %v5278_v46, %v1284_v57  ;;  %v1310_v0 = vld [vmem:[#allocation5 + $0x16] sm:$0xff] }
 0x327   : > { %v1537_v19 = vadd.f32 %v1529_v50, %v1511_v5  ;;  %v1659_v5 = vmul.f32 %v5333_v61, %v1284_v57  ;;  %v973_v50 = vld [vmem:[#allocation4 + $0x20] sm:$0xff]  ;;  %v5349_v57 = vstv %s4443_s18  ;;  %s5399_s18 = sld [smem:[#allocation7 + $0x30]] }
 0x328   : > { %v1198_v21 = vadd.f32 %v1190_v16, %v1172_v15  ;;  %v1320_v16 = vmul.f32 %v5281_v56, %v1310_v0  ;;  %8897 = vst [vmem:[#allocation54_spill] sm:$0xff] %v5349_v57 }
 0x329   : > { %954 = vmax.xlane.f32.xlu1 %v5234_v10  ;;  %920 = vadd.xlane.f32.xlu0 %v5234_v10  ;;  %v1563_v28 = vadd.f32 %v1555_v20, %v1537_v19  ;;  %v983_v19 = vmul.f32 %v5193_v36, %v973_v50 }
 0x32a   : > { %v1224_v7 = vadd.f32 %v1216_v23, %v1198_v21  ;;  %v1685_v21 = vmul.f32 %v5338_v18, %v1310_v0  ;;  %v5342_v23 = vstv %s4442_s17  ;;  %v5353_v0 = vstv %s4444_s19  ;;  %s5397_s17 = sld [smem:[#allocation7 + $0x2e]]  ;;  %s5401_s19 = sld [smem:[#allocation7 + $0x32]] }
 0x32b   : > { %v1589_v39 = vadd.f32 %v1581_v33, %v1563_v28  ;;  %8896 = vst [vmem:[#allocation53_spill] sm:$0xff] %v5342_v23  ;;  %v1347_v33 = vmul.f32 %v5284_v60, %v973_v50  ;;  %8898 = vst [vmem:[#allocation55_spill] sm:$0xff] %v5353_v0 }
 0x32c   : > { %v1250_v48 = vadd.f32 %v1242_v37, %v1224_v7  ;;  %v991_v7 = vadd.f32 %v983_v19, %v5196_v41  ;;  %v1009_v37 = vmul.f32 %v5198_v43, %v999_v27 }
 0x32d   : > { %956 = vmax.xlane.f32.xlu1 %v5236_v11  ;;  %922 = vadd.xlane.f32.xlu0 %v5236_v11  ;;  %v1615_v58 = vadd.f32 %v1607_v42, %v1589_v39  ;;  %v1712_v39 = vmul.f32 %v5342_v23, %v973_v50  ;;  %v1025_v42 = vld [vmem:[#allocation4 + $0x21] sm:$0xff] }
 0x32e   : > { %v1276_v62 = vadd.f32 %v1268_v51, %v1250_v48  ;;  %v1374_v51 = vmul.f32 %v5290_v3, %v999_v27  ;;  %v1400_v50 = vmul.f32 %v5293_v13, %v1025_v42  ;;  %v1233_v11 = vld [vmem:[#allocation4 + $0x25] sm:$0xff] }
 0x32f   : > { %v1641_v2 = vadd.f32 %v1633_v59, %v1615_v58  ;;  %v1017_v58 = vadd.f32 %v1009_v37, %v991_v7  ;;  %v1035_v59 = vmul.f32 %v5204_v47, %v1025_v42  ;;  %v5359_v7 = vstv %s4445_s20  ;;  %s5407_s20 = sld [smem:[#allocation7 + $0x34]] }
 0x330   : > { %v1302_v15 = vadd.f32 %v1294_v63, %v1276_v62  ;;  %v1739_v63 = vmul.f32 %v5349_v57, %v999_v27  ;;  %8899 = vst [vmem:[#allocation56_spill] sm:$0xff] %v5359_v7 }
 0x331   : > { %958 = vmax.xlane.f32.xlu1 %v5238_v52  ;;  %924 = vadd.xlane.f32.xlu0 %v5238_v52  ;;  %v1667_v20 = vadd.f32 %v1659_v5, %v1641_v2  ;;  %v1051_v2 = vld [vmem:[#allocation5 + $0x21] sm:$0xff] }
 0x332   : > { %v1328_v28 = vadd.f32 %v1320_v16, %v1302_v15  ;;  %v1043_v15 = vadd.f32 %v1035_v59, %v1017_v58  ;;  %v1061_v16 = vmul.f32 %v5210_v55, %v1051_v2 }
 0x333   : > { %v1693_v38 = vadd.f32 %v1685_v21, %v1667_v20  ;;  %v1765_v20 = vmul.f32 %v5353_v0, %v1025_v42  ;;  %v1077_v21 = vld [vmem:[#allocation4 + $0x22] sm:$0xff] }
 0x334   : > { %v1355_v48 = vadd.f32 %v1347_v33, %v1328_v28  ;;  %v1426_v33 = vmul.f32 %v5298_v24, %v1051_v2  ;;  %v1069_v27 = vadd.f32 %v1061_v16, %v1043_v15  ;;  %v1087_v37 = vmul.f32 %v5222_v4, %v1077_v21 }
 0x335   : > { %v1720_v62 = vadd.f32 %v1712_v39, %v1693_v38  ;;  %v1791_v39 = vmul.f32 %v5359_v7, %v1051_v2  ;;  %v1452_v42 = vmul.f32 %v5301_v29, %v1077_v21 }
 0x336   : > { %v1382_v5 = vadd.f32 %v1374_v51, %v1355_v48  ;;  %v5363_v48 = vstv %s4446_s21  ;;  %v1103_v51 = vld [vmem:[#allocation5 + $0x22] sm:$0xff]  ;;  %v1095_v59 = vadd.f32 %v1087_v37, %v1069_v27  ;;  %s5409_s21 = sld [smem:[#allocation7 + $0x36]] }
 0x337   : > { %v1747_v19 = vadd.f32 %v1739_v63, %v1720_v62  ;;  %8900 = vst [vmem:[#allocation57_spill] sm:$0xff] %v5363_v48  ;;  %v1113_v62 = vmul.f32 %v5243_v14, %v1103_v51  ;;  %v1478_v16 = vmul.f32 %v5306_v45, %v1103_v51  ;;  %v1155_v27 = vld [vmem:[#allocation5 + $0x23] sm:$0xff] }
 0x338   : > { %v1408_v28 = vadd.f32 %v1400_v50, %v1382_v5  ;;  %v1817_v5 = vmul.f32 %v5363_v48, %v1077_v21  ;;  %v1129_v50 = vld [vmem:[#allocation4 + $0x23] sm:$0xff] }
 0x339   : > { %v1773_v38 = vadd.f32 %v1765_v20, %v1747_v19  ;;  %v5369_v19 = vstv %s4447_s22  ;;  %v1121_v2 = vadd.f32 %v1113_v62, %v1095_v59  ;;  %v1139_v20 = vmul.f32 %v5248_v17, %v1129_v50  ;;  %s5412_s22 = sld [smem:[#allocation7 + $0x29]] }
 0x33a   : > { %v1434_v58 = vadd.f32 %v1426_v33, %v1408_v28  ;;  %8901 = vst [vmem:[#allocation58_spill] sm:$0xff] %v5369_v19  ;;  %v1843_v28 = vmul.f32 %v5369_v19, %v1103_v51  ;;  %v5373_v33 = vstv %s4448_s8  ;;  %v1504_v21 = vmul.f32 %v5309_v54, %v1129_v50  ;;  %s5414_s8 = sld [smem:[#allocation7 + $0x38]] }
 0x33b   : > { %v1799_v63 = vadd.f32 %v1791_v39, %v1773_v38  ;;  %8902 = vst [vmem:[#allocation59_spill] sm:$0xff] %v5373_v33  ;;  %v1147_v38 = vadd.f32 %v1139_v20, %v1121_v2  ;;  %v1165_v39 = vmul.f32 %v5253_v22, %v1155_v27  ;;  %v1530_v62 = vmul.f32 %v5314_v1, %v1155_v27  ;;  %v1207_v2 = vld [vmem:[#allocation5 + $0x24] sm:$0xff] }
 0x33c   : > { %v1460_v15 = vadd.f32 %v1452_v42, %v1434_v58  ;;  %v1869_v42 = vmul.f32 %v5373_v33, %v1129_v50  ;;  %v1556_v50 = vmul.f32 %v5317_v12, %v1181_v44  ;;  %v5513_v9 = vstv %s5409_s21  ;;  %s7968_s21 = sld [smem:[#allocation7 + $0x5f]] }
 0x33d   : > { %v1825_v49 = vadd.f32 %v1817_v5, %v1799_v63  ;;  %v5379_v63 = vstv %s4449_s27  ;;  %v1173_v51 = vadd.f32 %v1165_v39, %v1147_v38  ;;  %v1191_v5 = vmul.f32 %v5258_v25, %v1181_v44  ;;  %s5416_s27 = sld [smem:[#allocation7 + $0x2b]]  ;;  %8919 = vst [vmem:[#allocation76_spill] sm:$0xff] %v5513_v9 }
 0x33e   : > { %v1486_v37 = vadd.f32 %v1478_v16, %v1460_v15  ;;  %8903 = vst [vmem:[#allocation60_spill] sm:$0xff] %v5379_v63  ;;  %v1895_v15 = vmul.f32 %v5379_v63, %v1155_v27  ;;  %v5383_v16 = vstv %s4450_s28  ;;  %v1582_v39 = vmul.f32 %v5322_v26, %v1207_v2  ;;  %s5418_s28 = sld [smem:[#allocation7 + $0x3a]] }
 0x33f   : > { %v1851_v58 = vadd.f32 %v1843_v28, %v1825_v49  ;;  %8904 = vst [vmem:[#allocation61_spill] sm:$0xff] %v5383_v16  ;;  %v1199_v20 = vadd.f32 %v1191_v5, %v1173_v51  ;;  %v1217_v28 = vmul.f32 %v5263_v32, %v1207_v2  ;;  %v1608_v5 = vmul.f32 %v5325_v34, %v1233_v11 }
 0x340   : > { %v1512_v59 = vadd.f32 %v1504_v21, %v1486_v37  ;;  %v1921_v21 = vmul.f32 %v5383_v16, %v1181_v44  ;;  %v5607_v26 = vstv %s5482_s23  ;;  %s7838_s23 = sld [smem:[#allocation7 + $0x56]] }
 0x341   : > { %v1877_v52 = vadd.f32 %v1869_v42, %v1851_v58  ;;  %v5389_v58 = vstv %s4451_s29  ;;  %v1225_v44 = vadd.f32 %v1217_v28, %v1199_v20  ;;  %s5422_s29 = sld [smem:[#allocation7 + $0x2d]]  ;;  %v1285_v20 = vld [vmem:[#allocation4 + $0x26] sm:$0xff]  ;;  %8948 = vst [vmem:[#allocation102_spill] sm:$0xff] %v5607_v26 }
 0x342   : > { %v1538_v49 = vadd.f32 %v1530_v62, %v1512_v59  ;;  %8905 = vst [vmem:[#allocation62_spill] sm:$0xff] %v5389_v58  ;;  %v1947_v42 = vmul.f32 %v5389_v58, %v1207_v2  ;;  %v5405_v59 = vstv %s4452_s30  ;;  %v1259_v62 = vld [vmem:[#allocation5 + $0x25] sm:$0xff]  ;;  %s5424_s30 = sld [smem:[#allocation7 + $0x2f]]  ;;  %v1660_v10 = vmul.f32 %v5333_v61, %v1285_v20 }
 0x343   : > { %v1903_v37 = vadd.f32 %v1895_v15, %v1877_v52  ;;  %v1243_v52 = vmul.f32 %v5268_v35, %v1233_v11  ;;  %8906 = vst [vmem:[#allocation63_spill] sm:$0xff] %v5405_v59  ;;  %v1269_v2 = vmul.f32 %v5273_v40, %v1259_v62  ;;  %v5551_v58 = vstv %s5435_s3  ;;  %s7542_s3 = sld [smem:[#allocation7 + $0x44]] }
 0x344   : > { %v1564_v38 = vadd.f32 %v1556_v50, %v1538_v49  ;;  %v1973_v50 = vmul.f32 %v5405_v59, %v1233_v11  ;;  %8928 = vst [vmem:[#allocation85_spill] sm:$0xff] %v5551_v58  ;;  %v5572_v58 = vstv %s5453_s26  ;;  %s7930_s26 = sld [smem:[#allocation7 + $0x5c]] }
 0x345   : > { %v1929_v27 = vadd.f32 %v1921_v21, %v1903_v37  ;;  %v1251_v15 = vadd.f32 %v1243_v52, %v1225_v44  ;;  %v1634_v37 = vmul.f32 %v5330_v53, %v1259_v62  ;;  %v5427_v21 = vstv %s4453_s13  ;;  %s5443_s13 = sld [smem:[#allocation7 + $0x39]]  ;;  %8938 = vst [vmem:[#allocation92_spill] sm:$0xff] %v5572_v58 }
 0x346   : > { %v1590_v51 = vadd.f32 %v1582_v39, %v1564_v38  ;;  %8907 = vst [vmem:[#allocation64_spill] sm:$0xff] %v5427_v21  ;;  %v1295_v38 = vmul.f32 %v5278_v46, %v1285_v20  ;;  %v1999_v44 = vmul.f32 %v5427_v21, %v1259_v62  ;;  %v5604_v53 = vstv %s5480_s10  ;;  %s7809_s10 = sld [smem:[#allocation7 + $0x50]] }
 0x347   : > { %v1955_v49 = vadd.f32 %v1947_v42, %v1929_v27  ;;  %v1277_v11 = vadd.f32 %v1269_v2, %v1251_v15  ;;  %v5448_v27 = vstv %s5391_s14  ;;  %s5461_s14 = sld [smem:[#allocation7 + $0x45]]  ;;  %8947 = vst [vmem:[#allocation101_spill] sm:$0xff] %v5604_v53 }
 0x348   : > { %v1616_v28 = vadd.f32 %v1608_v5, %v1590_v51  ;;  %8908 = vst [vmem:[#allocation65_spill] sm:$0xff] %v5448_v27  ;;  %v1311_v51 = vld [vmem:[#allocation5 + $0x26] sm:$0xff] }
 0x349   : > { %v1981_v39 = vadd.f32 %v1973_v50, %v1955_v49  ;;  %v1303_v62 = vadd.f32 %v1295_v38, %v1277_v11  ;;  %v2025_v50 = vmul.f32 %v5448_v27, %v1285_v20 }
 0x34a   : > { %v1642_v5 = vadd.f32 %v1634_v37, %v1616_v28  ;;  %v1321_v28 = vmul.f32 %v5281_v56, %v1311_v51 }
 0x34b   : > { %v2007_v49 = vadd.f32 %v1999_v44, %v1981_v39  ;;  %v5488_v39 = vstv %s5395_s16  ;;  %v5491_v44 = vstv %s5397_s17  ;;  %s5510_s16 = sld [smem:[#allocation7 + $0x59]]  ;;  %s5522_s17 = sld [smem:[#allocation7 + $0x5b]] }
 0x34c   : > { %v1668_v37 = vadd.f32 %v1660_v10, %v1642_v5  ;;  %v5485_v10 = vstv %s5393_s15  ;;  %8914 = vst [vmem:[#allocation71_spill] sm:$0xff] %v5488_v39  ;;  %8915 = vst [vmem:[#allocation72_spill] sm:$0xff] %v5491_v44  ;;  %v5494_v5 = vstv %s5399_s18  ;;  %s5508_s15 = sld [smem:[#allocation7 + $0x57]]  ;;  %v5515_v8 = vadd.f32 %v1321_v28, %v1303_v62  ;;  %s5524_s18 = sld [smem:[#allocation7 + $0x5d]] }
 0x34d   : > { %8913 = vst [vmem:[#allocation70_spill] sm:$0xff] %v5485_v10  ;;  %8916 = vst [vmem:[#allocation73_spill] sm:$0xff] %v5494_v5  ;;  %v5530_v62 = vstv %s5422_s29  ;;  %v5533_v28 = vstv %s5418_s28  ;;  %v5585_v6 = vstv %s5461_s14 }
 0x34e   : > { %8922 = vst [vmem:[#allocation79_spill] sm:$0xff] %v5530_v62  ;;  %8923 = vst [vmem:[#allocation80_spill] sm:$0xff] %v5533_v28 }
 0x34f   : > { %8942 = vst [vmem:[#allocation96_spill] sm:$0xff] %v5585_v6 }
 0x351   : > { %v5622_v28 = vstv %s5522_s17 }
 0x352   : > { %v5616_v32 = vstv %s5508_s15  ;;  %8953 = vst [vmem:[#allocation107_spill] sm:$0xff] %v5622_v28  ;;  %v5625_v1 = vstv %s5524_s18 }
 0x353   : > { %8951 = vst [vmem:[#allocation105_spill] sm:$0xff] %v5616_v32  ;;  %8954 = vst [vmem:[#allocation108_spill] sm:$0xff] %v5625_v1 }
 0x3a2   : > { %v915_v52 = vpop.xlane.xlu1 %914  ;;  %v911_v42 = vpop.xlane.xlu0 %910 }
 0x3a3   : > { %v929_v15 = vmul.f32 0.0078125, %v915_v52  ;;  %v927_v2 = vmul.f32 0.0078125, %v911_v42  ;;  %v1686_v52 = vmul.f32 %v5338_v18, %v1311_v51  ;;  %v5473_v42 = vstv %s5412_s22  ;;  %s5496_s22 = sld [smem:[#allocation7 + $0x53]] }
 0x3a4   : > { %8911 = vst [vmem:[#allocation68_spill] sm:$0xff] %v5473_v42  ;;  %v5554_v18 = vstv %s5437_s4  ;;  %s7615_s4 = sld [smem:[#allocation7 + $0x46]] }
 0x3a5   : > { %938 = vst.msk [vmem:[#allocation4 + $0x53] sm:$0xff] %vm852_vm4, %v929_v15  ;;  %936 = vst.msk [vmem:[#allocation4 + $0x33] sm:$0xff] %vm852_vm4, %v927_v2  ;;  %v5501_v15 = vstv %s5401_s19  ;;  %v5504_v2 = vstv %s5407_s20  ;;  %v5517_v31 = vadd.f32 %v1686_v52, %v1668_v37  ;;  %v5537_v52 = vstv %s5424_s30  ;;  %s8931_s19 = sld [smem:[#allocation66_spill]]  ;;  %s7932_s20 = sld [smem:[#allocation7 + $0x5e]] }
 0x3a6   : > { %v945_v11 = vpop.xlane.xlu1 %944  ;;  %v913_v38 = vpop.xlane.xlu0 %912  ;;  %8917 = vst [vmem:[#allocation74_spill] sm:$0xff] %v5501_v15  ;;  %8918 = vst [vmem:[#allocation75_spill] sm:$0xff] %v5504_v2  ;;  %s9880_s30 = sld [smem:[#allocation306_spill]] }
 0x3a7   : > { %961 = vst.msk [vmem:[#allocation5 + $0x33] sm:$0xff] %vm852_vm4, %v945_v11  ;;  %v928_v20 = vmul.f32 0.0078125, %v913_v38  ;;  %v2033_v11 = vadd.f32 %v2025_v50, %v2007_v49  ;;  %v2051_v38 = vmul.f32 %v5473_v42, %v1311_v51  ;;  %v5520_v49 = vstv %s5414_s8  ;;  %8924 = vst [vmem:[#allocation81_spill] sm:$0xff] %v5537_v52  ;;  %s8114_s8 = sld [smem:[#allocation7 + $0x60]] }
 0x3a8   : > { %8920 = vst [vmem:[#allocation77_spill] sm:$0xff] %v5520_v49  ;;  %v5546_v42 = vstv %s5433_s2  ;;  %8929 = vst [vmem:[#allocation86_spill] sm:$0xff] %v5554_v18  ;;  %s7473_s2 = sld [smem:[#allocation7 + $0x42]] }
 0x3a9   : > { %937 = vst.msk [vmem:[#allocation4 + $0x43] sm:$0xff] %vm852_vm4, %v928_v20  ;;  %v5527_v20 = vstv %s5416_s27  ;;  %8927 = vst [vmem:[#allocation84_spill] sm:$0xff] %v5546_v42  ;;  %v5548_v21 = vadd.f32 %v2051_v38, %v2033_v11  ;;  %v5567_v42 = vstv %s5451_s7  ;;  %v5610_v56 = vstv %s5496_s22  ;;  %s7724_s7 = sld [smem:[#allocation7 + $0x4c]]  ;;  %s8124_s27 = sld [smem:[#allocation7 + $0x61]] }
 0x3aa   : > { %v947_v51 = vpop.xlane.xlu1 %946  ;;  %v917_v50 = vpop.xlane.xlu0 %916  ;;  %8921 = vst [vmem:[#allocation78_spill] sm:$0xff] %v5527_v20  ;;  %8936 = vst [vmem:[#allocation90_spill] sm:$0xff] %v5567_v42 }
 0x3ab   : > { %962 = vst.msk [vmem:[#allocation5 + $0x43] sm:$0xff] %vm852_vm4, %v947_v51  ;;  %v930_v37 = vmul.f32 0.0078125, %v917_v50  ;;  %v5557_v51 = vstv %s5439_s5  ;;  %v5561_v50 = vstv %s5443_s13  ;;  %v5592_v58 = vstv %s8931_s19  ;;  %8949 = vst [vmem:[#allocation103_spill] sm:$0xff] %v5610_v56  ;;  %s7655_s5 = sld [smem:[#allocation7 + $0x48]] }
 0x3ac   : > { %8930 = vst [vmem:[#allocation87_spill] sm:$0xff] %v5557_v51  ;;  %8933 = vst [vmem:[#allocation88_spill] sm:$0xff] %v5561_v50  ;;  %v5576_v51 = vstv %s5455_s24  ;;  %v5582_v50 = vstv %s5459_s12  ;;  %v5587_v42 = vld [vmem:[#allocation4 + $0x55] sm:$0xff]  ;;  %s7836_s12 = sld [smem:[#allocation7 + $0x54]]  ;;  %s7850_s24 = sld [smem:[#allocation7 + $0x58]] }
 0x3ad   : > { %939 = vst.msk [vmem:[#allocation4 + $0x63] sm:$0xff] %vm852_vm4, %v930_v37  ;;  %8939 = vst [vmem:[#allocation93_spill] sm:$0xff] %v5576_v51  ;;  %v5579_v37 = vstv %s5457_s25  ;;  %v5589_v18 = vld [vmem:[#allocation4 + $0x56] sm:$0xff]  ;;  %v5598_v51 = vstv %s5475_s11  ;;  %v5629_v26 = vmul.f32 %v5504_v2, %v5587_v42  ;;  %s7824_s11 = sld [smem:[#allocation7 + $0x52]] }
 0x3ae   : > { %v949_v11 = vpop.xlane.xlu1 %948  ;;  %v5569_v38 = vpop.xlane.xlu0 %918  ;;  %8940 = vst [vmem:[#allocation94_spill] sm:$0xff] %v5579_v37  ;;  %8941 = vst [vmem:[#allocation95_spill] sm:$0xff] %v5582_v50  ;;  %v5601_v37 = vstv %s8935_s1  ;;  %v1026_v50 = vld [vmem:[#allocation4 + $0x31] sm:$0xff]  ;;  %s7852_s25 = sld [smem:[#allocation7 + $0x5a]] }
 0x3af   : > { %8937 = vst [vmem:[#allocation91_spill] sm:$0xff] %v5569_v38  ;;  %963 = vst.msk [vmem:[#allocation5 + $0x53] sm:$0xff] %vm852_vm4, %v949_v11  ;;  %v974_v38 = vld [vmem:[#allocation4 + $0x30] sm:$0xff]  ;;  %v5595_v11 = vstv %s8932_s0  ;;  %v1036_v28 = vmul.f32 %v5204_v47, %v1026_v50  ;;  %v5647_v32 = vmul.f32 %v5293_v13, %v1026_v50  ;;  %v5677_v22 = vmul.f32 %v5353_v0, %v1026_v50  ;;  %s9891_s0 = sld [smem:[#allocation307_spill]] }
 0x3b0   : > { %8943 = vst [vmem:[#allocation97_spill] sm:$0xff] %v5592_v58  ;;  %8944 = vst [vmem:[#allocation98_spill] sm:$0xff] %v5595_v11  ;;  %v1078_v30 = vld [vmem:[#allocation4 + $0x32] sm:$0xff]  ;;  %v5613_v58 = vstv %s5498_s9  ;;  %v984_v56 = vmul.f32 %v5193_v36, %v974_v38  ;;  %v1348_v53 = vmul.f32 %v5284_v60, %v974_v38  ;;  %s7780_s9 = sld [smem:[#allocation7 + $0x4e]] }
 0x3b1   : > { %8945 = vst [vmem:[#allocation99_spill] sm:$0xff] %v5598_v51  ;;  %8946 = vst [vmem:[#allocation100_spill] sm:$0xff] %v5601_v37  ;;  %v1130_v6 = vld [vmem:[#allocation4 + $0x33] sm:$0xff]  ;;  %v5619_v37 = vstv %s5510_s16  ;;  %v5641_v1 = vmul.f32 %v5222_v4, %v1078_v30  ;;  %v5680_v45 = vmul.f32 %v5363_v48, %v1078_v30  ;;  %s9889_s16 = sld [smem:[#allocation308_spill]] }
 0x3b2   : > { %8950 = vst [vmem:[#allocation104_spill] sm:$0xff] %v5613_v58  ;;  %v1182_v40 = vld [vmem:[#allocation4 + $0x34] sm:$0xff]  ;;  %v953_v52 = vpop.xlane.xlu1 %952  ;;  %v951_v51 = vpop.xlane.xlu0 %950  ;;  %8952 = vst [vmem:[#allocation106_spill] sm:$0xff] %v5619_v37  ;;  %v5633_v58 = vmul.f32 %v5513_v9, %v5589_v18  ;;  %v5644_v37 = vmul.f32 %v5248_v17, %v1130_v6  ;;  %v5664_v19 = vmul.f32 %v5309_v54, %v1130_v6 }
 0x3b3   : > { %v1234_v11 = vld [vmem:[#allocation4 + $0x35] sm:$0xff]  ;;  %8955 = vst [vmem:[#allocation109_spill] sm:$0xff] %v5629_v26  ;;  %965 = vst.msk [vmem:[#allocation5 + $0x73] sm:$0xff] %vm852_vm4, %v953_v52 }
 0x3b4   : > { %v1286_v63 = vld [vmem:[#allocation4 + $0x36] sm:$0xff]  ;;  %8956 = vst [vmem:[#allocation110_spill] sm:$0xff] %v5633_v58  ;;  %964 = vst.msk [vmem:[#allocation5 + $0x63] sm:$0xff] %vm852_vm4, %v951_v51  ;;  %v5650_v58 = vmul.f32 %v5258_v25, %v1182_v40  ;;  %v5653_v26 = vmul.f32 %v5268_v35, %v1234_v11  ;;  %v5659_v51 = vmul.f32 %v5301_v29, %v1078_v30 }
 0x3b5   : > { %8957 = vst [vmem:[#allocation111_spill] sm:$0xff] %v5641_v1  ;;  %8958 = vst [vmem:[#allocation112_spill] sm:$0xff] %v5644_v37  ;;  %v5656_v52 = vmul.f32 %v5278_v46, %v1286_v63  ;;  %v5661_v49 = vld [vmem:[#allocation4 + $0x50] sm:$0xff]  ;;  %v5667_v37 = vmul.f32 %v5317_v12, %v1182_v40  ;;  %v5670_v62 = vmul.f32 %v5325_v34, %v1234_v11 }
 0x3b6   : > { %8959 = vst [vmem:[#allocation113_spill] sm:$0xff] %v5650_v58  ;;  %8960 = vst [vmem:[#allocation114_spill] sm:$0xff] %v5653_v26  ;;  %v5673_v58 = vmul.f32 %v5333_v61, %v1286_v63  ;;  %v955_v26 = vpop.xlane.xlu1 %954  ;;  %v986_v7 = vmul.f32 %v5193_v36, %v5661_v49  ;;  %v5707_v1 = vmul.f32 %v5488_v39, %v1026_v50 }
 0x3b7   : > { %8961 = vst [vmem:[#allocation115_spill] sm:$0xff] %v5656_v52  ;;  %8962 = vst [vmem:[#allocation116_spill] sm:$0xff] %v5659_v51  ;;  %v1713_v52 = vmul.f32 %v5342_v23, %v974_v38  ;;  %v5685_v51 = vld [vmem:[#allocation4 + $0x51] sm:$0xff]  ;;  %v5716_v36 = vmul.f32 %v5501_v15, %v1182_v40  ;;  %v5722_v20 = vmul.f32 %v5513_v9, %v1286_v63 }
 0x3b8   : > { %8963 = vst [vmem:[#allocation117_spill] sm:$0xff] %v5664_v19  ;;  %8964 = vst [vmem:[#allocation118_spill] sm:$0xff] %v5667_v37  ;;  %v5683_v19 = vmul.f32 %v5373_v33, %v1130_v6  ;;  %v5695_v37 = vmul.f32 %v5448_v27, %v1286_v63  ;;  %v5719_v27 = vmul.f32 %v5504_v2, %v1234_v11 }
 0x3b9   : > { %8965 = vst [vmem:[#allocation119_spill] sm:$0xff] %v5670_v62  ;;  %8966 = vst [vmem:[#allocation120_spill] sm:$0xff] %v5673_v58  ;;  %v5689_v62 = vmul.f32 %v5383_v16, %v1182_v40  ;;  %v5692_v58 = vmul.f32 %v5405_v59, %v1234_v11  ;;  %v5726_v50 = vmul.f32 %v5204_v47, %v5685_v51 }
 0x3ba   : > { %8967 = vst [vmem:[#allocation121_spill] sm:$0xff] %v5677_v22  ;;  %8968 = vst [vmem:[#allocation122_spill] sm:$0xff] %v5680_v45  ;;  %v5699_v45 = vld [vmem:[#allocation4 + $0x52] sm:$0xff]  ;;  %v992_v63 = vadd.f32 %v984_v56, %v5196_v41  ;;  %v5743_v11 = vadd.f32 %v986_v7, %v5196_v41  ;;  %v5760_v56 = vmul.f32 %v5293_v13, %v5685_v51 }
 0x3bb   : > { %8969 = vst [vmem:[#allocation123_spill] sm:$0xff] %v5683_v19  ;;  %966 = vst.msk [vmem:[#allocation5 + $0x83] sm:$0xff] %vm852_vm4, %v955_v26  ;;  %v5701_v22 = vld [vmem:[#allocation4 + $0x53] sm:$0xff]  ;;  %v2077_v26 = vmul.f32 %v5485_v10, %v974_v38  ;;  %v957_v38 = vpop.xlane.xlu1 %956  ;;  %v5764_v7 = vmul.f32 %v5301_v29, %v5699_v45 }
 0x3bc   : > { %8970 = vst [vmem:[#allocation124_spill] sm:$0xff] %v5689_v62  ;;  %8971 = vst [vmem:[#allocation125_spill] sm:$0xff] %v5692_v58  ;;  %v5703_v19 = vld [vmem:[#allocation4 + $0x54] sm:$0xff]  ;;  %v5710_v62 = vmul.f32 %v5491_v44, %v1078_v30  ;;  %v5713_v58 = vmul.f32 %v5494_v5, %v1130_v6  ;;  %v5730_v30 = vmul.f32 %v5222_v4, %v5699_v45 }
 0x3bd   : > { %8972 = vst [vmem:[#allocation126_spill] sm:$0xff] %v5695_v37  ;;  %v1000_v37 = vld [vmem:[#allocation5 + $0x30] sm:$0xff]  ;;  %8973 = vst [vmem:[#allocation127_spill] sm:$0xff] %v5722_v20  ;;  %v5734_v6 = vmul.f32 %v5248_v17, %v5701_v22  ;;  %v5738_v40 = vmul.f32 %v5258_v25, %v5703_v19 }
 0x3be   : > { %8974 = vst [vmem:[#allocation128_spill] sm:$0xff] %v5726_v50  ;;  %8975 = vst [vmem:[#allocation129_spill] sm:$0xff] %v5730_v30  ;;  %v5747_v50 = vmul.f32 %v5587_v42, %v5268_v35  ;;  %v5751_v30 = vmul.f32 %v5589_v18, %v5278_v46  ;;  %v1052_v20 = vld [vmem:[#allocation5 + $0x31] sm:$0xff] }
 0x3bf   : > { %8976 = vst [vmem:[#allocation130_spill] sm:$0xff] %v5734_v6  ;;  %8977 = vst [vmem:[#allocation131_spill] sm:$0xff] %v5738_v40  ;;  %v1010_v6 = vmul.f32 %v5198_v43, %v1000_v37  ;;  %v5756_v40 = vmul.f32 %v5284_v60, %v5661_v49  ;;  %v959_v43 = vpop.xlane.xlu1 %958  ;;  %v1156_v41 = vld [vmem:[#allocation5 + $0x33] sm:$0xff] }
 0x3c0   : > { %967 = vst.msk [vmem:[#allocation5 + $0x93] sm:$0xff] %vm852_vm4, %v957_v38  ;;  %8978 = vst [vmem:[#allocation132_spill] sm:$0xff] %v5743_v11  ;;  %v1356_v38 = vadd.f32 %v1348_v53, %v5515_v8  ;;  %v5786_v8 = vmul.f32 %v5342_v23, %v5661_v49  ;;  %v1062_v53 = vmul.f32 %v5210_v55, %v1052_v20 }
 0x3c1   : > { %8979 = vst [vmem:[#allocation133_spill] sm:$0xff] %v5747_v50  ;;  %8980 = vst [vmem:[#allocation134_spill] sm:$0xff] %v5751_v30  ;;  %v5769_v30 = vmul.f32 %v5309_v54, %v5701_v22  ;;  %v5773_v50 = vmul.f32 %v5317_v12, %v5703_v19  ;;  %v1018_v11 = vadd.f32 %v1010_v6, %v992_v63  ;;  %v1104_v63 = vld [vmem:[#allocation5 + $0x32] sm:$0xff] }
 0x3c2   : > { %8981 = vst [vmem:[#allocation135_spill] sm:$0xff] %v5756_v40  ;;  %8982 = vst [vmem:[#allocation136_spill] sm:$0xff] %v5760_v56  ;;  %v1375_v40 = vmul.f32 %v5290_v3, %v1000_v37  ;;  %v5778_v56 = vmul.f32 %v5587_v42, %v5325_v34  ;;  %v1740_v3 = vmul.f32 %v5349_v57, %v1000_v37  ;;  %v8995_v57 = vld [vmem:[#allocation111_spill] sm:$0xff] }
 0x3c3   : > { %8983 = vst [vmem:[#allocation137_spill] sm:$0xff] %v5764_v7  ;;  %8984 = vst [vmem:[#allocation138_spill] sm:$0xff] %v5769_v30  ;;  %v5782_v7 = vmul.f32 %v5589_v18, %v5333_v61  ;;  %v1044_v6 = vadd.f32 %v1036_v28, %v1018_v11  ;;  %v1721_v30 = vadd.f32 %v1713_v52, %v5517_v31 }
 0x3c4   : > { %8985 = vst [vmem:[#allocation139_spill] sm:$0xff] %v5773_v50  ;;  %8986 = vst [vmem:[#allocation140_spill] sm:$0xff] %v5778_v56  ;;  %v1383_v50 = vadd.f32 %v1375_v40, %v1356_v38  ;;  %v5794_v56 = vmul.f32 %v5353_v0, %v5685_v51  ;;  %v1427_v52 = vmul.f32 %v5298_v24, %v1052_v20  ;;  %v8998_v24 = vld [vmem:[#allocation65_spill] sm:$0xff] }
 0x3c5   : > { %8987 = vst [vmem:[#allocation141_spill] sm:$0xff] %v5782_v7  ;;  %8988 = vst [vmem:[#allocation142_spill] sm:$0xff] %v5786_v8  ;;  %v5798_v7 = vmul.f32 %v5363_v48, %v5699_v45  ;;  %v5802_v8 = vmul.f32 %v5373_v33, %v5701_v22  ;;  %v1070_v28 = vadd.f32 %v1062_v53, %v1044_v6  ;;  %v8996_v53 = vld [vmem:[#allocation121_spill] sm:$0xff] }
 0x3c6   : > { %968 = vst.msk [vmem:[#allocation5 + $0xa3] sm:$0xff] %vm852_vm4, %v959_v43  ;;  %8989 = vst [vmem:[#allocation143_spill] sm:$0xff] %v5794_v56  ;;  %v5806_v43 = vmul.f32 %v5383_v16, %v5703_v19  ;;  %v1409_v31 = vadd.f32 %v5647_v32, %v1383_v50  ;;  %v1748_v40 = vadd.f32 %v1740_v3, %v1721_v30  ;;  %v8994_v56 = vld [vmem:[#allocation78_spill] sm:$0xff]  ;;  %v8997_v32 = vld [vmem:[#allocation56_spill] sm:$0xff] }
 0x3c7   : > { %8990 = vst [vmem:[#allocation144_spill] sm:$0xff] %v5798_v7  ;;  %8991 = vst [vmem:[#allocation145_spill] sm:$0xff] %v5802_v8  ;;  %v5812_v11 = vmul.f32 %v5587_v42, %v5405_v59  ;;  %v1114_v38 = vmul.f32 %v5243_v14, %v1104_v63  ;;  %v2085_v7 = vadd.f32 %v2077_v26, %v5548_v21  ;;  %v9002_v26 = vld [vmem:[#allocation116_spill] sm:$0xff]  ;;  %v9036_v14 = vld [vmem:[#allocation83_spill] sm:$0xff] }
 0x3c8   : > { %8992 = vst [vmem:[#allocation146_spill] sm:$0xff] %v5806_v43  ;;  %v2103_v8 = vmul.f32 %v8994_v56, %v1000_v37  ;;  %v1096_v55 = vadd.f32 %v8995_v57, %v1070_v28  ;;  %v1435_v43 = vadd.f32 %v1427_v52, %v1409_v31  ;;  %v1774_v6 = vadd.f32 %v8996_v53, %v1748_v40  ;;  %v9003_v28 = vld [vmem:[#allocation44_spill] sm:$0xff]  ;;  %v9007_v56 = vld [vmem:[#allocation112_spill] sm:$0xff] }
 0x3c9   : > { %8993 = vst [vmem:[#allocation147_spill] sm:$0xff] %v5812_v11  ;;  %v1792_v50 = vmul.f32 %v8997_v32, %v1052_v20  ;;  %v5822_v3 = vmul.f32 %v5589_v18, %v8998_v24  ;;  %v5826_v42 = vmul.f32 %v5485_v10, %v5661_v49  ;;  %v5830_v21 = vmul.f32 %v5488_v39, %v5685_v51  ;;  %v9005_v18 = vld [vmem:[#allocation32_spill] sm:$0xff] }
 0x3ca   : > { %v2111_v37 = vadd.f32 %v2103_v8, %v2085_v7  ;;  %v1122_v57 = vadd.f32 %v1114_v38, %v1096_v55  ;;  %v1461_v30 = vadd.f32 %v9002_v26, %v1435_v43  ;;  %v1479_v31 = vmul.f32 %v9003_v28, %v1104_v63  ;;  %v9006_v11 = vld [vmem:[#allocation79_spill] sm:$0xff]  ;;  %v9008_v55 = vld [vmem:[#allocation122_spill] sm:$0xff]  ;;  %v9009_v43 = vld [vmem:[#allocation58_spill] sm:$0xff] }
 0x3cb   : > { %8999 = vst [vmem:[#allocation111_spill] sm:$0xff] %v5822_v3  ;;  %9000 = vst [vmem:[#allocation121_spill] sm:$0xff] %v5826_v42  ;;  %v1800_v52 = vadd.f32 %v1792_v50, %v1774_v6  ;;  %v5836_v40 = vmul.f32 %v5491_v44, %v5699_v45  ;;  %v1166_v53 = vmul.f32 %v9005_v18, %v1156_v41  ;;  %v9014_v26 = vld [vmem:[#allocation117_spill] sm:$0xff]  ;;  %v9026_v18 = vld [vmem:[#allocation118_spill] sm:$0xff] }
 0x3cc   : > { %9001 = vst [vmem:[#allocation148_spill] sm:$0xff] %v5830_v21  ;;  %v2137_v3 = vadd.f32 %v5707_v1, %v2111_v37  ;;  %v2155_v42 = vmul.f32 %v9006_v11, %v1052_v20  ;;  %v1148_v32 = vadd.f32 %v9007_v56, %v1122_v57  ;;  %v1208_v21 = vld [vmem:[#allocation5 + $0x34] sm:$0xff]  ;;  %v1487_v7 = vadd.f32 %v1479_v31, %v1461_v30  ;;  %v9012_v1 = vld [vmem:[#allocation77_spill] sm:$0xff] }
 0x3cd   : > { %9004 = vst [vmem:[#allocation116_spill] sm:$0xff] %v5836_v40  ;;  %v1826_v8 = vadd.f32 %v9008_v55, %v1800_v52  ;;  %v1844_v38 = vmul.f32 %v9009_v43, %v1104_v63  ;;  %v5846_v6 = vmul.f32 %v5494_v5, %v5701_v22  ;;  %v5850_v45 = vmul.f32 %v5501_v15, %v5703_v19  ;;  %v1260_v37 = vld [vmem:[#allocation5 + $0x35] sm:$0xff]  ;;  %v9015_v31 = vld [vmem:[#allocation46_spill] sm:$0xff] }
 0x3ce   : > { %v5854_v50 = vmul.f32 %v9012_v1, %v5661_v49  ;;  %v2163_v20 = vadd.f32 %v2155_v42, %v2137_v3  ;;  %v1174_v56 = vadd.f32 %v1166_v53, %v1148_v32  ;;  %v1312_v57 = vld [vmem:[#allocation5 + $0x36] sm:$0xff]  ;;  %v1513_v30 = vadd.f32 %v9014_v26, %v1487_v7  ;;  %v9018_v40 = vld [vmem:[#allocation34_spill] sm:$0xff] }
 0x3cf   : > { %9010 = vst [vmem:[#allocation112_spill] sm:$0xff] %v5846_v6  ;;  %9011 = vst [vmem:[#allocation122_spill] sm:$0xff] %v5850_v45  ;;  %v1531_v52 = vmul.f32 %v9015_v31, %v1156_v41  ;;  %v1852_v55 = vadd.f32 %v1844_v38, %v1826_v8  ;;  %v9016_v22 = vld [vmem:[#allocation80_spill] sm:$0xff]  ;;  %v1218_v19 = vmul.f32 %v9018_v40, %v1208_v21  ;;  %v9019_v11 = vld [vmem:[#allocation81_spill] sm:$0xff] }
 0x3d0   : > { %9013 = vst [vmem:[#allocation149_spill] sm:$0xff] %v5854_v50  ;;  %v5860_v6 = vmul.f32 %v9016_v22, %v5685_v51  ;;  %v2189_v45 = vadd.f32 %v5710_v62, %v2163_v20  ;;  %v2207_v49 = vmul.f32 %v9019_v11, %v1104_v63  ;;  %v9020_v50 = vld [vmem:[#allocation113_spill] sm:$0xff]  ;;  %v9021_v42 = vld [vmem:[#allocation123_spill] sm:$0xff] }
 0x3d1   : > { %v1200_v3 = vadd.f32 %v9020_v50, %v1174_v56  ;;  %v1539_v32 = vadd.f32 %v1531_v52, %v1513_v30  ;;  %v1878_v53 = vadd.f32 %v9021_v42, %v1852_v55  ;;  %v9022_v43 = vld [vmem:[#allocation60_spill] sm:$0xff]  ;;  %v9024_v8 = vld [vmem:[#allocation38_spill] sm:$0xff]  ;;  %v9031_v42 = vld [vmem:[#allocation82_spill] sm:$0xff] }
 0x3d2   : > { %9017 = vst [vmem:[#allocation117_spill] sm:$0xff] %v5860_v6  ;;  %v1896_v7 = vmul.f32 %v9022_v43, %v1156_v41  ;;  %v9023_v26 = vld [vmem:[#allocation36_spill] sm:$0xff]  ;;  %v5870_v38 = vmul.f32 %v9024_v8, %v1312_v57  ;;  %v2215_v28 = vadd.f32 %v2207_v49, %v2189_v45  ;;  %v9027_v20 = vld [vmem:[#allocation50_spill] sm:$0xff]  ;;  %v2259_v43 = vmul.f32 %v9031_v42, %v1156_v41 }
 0x3d3   : > { %v1270_v31 = vmul.f32 %v9023_v26, %v1260_v37  ;;  %v9025_v51 = vld [vmem:[#allocation48_spill] sm:$0xff]  ;;  %v1226_v40 = vadd.f32 %v1218_v19, %v1200_v3  ;;  %v1565_v62 = vadd.f32 %v9026_v18, %v1539_v32  ;;  %v1635_v63 = vmul.f32 %v9027_v20, %v1260_v37  ;;  %v9030_v30 = vld [vmem:[#allocation62_spill] sm:$0xff]  ;;  %v9032_v26 = vld [vmem:[#allocation114_spill] sm:$0xff] }
 0x3d4   : > { %v1583_v6 = vmul.f32 %v9025_v51, %v1208_v21  ;;  %v1904_v11 = vadd.f32 %v1896_v7, %v1878_v53  ;;  %v9028_v50 = vld [vmem:[#allocation52_spill] sm:$0xff]  ;;  %v1948_v52 = vmul.f32 %v9030_v30, %v1208_v21  ;;  %v2241_v55 = vadd.f32 %v5713_v58, %v2215_v28  ;;  %v5881_v8 = vld [vmem:[#allocation4 + $0x40] sm:$0xff]  ;;  %v9033_v19 = vld [vmem:[#allocation124_spill] sm:$0xff] }
 0x3d5   : > { %v5876_v56 = vmul.f32 %v9028_v50, %v1312_v57  ;;  %v1252_v51 = vadd.f32 %v9032_v26, %v1226_v40  ;;  %v9034_v18 = vld [vmem:[#allocation64_spill] sm:$0xff]  ;;  %v1027_v32 = vld [vmem:[#allocation4 + $0x41] sm:$0xff]  ;;  %v2311_v58 = vmul.f32 %v9036_v14, %v1208_v21  ;;  %v9037_v28 = vld [vmem:[#allocation84_spill] sm:$0xff] }
 0x3d6   : > { %v1591_v45 = vadd.f32 %v1583_v6, %v1565_v62  ;;  %v1930_v49 = vadd.f32 %v9033_v19, %v1904_v11  ;;  %v2000_v3 = vmul.f32 %v9034_v18, %v1260_v37  ;;  %v1079_v53 = vld [vmem:[#allocation4 + $0x42] sm:$0xff]  ;;  %v2267_v30 = vadd.f32 %v2259_v43, %v2241_v55  ;;  %v9038_v22 = vld [vmem:[#allocation119_spill] sm:$0xff] }
 0x3d7   : > { %9029 = vst [vmem:[#allocation113_spill] sm:$0xff] %v5876_v56  ;;  %v1131_v7 = vld [vmem:[#allocation4 + $0x43] sm:$0xff]  ;;  %v2363_v41 = vmul.f32 %v9037_v28, %v1260_v37  ;;  %v5899_v43 = vmul.f32 %v5204_v47, %v1027_v32  ;;  %v5902_v21 = vmul.f32 %v5222_v4, %v1079_v53  ;;  %v5920_v4 = vmul.f32 %v5293_v13, %v1027_v32 }
 0x3d8   : > { %v9035_v50 = vld [vmem:[#allocation68_spill] sm:$0xff]  ;;  %v1617_v40 = vadd.f32 %v9038_v22, %v1591_v45  ;;  %v1956_v6 = vadd.f32 %v1948_v52, %v1930_v49  ;;  %v5905_v37 = vmul.f32 %v5248_v17, %v1131_v7  ;;  %v1278_v22 = vadd.f32 %v1270_v31, %v1252_v51 }
 0x3d9   : > { %v5887_v20 = vmul.f32 %v9035_v50, %v1312_v57  ;;  %v1183_v42 = vld [vmem:[#allocation4 + $0x44] sm:$0xff]  ;;  %v2293_v50 = vadd.f32 %v5716_v36, %v2267_v30  ;;  %9041 = vst [vmem:[#allocation123_spill] sm:$0xff] %v5902_v21  ;;  %v1349_v30 = vmul.f32 %v5284_v60, %v5881_v8  ;;  %v5923_v31 = vmul.f32 %v5301_v29, %v1079_v53  ;;  %v9081_v21 = vld [vmem:[#allocation16_spill] sm:$0xff] }
 0x3da   : > { %v1235_v56 = vld [vmem:[#allocation4 + $0x45] sm:$0xff]  ;;  %9042 = vst [vmem:[#allocation118_spill] sm:$0xff] %v5905_v37  ;;  %v1643_v17 = vadd.f32 %v1635_v63, %v1617_v40  ;;  %v5926_v51 = vmul.f32 %v5309_v54, %v1131_v7  ;;  %v1714_v63 = vmul.f32 %v5342_v23, %v5881_v8  ;;  %v9053_v40 = vld [vmem:[#allocation115_spill] sm:$0xff]  ;;  %v5945_v47 = vmul.f32 %v5363_v48, %v1079_v53 }
 0x3db   : > { %v9039_v26 = vld [vmem:[#allocation85_spill] sm:$0xff]  ;;  %v5912_v45 = vmul.f32 %v5268_v35, %v1235_v56  ;;  %v2319_v49 = vadd.f32 %v2311_v58, %v2293_v50  ;;  %9048 = vst [vmem:[#allocation150_spill] sm:$0xff] %v5923_v31  ;;  %v5933_v58 = vmul.f32 %v5325_v34, %v1235_v56 }
 0x3dc   : > { %v5893_v11 = vmul.f32 %v9039_v26, %v1312_v57  ;;  %v1287_v62 = vld [vmem:[#allocation4 + $0x46] sm:$0xff]  ;;  %v5909_v57 = vmul.f32 %v5258_v25, %v1183_v42  ;;  %9049 = vst [vmem:[#allocation151_spill] sm:$0xff] %v5926_v51  ;;  %v5942_v25 = vmul.f32 %v5353_v0, %v1027_v32  ;;  %9055 = vst [vmem:[#allocation155_spill] sm:$0xff] %v5945_v47 }
 0x3dd   : > { %v9040_v19 = vld [vmem:[#allocation14_spill] sm:$0xff]  ;;  %9045 = vst [vmem:[#allocation124_spill] sm:$0xff] %v5912_v45  ;;  %v5915_v36 = vmul.f32 %v5278_v46, %v1287_v62  ;;  %v2345_v50 = vadd.f32 %v5719_v27, %v2319_v49  ;;  %9051 = vst [vmem:[#allocation153_spill] sm:$0xff] %v5933_v58  ;;  %v1304_v46 = vadd.f32 %v9053_v40, %v1278_v22  ;;  %v9060_v22 = vld [vmem:[#allocation120_spill] sm:$0xff] }
 0x3de   : > { %v985_v18 = vmul.f32 %v9040_v19, %v5881_v8  ;;  %v9043_v52 = vld [vmem:[#allocation125_spill] sm:$0xff]  ;;  %9044 = vst [vmem:[#allocation114_spill] sm:$0xff] %v5909_v57  ;;  %9054 = vst [vmem:[#allocation115_spill] sm:$0xff] %v5942_v25  ;;  %v5948_v27 = vmul.f32 %v5373_v33, %v1131_v7  ;;  %v5951_v49 = vmul.f32 %v5383_v16, %v1183_v42 }
 0x3df   : > { %v1982_v55 = vadd.f32 %v9043_v52, %v1956_v6  ;;  %9046 = vst [vmem:[#allocation119_spill] sm:$0xff] %v5915_v36  ;;  %9047 = vst [vmem:[#allocation125_spill] sm:$0xff] %v5920_v4  ;;  %v5929_v6 = vmul.f32 %v5317_v12, %v1183_v42  ;;  %v5936_v52 = vmul.f32 %v5333_v61, %v1287_v62  ;;  %v1001_v58 = vld [vmem:[#allocation5 + $0x40] sm:$0xff] }
 0x3e0   : > { %9056 = vst [vmem:[#allocation156_spill] sm:$0xff] %v5948_v27  ;;  %9057 = vst [vmem:[#allocation157_spill] sm:$0xff] %v5951_v49  ;;  %v5954_v19 = vmul.f32 %v5405_v59, %v1235_v56  ;;  %v2078_v40 = vmul.f32 %v5485_v10, %v5881_v8  ;;  %v5963_v36 = vmul.f32 %v5488_v39, %v1027_v32  ;;  %v1053_v45 = vld [vmem:[#allocation5 + $0x41] sm:$0xff] }
 0x3e1   : > { %9050 = vst [vmem:[#allocation152_spill] sm:$0xff] %v5929_v6  ;;  %9052 = vst [vmem:[#allocation154_spill] sm:$0xff] %v5936_v52  ;;  %v2008_v35 = vadd.f32 %v2000_v3, %v1982_v55  ;;  %v5957_v52 = vmul.f32 %v8998_v24, %v1287_v62  ;;  %v1669_v3 = vadd.f32 %v9060_v22, %v1643_v17  ;;  %v1105_v6 = vld [vmem:[#allocation5 + $0x42] sm:$0xff] }
 0x3e2   : > { %9058 = vst [vmem:[#allocation158_spill] sm:$0xff] %v5954_v19  ;;  %v2371_v55 = vadd.f32 %v2363_v41, %v2345_v50  ;;  %9061 = vst [vmem:[#allocation120_spill] sm:$0xff] %v5963_v36  ;;  %v5966_v49 = vmul.f32 %v5491_v44, %v1079_v53  ;;  %v5969_v19 = vmul.f32 %v5494_v5, %v1131_v7  ;;  %v9066_v50 = vld [vmem:[#allocation126_spill] sm:$0xff]  ;;  %v9079_v47 = vld [vmem:[#allocation113_spill] sm:$0xff] }
 0x3e3   : > { %9059 = vst [vmem:[#allocation159_spill] sm:$0xff] %v5957_v52  ;;  %v5972_v52 = vmul.f32 %v5501_v15, %v1183_v42  ;;  %v5975_v17 = vmul.f32 %v5504_v2, %v1235_v56  ;;  %v1330_v41 = vadd.f32 %v5870_v38, %v1304_v46  ;;  %v2034_v22 = vadd.f32 %v9066_v50, %v2008_v35  ;;  %v5979_v57 = vld [vmem:[#allocation5 + $0x43] sm:$0xff]  ;;  %v9072_v56 = vld [vmem:[#allocation80_spill] sm:$0xff]  ;;  %v9076_v35 = vld [vmem:[#allocation87_spill] sm:$0xff] }
 0x3e4   : > { %9062 = vst [vmem:[#allocation160_spill] sm:$0xff] %v5966_v49  ;;  %9063 = vst [vmem:[#allocation161_spill] sm:$0xff] %v5969_v19  ;;  %v5981_v27 = vld [vmem:[#allocation5 + $0x44] sm:$0xff]  ;;  %v5986_v37 = vmul.f32 %v5513_v9, %v1287_v62  ;;  %v2442_v42 = vmul.f32 %v9012_v1, %v5881_v8  ;;  %v5999_v50 = vmul.f32 %v9076_v35, %v1131_v7  ;;  %v9080_v62 = vld [vmem:[#allocation127_spill] sm:$0xff] }
 0x3e5   : > { %9064 = vst [vmem:[#allocation162_spill] sm:$0xff] %v5972_v52  ;;  %9065 = vst [vmem:[#allocation163_spill] sm:$0xff] %v5975_v17  ;;  %v5983_v51 = vld [vmem:[#allocation5 + $0x45] sm:$0xff]  ;;  %v5993_v17 = vmul.f32 %v9072_v56, %v1027_v32  ;;  %v1695_v31 = vadd.f32 %v9079_v47, %v1669_v3  ;;  %v1011_v36 = vmul.f32 %v9081_v21, %v1001_v58  ;;  %v9082_v8 = vld [vmem:[#allocation20_spill] sm:$0xff] }
 0x3e6   : > { %9067 = vst [vmem:[#allocation126_spill] sm:$0xff] %v5979_v57  ;;  %9068 = vst [vmem:[#allocation164_spill] sm:$0xff] %v5981_v27  ;;  %v5990_v52 = vld [vmem:[#allocation5 + $0x46] sm:$0xff]  ;;  %v6006_v25 = vmul.f32 %v9082_v8, %v1053_v45  ;;  %v9090_v47 = vld [vmem:[#allocation36_spill] sm:$0xff]  ;;  %v2060_v3 = vadd.f32 %v5887_v20, %v2034_v22 }
 0x3e7   : > { %9069 = vst [vmem:[#allocation165_spill] sm:$0xff] %v5983_v51  ;;  %9070 = vst [vmem:[#allocation166_spill] sm:$0xff] %v5986_v37  ;;  %v9074_v46 = vld [vmem:[#allocation86_spill] sm:$0xff]  ;;  %v2397_v37 = vadd.f32 %v9080_v62, %v2371_v55  ;;  %v9084_v4 = vld [vmem:[#allocation30_spill] sm:$0xff] }
 0x3e8   : > { %9071 = vst [vmem:[#allocation167_spill] sm:$0xff] %v5990_v52  ;;  %9073 = vst [vmem:[#allocation168_spill] sm:$0xff] %v5993_v17  ;;  %v5996_v38 = vmul.f32 %v9074_v46, %v1079_v53  ;;  %v9078_v19 = vld [vmem:[#allocation15_spill] sm:$0xff]  ;;  %v6009_v32 = vmul.f32 %v9084_v4, %v1105_v6  ;;  %v9086_v53 = vld [vmem:[#allocation32_spill] sm:$0xff] }
 0x3e9   : > { %9077 = vst [vmem:[#allocation170_spill] sm:$0xff] %v5999_v50  ;;  %v993_v49 = vadd.f32 %v985_v18, %v9078_v19  ;;  %9083 = vst [vmem:[#allocation113_spill] sm:$0xff] %v6006_v25  ;;  %v6013_v46 = vmul.f32 %v9086_v53, %v5979_v57  ;;  %v9088_v7 = vld [vmem:[#allocation34_spill] sm:$0xff]  ;;  %v6021_v18 = vmul.f32 %v9090_v47, %v5983_v51  ;;  %v9094_v50 = vld [vmem:[#allocation40_spill] sm:$0xff] }
 0x3ea   : > { %9075 = vst [vmem:[#allocation169_spill] sm:$0xff] %v5996_v38  ;;  %9085 = vst [vmem:[#allocation127_spill] sm:$0xff] %v6009_v32  ;;  %v6017_v35 = vmul.f32 %v9088_v7, %v5981_v27  ;;  %v9092_v55 = vld [vmem:[#allocation38_spill] sm:$0xff]  ;;  %v1357_v19 = vadd.f32 %v1349_v30, %v1330_v41  ;;  %v1376_v32 = vmul.f32 %v9094_v50, %v1001_v58  ;;  %v9108_v50 = vld [vmem:[#allocation56_spill] sm:$0xff] }
 0x3eb   : > { %9087 = vst [vmem:[#allocation171_spill] sm:$0xff] %v6013_v46  ;;  %9091 = vst [vmem:[#allocation173_spill] sm:$0xff] %v6021_v18  ;;  %v6026_v62 = vmul.f32 %v9092_v55, %v5990_v52  ;;  %v9095_v38 = vld [vmem:[#allocation42_spill] sm:$0xff]  ;;  %v9097_v46 = vld [vmem:[#allocation44_spill] sm:$0xff]  ;;  %v2423_v22 = vadd.f32 %v5893_v11, %v2397_v37 }
 0x3ec   : > { %9089 = vst [vmem:[#allocation172_spill] sm:$0xff] %v6017_v35  ;;  %v6030_v25 = vmul.f32 %v9095_v38, %v1053_v45  ;;  %v6033_v17 = vmul.f32 %v9097_v46, %v1105_v6  ;;  %v9099_v35 = vld [vmem:[#allocation46_spill] sm:$0xff]  ;;  %v9101_v18 = vld [vmem:[#allocation48_spill] sm:$0xff]  ;;  %v1722_v46 = vadd.f32 %v1714_v63, %v1695_v31 }
 0x3ed   : > { %9093 = vst [vmem:[#allocation174_spill] sm:$0xff] %v6026_v62  ;;  %v6037_v7 = vmul.f32 %v9099_v35, %v5979_v57  ;;  %v6041_v20 = vmul.f32 %v9101_v18, %v5981_v27  ;;  %v9103_v30 = vld [vmem:[#allocation50_spill] sm:$0xff]  ;;  %v9105_v62 = vld [vmem:[#allocation52_spill] sm:$0xff]  ;;  %v6054_v35 = vmul.f32 %v9108_v50, %v1053_v45 }
 0x3ee   : > { %9096 = vst [vmem:[#allocation175_spill] sm:$0xff] %v6030_v25  ;;  %9098 = vst [vmem:[#allocation176_spill] sm:$0xff] %v6033_v17  ;;  %v6046_v41 = vmul.f32 %v9103_v30, %v5983_v51  ;;  %v6050_v25 = vmul.f32 %v9105_v62, %v5990_v52  ;;  %v9107_v17 = vld [vmem:[#allocation54_spill] sm:$0xff]  ;;  %v9116_v62 = vld [vmem:[#allocation64_spill] sm:$0xff] }
 0x3ef   : > { %9100 = vst [vmem:[#allocation177_spill] sm:$0xff] %v6037_v7  ;;  %9102 = vst [vmem:[#allocation178_spill] sm:$0xff] %v6041_v20  ;;  %v1741_v38 = vmul.f32 %v9107_v17, %v1001_v58  ;;  %v9110_v7 = vld [vmem:[#allocation58_spill] sm:$0xff]  ;;  %v9112_v20 = vld [vmem:[#allocation60_spill] sm:$0xff] }
 0x3f0   : > { %9104 = vst [vmem:[#allocation179_spill] sm:$0xff] %v6046_v41  ;;  %9106 = vst [vmem:[#allocation180_spill] sm:$0xff] %v6050_v25  ;;  %v6057_v55 = vmul.f32 %v9110_v7, %v1105_v6  ;;  %v6061_v11 = vmul.f32 %v9112_v20, %v5979_v57  ;;  %v9114_v37 = vld [vmem:[#allocation62_spill] sm:$0xff]  ;;  %v6069_v25 = vmul.f32 %v9116_v62, %v5983_v51  ;;  %v9120_v17 = vld [vmem:[#allocation78_spill] sm:$0xff] }
 0x3f1   : > { %9109 = vst [vmem:[#allocation181_spill] sm:$0xff] %v6054_v35  ;;  %v6065_v41 = vmul.f32 %v9114_v37, %v5981_v27  ;;  %v9118_v31 = vld [vmem:[#allocation68_spill] sm:$0xff]  ;;  %v2086_v35 = vadd.f32 %v2078_v40, %v2060_v3  ;;  %v2104_v30 = vmul.f32 %v9120_v17, %v1001_v58  ;;  %v9121_v20 = vld [vmem:[#allocation79_spill] sm:$0xff]  ;;  %v6088_v40 = vmul.f32 %v9036_v14, %v5981_v27 }
 0x3f2   : > { %9111 = vst [vmem:[#allocation182_spill] sm:$0xff] %v6057_v55  ;;  %9113 = vst [vmem:[#allocation183_spill] sm:$0xff] %v6061_v11  ;;  %v6073_v63 = vmul.f32 %v9118_v31, %v5990_v52  ;;  %v1341_v50 = vld [vmem:[#allocation4 + $0x60] sm:$0xff]  ;;  %v6077_v11 = vmul.f32 %v9121_v20, %v1053_v45  ;;  %v6092_v3 = vmul.f32 %v9037_v28, %v5983_v51  ;;  %v9132_v20 = vld [vmem:[#allocation90_spill] sm:$0xff] }
 0x3f3   : > { %9115 = vst [vmem:[#allocation184_spill] sm:$0xff] %v6065_v41  ;;  %9117 = vst [vmem:[#allocation185_spill] sm:$0xff] %v6069_v25  ;;  %v1394_v7 = vld [vmem:[#allocation4 + $0x61] sm:$0xff]  ;;  %v6103_v17 = vmul.f32 %v9132_v20, %v1105_v6  ;;  %v1019_v27 = vadd.f32 %v1011_v36, %v993_v49  ;;  %v1384_v51 = vadd.f32 %v1376_v32, %v1357_v19  ;;  %v6134_v32 = vld [vmem:[#allocation5 + $0x50] sm:$0xff] }
 0x3f4   : > { %9119 = vst [vmem:[#allocation186_spill] sm:$0xff] %v6073_v63  ;;  %v1446_v55 = vld [vmem:[#allocation4 + $0x62] sm:$0xff]  ;;  %9122 = vst [vmem:[#allocation187_spill] sm:$0xff] %v6077_v11  ;;  %v6096_v63 = vmul.f32 %v9039_v26, %v5990_v52  ;;  %v9136_v52 = vld [vmem:[#allocation91_spill] sm:$0xff]  ;;  %v6128_v19 = vmul.f32 %v5342_v23, %v1341_v50  ;;  %v1749_v49 = vadd.f32 %v1741_v38, %v1722_v46 }
 0x3f5   : > { %v9123_v18 = vld [vmem:[#allocation81_spill] sm:$0xff]  ;;  %v9125_v41 = vld [vmem:[#allocation82_spill] sm:$0xff]  ;;  %9127 = vst [vmem:[#allocation190_spill] sm:$0xff] %v6088_v40  ;;  %9128 = vst [vmem:[#allocation191_spill] sm:$0xff] %v6092_v3  ;;  %v6106_v40 = vmul.f32 %v5284_v60, %v1341_v50  ;;  %v6109_v3 = vmul.f32 %v5293_v13, %v1394_v7  ;;  %v6188_v60 = vmul.f32 %v9072_v56, %v1394_v7 }
 0x3f6   : > { %v6080_v37 = vmul.f32 %v9123_v18, %v1105_v6  ;;  %v6084_v62 = vmul.f32 %v9125_v41, %v5979_v57  ;;  %v1498_v25 = vld [vmem:[#allocation4 + $0x63] sm:$0xff]  ;;  %9129 = vst [vmem:[#allocation192_spill] sm:$0xff] %v6096_v63  ;;  %v9130_v18 = vld [vmem:[#allocation88_spill] sm:$0xff]  ;;  %9133 = vst [vmem:[#allocation193_spill] sm:$0xff] %v6103_v17  ;;  %v931_v63 = vmul.f32 0.0078125, %v9136_v52  ;;  %v6131_v52 = vmul.f32 %v5353_v0, %v1394_v7 }
 0x3f7   : > { %v1550_v47 = vld [vmem:[#allocation4 + $0x64] sm:$0xff]  ;;  %v2469_v57 = vmul.f32 %v9130_v18, %v1001_v58  ;;  %9134 = vst [vmem:[#allocation194_spill] sm:$0xff] %v6106_v40  ;;  %9135 = vst [vmem:[#allocation195_spill] sm:$0xff] %v6109_v3  ;;  %v6116_v58 = vmul.f32 %v5309_v54, %v1498_v25  ;;  %v6148_v46 = vld [vmem:[#allocation5 + $0x51] sm:$0xff]  ;;  %v6161_v54 = vmul.f32 %v5488_v39, %v1394_v7 }
 0x3f8   : > { %9124 = vst [vmem:[#allocation188_spill] sm:$0xff] %v6080_v37  ;;  %9126 = vst [vmem:[#allocation189_spill] sm:$0xff] %v6084_v62  ;;  %v1602_v31 = vld [vmem:[#allocation4 + $0x65] sm:$0xff]  ;;  %v2450_v37 = vadd.f32 %v2442_v42, %v2423_v22  ;;  %v6113_v42 = vmul.f32 %v5301_v29, %v1446_v55  ;;  %v6137_v22 = vmul.f32 %v5363_v48, %v1446_v55  ;;  %v6150_v38 = vld [vmem:[#allocation5 + $0x52] sm:$0xff] }
 0x3f9   : > { %v1654_v11 = vld [vmem:[#allocation4 + $0x66] sm:$0xff]  ;;  %9138 = vst [vmem:[#allocation196_spill] sm:$0xff] %v6116_v58  ;;  %v6122_v36 = vmul.f32 %v5325_v34, %v1602_v31  ;;  %9142 = vst [vmem:[#allocation200_spill] sm:$0xff] %v6128_v19  ;;  %v6140_v34 = vmul.f32 %v5373_v33, %v1498_v25  ;;  %v6163_v58 = vld [vmem:[#allocation5 + $0x54] sm:$0xff]  ;;  %v6173_v13 = vmul.f32 %v5494_v5, %v1498_v25 }
 0x3fa   : > { %v9131_v62 = vld [vmem:[#allocation89_spill] sm:$0xff]  ;;  %9137 = vst [vmem:[#allocation91_spill] sm:$0xff] %v6113_v42  ;;  %v6125_v6 = vmul.f32 %v5333_v61, %v1654_v11  ;;  %9143 = vst [vmem:[#allocation201_spill] sm:$0xff] %v6131_v52  ;;  %v6143_v61 = vmul.f32 %v5383_v16, %v1550_v47  ;;  %v6165_v29 = vld [vmem:[#allocation5 + $0x55] sm:$0xff]  ;;  %v6185_v3 = vmul.f32 %v9012_v1, %v1341_v50 }
 0x3fb   : > { %v6100_v41 = vmul.f32 %v9131_v62, %v1053_v45  ;;  %v6119_v45 = vmul.f32 %v5317_v12, %v1550_v47  ;;  %9140 = vst [vmem:[#allocation198_spill] sm:$0xff] %v6122_v36  ;;  %940 = vst.msk [vmem:[#allocation4 + $0x73] sm:$0xff] %vm852_vm4, %v931_v63  ;;  %v6152_v36 = vld [vmem:[#allocation5 + $0x53] sm:$0xff]  ;;  %v6155_v63 = vmul.f32 %v8998_v24, %v1654_v11  ;;  %v9192_v19 = vld [vmem:[#allocation58_spill] sm:$0xff] }
 0x3fc   : > { %9141 = vst [vmem:[#allocation199_spill] sm:$0xff] %v6125_v6  ;;  %9144 = vst [vmem:[#allocation202_spill] sm:$0xff] %v6134_v32  ;;  %v6146_v6 = vmul.f32 %v5405_v59, %v1602_v31  ;;  %v6158_v12 = vmul.f32 %v5485_v10, %v1341_v50  ;;  %v6167_v42 = vld [vmem:[#allocation5 + $0x56] sm:$0xff]  ;;  %v1012_v25 = vmul.f32 %v9081_v21, %v6134_v32  ;;  %v9211_v17 = vld [vmem:[#allocation82_spill] sm:$0xff] }
 0x3fd   : > { %9139 = vst [vmem:[#allocation197_spill] sm:$0xff] %v6119_v45  ;;  %9145 = vst [vmem:[#allocation203_spill] sm:$0xff] %v6137_v22  ;;  %v2112_v45 = vadd.f32 %v2104_v30, %v2086_v35  ;;  %v6179_v35 = vmul.f32 %v5504_v2, %v1602_v31  ;;  %v6182_v30 = vmul.f32 %v5513_v9, %v1654_v11 }
 0x3fe   : > { %9146 = vst [vmem:[#allocation204_spill] sm:$0xff] %v6140_v34  ;;  %9147 = vst [vmem:[#allocation205_spill] sm:$0xff] %v6143_v61  ;;  %v2477_v61 = vadd.f32 %v2469_v57, %v2450_v37  ;;  %v6199_v11 = vmul.f32 %v9084_v4, %v6150_v38  ;;  %v6203_v50 = vmul.f32 %v9086_v53, %v6152_v36  ;;  %v9166_v57 = vld [vmem:[#allocation34_spill] sm:$0xff]  ;;  %v9168_v37 = vld [vmem:[#allocation36_spill] sm:$0xff] }
 0x3ff   : > { %9148 = vst [vmem:[#allocation206_spill] sm:$0xff] %v6146_v6  ;;  %9149 = vst [vmem:[#allocation207_spill] sm:$0xff] %v6150_v38  ;;  %v6170_v6 = vmul.f32 %v5491_v44, %v1446_v55  ;;  %v1045_v55 = vadd.f32 %v5899_v43, %v1019_v27  ;;  %v6207_v7 = vmul.f32 %v9166_v57, %v6163_v58  ;;  %v9170_v43 = vld [vmem:[#allocation38_spill] sm:$0xff] }
 0x400   : > { %9150 = vst [vmem:[#allocation208_spill] sm:$0xff] %v6152_v36  ;;  %9151 = vst [vmem:[#allocation209_spill] sm:$0xff] %v6155_v63  ;;  %v6176_v63 = vmul.f32 %v5501_v15, %v1550_v47  ;;  %v6195_v47 = vmul.f32 %v9082_v8, %v6148_v46  ;;  %v6211_v31 = vmul.f32 %v9168_v37, %v6165_v29  ;;  %v9179_v37 = vld [vmem:[#allocation46_spill] sm:$0xff] }
 0x401   : > { %9152 = vst [vmem:[#allocation210_spill] sm:$0xff] %v6158_v12  ;;  %9153 = vst [vmem:[#allocation211_spill] sm:$0xff] %v6161_v54  ;;  %v6215_v27 = vmul.f32 %v9170_v43, %v6167_v42  ;;  %v9181_v43 = vld [vmem:[#allocation48_spill] sm:$0xff]  ;;  %v9183_v57 = vld [vmem:[#allocation50_spill] sm:$0xff]  ;;  %v6257_v4 = vmul.f32 %v9192_v19, %v6150_v38 }
 0x402   : > { %9154 = vst [vmem:[#allocation212_spill] sm:$0xff] %v6163_v58  ;;  %9155 = vst [vmem:[#allocation213_spill] sm:$0xff] %v6165_v29  ;;  %v9187_v54 = vld [vmem:[#allocation54_spill] sm:$0xff] }
 0x403   : > { %9156 = vst [vmem:[#allocation214_spill] sm:$0xff] %v6167_v42  ;;  %9157 = vst [vmem:[#allocation215_spill] sm:$0xff] %v6170_v6  ;;  %v9177_v6 = vld [vmem:[#allocation44_spill] sm:$0xff]  ;;  %v6248_v52 = vmul.f32 %v9187_v54, %v6134_v32 }
 0x404   : > { %9158 = vst [vmem:[#allocation216_spill] sm:$0xff] %v6173_v13  ;;  %9159 = vst [vmem:[#allocation217_spill] sm:$0xff] %v6176_v63  ;;  %v9174_v63 = vld [vmem:[#allocation125_spill] sm:$0xff]  ;;  %v6228_v22 = vmul.f32 %v9177_v6, %v6150_v38 }
 0x405   : > { %9160 = vst [vmem:[#allocation218_spill] sm:$0xff] %v6179_v35  ;;  %9161 = vst [vmem:[#allocation219_spill] sm:$0xff] %v6182_v30  ;;  %v9172_v30 = vld [vmem:[#allocation40_spill] sm:$0xff]  ;;  %v1410_v40 = vadd.f32 %v9174_v63, %v1384_v51  ;;  %v9175_v13 = vld [vmem:[#allocation42_spill] sm:$0xff] }
 0x406   : > { %9162 = vst [vmem:[#allocation220_spill] sm:$0xff] %v6185_v3  ;;  %9163 = vst [vmem:[#allocation221_spill] sm:$0xff] %v6188_v60  ;;  %v6219_v35 = vmul.f32 %v9172_v30, %v6134_v32  ;;  %v6224_v34 = vmul.f32 %v9175_v13, %v6148_v46  ;;  %v6240_v60 = vmul.f32 %v9183_v57, %v6165_v29  ;;  %v9185_v51 = vld [vmem:[#allocation52_spill] sm:$0xff] }
 0x407   : > { %9164 = vst [vmem:[#allocation222_spill] sm:$0xff] %v6199_v11  ;;  %9165 = vst [vmem:[#allocation223_spill] sm:$0xff] %v6203_v50  ;;  %v6244_v63 = vmul.f32 %v9185_v51, %v6167_v42  ;;  %v9190_v3 = vld [vmem:[#allocation56_spill] sm:$0xff]  ;;  %v6296_v51 = vmul.f32 %v9211_v17, %v6152_v36 }
 0x408   : > { %9167 = vst [vmem:[#allocation224_spill] sm:$0xff] %v6207_v7  ;;  %9169 = vst [vmem:[#allocation225_spill] sm:$0xff] %v6211_v31  ;;  %v6232_v31 = vmul.f32 %v9179_v37, %v6152_v36  ;;  %v9189_v7 = vld [vmem:[#allocation115_spill] sm:$0xff]  ;;  %v6253_v12 = vmul.f32 %v9190_v3, %v6148_v46 }
 0x409   : > { %9171 = vst [vmem:[#allocation226_spill] sm:$0xff] %v6215_v27  ;;  %9173 = vst [vmem:[#allocation227_spill] sm:$0xff] %v6219_v35  ;;  %v6236_v27 = vmul.f32 %v9181_v43, %v6163_v58  ;;  %v1775_v53 = vadd.f32 %v9189_v7, %v1749_v49  ;;  %v9194_v50 = vld [vmem:[#allocation60_spill] sm:$0xff]  ;;  %v9200_v49 = vld [vmem:[#allocation68_spill] sm:$0xff] }
 0x40a   : > { %9176 = vst [vmem:[#allocation125_spill] sm:$0xff] %v6224_v34  ;;  %9178 = vst [vmem:[#allocation228_spill] sm:$0xff] %v6228_v22  ;;  %v6273_v7 = vmul.f32 %v9200_v49, %v6167_v42  ;;  %v1760_v22 = vld [vmem:[#allocation4 + $0x71] sm:$0xff] }
 0x40b   : > { %9180 = vst [vmem:[#allocation229_spill] sm:$0xff] %v6232_v31  ;;  %9182 = vst [vmem:[#allocation230_spill] sm:$0xff] %v6236_v27  ;;  %v9198_v27 = vld [vmem:[#allocation64_spill] sm:$0xff]  ;;  %v9204_v34 = vld [vmem:[#allocation120_spill] sm:$0xff] }
 0x40c   : > { %9184 = vst [vmem:[#allocation231_spill] sm:$0xff] %v6240_v60  ;;  %9186 = vst [vmem:[#allocation232_spill] sm:$0xff] %v6244_v63  ;;  %v6261_v60 = vmul.f32 %v9194_v50, %v6152_v36  ;;  %v9196_v63 = vld [vmem:[#allocation62_spill] sm:$0xff]  ;;  %v6269_v21 = vmul.f32 %v9198_v27, %v6165_v29  ;;  %v1707_v31 = vld [vmem:[#allocation4 + $0x70] sm:$0xff] }
 0x40d   : > { %9188 = vst [vmem:[#allocation233_spill] sm:$0xff] %v6248_v52  ;;  %9191 = vst [vmem:[#allocation115_spill] sm:$0xff] %v6253_v12  ;;  %v6265_v8 = vmul.f32 %v9196_v63, %v6163_v58  ;;  %v9205_v52 = vld [vmem:[#allocation79_spill] sm:$0xff]  ;;  %v9217_v36 = vld [vmem:[#allocation168_spill] sm:$0xff] }
 0x40e   : > { %9193 = vst [vmem:[#allocation234_spill] sm:$0xff] %v6257_v4  ;;  %9195 = vst [vmem:[#allocation235_spill] sm:$0xff] %v6261_v60  ;;  %v9202_v4 = vld [vmem:[#allocation78_spill] sm:$0xff]  ;;  %v2138_v60 = vadd.f32 %v9204_v34, %v2112_v45  ;;  %v6282_v35 = vmul.f32 %v9205_v52, %v6148_v46  ;;  %v6290_v11 = vld [vmem:[#allocation4 + $0x73] sm:$0xff]  ;;  %v6300_v34 = vmul.f32 %v9036_v14, %v6163_v58 }
 0x40f   : > { %9197 = vst [vmem:[#allocation236_spill] sm:$0xff] %v6265_v8  ;;  %9199 = vst [vmem:[#allocation237_spill] sm:$0xff] %v6269_v21  ;;  %v6277_v12 = vmul.f32 %v9202_v4, %v6134_v32  ;;  %v9207_v8 = vld [vmem:[#allocation81_spill] sm:$0xff]  ;;  %v6288_v21 = vld [vmem:[#allocation4 + $0x72] sm:$0xff]  ;;  %v6304_v45 = vmul.f32 %v9037_v28, %v6165_v29  ;;  %v6317_v58 = vmul.f32 %v9131_v62, %v6148_v46 }
 0x410   : > { %9201 = vst [vmem:[#allocation238_spill] sm:$0xff] %v6273_v7  ;;  %9206 = vst [vmem:[#allocation120_spill] sm:$0xff] %v6282_v35  ;;  %v6286_v20 = vmul.f32 %v9207_v8, %v6150_v38  ;;  %v6292_v7 = vld [vmem:[#allocation4 + $0x74] sm:$0xff]  ;;  %v6312_v38 = vmul.f32 %v9130_v18, %v6134_v32  ;;  %v9219_v29 = vld [vmem:[#allocation113_spill] sm:$0xff] }
 0x411   : > { %9203 = vst [vmem:[#allocation78_spill] sm:$0xff] %v6277_v12  ;;  %9209 = vst [vmem:[#allocation240_spill] sm:$0xff] %v6290_v11  ;;  %v1968_v35 = vld [vmem:[#allocation4 + $0x75] sm:$0xff]  ;;  %v9223_v32 = vld [vmem:[#allocation181_spill] sm:$0xff] }
 0x412   : > { %9208 = vst [vmem:[#allocation239_spill] sm:$0xff] %v6286_v20  ;;  %9210 = vst [vmem:[#allocation241_spill] sm:$0xff] %v6292_v7  ;;  %v6308_v20 = vmul.f32 %v9039_v26, %v6167_v42  ;;  %v2020_v12 = vld [vmem:[#allocation4 + $0x76] sm:$0xff]  ;;  %v6326_v42 = vmul.f32 %v5353_v0, %v1760_v22  ;;  %v6390_v0 = vmul.f32 %v9072_v56, %v1760_v22 }
 0x413   : > { %9212 = vst [vmem:[#allocation242_spill] sm:$0xff] %v6296_v51  ;;  %9213 = vst [vmem:[#allocation243_spill] sm:$0xff] %v6300_v34  ;;  %v2503_v51 = vadd.f32 %v9217_v36, %v2477_v61  ;;  %v9218_v34 = vld [vmem:[#allocation132_spill] sm:$0xff]  ;;  %v9220_v43 = vld [vmem:[#allocation175_spill] sm:$0xff]  ;;  %v6331_v61 = vmul.f32 %v5363_v48, %v6288_v21  ;;  %v6335_v36 = vmul.f32 %v5373_v33, %v6290_v11 }
 0x414   : > { %9214 = vst [vmem:[#allocation244_spill] sm:$0xff] %v6304_v45  ;;  %9215 = vst [vmem:[#allocation245_spill] sm:$0xff] %v6308_v20  ;;  %v1020_v57 = vadd.f32 %v1012_v25, %v9218_v34  ;;  %v1071_v45 = vadd.f32 %v9219_v29, %v1045_v55  ;;  %v1436_v37 = vadd.f32 %v9220_v43, %v1410_v40  ;;  %v6341_v40 = vld [vmem:[#allocation5 + $0x70] sm:$0xff] }
 0x415   : > { %9216 = vst [vmem:[#allocation246_spill] sm:$0xff] %v6312_v38  ;;  %v6323_v20 = vmul.f32 %v5342_v23, %v1707_v31  ;;  %9222 = vst [vmem:[#allocation132_spill] sm:$0xff] %v6326_v42  ;;  %v1801_v38 = vadd.f32 %v9223_v32, %v1775_v53  ;;  %v6339_v29 = vmul.f32 %v5383_v16, %v6292_v7  ;;  %v6355_v43 = vld [vmem:[#allocation5 + $0x71] sm:$0xff] }
 0x416   : > { %9224 = vst [vmem:[#allocation113_spill] sm:$0xff] %v6331_v61  ;;  %9225 = vst [vmem:[#allocation175_spill] sm:$0xff] %v6335_v36  ;;  %v6344_v25 = vmul.f32 %v5405_v59, %v1968_v35  ;;  %v6347_v55 = vmul.f32 %v8998_v24, %v2020_v12  ;;  %v6350_v53 = vmul.f32 %v5485_v10, %v1707_v31  ;;  %v6357_v34 = vld [vmem:[#allocation5 + $0x72] sm:$0xff] }
 0x417   : > { %9221 = vst [vmem:[#allocation168_spill] sm:$0xff] %v6323_v20  ;;  %9226 = vst [vmem:[#allocation181_spill] sm:$0xff] %v6339_v29  ;;  %v6353_v32 = vmul.f32 %v5488_v39, %v1760_v22  ;;  %v6359_v16 = vld [vmem:[#allocation5 + $0x73] sm:$0xff]  ;;  %v6372_v24 = vmul.f32 %v5501_v15, %v6292_v7  ;;  %v6387_v61 = vmul.f32 %v9012_v1, %v1707_v31 }
 0x418   : > { %9227 = vst [vmem:[#allocation247_spill] sm:$0xff] %v6344_v25  ;;  %9228 = vst [vmem:[#allocation248_spill] sm:$0xff] %v6347_v55  ;;  %v9231_v29 = vld [vmem:[#allocation187_spill] sm:$0xff]  ;;  %v6364_v25 = vmul.f32 %v5491_v44, %v6288_v21  ;;  %v6368_v55 = vmul.f32 %v5494_v5, %v6290_v11  ;;  %v2529_v42 = vadd.f32 %v6100_v41, %v2503_v51  ;;  %v6427_v51 = vld [vmem:[#allocation5 + $0x61] sm:$0xff] }
 0x419   : > { %9229 = vst [vmem:[#allocation249_spill] sm:$0xff] %v6350_v53  ;;  %9230 = vst [vmem:[#allocation250_spill] sm:$0xff] %v6353_v32  ;;  %v2164_v36 = vadd.f32 %v9231_v29, %v2138_v60  ;;  %v6374_v59 = vld [vmem:[#allocation5 + $0x74] sm:$0xff]  ;;  %v6381_v60 = vmul.f32 %v5504_v2, %v1968_v35  ;;  %v6384_v29 = vmul.f32 %v5513_v9, %v2020_v12 }
 0x41a   : > { %9232 = vst [vmem:[#allocation187_spill] sm:$0xff] %v6364_v25  ;;  %9233 = vst [vmem:[#allocation251_spill] sm:$0xff] %v6368_v55  ;;  %v6376_v33 = vld [vmem:[#allocation5 + $0x75] sm:$0xff]  ;;  %v9241_v25 = vld [vmem:[#allocation150_spill] sm:$0xff]  ;;  %v6398_v35 = vmul.f32 %v9187_v54, %v6341_v40  ;;  %v6402_v12 = vmul.f32 %v9190_v3, %v6355_v43  ;;  %v6407_v22 = vmul.f32 %v9192_v19, %v6357_v34 }
 0x41b   : > { %9234 = vst [vmem:[#allocation252_spill] sm:$0xff] %v6372_v24  ;;  %v6378_v48 = vld [vmem:[#allocation5 + $0x76] sm:$0xff]  ;;  %9235 = vst [vmem:[#allocation253_spill] sm:$0xff] %v6381_v60  ;;  %v1462_v32 = vadd.f32 %v9241_v25, %v1436_v37  ;;  %v6419_v41 = vmul.f32 %v9198_v27, %v6376_v33  ;;  %v6425_v37 = vld [vmem:[#allocation5 + $0x60] sm:$0xff]  ;;  %v6435_v25 = vmul.f32 %v9205_v52, %v6355_v43 }
 0x41c   : > { %9236 = vst [vmem:[#allocation254_spill] sm:$0xff] %v6384_v29  ;;  %9237 = vst [vmem:[#allocation255_spill] sm:$0xff] %v6387_v61  ;;  %v9239_v24 = vld [vmem:[#allocation128_spill] sm:$0xff]  ;;  %v9240_v20 = vld [vmem:[#allocation123_spill] sm:$0xff]  ;;  %v6452_v60 = vmul.f32 %v9036_v14, %v6374_v59  ;;  %v6477_v61 = vmul.f32 %v9172_v30, %v6425_v37 }
 0x41d   : > { %9238 = vst [vmem:[#allocation256_spill] sm:$0xff] %v6390_v0  ;;  %v1046_v23 = vadd.f32 %v9239_v24, %v1020_v57  ;;  %v1097_v55 = vadd.f32 %v9240_v20, %v1071_v45  ;;  %9242 = vst [vmem:[#allocation128_spill] sm:$0xff] %v6398_v35  ;;  %v9244_v31 = vld [vmem:[#allocation155_spill] sm:$0xff]  ;;  %v6411_v24 = vmul.f32 %v9194_v50, %v6359_v16  ;;  %v6464_v35 = vld [vmem:[#allocation5 + $0x65] sm:$0xff] }
 0x41e   : > { %9243 = vst [vmem:[#allocation123_spill] sm:$0xff] %v6402_v12  ;;  %v1827_v29 = vadd.f32 %v9244_v31, %v1801_v38  ;;  %9245 = vst [vmem:[#allocation150_spill] sm:$0xff] %v6407_v22  ;;  %v6415_v20 = vmul.f32 %v9196_v63, %v6374_v59  ;;  %v6423_v57 = vmul.f32 %v9200_v49, %v6378_v48  ;;  %v921_v38 = vpop.xlane.xlu0 %920  ;;  %v9253_v31 = vld [vmem:[#allocation160_spill] sm:$0xff]  ;;  %v9274_v30 = vld [vmem:[#allocation48_spill] sm:$0xff] }
 0x41f   : > { %9246 = vst [vmem:[#allocation155_spill] sm:$0xff] %v6411_v24  ;;  %9248 = vst [vmem:[#allocation258_spill] sm:$0xff] %v6419_v41  ;;  %v6431_v45 = vmul.f32 %v9202_v4, %v6341_v40  ;;  %v6440_v41 = vmul.f32 %v9207_v8, %v6357_v34  ;;  %v6444_v24 = vld [vmem:[#allocation5 + $0x63] sm:$0xff]  ;;  %v6448_v22 = vmul.f32 %v9211_v17, %v6359_v16  ;;  %v9268_v53 = vld [vmem:[#allocation176_spill] sm:$0xff]  ;;  %v932_v11 = vmul.f32 0.0078125, %v921_v38 }
 0x420   : > { %9247 = vst [vmem:[#allocation257_spill] sm:$0xff] %v6415_v20  ;;  %9249 = vst [vmem:[#allocation259_spill] sm:$0xff] %v6423_v57  ;;  %v2190_v20 = vadd.f32 %v9253_v31, %v2164_v36  ;;  %v6442_v57 = vld [vmem:[#allocation5 + $0x62] sm:$0xff]  ;;  %v6456_v12 = vmul.f32 %v9037_v28, %v6376_v33  ;;  %v6460_v36 = vmul.f32 %v9039_v26, %v6378_v48 }
 0x421   : > { %9250 = vst [vmem:[#allocation260_spill] sm:$0xff] %v6425_v37  ;;  %9251 = vst [vmem:[#allocation261_spill] sm:$0xff] %v6431_v45  ;;  %v6462_v31 = vld [vmem:[#allocation5 + $0x64] sm:$0xff]  ;;  %v1072_v0 = vadd.f32 %v6195_v47, %v1046_v23  ;;  %v9265_v45 = vld [vmem:[#allocation127_spill] sm:$0xff]  ;;  %v1488_v7 = vadd.f32 %v9268_v53, %v1462_v32 }
 0x422   : > { %9252 = vst [vmem:[#allocation262_spill] sm:$0xff] %v6435_v25  ;;  %9254 = vst [vmem:[#allocation160_spill] sm:$0xff] %v6440_v41  ;;  %v6466_v41 = vld [vmem:[#allocation5 + $0x66] sm:$0xff]  ;;  %v9278_v32 = vld [vmem:[#allocation52_spill] sm:$0xff] }
 0x423   : > { %9255 = vst [vmem:[#allocation263_spill] sm:$0xff] %v6444_v24  ;;  %9256 = vst [vmem:[#allocation264_spill] sm:$0xff] %v6448_v22  ;;  %v6470_v22 = vmul.f32 %v9130_v18, %v6341_v40  ;;  %v9264_v25 = vld [vmem:[#allocation169_spill] sm:$0xff]  ;;  %v9272_v47 = vld [vmem:[#allocation182_spill] sm:$0xff]  ;;  %v6504_v38 = vmul.f32 %v9278_v32, %v6466_v41  ;;  %v6525_v32 = vmul.f32 %v9196_v63, %v6462_v31 }
 0x424   : > { %9257 = vst [vmem:[#allocation265_spill] sm:$0xff] %v6452_v60  ;;  %9258 = vst [vmem:[#allocation266_spill] sm:$0xff] %v6456_v12  ;;  %v2555_v60 = vadd.f32 %v9264_v25, %v2529_v42  ;;  %v1123_v12 = vadd.f32 %v9265_v45, %v1097_v55  ;;  %v9270_v42 = vld [vmem:[#allocation46_spill] sm:$0xff]  ;;  %v1853_v55 = vadd.f32 %v9272_v47, %v1827_v29  ;;  %v9273_v45 = vld [vmem:[#allocation188_spill] sm:$0xff]  ;;  %v923_v29 = vpop.xlane.xlu0 %922 }
 0x425   : > { %9259 = vst [vmem:[#allocation267_spill] sm:$0xff] %v6460_v36  ;;  %9260 = vst [vmem:[#allocation268_spill] sm:$0xff] %v6462_v31  ;;  %v6481_v36 = vmul.f32 %v9175_v13, %v6427_v51  ;;  %v6490_v23 = vmul.f32 %v9270_v42, %v6444_v24  ;;  %v2216_v25 = vadd.f32 %v9273_v45, %v2190_v20  ;;  %v9276_v13 = vld [vmem:[#allocation50_spill] sm:$0xff]  ;;  %v933_v63 = vmul.f32 0.0078125, %v923_v29 }
 0x426   : > { %9261 = vst [vmem:[#allocation269_spill] sm:$0xff] %v6464_v35  ;;  %9262 = vst [vmem:[#allocation270_spill] sm:$0xff] %v6466_v41  ;;  %v6500_v53 = vmul.f32 %v9276_v13, %v6464_v35  ;;  %v6508_v42 = vmul.f32 %v9187_v54, %v6425_v37  ;;  %v6513_v20 = vmul.f32 %v9190_v3, %v6427_v51  ;;  %v9286_v54 = vld [vmem:[#allocation129_spill] sm:$0xff]  ;;  %v9287_v3 = vld [vmem:[#allocation118_spill] sm:$0xff] }
 0x427   : > { %9263 = vst [vmem:[#allocation271_spill] sm:$0xff] %v6470_v22  ;;  %9266 = vst [vmem:[#allocation169_spill] sm:$0xff] %v6477_v61  ;;  %v6486_v22 = vmul.f32 %v9177_v6, %v6442_v57  ;;  %v6496_v61 = vmul.f32 %v9274_v30, %v6462_v31  ;;  %v6517_v47 = vmul.f32 %v9192_v19, %v6442_v57 }
 0x428   : > { %9267 = vst [vmem:[#allocation127_spill] sm:$0xff] %v6481_v36  ;;  %9271 = vst [vmem:[#allocation272_spill] sm:$0xff] %v6490_v23  ;;  %v6521_v45 = vmul.f32 %v9194_v50, %v6444_v24  ;;  %v1149_v13 = vadd.f32 %v9287_v3, %v1123_v12  ;;  %v6536_v19 = vmul.f32 %v9200_v49, %v6466_v41  ;;  %v9290_v50 = vld [vmem:[#allocation156_spill] sm:$0xff]  ;;  %v9291_v23 = vld [vmem:[#allocation161_spill] sm:$0xff] }
 0x429   : > { %9269 = vst [vmem:[#allocation176_spill] sm:$0xff] %v6486_v22  ;;  %9275 = vst [vmem:[#allocation182_spill] sm:$0xff] %v6496_v61  ;;  %v1879_v61 = vadd.f32 %v9290_v50, %v1853_v55  ;;  %v2242_v6 = vadd.f32 %v9291_v23, %v2216_v25  ;;  %v6540_v22 = vld [vmem:[#allocation5 + $0x80] sm:$0xff]  ;;  %v6556_v50 = vmul.f32 %v9207_v8, %v6442_v57 }
 0x42a   : > { %9277 = vst [vmem:[#allocation188_spill] sm:$0xff] %v6500_v53  ;;  %9279 = vst [vmem:[#allocation273_spill] sm:$0xff] %v6504_v38  ;;  %v1098_v38 = vadd.f32 %v9286_v54, %v1072_v0  ;;  %v9288_v53 = vld [vmem:[#allocation151_spill] sm:$0xff]  ;;  %v6546_v54 = vld [vmem:[#allocation5 + $0x81] sm:$0xff]  ;;  %v6550_v0 = vmul.f32 %v9205_v52, %v6427_v51  ;;  %v6568_v55 = vmul.f32 %v9036_v14, %v6462_v31 }
 0x42b   : > { %9280 = vst [vmem:[#allocation274_spill] sm:$0xff] %v6508_v42  ;;  %941 = vst.msk [vmem:[#allocation4 + $0x83] sm:$0xff] %vm852_vm4, %v932_v11  ;;  %v6529_v11 = vmul.f32 %v9198_v27, %v6464_v35  ;;  %v1514_v30 = vadd.f32 %v9288_v53, %v1488_v7  ;;  %v6544_v27 = vmul.f32 %v9202_v4, %v6425_v37  ;;  %v6552_v3 = vld [vmem:[#allocation5 + $0x82] sm:$0xff] }
 0x42c   : > { %9281 = vst [vmem:[#allocation275_spill] sm:$0xff] %v6513_v20  ;;  %9282 = vst [vmem:[#allocation276_spill] sm:$0xff] %v6517_v47  ;;  %v6560_v7 = vmul.f32 %v9211_v17, %v6444_v24  ;;  %v6562_v12 = vld [vmem:[#allocation5 + $0x83] sm:$0xff]  ;;  %v6574_v53 = vmul.f32 %v9037_v28, %v6464_v35  ;;  %v6578_v29 = vmul.f32 %v9039_v26, %v6466_v41  ;;  %v6591_v47 = vld [vmem:[#allocation5 + $0x90] sm:$0xff] }
 0x42d   : > { %9283 = vst [vmem:[#allocation277_spill] sm:$0xff] %v6521_v45  ;;  %9284 = vst [vmem:[#allocation278_spill] sm:$0xff] %v6525_v32  ;;  %v6564_v23 = vld [vmem:[#allocation5 + $0x84] sm:$0xff]  ;;  %v6586_v36 = vmul.f32 %v9130_v18, %v6425_v37  ;;  %v9335_v24 = vld [vmem:[#allocation208_spill] sm:$0xff] }
 0x42e   : > { %9285 = vst [vmem:[#allocation279_spill] sm:$0xff] %v6529_v11  ;;  %9289 = vst [vmem:[#allocation129_spill] sm:$0xff] %v6536_v19  ;;  %v6570_v25 = vld [vmem:[#allocation5 + $0x85] sm:$0xff] }
 0x42f   : > { %9292 = vst [vmem:[#allocation118_spill] sm:$0xff] %v6544_v27  ;;  %9293 = vst [vmem:[#allocation151_spill] sm:$0xff] %v6550_v0  ;;  %v9299_v49 = vld [vmem:[#allocation193_spill] sm:$0xff]  ;;  %v9324_v27 = vld [vmem:[#allocation162_spill] sm:$0xff] }
 0x430   : > { %9294 = vst [vmem:[#allocation156_spill] sm:$0xff] %v6556_v50  ;;  %9295 = vst [vmem:[#allocation161_spill] sm:$0xff] %v6560_v7  ;;  %v2581_v19 = vadd.f32 %v9299_v49, %v2555_v60  ;;  %v6582_v11 = vld [vmem:[#allocation5 + $0x86] sm:$0xff]  ;;  %v9302_v7 = vld [vmem:[#allocation171_spill] sm:$0xff] }
 0x431   : > { %9296 = vst [vmem:[#allocation280_spill] sm:$0xff] %v6568_v55  ;;  %9297 = vst [vmem:[#allocation281_spill] sm:$0xff] %v6574_v53  ;;  %v9301_v55 = vld [vmem:[#allocation222_spill] sm:$0xff]  ;;  %v1175_v45 = vadd.f32 %v9302_v7, %v1149_v13  ;;  %v9303_v50 = vld [vmem:[#allocation177_spill] sm:$0xff]  ;;  %v6609_v13 = vmul.f32 %v9211_v17, %v6562_v12 }
 0x432   : > { %9298 = vst [vmem:[#allocation282_spill] sm:$0xff] %v6578_v29  ;;  %942 = vst.msk [vmem:[#allocation4 + $0x93] sm:$0xff] %vm852_vm4, %v933_v63  ;;  %v1124_v32 = vadd.f32 %v9301_v55, %v1098_v38  ;;  %v1540_v53 = vadd.f32 %v9303_v50, %v1514_v30  ;;  %v6595_v29 = vmul.f32 %v9202_v4, %v6540_v22  ;;  %v9306_v49 = vld [vmem:[#allocation183_spill] sm:$0xff]  ;;  %v9307_v41 = vld [vmem:[#allocation189_spill] sm:$0xff] }
 0x433   : > { %9300 = vst [vmem:[#allocation193_spill] sm:$0xff] %v6586_v36  ;;  %v6599_v63 = vmul.f32 %v9205_v52, %v6546_v54  ;;  %v1905_v60 = vadd.f32 %v9306_v49, %v1879_v61  ;;  %v2268_v0 = vadd.f32 %v9307_v41, %v2242_v6  ;;  %v6605_v38 = vmul.f32 %v9207_v8, %v6552_v3  ;;  %v2538_v7 = vld [vmem:[#allocation4 + $0x52] sm:$0xff]  ;;  %v9314_v41 = vld [vmem:[#allocation170_spill] sm:$0xff]  ;;  %v9323_v36 = vld [vmem:[#allocation157_spill] sm:$0xff] }
 0x434   : > { %9304 = vst [vmem:[#allocation222_spill] sm:$0xff] %v6595_v29  ;;  %9309 = vst [vmem:[#allocation183_spill] sm:$0xff] %v6609_v13  ;;  %v6613_v30 = vmul.f32 %v9036_v14, %v6564_v23  ;;  %v6617_v50 = vmul.f32 %v9037_v28, %v6570_v25  ;;  %v6621_v6 = vmul.f32 %v9039_v26, %v6582_v11  ;;  %v9317_v13 = vld [vmem:[#allocation130_spill] sm:$0xff]  ;;  %v9320_v29 = vld [vmem:[#allocation152_spill] sm:$0xff] }
 0x435   : > { %9305 = vst [vmem:[#allocation171_spill] sm:$0xff] %v6599_v63  ;;  %9308 = vst [vmem:[#allocation177_spill] sm:$0xff] %v6605_v38  ;;  %v6625_v61 = vmul.f32 %v9130_v18, %v6540_v22  ;;  %v6628_v55 = vadd.f32 %v9314_v41, %v2581_v19  ;;  %v6632_v49 = vmul.f32 %v9202_v4, %v6591_v47  ;;  %v6645_v19 = vld [vmem:[#allocation4 + $0x81] sm:$0xff] }
 0x436   : > { %9310 = vst [vmem:[#allocation189_spill] sm:$0xff] %v6613_v30  ;;  %9311 = vst [vmem:[#allocation283_spill] sm:$0xff] %v6617_v50  ;;  %v2590_v30 = vld [vmem:[#allocation4 + $0x53] sm:$0xff]  ;;  %v6635_v38 = vadd.f32 %v9317_v13, %v1124_v32  ;;  %v9319_v50 = vld [vmem:[#allocation114_spill] sm:$0xff]  ;;  %v1566_v20 = vadd.f32 %v9320_v29, %v1540_v53  ;;  %v2294_v42 = vadd.f32 %v9324_v27, %v2268_v0 }
 0x437   : > { %9312 = vst [vmem:[#allocation284_spill] sm:$0xff] %v6621_v6  ;;  %9313 = vst [vmem:[#allocation285_spill] sm:$0xff] %v6625_v61  ;;  %v1201_v63 = vadd.f32 %v9319_v50, %v1175_v45  ;;  %v6641_v6 = vmul.f32 %v9131_v62, %v6355_v43  ;;  %v6643_v61 = vld [vmem:[#allocation4 + $0x80] sm:$0xff]  ;;  %v6653_v32 = vmul.f32 %v9131_v62, %v6546_v54  ;;  %v9326_v45 = vld [vmem:[#allocation86_spill] sm:$0xff] }
 0x438   : > { %9315 = vst [vmem:[#allocation170_spill] sm:$0xff] %v6628_v55  ;;  %9316 = vst [vmem:[#allocation286_spill] sm:$0xff] %v6632_v49  ;;  %v6647_v41 = vld [vmem:[#allocation4 + $0x82] sm:$0xff]  ;;  %v1931_v49 = vadd.f32 %v9323_v36, %v1905_v60  ;;  %v6656_v53 = vmul.f32 %v9326_v45, %v2538_v7  ;;  %v9332_v0 = vld [vmem:[#allocation87_spill] sm:$0xff] }
 0x439   : > { %9318 = vst [vmem:[#allocation130_spill] sm:$0xff] %v6635_v38  ;;  %9321 = vst [vmem:[#allocation114_spill] sm:$0xff] %v6641_v6  ;;  %v6658_v29 = vld [vmem:[#allocation4 + $0x83] sm:$0xff]  ;;  %v9327_v6 = vld [vmem:[#allocation207_spill] sm:$0xff]  ;;  %v6675_v60 = vmul.f32 %v9332_v0, %v2590_v30  ;;  %v6695_v30 = vmul.f32 %v5485_v10, %v6643_v61 }
 0x43a   : > { %9322 = vst [vmem:[#allocation152_spill] sm:$0xff] %v6645_v19  ;;  %9325 = vst [vmem:[#allocation157_spill] sm:$0xff] %v6653_v32  ;;  %v6660_v13 = vld [vmem:[#allocation4 + $0x84] sm:$0xff] }
 0x43b   : > { %v2332_v50 = vld [vmem:[#allocation4 + $0x85] sm:$0xff]  ;;  %9339 = vst [vmem:[#allocation289_spill] sm:$0xff] %v6695_v30  ;;  %v6715_v10 = vmul.f32 %v5501_v15, %v6660_v13 }
 0x43c   : > { %v9328_v35 = vld [vmem:[#allocation90_spill] sm:$0xff]  ;;  %v9334_v31 = vld [vmem:[#allocation93_spill] sm:$0xff]  ;;  %v6718_v30 = vmul.f32 %v5504_v2, %v2332_v50  ;;  %v9358_v2 = vld [vmem:[#allocation95_spill] sm:$0xff] }
 0x43d   : > { %v6664_v38 = vmul.f32 %v9328_v35, %v9327_v6  ;;  %v6668_v36 = vmul.f32 %v9328_v35, %v6357_v34  ;;  %v6672_v27 = vmul.f32 %v9328_v35, %v6552_v3  ;;  %v2384_v7 = vld [vmem:[#allocation4 + $0x86] sm:$0xff]  ;;  %v6683_v55 = vmul.f32 %v9334_v31, %v9335_v24  ;;  %9344 = vst [vmem:[#allocation294_spill] sm:$0xff] %v6715_v10  ;;  %v9352_v10 = vld [vmem:[#allocation212_spill] sm:$0xff] }
 0x43e   : > { %v9333_v32 = vld [vmem:[#allocation126_spill] sm:$0xff]  ;;  %9345 = vst [vmem:[#allocation295_spill] sm:$0xff] %v6718_v30 }
 0x43f   : > { %9329 = vst [vmem:[#allocation162_spill] sm:$0xff] %v6664_v38  ;;  %9330 = vst [vmem:[#allocation207_spill] sm:$0xff] %v6668_v36  ;;  %v6679_v37 = vmul.f32 %v9334_v31, %v9333_v32  ;;  %v6687_v38 = vmul.f32 %v9334_v31, %v6359_v16  ;;  %v6691_v36 = vmul.f32 %v9334_v31, %v6562_v12 }
 0x440   : > { %9331 = vst [vmem:[#allocation287_spill] sm:$0xff] %v6672_v27  ;;  %9336 = vst [vmem:[#allocation126_spill] sm:$0xff] %v6683_v55  ;;  %v2642_v27 = vld [vmem:[#allocation4 + $0x54] sm:$0xff]  ;;  %v6699_v32 = vmul.f32 %v5488_v39, %v6645_v19  ;;  %v6703_v55 = vmul.f32 %v5491_v44, %v6647_v41 }
 0x441   : > { %9337 = vst [vmem:[#allocation208_spill] sm:$0xff] %v6687_v38  ;;  %9338 = vst [vmem:[#allocation288_spill] sm:$0xff] %v6691_v36  ;;  %v6707_v38 = vmul.f32 %v9012_v1, %v6643_v61  ;;  %v6711_v36 = vmul.f32 %v5494_v5, %v6658_v29  ;;  %v9348_v1 = vld [vmem:[#allocation92_spill] sm:$0xff]  ;;  %v9350_v5 = vld [vmem:[#allocation94_spill] sm:$0xff] }
 0x442   : > { %9340 = vst [vmem:[#allocation290_spill] sm:$0xff] %v6699_v32  ;;  %9341 = vst [vmem:[#allocation291_spill] sm:$0xff] %v6703_v55  ;;  %v6722_v32 = vmul.f32 %v9072_v56, %v6645_v19  ;;  %v6725_v55 = vmul.f32 %v5513_v9, %v2384_v7  ;;  %v6728_v44 = vmul.f32 %v9348_v1, %v2642_v27  ;;  %v9349_v39 = vld [vmem:[#allocation164_spill] sm:$0xff]  ;;  %v9354_v56 = vld [vmem:[#allocation178_spill] sm:$0xff] }
 0x443   : > { %9342 = vst [vmem:[#allocation292_spill] sm:$0xff] %v6707_v38  ;;  %9343 = vst [vmem:[#allocation293_spill] sm:$0xff] %v6711_v36  ;;  %v6732_v36 = vmul.f32 %v9350_v5, %v9349_v39  ;;  %v9351_v38 = vld [vmem:[#allocation172_spill] sm:$0xff]  ;;  %v6737_v50 = vmul.f32 %v9350_v5, %v9352_v10  ;;  %v6741_v30 = vmul.f32 %v9350_v5, %v6374_v59  ;;  %v9357_v39 = vld [vmem:[#allocation165_spill] sm:$0xff] }
 0x444   : > { %9346 = vst [vmem:[#allocation296_spill] sm:$0xff] %v6722_v32  ;;  %9347 = vst [vmem:[#allocation297_spill] sm:$0xff] %v6725_v55  ;;  %v1227_v15 = vadd.f32 %v9351_v38, %v1201_v63  ;;  %v1592_v7 = vadd.f32 %v9354_v56, %v1566_v20  ;;  %v9355_v55 = vld [vmem:[#allocation184_spill] sm:$0xff]  ;;  %v6747_v27 = vmul.f32 %v9350_v5, %v6564_v23  ;;  %v9360_v63 = vld [vmem:[#allocation213_spill] sm:$0xff] }
 0x445   : > { %9353 = vst [vmem:[#allocation164_spill] sm:$0xff] %v6741_v30  ;;  %v1957_v9 = vadd.f32 %v9355_v55, %v1931_v49  ;;  %v6751_v32 = vmul.f32 %v9358_v2, %v9357_v39  ;;  %v6755_v10 = vmul.f32 %v9358_v2, %v9360_v63  ;;  %v9362_v38 = vld [vmem:[#allocation124_spill] sm:$0xff]  ;;  %v6760_v59 = vmul.f32 %v9358_v2, %v6376_v33  ;;  %v9364_v56 = vld [vmem:[#allocation153_spill] sm:$0xff]  ;;  %v9365_v55 = vld [vmem:[#allocation158_spill] sm:$0xff] }
 0x446   : > { %9356 = vst [vmem:[#allocation172_spill] sm:$0xff] %v6747_v27  ;;  %v1253_v19 = vadd.f32 %v9362_v38, %v1227_v15  ;;  %v1618_v20 = vadd.f32 %v9364_v56, %v1592_v7  ;;  %v9366_v23 = vld [vmem:[#allocation190_spill] sm:$0xff]  ;;  %v6767_v39 = vmul.f32 %v9358_v2, %v6570_v25  ;;  %v9369_v30 = vld [vmem:[#allocation96_spill] sm:$0xff]  ;;  %v9373_v33 = vld [vmem:[#allocation173_spill] sm:$0xff] }
 0x447   : > { %9359 = vst [vmem:[#allocation212_spill] sm:$0xff] %v6751_v32  ;;  %9361 = vst [vmem:[#allocation178_spill] sm:$0xff] %v6755_v10  ;;  %v1983_v49 = vadd.f32 %v9365_v55, %v1957_v9  ;;  %v2320_v27 = vadd.f32 %v9366_v23, %v2294_v42  ;;  %v9368_v32 = vld [vmem:[#allocation167_spill] sm:$0xff]  ;;  %v9371_v10 = vld [vmem:[#allocation214_spill] sm:$0xff]  ;;  %v6780_v7 = vmul.f32 %v9369_v30, %v6378_v48 }
 0x448   : > { %9363 = vst [vmem:[#allocation184_spill] sm:$0xff] %v6760_v59  ;;  %9367 = vst [vmem:[#allocation165_spill] sm:$0xff] %v6767_v39  ;;  %v6771_v63 = vmul.f32 %v9369_v30, %v9368_v32  ;;  %v6775_v15 = vmul.f32 %v9369_v30, %v9371_v10  ;;  %v1279_v38 = vadd.f32 %v9373_v33, %v1253_v19  ;;  %v9375_v9 = vld [vmem:[#allocation179_spill] sm:$0xff]  ;;  %v9376_v56 = vld [vmem:[#allocation185_spill] sm:$0xff] }
 0x449   : > { %9374 = vst [vmem:[#allocation153_spill] sm:$0xff] %v6780_v7  ;;  %v1644_v42 = vadd.f32 %v9375_v9, %v1618_v20  ;;  %v2009_v55 = vadd.f32 %v9376_v56, %v1983_v49  ;;  %v9377_v25 = vld [vmem:[#allocation163_spill] sm:$0xff]  ;;  %v6787_v32 = vmul.f32 %v9369_v30, %v6582_v11  ;;  %v9380_v39 = vld [vmem:[#allocation97_spill] sm:$0xff]  ;;  %v9385_v49 = vld [vmem:[#allocation154_spill] sm:$0xff] }
 0x44a   : > { %9370 = vst [vmem:[#allocation213_spill] sm:$0xff] %v6771_v63  ;;  %9372 = vst [vmem:[#allocation124_spill] sm:$0xff] %v6775_v15  ;;  %v2346_v23 = vadd.f32 %v9377_v25, %v2320_v27  ;;  %v9379_v63 = vld [vmem:[#allocation202_spill] sm:$0xff]  ;;  %v6795_v19 = vmul.f32 %v9380_v39, %v6341_v40  ;;  %v9383_v48 = vld [vmem:[#allocation119_spill] sm:$0xff]  ;;  %v6800_v20 = vmul.f32 %v9380_v39, %v6540_v22 }
 0x44b   : > { %9378 = vst [vmem:[#allocation158_spill] sm:$0xff] %v6787_v32  ;;  %v6791_v10 = vmul.f32 %v9380_v39, %v9379_v63  ;;  %v1305_v33 = vadd.f32 %v9383_v48, %v1279_v38  ;;  %v1670_v27 = vadd.f32 %v9385_v49, %v1644_v42  ;;  %v9386_v9 = vld [vmem:[#allocation159_spill] sm:$0xff]  ;;  %v6807_v63 = vmul.f32 %v9380_v39, %v6591_v47  ;;  %v9392_v22 = vld [vmem:[#allocation174_spill] sm:$0xff]  ;;  %v6824_v47 = vld [vmem:[#allocation5 + $0xa0] sm:$0xff] }
 0x44c   : > { %9382 = vst [vmem:[#allocation167_spill] sm:$0xff] %v6795_v19  ;;  %9384 = vst [vmem:[#allocation214_spill] sm:$0xff] %v6800_v20  ;;  %v2035_v56 = vadd.f32 %v9386_v9, %v2009_v55  ;;  %v9387_v11 = vld [vmem:[#allocation191_spill] sm:$0xff]  ;;  %v9394_v55 = vld [vmem:[#allocation180_spill] sm:$0xff] }
 0x44d   : > { %9381 = vst [vmem:[#allocation190_spill] sm:$0xff] %v6791_v10  ;;  %v2372_v25 = vadd.f32 %v9387_v11, %v2346_v23  ;;  %9388 = vst [vmem:[#allocation173_spill] sm:$0xff] %v6807_v63  ;;  %v9389_v10 = vld [vmem:[#allocation98_spill] sm:$0xff]  ;;  %v1331_v48 = vadd.f32 %v9392_v22, %v1305_v33  ;;  %v1696_v23 = vadd.f32 %v9394_v55, %v1670_v27  ;;  %v9401_v33 = vld [vmem:[#allocation135_spill] sm:$0xff] }
 0x44e   : > { %v6811_v40 = vmul.f32 %v9389_v10, %v6148_v46  ;;  %v6815_v38 = vmul.f32 %v9389_v10, %v6355_v43  ;;  %v6820_v42 = vmul.f32 %v9389_v10, %v6546_v54  ;;  %v9395_v49 = vld [vmem:[#allocation186_spill] sm:$0xff]  ;;  %v9397_v46 = vld [vmem:[#allocation99_spill] sm:$0xff]  ;;  %v6930_v63 = vmul.f32 %v9326_v45, %v6288_v21  ;;  %v9438_v32 = vld [vmem:[#allocation240_spill] sm:$0xff] }
 0x44f   : > { %v2061_v9 = vadd.f32 %v9395_v49, %v2035_v56  ;;  %v9396_v11 = vld [vmem:[#allocation166_spill] sm:$0xff]  ;;  %v6833_v43 = vmul.f32 %v9397_v46, %v6357_v34  ;;  %v6837_v54 = vmul.f32 %v9397_v46, %v6552_v3  ;;  %v1358_v27 = vadd.f32 %v9401_v33, %v1331_v48  ;;  %v9402_v56 = vld [vmem:[#allocation100_spill] sm:$0xff]  ;;  %v9411_v33 = vld [vmem:[#allocation227_spill] sm:$0xff] }
 0x450   : > { %9390 = vst [vmem:[#allocation179_spill] sm:$0xff] %v6811_v40  ;;  %9391 = vst [vmem:[#allocation185_spill] sm:$0xff] %v6815_v38  ;;  %v2398_v19 = vadd.f32 %v9396_v11, %v2372_v25  ;;  %v6829_v40 = vmul.f32 %v9397_v46, %v9327_v6  ;;  %v6840_v22 = vld [vmem:[#allocation5 + $0xa1] sm:$0xff]  ;;  %v6844_v55 = vmul.f32 %v9402_v56, %v9335_v24  ;;  %v9408_v3 = vld [vmem:[#allocation192_spill] sm:$0xff] }
 0x451   : > { %9393 = vst [vmem:[#allocation163_spill] sm:$0xff] %v6820_v42  ;;  %9399 = vst [vmem:[#allocation119_spill] sm:$0xff] %v6833_v43  ;;  %v9404_v25 = vld [vmem:[#allocation142_spill] sm:$0xff]  ;;  %v9405_v6 = vld [vmem:[#allocation121_spill] sm:$0xff]  ;;  %v6857_v48 = vmul.f32 %v9402_v56, %v6359_v16  ;;  %v6861_v24 = vmul.f32 %v9402_v56, %v6562_v12  ;;  %v6874_v16 = vmul.f32 %v9205_v52, %v6840_v22 }
 0x452   : > { %9398 = vst [vmem:[#allocation202_spill] sm:$0xff] %v6829_v40  ;;  %9400 = vst [vmem:[#allocation154_spill] sm:$0xff] %v6837_v54  ;;  %v1723_v49 = vadd.f32 %v9404_v25, %v1696_v23  ;;  %v2087_v11 = vadd.f32 %v9405_v6, %v2061_v9  ;;  %v6848_v42 = vld [vmem:[#allocation5 + $0xa2] sm:$0xff]  ;;  %v2424_v54 = vadd.f32 %v9408_v3, %v2398_v19  ;;  %v9471_v52 = vld [vmem:[#allocation140_spill] sm:$0xff] }
 0x453   : > { %9403 = vst [vmem:[#allocation159_spill] sm:$0xff] %v6844_v55  ;;  %v6850_v34 = vld [vmem:[#allocation5 + $0xa3] sm:$0xff]  ;;  %9409 = vst [vmem:[#allocation180_spill] sm:$0xff] %v6857_v48  ;;  %v1385_v23 = vadd.f32 %v9411_v33, %v1358_v27  ;;  %v6866_v9 = vmul.f32 %v9202_v4, %v6824_v47  ;;  %v9417_v48 = vld [vmem:[#allocation136_spill] sm:$0xff]  ;;  %v6882_v4 = vmul.f32 %v9207_v8, %v6848_v42 }
 0x454   : > { %9406 = vst [vmem:[#allocation191_spill] sm:$0xff] %v6850_v34  ;;  %v6852_v43 = vld [vmem:[#allocation5 + $0xa4] sm:$0xff]  ;;  %9410 = vst [vmem:[#allocation186_spill] sm:$0xff] %v6861_v24  ;;  %v6886_v33 = vmul.f32 %v9211_v17, %v6850_v34  ;;  %v6946_v21 = vmul.f32 %v9328_v35, %v6848_v42  ;;  %v7029_v8 = vld [vmem:[#allocation5 + $0x71] sm:$0xff] }
 0x455   : > { %9407 = vst [vmem:[#allocation174_spill] sm:$0xff] %v6852_v43  ;;  %9412 = vst [vmem:[#allocation166_spill] sm:$0xff] %v6866_v9  ;;  %v6868_v25 = vld [vmem:[#allocation5 + $0xa5] sm:$0xff]  ;;  %v1411_v27 = vadd.f32 %v9417_v48, %v1385_v23 }
 0x456   : > { %v9413_v6 = vld [vmem:[#allocation233_spill] sm:$0xff]  ;;  %v9414_v55 = vld [vmem:[#allocation78_spill] sm:$0xff]  ;;  %9415 = vst [vmem:[#allocation135_spill] sm:$0xff] %v6874_v16  ;;  %9418 = vst [vmem:[#allocation142_spill] sm:$0xff] %v6882_v4 }
 0x457   : > { %v1750_v38 = vadd.f32 %v9413_v6, %v1723_v49  ;;  %v2113_v19 = vadd.f32 %v9414_v55, %v2087_v11  ;;  %v6876_v3 = vld [vmem:[#allocation5 + $0xa6] sm:$0xff]  ;;  %9419 = vst [vmem:[#allocation121_spill] sm:$0xff] %v6886_v33  ;;  %v6890_v55 = vmul.f32 %v9036_v14, %v6852_v43  ;;  %v9421_v49 = vld [vmem:[#allocation143_spill] sm:$0xff]  ;;  %v9422_v6 = vld [vmem:[#allocation148_spill] sm:$0xff] }
 0x458   : > { %v9416_v12 = vld [vmem:[#allocation149_spill] sm:$0xff]  ;;  %v9424_v48 = vld [vmem:[#allocation246_spill] sm:$0xff]  ;;  %v6904_v33 = vmul.f32 %v9039_v26, %v6876_v3  ;;  %9437 = vst [vmem:[#allocation143_spill] sm:$0xff] %v6946_v21 }
 0x459   : > { %v2451_v24 = vadd.f32 %v9416_v12, %v2424_v54  ;;  %9420 = vst [vmem:[#allocation192_spill] sm:$0xff] %v6890_v55  ;;  %v1776_v11 = vadd.f32 %v9421_v49, %v1750_v38  ;;  %v2139_v16 = vadd.f32 %v9422_v6, %v2113_v19  ;;  %v6896_v54 = vmul.f32 %v9037_v28, %v6868_v25  ;;  %v6899_v12 = vld [vmem:[#allocation4 + $0x62] sm:$0xff]  ;;  %v9428_v19 = vld [vmem:[#allocation115_spill] sm:$0xff]  ;;  %v9429_v6 = vld [vmem:[#allocation120_spill] sm:$0xff] }
 0x45a   : > { %v9425_v4 = vld [vmem:[#allocation125_spill] sm:$0xff]  ;;  %9426 = vst [vmem:[#allocation233_spill] sm:$0xff] %v6904_v33  ;;  %v6908_v55 = vmul.f32 %v9130_v18, %v6824_v47  ;;  %v6912_v38 = vmul.f32 %v9131_v62, %v6427_v51  ;;  %v9443_v21 = vld [vmem:[#allocation138_spill] sm:$0xff] }
 0x45b   : > { %9423 = vst [vmem:[#allocation227_spill] sm:$0xff] %v6896_v54  ;;  %v2478_v23 = vadd.f32 %v9424_v48, %v2451_v24  ;;  %v1437_v9 = vadd.f32 %v9425_v4, %v1411_v27  ;;  %v1802_v49 = vadd.f32 %v9428_v19, %v1776_v11  ;;  %v2165_v24 = vadd.f32 %v9429_v6, %v2139_v16  ;;  %v9430_v48 = vld [vmem:[#allocation117_spill] sm:$0xff]  ;;  %v9434_v11 = vld [vmem:[#allocation144_spill] sm:$0xff]  ;;  %v9461_v14 = vld [vmem:[#allocation146_spill] sm:$0xff] }
 0x45c   : > { %9427 = vst [vmem:[#allocation78_spill] sm:$0xff] %v6908_v55  ;;  %v6919_v27 = vmul.f32 %v9131_v62, %v6840_v22  ;;  %v6921_v4 = vld [vmem:[#allocation4 + $0x63] sm:$0xff]  ;;  %v6926_v55 = vmul.f32 %v9326_v45, %v6899_v12  ;;  %v6934_v16 = vmul.f32 %v9326_v45, %v6647_v41  ;;  %v9435_v19 = vld [vmem:[#allocation116_spill] sm:$0xff]  ;;  %v6966_v45 = vmul.f32 %v9332_v0, %v6658_v29  ;;  %v6982_v29 = vld [vmem:[#allocation4 + $0x70] sm:$0xff] }
 0x45d   : > { %v2504_v54 = vadd.f32 %v9430_v48, %v2478_v23  ;;  %v9432_v33 = vld [vmem:[#allocation137_spill] sm:$0xff]  ;;  %v1828_v23 = vadd.f32 %v9434_v11, %v1802_v49  ;;  %v2191_v6 = vadd.f32 %v9435_v19, %v2165_v24  ;;  %v6950_v20 = vmul.f32 %v9332_v0, %v6921_v4  ;;  %v9441_v11 = vld [vmem:[#allocation239_spill] sm:$0xff] }
 0x45e   : > { %9431 = vst [vmem:[#allocation149_spill] sm:$0xff] %v6919_v27  ;;  %v1463_v40 = vadd.f32 %v9432_v33, %v1437_v9  ;;  %9433 = vst [vmem:[#allocation136_spill] sm:$0xff] %v6934_v16  ;;  %v6941_v9 = vmul.f32 %v9328_v35, %v6442_v57  ;;  %v9436_v33 = vld [vmem:[#allocation228_spill] sm:$0xff]  ;;  %v6954_v49 = vmul.f32 %v9332_v0, %v9438_v32  ;;  %v2641_v24 = vld [vmem:[#allocation4 + $0x44] sm:$0xff] }
 0x45f   : > { %v2530_v48 = vadd.f32 %v6317_v58, %v2504_v54  ;;  %v9440_v58 = vld [vmem:[#allocation234_spill] sm:$0xff]  ;;  %v2217_v19 = vadd.f32 %v9441_v11, %v2191_v6  ;;  %9444 = vst [vmem:[#allocation246_spill] sm:$0xff] %v6966_v45  ;;  %v9445_v32 = vld [vmem:[#allocation263_spill] sm:$0xff]  ;;  %v9458_v45 = vld [vmem:[#allocation14_spill] sm:$0xff] }
 0x460   : > { %v1489_v27 = vadd.f32 %v9436_v33, %v1463_v40  ;;  %9439 = vst [vmem:[#allocation148_spill] sm:$0xff] %v6954_v49  ;;  %v1854_v54 = vadd.f32 %v9440_v58, %v1828_v23  ;;  %v9442_v40 = vld [vmem:[#allocation170_spill] sm:$0xff]  ;;  %v6970_v59 = vmul.f32 %v9334_v31, %v9445_v32  ;;  %v6974_v23 = vmul.f32 %v9334_v31, %v6850_v34  ;;  %v9452_v31 = vld [vmem:[#allocation241_spill] sm:$0xff] }
 0x461   : > { %v2556_v7 = vadd.f32 %v6656_v53, %v2530_v48  ;;  %v2633_v33 = vadd.f32 %v6679_v37, %v9442_v40  ;;  %v6961_v15 = vld [vmem:[#allocation4 + $0x64] sm:$0xff]  ;;  %v9448_v48 = vld [vmem:[#allocation112_spill] sm:$0xff]  ;;  %v988_v26 = vmul.f32 %v9458_v45, %v6982_v29 }
 0x462   : > { %v1515_v35 = vadd.f32 %v9443_v21, %v1489_v27  ;;  %9446 = vst [vmem:[#allocation125_spill] sm:$0xff] %v6974_v23  ;;  %v9447_v53 = vld [vmem:[#allocation145_spill] sm:$0xff]  ;;  %v2243_v37 = vadd.f32 %v9448_v48, %v2217_v19  ;;  %v9449_v58 = vld [vmem:[#allocation162_spill] sm:$0xff]  ;;  %v2651_v27 = vmul.f32 %v9348_v1, %v2641_v24  ;;  %v6987_v62 = vmul.f32 %v9348_v1, %v6961_v15  ;;  %v9455_v24 = vld [vmem:[#allocation235_spill] sm:$0xff] }
 0x463   : > { %v1880_v6 = vadd.f32 %v9447_v53, %v1854_v54  ;;  %v2582_v11 = vadd.f32 %v9449_v58, %v2556_v7  ;;  %v6980_v21 = vld [vmem:[#allocation4 + $0x60] sm:$0xff]  ;;  %v6991_v23 = vmul.f32 %v9348_v1, %v9452_v31  ;;  %v6995_v54 = vmul.f32 %v9348_v1, %v6660_v13  ;;  %v6997_v7 = vld [vmem:[#allocation5 + $0x70] sm:$0xff]  ;;  %v9456_v53 = vld [vmem:[#allocation242_spill] sm:$0xff] }
 0x464   : > { %9450 = vst [vmem:[#allocation115_spill] sm:$0xff] %v6980_v21  ;;  %v9451_v40 = vld [vmem:[#allocation229_spill] sm:$0xff]  ;;  %v2269_v48 = vadd.f32 %v9456_v53, %v2243_v37  ;;  %v7002_v58 = vadd.f32 %v2651_v27, %v2633_v33  ;;  %v987_v31 = vmul.f32 %v9458_v45, %v6980_v21  ;;  %v9459_v13 = vld [vmem:[#allocation16_spill] sm:$0xff]  ;;  %v9460_v1 = vld [vmem:[#allocation260_spill] sm:$0xff] }
 0x465   : > { %v1541_v0 = vadd.f32 %v9451_v40, %v1515_v35  ;;  %9453 = vst [vmem:[#allocation120_spill] sm:$0xff] %v6991_v23  ;;  %9454 = vst [vmem:[#allocation117_spill] sm:$0xff] %v6995_v54  ;;  %v1906_v19 = vadd.f32 %v9455_v24, %v1880_v6  ;;  %v2608_v35 = vadd.f32 %v6675_v60, %v2582_v11  ;;  %v9457_v40 = vld [vmem:[#allocation139_spill] sm:$0xff]  ;;  %v1029_v28 = vld [vmem:[#allocation4 + $0x61] sm:$0xff] }
 0x466   : > { %v1013_v54 = vmul.f32 %v9460_v1, %v9459_v13  ;;  %v9462_v24 = vld [vmem:[#allocation122_spill] sm:$0xff]  ;;  %v1014_v33 = vmul.f32 %v9459_v13, %v6997_v7 }
 0x467   : > { %v1567_v18 = vadd.f32 %v9457_v40, %v1541_v0  ;;  %v1932_v6 = vadd.f32 %v9461_v14, %v1906_v19  ;;  %v2295_v37 = vadd.f32 %v9462_v24, %v2269_v48  ;;  %v9463_v53 = vld [vmem:[#allocation126_spill] sm:$0xff]  ;;  %v7016_v0 = vld [vmem:[#allocation4 + $0x71] sm:$0xff] }
 0x468   : > { %v2634_v60 = vadd.f32 %v9463_v53, %v2608_v35  ;;  %v9464_v11 = vld [vmem:[#allocation230_spill] sm:$0xff]  ;;  %v9465_v40 = vld [vmem:[#allocation268_spill] sm:$0xff]  ;;  %v9469_v48 = vld [vmem:[#allocation243_spill] sm:$0xff] }
 0x469   : > { %v1593_v27 = vadd.f32 %v9464_v11, %v1567_v18  ;;  %v7021_v45 = vmul.f32 %v9350_v5, %v9465_v40  ;;  %v9467_v21 = vld [vmem:[#allocation15_spill] sm:$0xff]  ;;  %v9468_v14 = vld [vmem:[#allocation236_spill] sm:$0xff]  ;;  %v2321_v24 = vadd.f32 %v9469_v48, %v2295_v37  ;;  %v9470_v53 = vld [vmem:[#allocation18_spill] sm:$0xff] }
 0x46a   : > { %v995_v17 = vadd.f32 %v987_v31, %v9467_v21  ;;  %v996_v16 = vadd.f32 %v988_v26, %v9467_v21  ;;  %v1958_v19 = vadd.f32 %v9468_v14, %v1932_v6  ;;  %v2660_v35 = vadd.f32 %v6728_v44, %v2634_v60  ;;  %v9472_v31 = vld [vmem:[#allocation147_spill] sm:$0xff]  ;;  %v9473_v26 = vld [vmem:[#allocation109_spill] sm:$0xff]  ;;  %v9480_v48 = vld [vmem:[#allocation21_spill] sm:$0xff] }
 0x46b   : > { %9466 = vst [vmem:[#allocation137_spill] sm:$0xff] %v7021_v45  ;;  %v1039_v13 = vmul.f32 %v9470_v53, %v1029_v28  ;;  %v1619_v18 = vadd.f32 %v9471_v52, %v1593_v27  ;;  %v1040_v40 = vmul.f32 %v9470_v53, %v7016_v0  ;;  %v2347_v21 = vadd.f32 %v9473_v26, %v2321_v24  ;;  %v9475_v37 = vld [vmem:[#allocation20_spill] sm:$0xff]  ;;  %v9478_v27 = vld [vmem:[#allocation244_spill] sm:$0xff]  ;;  %v9481_v53 = vld [vmem:[#allocation141_spill] sm:$0xff] }
 0x46c   : > { %v1021_v11 = vadd.f32 %v1013_v54, %v995_v17  ;;  %v1022_v23 = vadd.f32 %v1014_v33, %v996_v16  ;;  %v1984_v45 = vadd.f32 %v9472_v31, %v1958_v19  ;;  %v7037_v6 = vadd.f32 %v6737_v50, %v2660_v35  ;;  %v7041_v28 = vld [vmem:[#allocation4 + $0x72] sm:$0xff]  ;;  %v9477_v54 = vld [vmem:[#allocation237_spill] sm:$0xff]  ;;  %v9483_v31 = vld [vmem:[#allocation110_spill] sm:$0xff] }
 0x46d   : > { %v1065_v44 = vmul.f32 %v6427_v51, %v9475_v37  ;;  %v9476_v60 = vld [vmem:[#allocation231_spill] sm:$0xff]  ;;  %v1066_v16 = vmul.f32 %v9475_v37, %v7029_v8  ;;  %v2373_v19 = vadd.f32 %v9478_v27, %v2347_v21  ;;  %v7050_v50 = vmul.f32 %v9350_v5, %v6852_v43  ;;  %v9484_v21 = vld [vmem:[#allocation130_spill] sm:$0xff] }
 0x46e   : > { %9474 = vst [vmem:[#allocation144_spill] sm:$0xff] %v7037_v6  ;;  %v1645_v14 = vadd.f32 %v9476_v60, %v1619_v18  ;;  %v1047_v52 = vadd.f32 %v1039_v13, %v1021_v11  ;;  %v1048_v17 = vadd.f32 %v1040_v40, %v1022_v23  ;;  %v2010_v33 = vadd.f32 %v9477_v54, %v1984_v45  ;;  %v7054_v35 = vld [vmem:[#allocation5 + $0x72] sm:$0xff]  ;;  %v9486_v54 = vld [vmem:[#allocation30_spill] sm:$0xff] }
 0x46f   : > { %9479 = vst [vmem:[#allocation116_spill] sm:$0xff] %v7050_v50  ;;  %v1091_v24 = vmul.f32 %v6899_v12, %v9480_v48  ;;  %v1092_v11 = vmul.f32 %v9480_v48, %v7041_v28  ;;  %v9482_v40 = vld [vmem:[#allocation111_spill] sm:$0xff]  ;;  %v2399_v26 = vadd.f32 %v9483_v31, %v2373_v19  ;;  %v1117_v27 = vmul.f32 %v6442_v57, %v9486_v54  ;;  %v9487_v50 = vld [vmem:[#allocation232_spill] sm:$0xff]  ;;  %v9489_v48 = vld [vmem:[#allocation245_spill] sm:$0xff] }
 0x470   : > { %v1671_v18 = vadd.f32 %v9481_v53, %v1645_v14  ;;  %v1073_v13 = vadd.f32 %v1065_v44, %v1047_v52  ;;  %v1074_v23 = vadd.f32 %v1066_v16, %v1048_v17  ;;  %v2036_v45 = vadd.f32 %v9482_v40, %v2010_v33  ;;  %v9485_v37 = vld [vmem:[#allocation223_spill] sm:$0xff]  ;;  %v1159_v17 = vld [vmem:[#allocation5 + $0x63] sm:$0xff] }
 0x471   : > { %v1176_v60 = vadd.f32 %v9485_v37, %v9484_v21  ;;  %v7065_v12 = vld [vmem:[#allocation4 + $0x73] sm:$0xff]  ;;  %v1118_v52 = vmul.f32 %v9486_v54, %v7054_v35  ;;  %v9488_v16 = vld [vmem:[#allocation238_spill] sm:$0xff]  ;;  %v2425_v19 = vadd.f32 %v9489_v48, %v2399_v26  ;;  %v9490_v53 = vld [vmem:[#allocation269_spill] sm:$0xff] }
 0x472   : > { %v1697_v5 = vadd.f32 %v9487_v50, %v1671_v18  ;;  %v1099_v14 = vadd.f32 %v1091_v24, %v1073_v13  ;;  %v1100_v44 = vadd.f32 %v1092_v11, %v1074_v23  ;;  %v2062_v33 = vadd.f32 %v9488_v16, %v2036_v45  ;;  %v9492_v31 = vld [vmem:[#allocation31_spill] sm:$0xff]  ;;  %v7078_v37 = vld [vmem:[#allocation5 + $0x73] sm:$0xff] }
 0x473   : > { %v7074_v40 = vmul.f32 %v9358_v2, %v9490_v53  ;;  %v1143_v21 = vmul.f32 %v6921_v4, %v9492_v31  ;;  %v9493_v50 = vld [vmem:[#allocation200_spill] sm:$0xff]  ;;  %v1144_v23 = vmul.f32 %v9492_v31, %v7065_v12  ;;  %v9494_v11 = vld [vmem:[#allocation210_spill] sm:$0xff]  ;;  %v9496_v16 = vld [vmem:[#allocation32_spill] sm:$0xff] }
 0x474   : > { %v1724_v24 = vadd.f32 %v9493_v50, %v1697_v5  ;;  %v1125_v18 = vadd.f32 %v1117_v27, %v1099_v14  ;;  %v1126_v13 = vadd.f32 %v1118_v52, %v1100_v44  ;;  %v2088_v45 = vadd.f32 %v9494_v11, %v2062_v33  ;;  %v9495_v54 = vld [vmem:[#allocation220_spill] sm:$0xff]  ;;  %v9498_v4 = vld [vmem:[#allocation274_spill] sm:$0xff]  ;;  %v9500_v52 = vld [vmem:[#allocation193_spill] sm:$0xff] }
 0x475   : > { %9491 = vst [vmem:[#allocation228_spill] sm:$0xff] %v7074_v40  ;;  %v2452_v26 = vadd.f32 %v9495_v54, %v2425_v19  ;;  %v1169_v48 = vmul.f32 %v9496_v16, %v1159_v17  ;;  %v7086_v53 = vld [vmem:[#allocation4 + $0x74] sm:$0xff]  ;;  %v1170_v5 = vmul.f32 %v9496_v16, %v7078_v37  ;;  %v1211_v27 = vld [vmem:[#allocation5 + $0x64] sm:$0xff] }
 0x476   : > { %v9497_v40 = vld [vmem:[#allocation131_spill] sm:$0xff]  ;;  %v1751_v49 = vadd.f32 %v9498_v4, %v1724_v24  ;;  %v1151_v43 = vadd.f32 %v1143_v21, %v1125_v18  ;;  %v1152_v34 = vadd.f32 %v1144_v23, %v1126_v13  ;;  %v9499_v14 = vld [vmem:[#allocation118_spill] sm:$0xff]  ;;  %v9501_v31 = vld [vmem:[#allocation33_spill] sm:$0xff] }
 0x477   : > { %v1202_v6 = vadd.f32 %v9497_v40, %v1176_v60  ;;  %v2114_v44 = vadd.f32 %v9499_v14, %v2088_v45  ;;  %v2479_v33 = vadd.f32 %v9500_v52, %v2452_v26  ;;  %v1195_v19 = vmul.f32 %v6961_v15, %v9501_v31  ;;  %v7096_v17 = vld [vmem:[#allocation5 + $0x74] sm:$0xff]  ;;  %v9503_v60 = vld [vmem:[#allocation201_spill] sm:$0xff] }
 0x478   : > { %v9502_v50 = vld [vmem:[#allocation224_spill] sm:$0xff]  ;;  %v1777_v40 = vadd.f32 %v9503_v60, %v1751_v49  ;;  %v1177_v24 = vadd.f32 %v1169_v48, %v1151_v43  ;;  %v1178_v21 = vadd.f32 %v1170_v5, %v1152_v34  ;;  %v1196_v18 = vmul.f32 %v9501_v31, %v7086_v53  ;;  %v7102_v13 = vld [vmem:[#allocation4 + $0x65] sm:$0xff]  ;;  %v9505_v23 = vld [vmem:[#allocation211_spill] sm:$0xff] }
 0x479   : > { %v1228_v11 = vadd.f32 %v9502_v50, %v1202_v6  ;;  %9504 = vst [vmem:[#allocation240_spill] sm:$0xff] %v7102_v13  ;;  %v2140_v45 = vadd.f32 %v9505_v23, %v2114_v44  ;;  %v9506_v54 = vld [vmem:[#allocation221_spill] sm:$0xff]  ;;  %v7107_v15 = vld [vmem:[#allocation4 + $0x75] sm:$0xff] }
 0x47a   : > { %v2505_v26 = vadd.f32 %v9506_v54, %v2479_v33  ;;  %v9507_v16 = vld [vmem:[#allocation34_spill] sm:$0xff]  ;;  %v9509_v6 = vld [vmem:[#allocation275_spill] sm:$0xff]  ;;  %v1203_v49 = vadd.f32 %v1195_v19, %v1177_v24  ;;  %v1204_v43 = vadd.f32 %v1196_v18, %v1178_v21  ;;  %v9511_v33 = vld [vmem:[#allocation35_spill] sm:$0xff] }
 0x47b   : > { %v1221_v4 = vmul.f32 %v9507_v16, %v1211_v27  ;;  %v9508_v14 = vld [vmem:[#allocation133_spill] sm:$0xff]  ;;  %v1803_v50 = vadd.f32 %v9509_v6, %v1777_v40  ;;  %v1222_v34 = vmul.f32 %v9507_v16, %v7096_v17  ;;  %v9510_v5 = vld [vmem:[#allocation151_spill] sm:$0xff]  ;;  %v1247_v60 = vmul.f32 %v9511_v33, %v7102_v13 }
 0x47c   : > { %v1254_v52 = vadd.f32 %v9508_v14, %v1228_v11  ;;  %v1263_v48 = vld [vmem:[#allocation5 + $0x65] sm:$0xff]  ;;  %v2166_v31 = vadd.f32 %v9510_v5, %v2140_v45  ;;  %v2531_v44 = vadd.f32 %v6912_v38, %v2505_v26  ;;  %v7117_v27 = vld [vmem:[#allocation5 + $0x75] sm:$0xff]  ;;  %v1248_v24 = vmul.f32 %v9511_v33, %v7107_v15 }
 0x47d   : > { %v9512_v23 = vld [vmem:[#allocation225_spill] sm:$0xff]  ;;  %v9513_v11 = vld [vmem:[#allocation203_spill] sm:$0xff]  ;;  %v1229_v40 = vadd.f32 %v1221_v4, %v1203_v49  ;;  %v1230_v19 = vadd.f32 %v1222_v34, %v1204_v43  ;;  %v9517_v5 = vld [vmem:[#allocation134_spill] sm:$0xff] }
 0x47e   : > { %v1280_v54 = vadd.f32 %v9512_v23, %v1254_v52  ;;  %v1829_v14 = vadd.f32 %v9513_v11, %v1803_v50  ;;  %v7123_v21 = vld [vmem:[#allocation4 + $0x66] sm:$0xff]  ;;  %v9515_v18 = vld [vmem:[#allocation215_spill] sm:$0xff]  ;;  %v2557_v38 = vadd.f32 %v6926_v55, %v2531_v44  ;;  %v9518_v52 = vld [vmem:[#allocation276_spill] sm:$0xff] }
 0x47f   : > { %9514 = vst [vmem:[#allocation234_spill] sm:$0xff] %v7123_v21  ;;  %v2192_v45 = vadd.f32 %v9515_v18, %v2166_v31  ;;  %v9516_v26 = vld [vmem:[#allocation36_spill] sm:$0xff]  ;;  %v1255_v50 = vadd.f32 %v1247_v60, %v1229_v40  ;;  %v1256_v4 = vadd.f32 %v1248_v24, %v1230_v19  ;;  %v1315_v43 = vld [vmem:[#allocation5 + $0x66] sm:$0xff]  ;;  %v9519_v34 = vld [vmem:[#allocation156_spill] sm:$0xff] }
 0x480   : > { %v1273_v16 = vmul.f32 %v9516_v26, %v1263_v48  ;;  %v7128_v6 = vld [vmem:[#allocation4 + $0x76] sm:$0xff]  ;;  %v1306_v13 = vadd.f32 %v9517_v5, %v1280_v54  ;;  %v1855_v23 = vadd.f32 %v9518_v52, %v1829_v14  ;;  %v1274_v49 = vmul.f32 %v9516_v26, %v7117_v27  ;;  %v9521_v11 = vld [vmem:[#allocation226_spill] sm:$0xff]  ;;  %v9524_v26 = vld [vmem:[#allocation38_spill] sm:$0xff] }
 0x481   : > { %v2218_v33 = vadd.f32 %v9519_v34, %v2192_v45  ;;  %v2583_v31 = vadd.f32 %v6941_v9, %v2557_v38  ;;  %v9520_v55 = vld [vmem:[#allocation37_spill] sm:$0xff]  ;;  %v1325_v9 = vmul.f32 %v9524_v26, %v1315_v43  ;;  %v9525_v38 = vld [vmem:[#allocation194_spill] sm:$0xff]  ;;  %v9526_v34 = vld [vmem:[#allocation277_spill] sm:$0xff] }
 0x482   : > { %v1299_v44 = vmul.f32 %v9520_v55, %v7123_v21  ;;  %v7138_v48 = vld [vmem:[#allocation5 + $0x76] sm:$0xff]  ;;  %v1332_v18 = vadd.f32 %v9521_v11, %v1306_v13  ;;  %v1281_v14 = vadd.f32 %v1273_v16, %v1255_v50  ;;  %v1282_v60 = vadd.f32 %v1274_v49, %v1256_v4  ;;  %v9527_v16 = vld [vmem:[#allocation161_spill] sm:$0xff]  ;;  %v9528_v4 = vld [vmem:[#allocation39_spill] sm:$0xff] }
 0x483   : > { %v9522_v54 = vld [vmem:[#allocation204_spill] sm:$0xff]  ;;  %v1300_v40 = vmul.f32 %v9520_v55, %v7128_v6  ;;  %v2609_v45 = vadd.f32 %v6950_v20, %v2583_v31  ;;  %v1326_v13 = vmul.f32 %v9524_v26, %v7138_v48  ;;  %v1352_v49 = vmul.f32 %v9528_v4, %v6982_v29  ;;  %v9529_v20 = vld [vmem:[#allocation169_spill] sm:$0xff] }
 0x484   : > { %v1881_v5 = vadd.f32 %v9522_v54, %v1855_v23  ;;  %v9523_v19 = vld [vmem:[#allocation216_spill] sm:$0xff]  ;;  %v1359_v52 = vadd.f32 %v9525_v38, %v1332_v18  ;;  %v1307_v56 = vadd.f32 %v1299_v44, %v1281_v14  ;;  %v9530_v31 = vld [vmem:[#allocation205_spill] sm:$0xff]  ;;  %v1353_v44 = vmul.f32 %v6643_v61, %v9528_v4 }
 0x485   : > { %v2244_v24 = vadd.f32 %v9523_v19, %v2218_v33  ;;  %v1308_v32 = vadd.f32 %v1300_v40, %v1282_v60  ;;  %v2635_v50 = vadd.f32 %v6970_v59, %v2609_v45  ;;  %v7155_v33 = vld [vmem:[#allocation5 + $0x80] sm:$0xff]  ;;  %v9532_v59 = vld [vmem:[#allocation40_spill] sm:$0xff]  ;;  %v7174_v61 = vadd.f32 %v6732_v36, %v7002_v58  ;;  %v9539_v4 = vld [vmem:[#allocation152_spill] sm:$0xff] }
 0x486   : > { %v1907_v21 = vadd.f32 %v9526_v34, %v1881_v5  ;;  %v1386_v43 = vadd.f32 %v9529_v20, %v1359_v52  ;;  %v1333_v11 = vadd.f32 %v1325_v9, %v1307_v56  ;;  %v9531_v54 = vld [vmem:[#allocation217_spill] sm:$0xff]  ;;  %v1379_v60 = vmul.f32 %v9532_v59, %v6997_v7  ;;  %v9533_v40 = vld [vmem:[#allocation195_spill] sm:$0xff]  ;;  %v9540_v20 = vld [vmem:[#allocation218_spill] sm:$0xff] }
 0x487   : > { %v2270_v23 = vadd.f32 %v9527_v16, %v2244_v24  ;;  %v1334_v18 = vadd.f32 %v1326_v13, %v1308_v32  ;;  %v7163_v14 = vadd.f32 %v6987_v62, %v2635_v50  ;;  %v9534_v24 = vld [vmem:[#allocation278_spill] sm:$0xff]  ;;  %v1380_v56 = vmul.f32 %v9532_v59, %v7155_v33  ;;  %v9535_v32 = vld [vmem:[#allocation280_spill] sm:$0xff]  ;;  %v9537_v7 = vld [vmem:[#allocation127_spill] sm:$0xff] }
 0x488   : > { %v1933_v55 = vadd.f32 %v9530_v31, %v1907_v21  ;;  %v1412_v19 = vadd.f32 %v9533_v40, %v1386_v43  ;;  %v1360_v26 = vadd.f32 %v1352_v49, %v1333_v11  ;;  %v9536_v62 = vld [vmem:[#allocation41_spill] sm:$0xff]  ;;  %v7178_v52 = vld [vmem:[#allocation5 + $0x81] sm:$0xff]  ;;  %v7187_v36 = vmul.f32 %v9358_v2, %v6868_v25  ;;  %v9543_v31 = vld [vmem:[#allocation91_spill] sm:$0xff] }
 0x489   : > { %v2296_v5 = vadd.f32 %v9531_v54, %v2270_v23  ;;  %v1361_v38 = vadd.f32 %v1353_v44, %v1334_v18  ;;  %v1405_v9 = vmul.f32 %v9536_v62, %v7016_v0  ;;  %v9538_v13 = vld [vmem:[#allocation206_spill] sm:$0xff]  ;;  %v1406_v49 = vmul.f32 %v9539_v4, %v9536_v62  ;;  %v9542_v58 = vld [vmem:[#allocation42_spill] sm:$0xff]  ;;  %v9544_v11 = vld [vmem:[#allocation279_spill] sm:$0xff] }
 0x48a   : > { %v1959_v45 = vadd.f32 %v9534_v24, %v1933_v55  ;;  %v1438_v34 = vadd.f32 %v9537_v7, %v1412_v19  ;;  %v1387_v23 = vadd.f32 %v1379_v60, %v1360_v26  ;;  %9541 = vst [vmem:[#allocation239_spill] sm:$0xff] %v7187_v36  ;;  %v1431_v0 = vmul.f32 %v9542_v58, %v7029_v8  ;;  %v9545_v59 = vld [vmem:[#allocation281_spill] sm:$0xff]  ;;  %v9546_v40 = vld [vmem:[#allocation270_spill] sm:$0xff]  ;;  %v9548_v8 = vld [vmem:[#allocation176_spill] sm:$0xff] }
 0x48b   : > { %v2322_v21 = vadd.f32 %v9535_v32, %v2296_v5  ;;  %v1388_v50 = vadd.f32 %v1380_v56, %v1361_v38  ;;  %v1432_v5 = vmul.f32 %v9542_v58, %v7178_v52  ;;  %v7198_v19 = vmul.f32 %v9369_v30, %v9546_v40  ;;  %v9547_v24 = vld [vmem:[#allocation43_spill] sm:$0xff]  ;;  %v9549_v56 = vld [vmem:[#allocation209_spill] sm:$0xff]  ;;  %v9550_v7 = vld [vmem:[#allocation219_spill] sm:$0xff] }
 0x48c   : > { %v1985_v16 = vadd.f32 %v9538_v13, %v1959_v45  ;;  %v1464_v55 = vadd.f32 %v9543_v31, %v1438_v34  ;;  %v1413_v44 = vadd.f32 %v1405_v9, %v1387_v23  ;;  %v1457_v45 = vmul.f32 %v9547_v24, %v7041_v28  ;;  %v7202_v26 = vld [vmem:[#allocation5 + $0x82] sm:$0xff] }
 0x48d   : > { %v2348_v43 = vadd.f32 %v9540_v20, %v2322_v21  ;;  %v1414_v54 = vadd.f32 %v1406_v49, %v1388_v50  ;;  %v1458_v9 = vmul.f32 %v6647_v41, %v9547_v24  ;;  %v7211_v13 = vmul.f32 %v9369_v30, %v6876_v3  ;;  %v7215_v23 = vld [vmem:[#allocation4 + $0x83] sm:$0xff]  ;;  %v9553_v50 = vld [vmem:[#allocation196_spill] sm:$0xff] }
 0x48e   : > { %v2011_v18 = vadd.f32 %v9544_v11, %v1985_v16  ;;  %v1490_v38 = vadd.f32 %v9548_v8, %v1464_v55  ;;  %v1439_v21 = vadd.f32 %v1431_v0, %v1413_v44  ;;  %v9552_v16 = vld [vmem:[#allocation44_spill] sm:$0xff]  ;;  %v9554_v49 = vld [vmem:[#allocation129_spill] sm:$0xff]  ;;  %v9555_v0 = vld [vmem:[#allocation282_spill] sm:$0xff]  ;;  %v7224_v55 = vmul.f32 %v9380_v39, %v9460_v1 }
 0x48f   : > { %v2374_v60 = vadd.f32 %v9545_v59, %v2348_v43  ;;  %v1440_v62 = vadd.f32 %v1432_v5, %v1414_v54  ;;  %9551 = vst [vmem:[#allocation170_spill] sm:$0xff] %v7211_v13  ;;  %v1483_v28 = vmul.f32 %v9552_v16, %v7054_v35  ;;  %v1484_v41 = vmul.f32 %v9552_v16, %v7202_v26  ;;  %v9556_v11 = vld [vmem:[#allocation45_spill] sm:$0xff]  ;;  %v9558_v5 = vld [vmem:[#allocation249_spill] sm:$0xff] }
 0x490   : > { %v2037_v32 = vadd.f32 %v9549_v56, %v2011_v18  ;;  %v1516_v4 = vadd.f32 %v9553_v50, %v1490_v38  ;;  %v1465_v43 = vadd.f32 %v1457_v45, %v1439_v21  ;;  %v1509_v35 = vmul.f32 %v9556_v11, %v7065_v12  ;;  %v7228_v18 = vld [vmem:[#allocation5 + $0x83] sm:$0xff]  ;;  %v9557_v44 = vld [vmem:[#allocation272_spill] sm:$0xff]  ;;  %v9559_v45 = vld [vmem:[#allocation255_spill] sm:$0xff] }
 0x491   : > { %v2400_v34 = vadd.f32 %v9550_v7, %v2374_v60  ;;  %v1466_v58 = vadd.f32 %v1458_v9, %v1440_v62  ;;  %v1510_v24 = vmul.f32 %v9556_v11, %v7215_v23  ;;  %v7237_v1 = vmul.f32 %v9380_v39, %v6824_v47  ;;  %v9561_v38 = vld [vmem:[#allocation46_spill] sm:$0xff] }
 0x492   : > { %v2063_v20 = vadd.f32 %v9554_v49, %v2037_v32  ;;  %v1542_v54 = vadd.f32 %v9557_v44, %v1516_v4  ;;  %v1491_v60 = vadd.f32 %v1483_v28, %v1465_v43  ;;  %v1535_v12 = vmul.f32 %v9561_v38, %v7078_v37  ;;  %v7241_v56 = vld [vmem:[#allocation4 + $0x84] sm:$0xff]  ;;  %v9564_v28 = vld [vmem:[#allocation271_spill] sm:$0xff]  ;;  %v9569_v44 = vld [vmem:[#allocation256_spill] sm:$0xff] }
 0x493   : > { %v2426_v31 = vadd.f32 %v9555_v0, %v2400_v34  ;;  %v1492_v40 = vadd.f32 %v1484_v41, %v1466_v58  ;;  %9560 = vst [vmem:[#allocation138_spill] sm:$0xff] %v7237_v1  ;;  %v9562_v32 = vld [vmem:[#allocation197_spill] sm:$0xff]  ;;  %v1536_v16 = vmul.f32 %v9561_v38, %v7228_v18  ;;  %v7250_v4 = vmul.f32 %v9389_v10, %v6427_v51  ;;  %v9566_v49 = vld [vmem:[#allocation47_spill] sm:$0xff]  ;;  %v9637_v1 = vld [vmem:[#allocation155_spill] sm:$0xff] }
 0x494   : > { %v2089_v59 = vadd.f32 %v9558_v5, %v2063_v20  ;;  %v1568_v21 = vadd.f32 %v9562_v32, %v1542_v54  ;;  %v9563_v62 = vld [vmem:[#allocation261_spill] sm:$0xff]  ;;  %v1517_v7 = vadd.f32 %v1509_v35, %v1491_v60  ;;  %v1561_v37 = vmul.f32 %v9566_v49, %v7086_v53  ;;  %v9567_v43 = vld [vmem:[#allocation182_spill] sm:$0xff]  ;;  %v9571_v5 = vld [vmem:[#allocation48_spill] sm:$0xff] }
 0x495   : > { %v2453_v8 = vadd.f32 %v9559_v45, %v2426_v31  ;;  %v1518_v34 = vadd.f32 %v1510_v24, %v1492_v40  ;;  %9565 = vst [vmem:[#allocation145_spill] sm:$0xff] %v7250_v4  ;;  %v7254_v20 = vld [vmem:[#allocation5 + $0x84] sm:$0xff]  ;;  %v1562_v35 = vmul.f32 %v9566_v49, %v7241_v56  ;;  %v7263_v51 = vmul.f32 %v9389_v10, %v6840_v22  ;;  %v7419_v4 = vld [vmem:[#allocation4 + $0x94] sm:$0xff] }
 0x496   : > { %v2115_v9 = vadd.f32 %v9563_v62, %v2089_v59  ;;  %v1594_v58 = vadd.f32 %v9567_v43, %v1568_v21  ;;  %v9568_v41 = vld [vmem:[#allocation250_spill] sm:$0xff]  ;;  %v1543_v31 = vadd.f32 %v1535_v12, %v1517_v7  ;;  %v1587_v53 = vmul.f32 %v9571_v5, %v7096_v17  ;;  %v9576_v17 = vld [vmem:[#allocation49_spill] sm:$0xff] }
 0x497   : > { %v2480_v50 = vadd.f32 %v9564_v28, %v2453_v8  ;;  %v1544_v11 = vadd.f32 %v1536_v16, %v1518_v34  ;;  %9570 = vst [vmem:[#allocation112_spill] sm:$0xff] %v7263_v51  ;;  %v7267_v59 = vld [vmem:[#allocation4 + $0x85] sm:$0xff]  ;;  %v1588_v12 = vmul.f32 %v9571_v5, %v7254_v20  ;;  %v1613_v7 = vmul.f32 %v9576_v17, %v7107_v15  ;;  %v9577_v34 = vld [vmem:[#allocation188_spill] sm:$0xff]  ;;  %v9578_v28 = vld [vmem:[#allocation187_spill] sm:$0xff] }
 0x498   : > { %v2141_v0 = vadd.f32 %v9568_v41, %v2115_v9  ;;  %v9572_v60 = vld [vmem:[#allocation198_spill] sm:$0xff]  ;;  %v1569_v8 = vadd.f32 %v1561_v37, %v1543_v31  ;;  %v7278_v9 = vmul.f32 %v9397_v46, %v6442_v57  ;;  %v1614_v43 = vmul.f32 %v9576_v17, %v7267_v59  ;;  %v9580_v41 = vld [vmem:[#allocation50_spill] sm:$0xff] }
 0x499   : > { %v2506_v54 = vadd.f32 %v9569_v44, %v2480_v50  ;;  %v1620_v40 = vadd.f32 %v9572_v60, %v1594_v58  ;;  %v9573_v24 = vld [vmem:[#allocation262_spill] sm:$0xff]  ;;  %v1570_v38 = vadd.f32 %v1562_v35, %v1544_v11  ;;  %v7288_v58 = vmul.f32 %v9397_v46, %v6848_v42  ;;  %v9581_v11 = vld [vmem:[#allocation199_spill] sm:$0xff]  ;;  %v9582_v44 = vld [vmem:[#allocation160_spill] sm:$0xff] }
 0x49a   : > { %v2167_v45 = vadd.f32 %v9573_v24, %v2141_v0  ;;  %v7273_v32 = vld [vmem:[#allocation5 + $0x85] sm:$0xff]  ;;  %9575 = vst [vmem:[#allocation162_spill] sm:$0xff] %v7278_v9  ;;  %v1595_v49 = vadd.f32 %v1587_v53, %v1569_v8  ;;  %v1639_v57 = vmul.f32 %v9580_v41, %v7117_v27  ;;  %v9583_v24 = vld [vmem:[#allocation263_spill] sm:$0xff] }
 0x49b   : > { %v9574_v21 = vld [vmem:[#allocation114_spill] sm:$0xff]  ;;  %v1646_v16 = vadd.f32 %v9577_v34, %v1620_v40  ;;  %v1596_v37 = vadd.f32 %v1588_v12, %v1570_v38  ;;  %9579 = vst [vmem:[#allocation229_spill] sm:$0xff] %v7288_v58  ;;  %v1640_v0 = vmul.f32 %v9580_v41, %v7273_v32  ;;  %v9586_v27 = vld [vmem:[#allocation191_spill] sm:$0xff]  ;;  %v9589_v17 = vld [vmem:[#allocation273_spill] sm:$0xff] }
 0x49c   : > { %v2532_v62 = vadd.f32 %v9574_v21, %v2506_v54  ;;  %v2193_v50 = vadd.f32 %v9578_v28, %v2167_v45  ;;  %v7294_v31 = vld [vmem:[#allocation4 + $0x86] sm:$0xff]  ;;  %v1621_v53 = vadd.f32 %v1613_v7, %v1595_v49  ;;  %v9584_v45 = vld [vmem:[#allocation100_spill] sm:$0xff]  ;;  %v9594_v41 = vld [vmem:[#allocation52_spill] sm:$0xff] }
 0x49d   : > { %v1672_v35 = vadd.f32 %v9581_v11, %v1646_v16  ;;  %v1622_v60 = vadd.f32 %v1614_v43, %v1596_v37  ;;  %v7299_v40 = vld [vmem:[#allocation5 + $0x86] sm:$0xff]  ;;  %v7303_v8 = vmul.f32 %v9584_v45, %v9583_v24  ;;  %v7307_v38 = vmul.f32 %v9584_v45, %v9586_v27  ;;  %v9590_v16 = vld [vmem:[#allocation251_spill] sm:$0xff] }
 0x49e   : > { %v2219_v54 = vadd.f32 %v9582_v44, %v2193_v50  ;;  %v2558_v5 = vadd.f32 %v6930_v63, %v2532_v62  ;;  %v9588_v12 = vld [vmem:[#allocation51_spill] sm:$0xff]  ;;  %v1647_v63 = vadd.f32 %v1639_v57, %v1621_v53  ;;  %v7315_v50 = vld [vmem:[#allocation4 + $0x80] sm:$0xff]  ;;  %v1691_v11 = vmul.f32 %v9594_v41, %v7138_v48  ;;  %v9600_v48 = vld [vmem:[#allocation103_spill] sm:$0xff] }
 0x49f   : > { %9585 = vst [vmem:[#allocation241_spill] sm:$0xff] %v7303_v8  ;;  %9587 = vst [vmem:[#allocation235_spill] sm:$0xff] %v7307_v38  ;;  %v1665_v21 = vmul.f32 %v9588_v12, %v7128_v6  ;;  %v1698_v34 = vadd.f32 %v9589_v17, %v1672_v35  ;;  %v1648_v62 = vadd.f32 %v1640_v0, %v1622_v60  ;;  %v9591_v49 = vld [vmem:[#allocation174_spill] sm:$0xff]  ;;  %v9592_v37 = vld [vmem:[#allocation101_spill] sm:$0xff] }
 0x4a0   : > { %v2245_v28 = vadd.f32 %v9590_v16, %v2219_v54  ;;  %v1666_v7 = vmul.f32 %v9588_v12, %v7294_v31  ;;  %v7319_v43 = vmul.f32 %v9592_v37, %v9591_v49  ;;  %v1692_v44 = vmul.f32 %v9594_v41, %v7299_v40  ;;  %v7325_v35 = vld [vmem:[#allocation4 + $0x90] sm:$0xff]  ;;  %v9595_v54 = vld [vmem:[#allocation168_spill] sm:$0xff] }
 0x4a1   : > { %v1725_v57 = vadd.f32 %v9595_v54, %v1698_v34  ;;  %v9596_v0 = vld [vmem:[#allocation264_spill] sm:$0xff]  ;;  %v9597_v60 = vld [vmem:[#allocation207_spill] sm:$0xff]  ;;  %v1673_v12 = vadd.f32 %v1665_v21, %v1647_v63  ;;  %v7338_v38 = vmul.f32 %v9600_v48, %v6876_v3  ;;  %v9607_v3 = vld [vmem:[#allocation54_spill] sm:$0xff] }
 0x4a2   : > { %9593 = vst [vmem:[#allocation242_spill] sm:$0xff] %v7319_v43  ;;  %v2271_v53 = vadd.f32 %v9596_v0, %v2245_v28  ;;  %v2584_v24 = vadd.f32 %v9597_v60, %v2558_v5  ;;  %v1674_v17 = vadd.f32 %v1666_v7, %v1648_v62  ;;  %v7330_v16 = vld [vmem:[#allocation5 + $0x90] sm:$0xff]  ;;  %v9598_v43 = vld [vmem:[#allocation102_spill] sm:$0xff]  ;;  %v9602_v41 = vld [vmem:[#allocation53_spill] sm:$0xff]  ;;  %v1745_v60 = vmul.f32 %v9607_v3, %v7155_v33 }
 0x4a3   : > { %v7334_v13 = vmul.f32 %v9598_v43, %v6868_v25  ;;  %9601 = vst [vmem:[#allocation14_spill] sm:$0xff] %v7338_v38  ;;  %v1718_v36 = vmul.f32 %v9602_v41, %v7315_v50  ;;  %v9603_v34 = vld [vmem:[#allocation128_spill] sm:$0xff]  ;;  %v1699_v5 = vadd.f32 %v1691_v11, %v1673_v12  ;;  %v1719_v63 = vmul.f32 %v9602_v41, %v7325_v35  ;;  %v7346_v62 = vld [vmem:[#allocation4 + $0x81] sm:$0xff] }
 0x4a4   : > { %v1752_v54 = vadd.f32 %v9603_v34, %v1725_v57  ;;  %v9604_v28 = vld [vmem:[#allocation252_spill] sm:$0xff]  ;;  %v1700_v21 = vadd.f32 %v1692_v44, %v1674_v17  ;;  %v1746_v38 = vmul.f32 %v9607_v3, %v7330_v16  ;;  %v9609_v44 = vld [vmem:[#allocation265_spill] sm:$0xff]  ;;  %v9613_v33 = vld [vmem:[#allocation106_spill] sm:$0xff] }
 0x4a5   : > { %9599 = vst [vmem:[#allocation139_spill] sm:$0xff] %v7334_v13  ;;  %v2297_v0 = vadd.f32 %v9604_v28, %v2271_v53  ;;  %v9605_v25 = vld [vmem:[#allocation104_spill] sm:$0xff]  ;;  %v1726_v34 = vadd.f32 %v1718_v36, %v1699_v5  ;;  %v7369_v8 = vmul.f32 %v9613_v33, %v6848_v42  ;;  %v9615_v3 = vld [vmem:[#allocation55_spill] sm:$0xff]  ;;  %v9621_v42 = vld [vmem:[#allocation56_spill] sm:$0xff] }
 0x4a6   : > { %v7350_v7 = vmul.f32 %v9605_v25, %v6824_v47  ;;  %v7356_v57 = vld [vmem:[#allocation4 + $0x91] sm:$0xff]  ;;  %v1727_v28 = vadd.f32 %v1719_v63, %v1700_v21  ;;  %v9611_v47 = vld [vmem:[#allocation105_spill] sm:$0xff]  ;;  %v1771_v58 = vmul.f32 %v9615_v3, %v7346_v62  ;;  %v9654_v43 = vld [vmem:[#allocation70_spill] sm:$0xff] }
 0x4a7   : > { %v9608_v53 = vld [vmem:[#allocation132_spill] sm:$0xff]  ;;  %v2323_v12 = vadd.f32 %v9609_v44, %v2297_v0  ;;  %9614 = vst [vmem:[#allocation146_spill] sm:$0xff] %v7369_v8  ;;  %v9617_v0 = vld [vmem:[#allocation253_spill] sm:$0xff]  ;;  %v1772_v5 = vmul.f32 %v9615_v3, %v7356_v57  ;;  %v9648_v33 = vld [vmem:[#allocation64_spill] sm:$0xff]  ;;  %v2083_v37 = vmul.f32 %v9654_v43, %v7325_v35 }
 0x4a8   : > { %9606 = vst [vmem:[#allocation16_spill] sm:$0xff] %v7350_v7  ;;  %v1778_v11 = vadd.f32 %v9608_v53, %v1752_v54  ;;  %v9610_v17 = vld [vmem:[#allocation148_spill] sm:$0xff]  ;;  %v7365_v7 = vmul.f32 %v9611_v47, %v6840_v22  ;;  %v9616_v54 = vld [vmem:[#allocation123_spill] sm:$0xff]  ;;  %v1754_v36 = vadd.f32 %v1746_v38, %v1727_v28  ;;  %v7377_v21 = vld [vmem:[#allocation4 + $0x82] sm:$0xff]  ;;  %v2005_v47 = vmul.f32 %v9648_v33, %v7273_v32 }
 0x4a9   : > { %v2610_v41 = vadd.f32 %v9610_v17, %v2584_v24  ;;  %v7361_v13 = vld [vmem:[#allocation5 + $0x91] sm:$0xff]  ;;  %v2349_v44 = vadd.f32 %v9617_v0, %v2323_v12  ;;  %v1753_v24 = vadd.f32 %v1745_v60, %v1726_v34  ;;  %9618 = vst [vmem:[#allocation122_spill] sm:$0xff] %v7377_v21  ;;  %v1797_v17 = vmul.f32 %v9621_v42, %v7178_v52  ;;  %v9622_v12 = vld [vmem:[#allocation113_spill] sm:$0xff]  ;;  %v9623_v38 = vld [vmem:[#allocation266_spill] sm:$0xff] }
 0x4aa   : > { %9612 = vst [vmem:[#allocation260_spill] sm:$0xff] %v7365_v7  ;;  %v1804_v53 = vadd.f32 %v9616_v54, %v1778_v11  ;;  %v9619_v22 = vld [vmem:[#allocation107_spill] sm:$0xff]  ;;  %v1798_v8 = vmul.f32 %v9621_v42, %v7361_v13  ;;  %v9624_v28 = vld [vmem:[#allocation208_spill] sm:$0xff]  ;;  %v1780_v0 = vadd.f32 %v1772_v5, %v1754_v36  ;;  %v9652_v32 = vld [vmem:[#allocation68_spill] sm:$0xff] }
 0x4ab   : > { %v7381_v63 = vmul.f32 %v9619_v22, %v9586_v27  ;;  %v7387_v11 = vld [vmem:[#allocation4 + $0x92] sm:$0xff]  ;;  %v2375_v34 = vadd.f32 %v9623_v38, %v2349_v44  ;;  %v2636_v3 = vadd.f32 %v9624_v28, %v2610_v41  ;;  %v1779_v54 = vadd.f32 %v1771_v58, %v1753_v24  ;;  %v9625_v27 = vld [vmem:[#allocation137_spill] sm:$0xff]  ;;  %v9630_v41 = vld [vmem:[#allocation254_spill] sm:$0xff] }
 0x4ac   : > { %v1830_v60 = vadd.f32 %v9622_v12, %v1804_v53  ;;  %v7392_v7 = vld [vmem:[#allocation5 + $0x92] sm:$0xff]  ;;  %v9629_v53 = vld [vmem:[#allocation150_spill] sm:$0xff]  ;;  %v1806_v36 = vadd.f32 %v1798_v8, %v1780_v0  ;;  %v9631_v38 = vld [vmem:[#allocation58_spill] sm:$0xff]  ;;  %v2057_v48 = vmul.f32 %v9652_v32, %v7299_v40 }
 0x4ad   : > { %9620 = vst [vmem:[#allocation126_spill] sm:$0xff] %v7381_v63  ;;  %v7396_v63 = vadd.f32 %v9625_v27, %v7163_v14  ;;  %v9626_v52 = vld [vmem:[#allocation108_spill] sm:$0xff]  ;;  %v2401_v58 = vadd.f32 %v9630_v41, %v2375_v34  ;;  %v1805_v24 = vadd.f32 %v1797_v17, %v1779_v54  ;;  %v1850_v28 = vmul.f32 %v9631_v38, %v7392_v7  ;;  %v9632_v27 = vld [vmem:[#allocation59_spill] sm:$0xff]  ;;  %v9634_v17 = vld [vmem:[#allocation267_spill] sm:$0xff] }
 0x4ae   : > { %v7400_v9 = vmul.f32 %v9626_v52, %v9591_v49  ;;  %v9628_v42 = vld [vmem:[#allocation57_spill] sm:$0xff]  ;;  %v1856_v12 = vadd.f32 %v9629_v53, %v1830_v60  ;;  %v1849_v49 = vmul.f32 %v9631_v38, %v7202_v26  ;;  %v1875_v60 = vmul.f32 %v9632_v27, %v7215_v23  ;;  %v9633_v53 = vld [vmem:[#allocation175_spill] sm:$0xff] }
 0x4af   : > { %v1823_v51 = vmul.f32 %v9628_v42, %v7377_v21  ;;  %v7405_v44 = vld [vmem:[#allocation4 + $0x93] sm:$0xff]  ;;  %v1824_v5 = vmul.f32 %v9628_v42, %v7387_v11  ;;  %v2427_v8 = vadd.f32 %v9634_v17, %v2401_v58  ;;  %v9655_v21 = vld [vmem:[#allocation157_spill] sm:$0xff] }
 0x4b0   : > { %9627 = vst [vmem:[#allocation230_spill] sm:$0xff] %v7400_v9  ;;  %v7410_v14 = vld [vmem:[#allocation5 + $0x93] sm:$0xff]  ;;  %v1882_v9 = vadd.f32 %v9633_v53, %v1856_v12  ;;  %v1876_v42 = vmul.f32 %v9632_v27, %v7405_v44 }
 0x4b1   : > { %v9635_v34 = vld [vmem:[#allocation120_spill] sm:$0xff]  ;;  %v1831_v0 = vadd.f32 %v1823_v51, %v1805_v24  ;;  %v9636_v26 = vld [vmem:[#allocation60_spill] sm:$0xff]  ;;  %v1832_v24 = vadd.f32 %v1824_v5, %v1806_v36  ;;  %v9644_v5 = vld [vmem:[#allocation285_spill] sm:$0xff] }
 0x4b2   : > { %v2662_v54 = vadd.f32 %v9635_v34, %v2636_v3  ;;  %v7425_v41 = vld [vmem:[#allocation5 + $0x94] sm:$0xff]  ;;  %v1901_v38 = vmul.f32 %v9636_v26, %v7228_v18  ;;  %v1902_v23 = vmul.f32 %v9636_v26, %v7410_v14  ;;  %v1908_v12 = vadd.f32 %v9637_v1, %v1882_v9  ;;  %v9640_v18 = vld [vmem:[#allocation181_spill] sm:$0xff]  ;;  %v9642_v9 = vld [vmem:[#allocation63_spill] sm:$0xff] }
 0x4b3   : > { %v9638_v53 = vld [vmem:[#allocation61_spill] sm:$0xff]  ;;  %v1857_v17 = vadd.f32 %v1849_v49, %v1831_v0  ;;  %v9641_v26 = vld [vmem:[#allocation62_spill] sm:$0xff] }
 0x4b4   : > { %v1927_v52 = vmul.f32 %v9638_v53, %v7241_v56  ;;  %v7434_v58 = vld [vmem:[#allocation4 + $0x95] sm:$0xff]  ;;  %v7439_v27 = vmul.f32 %v9638_v53, %v7419_v4  ;;  %v1934_v22 = vadd.f32 %v9640_v18, %v1908_v12  ;;  %v1953_v1 = vmul.f32 %v9641_v26, %v7254_v20  ;;  %v9647_v18 = vld [vmem:[#allocation257_spill] sm:$0xff] }
 0x4b5   : > { %v9639_v3 = vld [vmem:[#allocation292_spill] sm:$0xff]  ;;  %v7448_v56 = vmul.f32 %v9641_v26, %v7425_v41  ;;  %v7460_v12 = vmul.f32 %v9642_v9, %v7434_v58 }
 0x4b6   : > { %v2454_v51 = vadd.f32 %v9639_v3, %v2427_v8  ;;  %v7441_v34 = vld [vmem:[#allocation5 + $0x95] sm:$0xff]  ;;  %v1979_v8 = vmul.f32 %v9642_v9, %v7267_v59  ;;  %v1883_v3 = vadd.f32 %v1875_v60, %v1857_v17  ;;  %v1960_v26 = vadd.f32 %v9647_v18, %v1934_v22 }
 0x4b7   : > { %v7452_v36 = vld [vmem:[#allocation4 + $0x96] sm:$0xff]  ;;  %v7469_v25 = vmul.f32 %v9648_v33, %v7441_v34  ;;  %v1858_v9 = vadd.f32 %v1850_v28, %v1832_v24 }
 0x4b8   : > { %9643 = vst [vmem:[#allocation268_spill] sm:$0xff] %v7452_v36  ;;  %v2481_v49 = vadd.f32 %v9644_v5, %v2454_v51  ;;  %v9645_v0 = vld [vmem:[#allocation164_spill] sm:$0xff]  ;;  %v1909_v5 = vadd.f32 %v1901_v38, %v1883_v3  ;;  %v9651_v22 = vld [vmem:[#allocation247_spill] sm:$0xff] }
 0x4b9   : > { %v7456_v53 = vadd.f32 %v9645_v0, %v2662_v54  ;;  %v7462_v20 = vld [vmem:[#allocation5 + $0x96] sm:$0xff]  ;;  %v1986_v18 = vadd.f32 %v9651_v22, %v1960_v26 }
 0x4ba   : > { %9646 = vst [vmem:[#allocation15_spill] sm:$0xff] %v7462_v20  ;;  %v9649_v51 = vld [vmem:[#allocation65_spill] sm:$0xff]  ;;  %v7485_v33 = vmul.f32 %v9652_v32, %v7462_v20  ;;  %v1935_v28 = vadd.f32 %v1927_v52, %v1909_v5  ;;  %v9656_v38 = vld [vmem:[#allocation71_spill] sm:$0xff]  ;;  %v9660_v32 = vld [vmem:[#allocation81_spill] sm:$0xff] }
 0x4bb   : > { %v2031_v54 = vmul.f32 %v9649_v51, %v7294_v31  ;;  %v9650_v60 = vld [vmem:[#allocation296_spill] sm:$0xff]  ;;  %v7478_v0 = vmul.f32 %v9649_v51, %v7452_v36  ;;  %v7492_v24 = vmul.f32 %v9656_v38, %v7356_v57  ;;  %v9657_v3 = vld [vmem:[#allocation79_spill] sm:$0xff]  ;;  %v9658_v51 = vld [vmem:[#allocation258_spill] sm:$0xff]  ;;  %v7505_v43 = vmul.f32 %v9660_v32, %v7392_v7 }
 0x4bc   : > { %v2507_v17 = vadd.f32 %v9650_v60, %v2481_v49  ;;  %9653 = vst [vmem:[#allocation236_spill] sm:$0xff] %v7485_v33  ;;  %v7496_v26 = vmul.f32 %v9657_v3, %v7361_v13  ;;  %v2012_v40 = vadd.f32 %v9658_v51, %v1986_v18  ;;  %v9659_v60 = vld [vmem:[#allocation72_spill] sm:$0xff]  ;;  %v1884_v38 = vadd.f32 %v1876_v42, %v1858_v9  ;;  %v9663_v3 = vld [vmem:[#allocation82_spill] sm:$0xff]  ;;  %v9666_v32 = vld [vmem:[#allocation83_spill] sm:$0xff] }
 0x4bd   : > { %v7501_v22 = vmul.f32 %v9659_v60, %v7387_v11  ;;  %v1961_v45 = vadd.f32 %v1953_v1, %v1935_v28  ;;  %v7514_v39 = vmul.f32 %v9663_v3, %v7410_v14  ;;  %v9664_v18 = vld [vmem:[#allocation248_spill] sm:$0xff]  ;;  %v9665_v60 = vld [vmem:[#allocation74_spill] sm:$0xff]  ;;  %v7523_v46 = vmul.f32 %v9666_v32, %v7425_v41  ;;  %v7529_v42 = vld [vmem:[#allocation4 + $0xb0] sm:$0xff] }
 0x4be   : > { %v2533_v49 = vadd.f32 %v9655_v21, %v2507_v17  ;;  %v9661_v21 = vld [vmem:[#allocation73_spill] sm:$0xff]  ;;  %v9662_v17 = vld [vmem:[#allocation136_spill] sm:$0xff]  ;;  %v2038_v51 = vadd.f32 %v9664_v18, %v2012_v40  ;;  %v7519_v30 = vmul.f32 %v9665_v60, %v7419_v4  ;;  %9669 = vst [vmem:[#allocation18_spill] sm:$0xff] %v7529_v42  ;;  %v9670_v1 = vld [vmem:[#allocation287_spill] sm:$0xff] }
 0x4bf   : > { %v7509_v52 = vmul.f32 %v9661_v21, %v7405_v44  ;;  %v9667_v21 = vld [vmem:[#allocation75_spill] sm:$0xff]  ;;  %v1987_v28 = vadd.f32 %v1979_v8, %v1961_v45  ;;  %v9671_v40 = vld [vmem:[#allocation84_spill] sm:$0xff]  ;;  %v9678_v45 = vld [vmem:[#allocation77_spill] sm:$0xff] }
 0x4c0   : > { %v2559_v5 = vadd.f32 %v9662_v17, %v2533_v49  ;;  %v7527_v49 = vmul.f32 %v9667_v21, %v7434_v58  ;;  %v7534_v17 = vmul.f32 %v9671_v40, %v7441_v34  ;;  %v9673_v3 = vld [vmem:[#allocation76_spill] sm:$0xff]  ;;  %v7540_v60 = vld [vmem:[#allocation5 + $0xb0] sm:$0xff]  ;;  %v7551_v8 = vmul.f32 %v9678_v45, %v7325_v35 }
 0x4c1   : > { %v7538_v18 = vmul.f32 %v9673_v3, %v7452_v36  ;;  %v9675_v32 = vld [vmem:[#allocation259_spill] sm:$0xff]  ;;  %v7558_v40 = vstv %s7473_s2  ;;  %v9682_v3 = vld [vmem:[#allocation246_spill] sm:$0xff]  ;;  %v2013_v36 = vadd.f32 %v2005_v47, %v1987_v28  ;;  %v9689_v47 = vld [vmem:[#allocation288_spill] sm:$0xff] }
 0x4c2   : > { %9668 = vst [vmem:[#allocation243_spill] sm:$0xff] %v7527_v49  ;;  %v2585_v9 = vadd.f32 %v9670_v1, %v2559_v5  ;;  %9672 = vst [vmem:[#allocation140_spill] sm:$0xff] %v7534_v17  ;;  %v2064_v21 = vadd.f32 %v9675_v32, %v2038_v51  ;;  %v9676_v49 = vld [vmem:[#allocation85_spill] sm:$0xff]  ;;  %v7553_v5 = vld [vmem:[#allocation4 + $0xb1] sm:$0xff]  ;;  %v1910_v17 = vadd.f32 %v1902_v23, %v1884_v38 }
 0x4c3   : > { %9674 = vst [vmem:[#allocation147_spill] sm:$0xff] %v7538_v18  ;;  %v7547_v33 = vmul.f32 %v9676_v49, %v7462_v20  ;;  %9679 = vst [vmem:[#allocation20_spill] sm:$0xff] %v7551_v8  ;;  %v7555_v1 = vld [vmem:[#allocation4 + $0x55] sm:$0xff]  ;;  %v7563_v51 = vmul.f32 %v9678_v45, %v7529_v42  ;;  %v9685_v32 = vld [vmem:[#allocation289_spill] sm:$0xff]  ;;  %v2039_v28 = vadd.f32 %v2031_v54, %v2013_v36 }
 0x4c4   : > { %9680 = vst [vmem:[#allocation231_spill] sm:$0xff] %v7553_v5  ;;  %9681 = vst [vmem:[#allocation237_spill] sm:$0xff] %v7555_v1  ;;  %v2611_v18 = vadd.f32 %v9682_v3, %v2585_v9  ;;  %v7565_v49 = vld [vmem:[#allocation5 + $0xb1] sm:$0xff]  ;;  %v2706_v36 = vmul.f32 %v7558_v40, %v7107_v15  ;;  %v9695_v54 = vld [vmem:[#allocation117_spill] sm:$0xff] }
 0x4c5   : > { %9677 = vst [vmem:[#allocation109_spill] sm:$0xff] %v7547_v33  ;;  %9683 = vst [vmem:[#allocation244_spill] sm:$0xff] %v7563_v51  ;;  %v2090_v33 = vadd.f32 %v9685_v32, %v2064_v21  ;;  %v9686_v20 = vld [vmem:[#allocation88_spill] sm:$0xff]  ;;  %v2693_v21 = vld [vmem:[#allocation4 + $0x45] sm:$0xff] }
 0x4c6   : > { %9684 = vst [vmem:[#allocation21_spill] sm:$0xff] %v7565_v49  ;;  %v7570_v8 = vmul.f32 %v9686_v20, %v7330_v16  ;;  %v7574_v2 = vmul.f32 %v9686_v20, %v7540_v60  ;;  %v9688_v9 = vld [vmem:[#allocation80_spill] sm:$0xff]  ;;  %v2637_v38 = vadd.f32 %v9689_v47, %v2611_v18  ;;  %v2704_v16 = vmul.f32 %v7558_v40, %v7555_v1  ;;  %v9691_v32 = vld [vmem:[#allocation222_spill] sm:$0xff]  ;;  %v9692_v20 = vld [vmem:[#allocation89_spill] sm:$0xff] }
 0x4c7   : > { %v7578_v23 = vmul.f32 %v9688_v9, %v7356_v57  ;;  %v7583_v3 = vmul.f32 %v9688_v9, %v7553_v5  ;;  %v2116_v51 = vadd.f32 %v9691_v32, %v2090_v33  ;;  %v7594_v45 = vmul.f32 %v9692_v20, %v7565_v49  ;;  %v9696_v9 = vld [vmem:[#allocation144_spill] sm:$0xff]  ;;  %v9697_v33 = vld [vmem:[#allocation290_spill] sm:$0xff] }
 0x4c8   : > { %9687 = vst [vmem:[#allocation141_spill] sm:$0xff] %v7574_v2  ;;  %v7590_v2 = vmul.f32 %v9692_v20, %v7361_v13  ;;  %v2663_v18 = vadd.f32 %v9695_v54, %v2637_v38  ;;  %v1936_v47 = vadd.f32 %v7439_v27, %v1910_v17  ;;  %v2712_v1 = vadd.f32 %v2704_v16, %v9696_v9  ;;  %v7602_v5 = vld [vmem:[#allocation4 + $0xb2] sm:$0xff]  ;;  %v9699_v38 = vld [vmem:[#allocation178_spill] sm:$0xff] }
 0x4c9   : > { %9690 = vst [vmem:[#allocation111_spill] sm:$0xff] %v7583_v3  ;;  %9694 = vst [vmem:[#allocation130_spill] sm:$0xff] %v7594_v45  ;;  %v2065_v3 = vadd.f32 %v2057_v48, %v2039_v28  ;;  %v2142_v32 = vadd.f32 %v9697_v33, %v2116_v51  ;;  %v2707_v20 = vmul.f32 %v7558_v40, %v7267_v59  ;;  %v9698_v49 = vld [vmem:[#allocation172_spill] sm:$0xff]  ;;  %v7613_v48 = vstv %s7542_s3  ;;  %v9700_v17 = vld [vmem:[#allocation171_spill] sm:$0xff] }
 0x4ca   : > { %9693 = vst [vmem:[#allocation110_spill] sm:$0xff] %v7590_v2  ;;  %v2703_v2 = vmul.f32 %v7558_v40, %v2693_v21  ;;  %v2714_v45 = vadd.f32 %v2706_v36, %v7456_v53  ;;  %v2689_v15 = vadd.f32 %v9698_v49, %v2663_v18  ;;  %v2738_v54 = vadd.f32 %v9699_v38, %v2712_v1  ;;  %v7610_v27 = vld [vmem:[#allocation4 + $0x56] sm:$0xff]  ;;  %v9703_v16 = vld [vmem:[#allocation286_spill] sm:$0xff] }
 0x4cb   : > { %v2091_v42 = vadd.f32 %v2083_v37, %v2065_v3  ;;  %v2168_v51 = vadd.f32 %v9700_v17, %v2142_v32  ;;  %v9701_v9 = vld [vmem:[#allocation240_spill] sm:$0xff]  ;;  %v9704_v37 = vld [vmem:[#allocation86_spill] sm:$0xff]  ;;  %v9706_v18 = vld [vmem:[#allocation291_spill] sm:$0xff] }
 0x4cc   : > { %v2705_v28 = vmul.f32 %v7558_v40, %v9701_v9  ;;  %v2711_v59 = vadd.f32 %v2703_v2, %v7174_v61  ;;  %v9702_v21 = vld [vmem:[#allocation184_spill] sm:$0xff]  ;;  %v7625_v1 = vmul.f32 %v9704_v37, %v7387_v11  ;;  %v7629_v3 = vmul.f32 %v9704_v37, %v7602_v5  ;;  %v9707_v17 = vld [vmem:[#allocation165_spill] sm:$0xff] }
 0x4cd   : > { %v2740_v53 = vadd.f32 %v9702_v21, %v2714_v45  ;;  %v2117_v49 = vadd.f32 %v9703_v16, %v2091_v42  ;;  %v2715_v36 = vadd.f32 %v2707_v20, %v2689_v15  ;;  %v2194_v33 = vadd.f32 %v9706_v18, %v2168_v51  ;;  %v7632_v32 = vld [vmem:[#allocation5 + $0xb2] sm:$0xff]  ;;  %v2745_v21 = vld [vmem:[#allocation4 + $0x46] sm:$0xff] }
 0x4ce   : > { %9705 = vst [vmem:[#allocation223_spill] sm:$0xff] %v7629_v3  ;;  %v2713_v38 = vadd.f32 %v2705_v28, %v7396_v63  ;;  %v2756_v2 = vmul.f32 %v7613_v48, %v7610_v27  ;;  %v2758_v61 = vmul.f32 %v7613_v48, %v7128_v6  ;;  %v1962_v42 = vadd.f32 %v7448_v56, %v1936_v47  ;;  %v9708_v15 = vld [vmem:[#allocation177_spill] sm:$0xff]  ;;  %v9709_v16 = vld [vmem:[#allocation212_spill] sm:$0xff]  ;;  %v9710_v6 = vld [vmem:[#allocation90_spill] sm:$0xff] }
 0x4cf   : > { %v2143_v45 = vadd.f32 %v7492_v24, %v2117_v49  ;;  %v2741_v9 = vadd.f32 %v9707_v17, %v2715_v36  ;;  %v2759_v20 = vmul.f32 %v7613_v48, %v7294_v31  ;;  %v2220_v51 = vadd.f32 %v9708_v15, %v2194_v33  ;;  %v9712_v31 = vld [vmem:[#allocation293_spill] sm:$0xff]  ;;  %v9713_v36 = vld [vmem:[#allocation228_spill] sm:$0xff]  ;;  %v9716_v17 = vld [vmem:[#allocation158_spill] sm:$0xff] }
 0x4d0   : > { %v2737_v63 = vadd.f32 %v9709_v16, %v2711_v59  ;;  %v2764_v28 = vadd.f32 %v2756_v2, %v2738_v54  ;;  %v2766_v18 = vadd.f32 %v2758_v61, %v2740_v53  ;;  %v7649_v56 = vmul.f32 %v9710_v6, %v7392_v7  ;;  %v9714_v53 = vld [vmem:[#allocation124_spill] sm:$0xff]  ;;  %v9715_v61 = vld [vmem:[#allocation153_spill] sm:$0xff] }
 0x4d1   : > { %v2169_v3 = vadd.f32 %v7496_v26, %v2143_v45  ;;  %v7653_v24 = vmul.f32 %v9710_v6, %v7632_v32  ;;  %v2767_v47 = vadd.f32 %v2759_v20, %v2741_v9  ;;  %v2246_v49 = vadd.f32 %v9712_v31, %v2220_v51  ;;  %v7662_v2 = vld [vmem:[#allocation4 + $0xb3] sm:$0xff]  ;;  %v9720_v31 = vld [vmem:[#allocation234_spill] sm:$0xff] }
 0x4d2   : > { %v2739_v59 = vadd.f32 %v9713_v36, %v2713_v38  ;;  %v2755_v54 = vmul.f32 %v7613_v48, %v2745_v21  ;;  %v2790_v33 = vadd.f32 %v9714_v53, %v2764_v28  ;;  %v2792_v45 = vadd.f32 %v9715_v61, %v2766_v18  ;;  %v9718_v20 = vld [vmem:[#allocation183_spill] sm:$0xff]  ;;  %v9724_v61 = vld [vmem:[#allocation189_spill] sm:$0xff] }
 0x4d3   : > { %9711 = vst [vmem:[#allocation30_spill] sm:$0xff] %v7653_v24  ;;  %v2195_v26 = vadd.f32 %v7501_v22, %v2169_v3  ;;  %v2793_v15 = vadd.f32 %v9716_v17, %v2767_v47  ;;  %v7667_v16 = vstv %s7615_s4  ;;  %v1988_v9 = vadd.f32 %v7460_v12, %v1962_v42  ;;  %v9719_v38 = vld [vmem:[#allocation115_spill] sm:$0xff]  ;;  %v9721_v47 = vld [vmem:[#allocation294_spill] sm:$0xff]  ;;  %s9893_s4 = sld [smem:[#allocation13_spill]] }
 0x4d4   : > { %9717 = vst [vmem:[#allocation232_spill] sm:$0xff] %v7667_v16  ;;  %v2272_v51 = vadd.f32 %v9718_v20, %v2246_v49  ;;  %v2763_v6 = vadd.f32 %v2755_v54, %v2737_v63  ;;  %v2809_v21 = vmul.f32 %v7667_v16, %v9719_v38  ;;  %v2757_v22 = vmul.f32 %v7613_v48, %v9720_v31  ;;  %v9722_v12 = vld [vmem:[#allocation87_spill] sm:$0xff]  ;;  %v9725_v20 = vld [vmem:[#allocation213_spill] sm:$0xff] }
 0x4d5   : > { %v2221_v28 = vadd.f32 %v7505_v43, %v2195_v26  ;;  %v2811_v3 = vmul.f32 %v7667_v16, %v7315_v50  ;;  %v2812_v18 = vmul.f32 %v7667_v16, %v7325_v35  ;;  %v7683_v42 = vmul.f32 %v9722_v12, %v7405_v44  ;;  %v7690_v54 = vld [vmem:[#allocation5 + $0xb3] sm:$0xff] }
 0x4d6   : > { %v2298_v36 = vadd.f32 %v9721_v47, %v2272_v51  ;;  %v7687_v63 = vmul.f32 %v9722_v12, %v7662_v2  ;;  %v2817_v43 = vadd.f32 %v2809_v21, %v2790_v33  ;;  %v2765_v50 = vadd.f32 %v2757_v22, %v2739_v59  ;;  %v2798_v38 = vld [vmem:[#allocation4 + $0x50] sm:$0xff] }
 0x4d7   : > { %v2247_v49 = vadd.f32 %v7509_v52, %v2221_v28  ;;  %v2819_v53 = vadd.f32 %v2811_v3, %v2792_v45  ;;  %v2820_v26 = vadd.f32 %v2812_v18, %v2793_v15  ;;  %v2014_v35 = vadd.f32 %v7469_v25, %v1988_v9  ;;  %v9726_v52 = vld [vmem:[#allocation214_spill] sm:$0xff]  ;;  %v9727_v28 = vld [vmem:[#allocation173_spill] sm:$0xff]  ;;  %v9729_v15 = vld [vmem:[#allocation295_spill] sm:$0xff] }
 0x4d8   : > { %9723 = vst [vmem:[#allocation238_spill] sm:$0xff] %v7687_v63  ;;  %v2324_v17 = vadd.f32 %v9724_v61, %v2298_v36  ;;  %v2789_v51 = vadd.f32 %v9725_v20, %v2763_v6  ;;  %v7698_v31 = vadd.f32 %v7224_v55, %v2817_v43  ;;  %v7704_v45 = vstv %s7655_s5  ;;  %v9730_v25 = vld [vmem:[#allocation93_spill] sm:$0xff]  ;;  %v7718_v3 = vld [vmem:[#allocation4 + $0xb4] sm:$0xff] }
 0x4d9   : > { %v2273_v33 = vadd.f32 %v7514_v39, %v2247_v49  ;;  %v2846_v21 = vadd.f32 %v9726_v52, %v2819_v53  ;;  %v2847_v59 = vadd.f32 %v9727_v28, %v2820_v26  ;;  %9728 = vst [vmem:[#allocation245_spill] sm:$0xff] %v7704_v45  ;;  %v7709_v9 = vmul.f32 %v9730_v25, %v7410_v14  ;;  %v9732_v49 = vld [vmem:[#allocation283_spill] sm:$0xff]  ;;  %v9733_v26 = vld [vmem:[#allocation92_spill] sm:$0xff]  ;;  %s4392_s5 = sshll.u32 %s9893_s4, 3 }
 0x4da   : > { %v2350_v22 = vadd.f32 %v9729_v15, %v2324_v17  ;;  %v7713_v6 = vmul.f32 %v9730_v25, %v7690_v54  ;;  %v2864_v55 = vmul.f32 %v7704_v45, %v7346_v62  ;;  %v2791_v18 = vadd.f32 %v7198_v19, %v2765_v50 }
 0x4db   : > { %v2299_v39 = vadd.f32 %v7519_v30, %v2273_v33  ;;  %v2808_v47 = vmul.f32 %v7667_v16, %v2798_v38  ;;  %v2865_v36 = vmul.f32 %v7704_v45, %v7356_v57  ;;  %v2040_v43 = vadd.f32 %v7478_v0, %v2014_v35  ;;  %v2674_v30 = vld [vmem:[#allocation5 + $0xb4] sm:$0xff]  ;;  %v9735_v35 = vld [vmem:[#allocation297_spill] sm:$0xff]  ;;  %v9737_v33 = vld [vmem:[#allocation94_spill] sm:$0xff] }
 0x4dc   : > { %9731 = vst [vmem:[#allocation269_spill] sm:$0xff] %v7713_v6  ;;  %v2376_v53 = vadd.f32 %v9732_v49, %v2350_v22  ;;  %v7730_v62 = vmul.f32 %v9733_v26, %v7419_v4  ;;  %v7732_v61 = vadd.f32 %v2864_v55, %v2846_v21  ;;  %v2810_v19 = vmul.f32 %v7667_v16, %v6982_v29  ;;  %v2700_v21 = vld [vmem:[#allocation4 + $0xb5] sm:$0xff] }
 0x4dd   : > { %v2816_v50 = vadd.f32 %v2808_v47, %v2789_v51  ;;  %v2873_v17 = vadd.f32 %v2865_v36, %v2847_v59  ;;  %v2891_v57 = vmul.f32 %v9389_v10, %v7361_v13  ;;  %v2325_v0 = vadd.f32 %v7523_v46, %v2299_v39  ;;  %v9740_v13 = vld [vmem:[#allocation284_spill] sm:$0xff]  ;;  %v9741_v22 = vld [vmem:[#allocation95_spill] sm:$0xff] }
 0x4de   : > { %9734 = vst [vmem:[#allocation31_spill] sm:$0xff] %v7732_v61  ;;  %v2402_v20 = vadd.f32 %v9735_v35, %v2376_v53  ;;  %v7742_v38 = vmul.f32 %v9733_v26, %v7718_v3  ;;  %v7746_v52 = vmul.f32 %v9737_v33, %v7425_v41  ;;  %v7749_v29 = vmul.f32 %v9737_v33, %v2674_v30  ;;  %v2752_v55 = vld [vmem:[#allocation4 + $0xb6] sm:$0xff]  ;;  %v9784_v61 = vld [vmem:[#allocation237_spill] sm:$0xff] }
 0x4df   : > { %v2818_v51 = vadd.f32 %v2810_v19, %v2791_v18  ;;  %v2899_v28 = vadd.f32 %v2891_v57, %v2873_v17  ;;  %v7752_v59 = vstv %s7692_s6  ;;  %v7757_v15 = vmul.f32 %v7558_v40, %v7434_v58  ;;  %v2851_v39 = vld [vmem:[#allocation4 + $0x51] sm:$0xff]  ;;  %v9745_v19 = vld [vmem:[#allocation190_spill] sm:$0xff] }
 0x4e0   : > { %9736 = vst [vmem:[#allocation200_spill] sm:$0xff] %v7742_v38  ;;  %9738 = vst [vmem:[#allocation210_spill] sm:$0xff] %v7749_v29  ;;  %v2428_v46 = vadd.f32 %v9740_v13, %v2402_v20  ;;  %v7761_v25 = vmul.f32 %v9741_v22, %v7441_v34  ;;  %v2917_v47 = vmul.f32 %v7752_v59, %v7387_v11  ;;  %v9742_v18 = vld [vmem:[#allocation236_spill] sm:$0xff]  ;;  %v9746_v57 = vld [vmem:[#allocation243_spill] sm:$0xff]  ;;  %v7788_v29 = vstv %s7724_s7 }
 0x4e1   : > { %9739 = vst [vmem:[#allocation220_spill] sm:$0xff] %v7752_v59  ;;  %v7766_v36 = vadd.f32 %v9742_v18, %v2040_v43  ;;  %v7769_v49 = vmul.f32 %v7558_v40, %v2700_v21  ;;  %v9744_v53 = vld [vmem:[#allocation268_spill] sm:$0xff]  ;;  %v2843_v17 = vadd.f32 %v9745_v19, %v2816_v50  ;;  %v2351_v35 = vadd.f32 %v9746_v57, %v2325_v0  ;;  %v9747_v20 = vld [vmem:[#allocation20_spill] sm:$0xff]  ;;  %v9751_v0 = vld [vmem:[#allocation15_spill] sm:$0xff] }
 0x4e2   : > { %v7773_v30 = vmul.f32 %v7613_v48, %v9744_v53  ;;  %v2455_v33 = vadd.f32 %v9747_v20, %v2428_v46  ;;  %v2925_v13 = vadd.f32 %v2917_v47, %v2899_v28  ;;  %v9748_v22 = vld [vmem:[#allocation99_spill] sm:$0xff]  ;;  %v7783_v43 = vmul.f32 %v7613_v48, %v2752_v55  ;;  %v9752_v19 = vld [vmem:[#allocation96_spill] sm:$0xff]  ;;  %v9753_v47 = vld [vmem:[#allocation97_spill] sm:$0xff] }
 0x4e3   : > { %9743 = vst [vmem:[#allocation32_spill] sm:$0xff] %v7769_v49  ;;  %v2943_v11 = vmul.f32 %v9748_v22, %v7392_v7  ;;  %v9750_v21 = vld [vmem:[#allocation167_spill] sm:$0xff]  ;;  %v2861_v49 = vmul.f32 %v7704_v45, %v2851_v39  ;;  %v7793_v46 = vmul.f32 %v9752_v19, %v9751_v0  ;;  %v2969_v7 = vmul.f32 %v7788_v29, %v7405_v44  ;;  %v4850_v57 = vld [vmem:[#allocation4 + $0x61] sm:$0xff] }
 0x4e4   : > { %9749 = vst [vmem:[#allocation131_spill] sm:$0xff] %v7783_v43  ;;  %v2845_v18 = vadd.f32 %v9750_v21, %v2818_v51  ;;  %v2482_v50 = vadd.f32 %v7570_v8, %v2455_v33  ;;  %v7799_v55 = vmul.f32 %v9753_v47, %v7540_v60  ;;  %v2862_v51 = vmul.f32 %v4850_v57, %v7704_v45  ;;  %v4851_v39 = vld [vmem:[#allocation4 + $0x71] sm:$0xff]  ;;  %v925_v47 = vpop.xlane.xlu0 %924 }
 0x4e5   : > { %v2951_v28 = vadd.f32 %v2943_v11, %v2925_v13  ;;  %v2863_v20 = vmul.f32 %v4851_v39, %v7704_v45  ;;  %v2869_v21 = vadd.f32 %v2861_v49, %v2843_v17  ;;  %v2903_v8 = vld [vmem:[#allocation4 + $0x52] sm:$0xff]  ;;  %v9756_v13 = vld [vmem:[#allocation18_spill] sm:$0xff] }
 0x4e6   : > { %9754 = vst [vmem:[#allocation274_spill] sm:$0xff] %v7799_v55  ;;  %v9755_v33 = vld [vmem:[#allocation140_spill] sm:$0xff]  ;;  %v2508_v19 = vadd.f32 %v7578_v23, %v2482_v50  ;;  %v7807_v11 = vmul.f32 %v7667_v16, %v9756_v13  ;;  %v9757_v38 = vld [vmem:[#allocation231_spill] sm:$0xff]  ;;  %v7816_v39 = vadd.f32 %v2862_v51, %v7698_v31  ;;  %v7820_v17 = vld [vmem:[#allocation4 + $0x62] sm:$0xff]  ;;  %v7834_v31 = vmul.f32 %v9748_v22, %v7632_v32 }
 0x4e7   : > { %v2377_v43 = vadd.f32 %v9755_v33, %v2351_v35  ;;  %v2977_v44 = vadd.f32 %v2969_v7, %v2951_v28  ;;  %v7813_v57 = vmul.f32 %v7704_v45, %v9757_v38  ;;  %v7818_v49 = vadd.f32 %v2863_v20, %v2845_v18  ;;  %v9759_v23 = vld [vmem:[#allocation100_spill] sm:$0xff]  ;;  %v9760_v50 = vld [vmem:[#allocation110_spill] sm:$0xff]  ;;  %v9764_v51 = vld [vmem:[#allocation179_spill] sm:$0xff] }
 0x4e8   : > { %v2995_v35 = vmul.f32 %v9759_v23, %v7410_v14  ;;  %v2534_v28 = vadd.f32 %v9760_v50, %v2508_v19  ;;  %v9761_v7 = vld [vmem:[#allocation21_spill] sm:$0xff]  ;;  %v2913_v38 = vmul.f32 %v7752_v59, %v2903_v8  ;;  %9763 = vst [vmem:[#allocation33_spill] sm:$0xff] %v7834_v31  ;;  %v934_v14 = vmul.f32 0.0078125, %v925_v47  ;;  %v9765_v6 = vld [vmem:[#allocation147_spill] sm:$0xff] }
 0x4e9   : > { %9758 = vst [vmem:[#allocation118_spill] sm:$0xff] %v7813_v57  ;;  %v7829_v33 = vmul.f32 %v9389_v10, %v9761_v7  ;;  %v2895_v20 = vadd.f32 %v9764_v51, %v2869_v21  ;;  %v2403_v19 = vadd.f32 %v9765_v6, %v2377_v43  ;;  %v7845_v7 = vmul.f32 %v7752_v59, %v7820_v17  ;;  %v4852_v47 = vld [vmem:[#allocation4 + $0x72] sm:$0xff]  ;;  %v9767_v6 = vld [vmem:[#allocation122_spill] sm:$0xff] }
 0x4ea   : > { %v3003_v18 = vadd.f32 %v2995_v35, %v2977_v44  ;;  %v2560_v50 = vadd.f32 %v7625_v1, %v2534_v28  ;;  %v7848_v8 = vstv %s7780_s9  ;;  %v4900_v32 = vmov 0   ;;  %v2955_v44 = vld [vmem:[#allocation4 + $0x53] sm:$0xff]  ;;  %943 = vst.msk [vmem:[#allocation4 + $0xa3] sm:$0xff] %vm852_vm4, %v934_v14  ;;  %s9894_s9 = sld [smem:[#allocation309_spill]] }
 0x4eb   : > { %9762 = vst [vmem:[#allocation193_spill] sm:$0xff] %v7829_v33  ;;  %4716 = vset.pattern.permute.xlu0 %v4900_v32  ;;  %v7855_v21 = vmul.f32 %v4852_v47, %v7752_v59  ;;  %v7859_v1 = vmul.f32 %v7752_v59, %v9767_v6  ;;  %v3021_v43 = vmul.f32 %v7848_v8, %v7419_v4 }
 0x4ec   : > { %v2921_v35 = vadd.f32 %v2913_v38, %v2895_v20  ;;  %4717 = vset.pattern.permute.xlu1 %v4900_v32  ;;  %v2586_v28 = vadd.f32 %v7649_v56, %v2560_v50  ;;  %v7867_v51 = vmul.f32 %v7752_v59, %v7602_v5  ;;  %v7871_v47 = vmul.f32 %v7788_v29, %v7662_v2  ;;  %v9772_v38 = vld [vmem:[#allocation101_spill] sm:$0xff]  ;;  %v9773_v56 = vld [vmem:[#allocation202_spill] sm:$0xff] }
 0x4ed   : > { %9766 = vst [vmem:[#allocation224_spill] sm:$0xff] %v7855_v21  ;;  %9768 = vst [vmem:[#allocation201_spill] sm:$0xff] %v7859_v1  ;;  %v7875_v6 = vmul.f32 %v9759_v23, %v7690_v54  ;;  %3886 = vmatprep.mubr.bf16.mxu0 %v4900_v32  ;;  %v3029_v4 = vadd.f32 %v3021_v43, %v3003_v18  ;;  %v3047_v14 = vmul.f32 %v9772_v38, %v7425_v41  ;;  %v9774_v5 = vld [vmem:[#allocation109_spill] sm:$0xff]  ;;  %v9776_v41 = vld [vmem:[#allocation102_spill] sm:$0xff] }
 0x4ee   : > { %9769 = vst [vmem:[#allocation211_spill] sm:$0xff] %v7867_v51  ;;  %9770 = vst [vmem:[#allocation221_spill] sm:$0xff] %v7871_v47  ;;  %v2947_v20 = vadd.f32 %v9773_v56, %v2921_v35  ;;  %v2965_v50 = vmul.f32 %v7788_v29, %v2955_v44  ;;  %3927 = vmatprep.mubr.bf16.mxu1 %v4900_v32  ;;  %v2429_v22 = vadd.f32 %v9774_v5, %v2403_v19  ;;  %v3033_v56 = vld [vmem:[#allocation5 + $0x54] sm:$0xff]  ;;  %v3191_v1 = vld [vmem:[#allocation5 + $0x60] sm:$0xff] }
 0x4ef   : > { %9771 = vst [vmem:[#allocation34_spill] sm:$0xff] %v7875_v6  ;;  %v2612_v2 = vadd.f32 %v7683_v42, %v2586_v28  ;;  %v7885_v54 = vmul.f32 %v7848_v8, %v7718_v3  ;;  %v7888_v23 = vstv %s7809_s10  ;;  %v3099_v43 = vmul.f32 %v9776_v41, %v7441_v34  ;;  %v9777_v3 = vld [vmem:[#allocation103_spill] sm:$0xff]  ;;  %v9778_v5 = vld [vmem:[#allocation104_spill] sm:$0xff]  ;;  %v7999_v21 = vld [vmem:[#allocation4 + $0x64] sm:$0xff] }
 0x4f0   : > { %v3073_v18 = vmul.f32 %v7888_v23, %v7434_v58  ;;  %v7895_v44 = vstv %s7824_s11  ;;  %v2973_v19 = vadd.f32 %v2965_v50, %v2947_v20  ;;  %v7904_v35 = vmul.f32 %v9777_v3, %v9751_v0  ;;  %v3007_v58 = vld [vmem:[#allocation4 + $0x54] sm:$0xff]  ;;  %s454_s10 = scalar_lea.vmem %s9894_s9, %s4392_s5 }
 0x4f1   : > { %9775 = vst [vmem:[#allocation133_spill] sm:$0xff] %v7885_v54  ;;  %v2638_v32 = vadd.f32 %v7709_v9, %v2612_v2  ;;  %v7900_v42 = vmul.f32 %v7895_v44, %v9744_v53  ;;  %v7907_v28 = vstv %s7836_s12  ;;  %v3055_v34 = vadd.f32 %v3047_v14, %v3029_v4  ;;  %v9780_v9 = vld [vmem:[#allocation159_spill] sm:$0xff]  ;;  %v7928_v4 = vld [vmem:[#allocation4 + $0xa0] sm:$0xff] }
 0x4f2   : > { %v7911_v10 = vmul.f32 %v9778_v5, %v7540_v60  ;;  %v7914_v20 = vstv %s7838_s23  ;;  %v2999_v50 = vadd.f32 %v9780_v9, %v2973_v19  ;;  %v3085_v2 = vld [vmem:[#allocation5 + $0x55] sm:$0xff]  ;;  %v7920_v0 = vmul.f32 %v7907_v28, %v9756_v13  ;;  %v9782_v60 = vld [vmem:[#allocation70_spill] sm:$0xff] }
 0x4f3   : > { %v2664_v53 = vadd.f32 %v7730_v62, %v2638_v32  ;;  %v7923_v54 = vstv %s7850_s24  ;;  %v7926_v6 = vstv %s7852_s25  ;;  %v3137_v14 = vld [vmem:[#allocation5 + $0x56] sm:$0xff]  ;;  %v2084_v19 = vmul.f32 %v9782_v60, %v7928_v4  ;;  %v9783_v62 = vld [vmem:[#allocation77_spill] sm:$0xff] }
 0x4f4   : > { %9779 = vst [vmem:[#allocation275_spill] sm:$0xff] %v7911_v10  ;;  %9781 = vst [vmem:[#allocation151_spill] sm:$0xff] %v7920_v0  ;;  %v2448_v32 = vmul.f32 %v9783_v62, %v7928_v4  ;;  %v3017_v13 = vmul.f32 %v7848_v8, %v3007_v58  ;;  %v3043_v9 = vmul.f32 %v9772_v38, %v3033_v56  ;;  %v3164_v10 = vld [vmem:[#allocation4 + $0x60] sm:$0xff] }
 0x4f5   : > { %v3217_v0 = vld [vmem:[#allocation4 + $0x61] sm:$0xff]  ;;  %v2690_v47 = vadd.f32 %v7746_v52, %v2664_v53  ;;  %v3069_v31 = vmul.f32 %v7888_v23, %v9784_v61  ;;  %v7946_v24 = vmul.f32 %v9776_v41, %v3085_v2  ;;  %v7950_v60 = vmul.f32 %v7895_v44, %v7610_v27 }
 0x4f6   : > { %v7941_v63 = vld [vmem:[#allocation4 + $0xa1] sm:$0xff]  ;;  %v3081_v58 = vadd.f32 %v3073_v18, %v3055_v34  ;;  %v2092_v56 = vadd.f32 %v2084_v19, %v7766_v36  ;;  %v2456_v62 = vadd.f32 %v2448_v32, %v2429_v22  ;;  %v7954_v51 = vmul.f32 %v9777_v3, %v3137_v14  ;;  %v9786_v34 = vld [vmem:[#allocation71_spill] sm:$0xff] }
 0x4f7   : > { %v3243_v52 = vld [vmem:[#allocation5 + $0x61] sm:$0xff]  ;;  %v2716_v33 = vadd.f32 %v7757_v15, %v2690_v47  ;;  %v7958_v61 = vmul.f32 %v7907_v28, %v3164_v10  ;;  %v7961_v2 = vmul.f32 %v9778_v5, %v3191_v1  ;;  %v7964_v27 = vmul.f32 %v7914_v20, %v3217_v0  ;;  %v9788_v10 = vld [vmem:[#allocation80_spill] sm:$0xff] }
 0x4f8   : > { %v3295_v53 = vld [vmem:[#allocation5 + $0x62] sm:$0xff]  ;;  %v2136_v14 = vmul.f32 %v9786_v34, %v7941_v63  ;;  %v2501_v47 = vmul.f32 %v9788_v10, %v7941_v63 }
 0x4f9   : > { %v7966_v18 = vld [vmem:[#allocation4 + $0x63] sm:$0xff]  ;;  %v2742_v0 = vadd.f32 %v7761_v25, %v2716_v33 }
 0x4fa   : > { %v9785_v22 = vld [vmem:[#allocation166_spill] sm:$0xff]  ;;  %v9789_v5 = vld [vmem:[#allocation105_spill] sm:$0xff]  ;;  %v7991_v10 = vmul.f32 %v7926_v6, %v7966_v18 }
 0x4fb   : > { %v2118_v36 = vadd.f32 %v9785_v22, %v2092_v56  ;;  %v9787_v19 = vld [vmem:[#allocation78_spill] sm:$0xff]  ;;  %v7980_v57 = vmul.f32 %v9789_v5, %v3243_v52  ;;  %v7984_v56 = vmul.f32 %v7923_v54, %v7820_v17  ;;  %v2768_v33 = vadd.f32 %v7773_v30, %v2742_v0  ;;  %v9792_v52 = vld [vmem:[#allocation107_spill] sm:$0xff] }
 0x4fc   : > { %v2483_v15 = vadd.f32 %v9787_v19, %v2456_v62  ;;  %v3347_v1 = vld [vmem:[#allocation5 + $0x63] sm:$0xff]  ;;  %v3107_v62 = vadd.f32 %v3099_v43, %v3081_v58  ;;  %9791 = vst [vmem:[#allocation35_spill] sm:$0xff] %v7991_v10  ;;  %v8002_v17 = vstv %s7930_s26  ;;  %v9796_v43 = vld [vmem:[#allocation135_spill] sm:$0xff] }
 0x4fd   : > { %v7977_v32 = vld [vmem:[#allocation4 + $0xa2] sm:$0xff]  ;;  %v2144_v19 = vadd.f32 %v2136_v14, %v2118_v36  ;;  %v7997_v5 = vmul.f32 %v9792_v52, %v3347_v1  ;;  %9794 = vst [vmem:[#allocation203_spill] sm:$0xff] %v8002_v17  ;;  %v9797_v36 = vld [vmem:[#allocation72_spill] sm:$0xff]  ;;  %v2794_v1 = vadd.f32 %v7793_v46, %v2768_v33 }
 0x4fe   : > { %v9790_v22 = vld [vmem:[#allocation106_spill] sm:$0xff]  ;;  %v2509_v55 = vadd.f32 %v2501_v47, %v2483_v15  ;;  %v2188_v14 = vmul.f32 %v9797_v36, %v7977_v32  ;;  %v9798_v15 = vld [vmem:[#allocation149_spill] sm:$0xff]  ;;  %v2553_v30 = vmul.f32 %v9704_v37, %v7977_v32  ;;  %v8027_v37 = vmul.f32 %v8002_v17, %v7999_v21 }
 0x4ff   : > { %v7987_v34 = vmul.f32 %v9790_v22, %v3295_v53  ;;  %v7993_v25 = vld [vmem:[#allocation5 + $0x64] sm:$0xff]  ;;  %9793 = vst [vmem:[#allocation225_spill] sm:$0xff] %v7997_v5  ;;  %v8005_v53 = vstv %s7932_s20  ;;  %v2170_v58 = vadd.f32 %v9796_v43, %v2144_v19  ;;  %v2813_v22 = vmul.f32 %v7667_v16, %v7928_v4  ;;  %v9799_v19 = vld [vmem:[#allocation108_spill] sm:$0xff] }
 0x500   : > { %9795 = vst [vmem:[#allocation215_spill] sm:$0xff] %v8005_v53  ;;  %v2535_v47 = vadd.f32 %v9798_v15, %v2509_v55  ;;  %v8013_v0 = vld [vmem:[#allocation4 + $0x65] sm:$0xff]  ;;  %v3025_v5 = vadd.f32 %v3017_v13, %v2999_v50  ;;  %v8022_v43 = vmul.f32 %v9799_v19, %v7993_v25  ;;  %v3133_v55 = vadd.f32 %v7900_v42, %v3107_v62 }
 0x501   : > { %v8016_v52 = vld [vmem:[#allocation4 + $0xa3] sm:$0xff]  ;;  %v2196_v36 = vadd.f32 %v2188_v14, %v2170_v58  ;;  %v2821_v10 = vadd.f32 %v2813_v22, %v2794_v1  ;;  %v8031_v33 = vmul.f32 %v8005_v53, %v8013_v0  ;;  %v8036_v50 = vstv %s7968_s21  ;;  %v9803_v14 = vld [vmem:[#allocation143_spill] sm:$0xff] }
 0x502   : > { %v2561_v15 = vadd.f32 %v2553_v30, %v2535_v47  ;;  %v3051_v46 = vadd.f32 %v3043_v9, %v3025_v5  ;;  %v8033_v16 = vld [vmem:[#allocation5 + $0x65] sm:$0xff]  ;;  %v2605_v5 = vmul.f32 %v9722_v12, %v8016_v52  ;;  %v2866_v30 = vmul.f32 %v7704_v45, %v7941_v63 }
 0x503   : > { %9800 = vst [vmem:[#allocation36_spill] sm:$0xff] %v8031_v33  ;;  %v9801_v13 = vld [vmem:[#allocation142_spill] sm:$0xff]  ;;  %v9802_v42 = vld [vmem:[#allocation73_spill] sm:$0xff]  ;;  %v8054_v33 = vmul.f32 %v8036_v50, %v8033_v16 }
 0x504   : > { %v2222_v19 = vadd.f32 %v9801_v13, %v2196_v36  ;;  %v2240_v62 = vmul.f32 %v9802_v42, %v8016_v52  ;;  %v8041_v58 = vld [vmem:[#allocation4 + $0xa4] sm:$0xff]  ;;  %v2587_v47 = vadd.f32 %v9803_v14, %v2561_v15  ;;  %v3077_v1 = vadd.f32 %v3069_v31, %v3051_v46 }
 0x505   : > { %v9804_v9 = vld [vmem:[#allocation138_spill] sm:$0xff]  ;;  %v9805_v53 = vld [vmem:[#allocation145_spill] sm:$0xff]  ;;  %v3159_v36 = vadd.f32 %v7904_v35, %v3133_v55  ;;  %v2657_v46 = vmul.f32 %v9733_v26, %v8041_v58 }
 0x506   : > { %v2848_v22 = vadd.f32 %v9804_v9, %v2821_v10  ;;  %v2896_v17 = vadd.f32 %v9805_v53, %v7816_v39  ;;  %v2248_v13 = vadd.f32 %v2240_v62, %v2222_v19  ;;  %v2613_v42 = vadd.f32 %v2605_v5, %v2587_v47  ;;  %v9806_v15 = vld [vmem:[#allocation74_spill] sm:$0xff]  ;;  %v9807_v53 = vld [vmem:[#allocation121_spill] sm:$0xff]  ;;  %v9809_v47 = vld [vmem:[#allocation112_spill] sm:$0xff] }
 0x507   : > { %v2292_v12 = vmul.f32 %v9806_v15, %v8041_v58  ;;  %v8058_v14 = vld [vmem:[#allocation4 + $0xa5] sm:$0xff]  ;;  %v3103_v31 = vadd.f32 %v7946_v24, %v3077_v1  ;;  %v2918_v62 = vmul.f32 %v7752_v59, %v7977_v32  ;;  %v2966_v24 = vmul.f32 %v7966_v18, %v7788_v29  ;;  %v9812_v1 = vld [vmem:[#allocation76_spill] sm:$0xff] }
 0x508   : > { %v8060_v10 = vld [vmem:[#allocation4 + $0xa6] sm:$0xff]  ;;  %v2874_v9 = vadd.f32 %v2866_v30, %v2848_v22  ;;  %v2922_v39 = vadd.f32 %v7845_v7, %v2896_v17  ;;  %v2274_v35 = vadd.f32 %v9807_v53, %v2248_v13  ;;  %v9811_v17 = vld [vmem:[#allocation75_spill] sm:$0xff] }
 0x509   : > { %v9808_v19 = vld [vmem:[#allocation125_spill] sm:$0xff]  ;;  %v3129_v15 = vadd.f32 %v7950_v60, %v3103_v31  ;;  %v9810_v45 = vld [vmem:[#allocation162_spill] sm:$0xff]  ;;  %v2344_v30 = vmul.f32 %v9811_v17, %v8058_v14  ;;  %v2396_v13 = vmul.f32 %v9812_v1, %v8060_v10  ;;  %v9813_v31 = vld [vmem:[#allocation192_spill] sm:$0xff]  ;;  %v2761_v18 = vmul.f32 %v7613_v48, %v8060_v10 }
 0x50a   : > { %v2639_v55 = vadd.f32 %v9808_v19, %v2613_v42  ;;  %v2900_v5 = vadd.f32 %v9809_v47, %v2874_v9  ;;  %v2948_v22 = vadd.f32 %v9810_v45, %v2922_v39  ;;  %v2300_v7 = vadd.f32 %v2292_v12, %v2274_v35  ;;  %v9814_v39 = vld [vmem:[#allocation116_spill] sm:$0xff]  ;;  %v9815_v35 = vld [vmem:[#allocation229_spill] sm:$0xff]  ;;  %v9817_v17 = vld [vmem:[#allocation227_spill] sm:$0xff] }
 0x50b   : > { %v2709_v42 = vmul.f32 %v7558_v40, %v8058_v14  ;;  %v3155_v9 = vadd.f32 %v7954_v51, %v3129_v15  ;;  %v2970_v12 = vmul.f32 %v7788_v29, %v8016_v52  ;;  %v3018_v51 = vmul.f32 %v7999_v21, %v7848_v8 }
 0x50c   : > { %v2665_v26 = vadd.f32 %v2657_v46, %v2639_v55  ;;  %v2926_v53 = vadd.f32 %v2918_v62, %v2900_v5  ;;  %v2974_v60 = vadd.f32 %v2966_v24, %v2948_v22  ;;  %v2326_v45 = vadd.f32 %v9813_v31, %v2300_v7  ;;  %v9816_v46 = vld [vmem:[#allocation241_spill] sm:$0xff] }
 0x50d   : > { %v3182_v55 = vadd.f32 %v7958_v61, %v3155_v9  ;;  %v3022_v15 = vmul.f32 %v7848_v8, %v8041_v58  ;;  %v3178_v48 = vmul.f32 %v7907_v28, %v7928_v4  ;;  %v3044_v61 = vmul.f32 %v7993_v25, %v9772_v38 }
 0x50e   : > { %v2691_v19 = vadd.f32 %v9814_v39, %v2665_v26  ;;  %v2952_v47 = vadd.f32 %v9815_v35, %v2926_v53  ;;  %v3000_v40 = vadd.f32 %v9816_v46, %v2974_v60  ;;  %v2352_v62 = vadd.f32 %v2344_v30, %v2326_v45  ;;  %v9818_v26 = vld [vmem:[#allocation239_spill] sm:$0xff] }
 0x50f   : > { %v3209_v24 = vadd.f32 %v7961_v2, %v3182_v55  ;;  %v3074_v21 = vmul.f32 %v7888_v23, %v8058_v14  ;;  %v3186_v30 = vadd.f32 %v3178_v48, %v3159_v36  ;;  %v3070_v2 = vmul.f32 %v8013_v0, %v7888_v23  ;;  %v9820_v0 = vld [vmem:[#allocation233_spill] sm:$0xff]  ;;  %v9822_v55 = vld [vmem:[#allocation16_spill] sm:$0xff]  ;;  %v9824_v48 = vld [vmem:[#allocation244_spill] sm:$0xff] }
 0x510   : > { %v2717_v5 = vadd.f32 %v2709_v42, %v2691_v19  ;;  %v2978_v22 = vadd.f32 %v2970_v12, %v2952_v47  ;;  %v3026_v7 = vadd.f32 %v3018_v51, %v3000_v40  ;;  %v2378_v1 = vadd.f32 %v9817_v17, %v2352_v62  ;;  %v9819_v42 = vld [vmem:[#allocation235_spill] sm:$0xff]  ;;  %v3477_v19 = vld [vmem:[#allocation4 + $0x66] sm:$0xff] }
 0x511   : > { %v3235_v60 = vadd.f32 %v7964_v27, %v3209_v24  ;;  %v8110_v25 = vmul.f32 %v7895_v44, %v8060_v10  ;;  %v3231_v39 = vmul.f32 %v7914_v20, %v7941_v63  ;;  %v3096_v35 = vmul.f32 %v8033_v16, %v9776_v41  ;;  %v3503_v63 = vld [vmem:[#allocation5 + $0x66] sm:$0xff]  ;;  %v3322_v17 = vld [vmem:[#allocation4 + $0x73] sm:$0xff] }
 0x512   : > { %v2743_v53 = vadd.f32 %v9818_v26, %v2717_v5  ;;  %v3004_v9 = vadd.f32 %v9819_v42, %v2978_v22  ;;  %v3052_v4 = vadd.f32 %v3044_v61, %v3026_v7  ;;  %v2404_v31 = vadd.f32 %v2396_v13, %v2378_v1  ;;  %v3165_v5 = vld [vmem:[#allocation4 + $0x70] sm:$0xff]  ;;  %v9823_v16 = vld [vmem:[#allocation185_spill] sm:$0xff]  ;;  %v9825_v7 = vld [vmem:[#allocation242_spill] sm:$0xff] }
 0x513   : > { %v3261_v12 = vadd.f32 %v7980_v57, %v3235_v60  ;;  %v3213_v46 = vadd.f32 %v9822_v55, %v3186_v30  ;;  %v3283_v40 = vmul.f32 %v7923_v54, %v7977_v32  ;;  %v3122_v57 = vmul.f32 %v3477_v19, %v7895_v44 }
 0x514   : > { %v2769_v45 = vadd.f32 %v2761_v18, %v2743_v53  ;;  %v3030_v36 = vadd.f32 %v3022_v15, %v3004_v9  ;;  %v3078_v27 = vadd.f32 %v3070_v2, %v3052_v4  ;;  %v2430_v13 = vadd.f32 %v9820_v0, %v2404_v31  ;;  %v9821_v18 = vld [vmem:[#allocation170_spill] sm:$0xff]  ;;  %v9826_v53 = vld [vmem:[#allocation224_spill] sm:$0xff]  ;;  %v3192_v2 = vld [vmem:[#allocation5 + $0x70] sm:$0xff] }
 0x515   : > { %v3287_v51 = vadd.f32 %v7984_v56, %v3261_v12  ;;  %v2897_v15 = vadd.f32 %v9823_v16, %v7818_v49  ;;  %v8135_v32 = vmul.f32 %v7926_v6, %v8016_v52  ;;  %v3148_v26 = vmul.f32 %v3503_v63, %v9777_v3  ;;  %v9827_v49 = vld [vmem:[#allocation141_spill] sm:$0xff]  ;;  %v9828_v9 = vld [vmem:[#allocation274_spill] sm:$0xff]  ;;  %v9830_v12 = vld [vmem:[#allocation119_spill] sm:$0xff] }
 0x516   : > { %v2795_v47 = vadd.f32 %v9821_v18, %v2769_v45  ;;  %v3104_v62 = vadd.f32 %v3096_v35, %v3078_v27  ;;  %v2457_v22 = vadd.f32 %v9824_v48, %v2430_v13  ;;  %v3056_v61 = vadd.f32 %v9825_v7, %v3030_v36  ;;  %v9829_v31 = vld [vmem:[#allocation35_spill] sm:$0xff]  ;;  %v3218_v36 = vld [vmem:[#allocation4 + $0x71] sm:$0xff] }
 0x517   : > { %v3313_v56 = vadd.f32 %v7987_v34, %v3287_v51  ;;  %v2923_v30 = vadd.f32 %v9826_v53, %v2897_v15  ;;  %v3175_v4 = vmul.f32 %v7907_v28, %v3165_v5  ;;  %v3374_v34 = vld [vmem:[#allocation4 + $0x74] sm:$0xff]  ;;  %v2967_v35 = vmul.f32 %v3322_v17, %v7788_v29  ;;  %v9832_v18 = vld [vmem:[#allocation118_spill] sm:$0xff] }
 0x518   : > { %v2822_v24 = vadd.f32 %v7807_v11, %v2795_v47  ;;  %v3130_v1 = vadd.f32 %v3122_v57, %v3104_v62  ;;  %v2484_v42 = vadd.f32 %v9827_v49, %v2457_v22  ;;  %v3239_v11 = vadd.f32 %v3231_v39, %v3213_v46  ;;  %v9831_v0 = vld [vmem:[#allocation111_spill] sm:$0xff]  ;;  %v9833_v39 = vld [vmem:[#allocation225_spill] sm:$0xff]  ;;  %v9834_v57 = vld [vmem:[#allocation104_spill] sm:$0xff] }
 0x519   : > { %v3339_v52 = vadd.f32 %v9829_v31, %v3313_v56  ;;  %v2949_v27 = vadd.f32 %v9830_v12, %v2923_v30  ;;  %v3082_v55 = vadd.f32 %v3074_v21, %v3056_v61  ;;  %v8149_v51 = vstv %s8114_s8  ;;  %v3244_v16 = vld [vmem:[#allocation5 + $0x71] sm:$0xff] }
 0x51a   : > { %v2849_v60 = vadd.f32 %v9828_v9, %v2822_v24  ;;  %v3156_v45 = vadd.f32 %v3148_v26, %v3130_v1  ;;  %v2510_v13 = vadd.f32 %v9831_v0, %v2484_v42  ;;  %v3202_v5 = vmul.f32 %v9834_v57, %v3192_v2  ;;  %v9835_v48 = vld [vmem:[#allocation260_spill] sm:$0xff]  ;;  %v9836_v26 = vld [vmem:[#allocation130_spill] sm:$0xff]  ;;  %v9839_v2 = vld [vmem:[#allocation139_spill] sm:$0xff] }
 0x51b   : > { %v3365_v46 = vadd.f32 %v9833_v39, %v3339_v52  ;;  %v2975_v15 = vadd.f32 %v2967_v35, %v2949_v27  ;;  %v3265_v22 = vadd.f32 %v9835_v48, %v3239_v11  ;;  %v8155_v24 = vstv %s8124_s27  ;;  %v3400_v56 = vld [vmem:[#allocation5 + $0x74] sm:$0xff]  ;;  %v9840_v52 = vld [vmem:[#allocation105_spill] sm:$0xff] }
 0x51c   : > { %v2875_v47 = vadd.f32 %v9832_v18, %v2849_v60  ;;  %v3183_v62 = vadd.f32 %v3175_v4, %v3156_v45  ;;  %v3228_v7 = vmul.f32 %v7914_v20, %v3218_v36  ;;  %v3019_v1 = vmul.f32 %v3374_v34, %v7848_v8  ;;  %v3270_v30 = vld [vmem:[#allocation4 + $0x72] sm:$0xff]  ;;  %v9838_v60 = vld [vmem:[#allocation193_spill] sm:$0xff] }
 0x51d   : > { %v2536_v21 = vadd.f32 %v9836_v26, %v2510_v13  ;;  %v3391_v61 = vadd.f32 %v8027_v37, %v3365_v46  ;;  %v3426_v49 = vld [vmem:[#allocation4 + $0x75] sm:$0xff]  ;;  %v3108_v11 = vadd.f32 %v9839_v2, %v3082_v55  ;;  %v3487_v31 = vmul.f32 %v8149_v51, %v3477_v19 }
 0x51e   : > { %v3210_v53 = vadd.f32 %v3202_v5, %v3183_v62  ;;  %v9837_v42 = vld [vmem:[#allocation180_spill] sm:$0xff]  ;;  %v2901_v4 = vadd.f32 %v9838_v60, %v2875_v47  ;;  %v3254_v45 = vmul.f32 %v9840_v52, %v3244_v16  ;;  %v3045_v37 = vmul.f32 %v3400_v56, %v9772_v38  ;;  %v9841_v39 = vld [vmem:[#allocation223_spill] sm:$0xff] }
 0x51f   : > { %v3001_v9 = vadd.f32 %v9837_v42, %v2975_v15  ;;  %v3417_v36 = vadd.f32 %v8022_v43, %v3391_v61  ;;  %v3296_v27 = vld [vmem:[#allocation5 + $0x72] sm:$0xff]  ;;  %v8168_v0 = vadd.f32 %v3283_v40, %v3265_v22  ;;  %v3513_v13 = vmul.f32 %v8155_v24, %v3503_v63  ;;  %v9844_v22 = vld [vmem:[#allocation106_spill] sm:$0xff] }
 0x520   : > { %v3236_v12 = vadd.f32 %v3228_v7, %v3210_v53  ;;  %v3280_v18 = vmul.f32 %v7923_v54, %v3270_v30  ;;  %v3452_v47 = vld [vmem:[#allocation5 + $0x75] sm:$0xff]  ;;  %v3071_v55 = vmul.f32 %v3426_v49, %v7888_v23  ;;  %v2562_v19 = vadd.f32 %v9841_v39, %v2536_v21 }
 0x521   : > { %v3027_v35 = vadd.f32 %v3019_v1, %v3001_v9  ;;  %v9842_v46 = vld [vmem:[#allocation36_spill] sm:$0xff]  ;;  %v3134_v40 = vadd.f32 %v8110_v25, %v3108_v11  ;;  %v3306_v1 = vmul.f32 %v9844_v22, %v3296_v27  ;;  %v3332_v63 = vmul.f32 %v7926_v6, %v3322_v17  ;;  %v9847_v2 = vld [vmem:[#allocation108_spill] sm:$0xff]  ;;  %v9848_v25 = vld [vmem:[#allocation30_spill] sm:$0xff] }
 0x522   : > { %v3443_v62 = vadd.f32 %v9842_v46, %v3417_v36  ;;  %v3262_v5 = vadd.f32 %v3254_v45, %v3236_v12  ;;  %v3348_v43 = vld [vmem:[#allocation5 + $0x73] sm:$0xff]  ;;  %v3097_v21 = vmul.f32 %v3452_v47, %v9776_v41  ;;  %v3410_v45 = vmul.f32 %v9847_v2, %v3400_v56 }
 0x523   : > { %v3478_v16 = vld [vmem:[#allocation4 + $0x76] sm:$0xff]  ;;  %v3053_v15 = vadd.f32 %v3045_v37, %v3027_v35  ;;  %v2588_v11 = vadd.f32 %v9848_v25, %v2562_v19  ;;  %v3166_v35 = vld [vmem:[#allocation4 + $0x80] sm:$0xff] }
 0x524   : > { %v9843_v48 = vld [vmem:[#allocation211_spill] sm:$0xff]  ;;  %v3469_v26 = vadd.f32 %v8054_v33, %v3443_v62  ;;  %v3288_v61 = vadd.f32 %v3280_v18, %v3262_v5  ;;  %v9849_v33 = vld [vmem:[#allocation33_spill] sm:$0xff]  ;;  %v9850_v18 = vld [vmem:[#allocation14_spill] sm:$0xff]  ;;  %v3462_v62 = vmul.f32 %v8036_v50, %v3452_v47  ;;  %v3488_v19 = vmul.f32 %v8149_v51, %v3478_v16 }
 0x525   : > { %v2927_v7 = vadd.f32 %v9843_v48, %v2901_v4  ;;  %v3079_v53 = vadd.f32 %v3071_v55, %v3053_v15  ;;  %v9845_v30 = vld [vmem:[#allocation107_spill] sm:$0xff]  ;;  %v3123_v4 = vmul.f32 %v3478_v16, %v7895_v44  ;;  %v3160_v55 = vadd.f32 %v9850_v18, %v3134_v40  ;;  %v3193_v15 = vld [vmem:[#allocation5 + $0x80] sm:$0xff] }
 0x526   : > { %v3358_v42 = vmul.f32 %v9845_v30, %v3348_v43  ;;  %v9846_v9 = vld [vmem:[#allocation203_spill] sm:$0xff]  ;;  %v3495_v12 = vadd.f32 %v3487_v31, %v3469_v26  ;;  %v3314_v27 = vadd.f32 %v3306_v1, %v3288_v61  ;;  %v3176_v48 = vmul.f32 %v7907_v28, %v3166_v35  ;;  %v9852_v1 = vld [vmem:[#allocation31_spill] sm:$0xff]  ;;  %v9855_v25 = vld [vmem:[#allocation221_spill] sm:$0xff] }
 0x527   : > { %v3384_v60 = vmul.f32 %v9846_v9, %v3374_v34  ;;  %v3504_v36 = vld [vmem:[#allocation5 + $0x76] sm:$0xff]  ;;  %v3105_v17 = vadd.f32 %v3097_v21, %v3079_v53  ;;  %v2953_v37 = vadd.f32 %v9849_v33, %v2927_v7  ;;  %v3219_v7 = vld [vmem:[#allocation4 + $0x81] sm:$0xff] }
 0x528   : > { %v9851_v39 = vld [vmem:[#allocation215_spill] sm:$0xff]  ;;  %v3521_v34 = vadd.f32 %v3513_v13, %v3495_v12  ;;  %v3340_v5 = vadd.f32 %v3332_v63, %v3314_v27  ;;  %v3149_v43 = vmul.f32 %v3504_v36, %v9777_v3  ;;  %v8193_v31 = vmul.f32 %v8155_v24, %v3504_v36  ;;  %v3245_v53 = vld [vmem:[#allocation5 + $0x81] sm:$0xff] }
 0x529   : > { %v3436_v46 = vmul.f32 %v9851_v39, %v3426_v49  ;;  %v3131_v56 = vadd.f32 %v3123_v4, %v3105_v17  ;;  %v9853_v40 = vld [vmem:[#allocation163_spill] sm:$0xff]  ;;  %v9854_v49 = vld [vmem:[#allocation238_spill] sm:$0xff]  ;;  %v2979_v12 = vadd.f32 %v9855_v25, %v2953_v37  ;;  %v3203_v36 = vmul.f32 %v9834_v57, %v3193_v15  ;;  %v9857_v17 = vld [vmem:[#allocation201_spill] sm:$0xff] }
 0x52a   : > { %v2898_v26 = vadd.f32 %v9853_v40, %v9852_v1  ;;  %v2614_v61 = vadd.f32 %v9854_v49, %v2588_v11  ;;  %v3529_v47 = vsub.f32 0.0, %v3521_v34  ;;  %v3366_v13 = vadd.f32 %v3358_v42, %v3340_v5  ;;  %v3271_v21 = vld [vmem:[#allocation4 + $0x82] sm:$0xff]  ;;  %v9856_v16 = vld [vmem:[#allocation151_spill] sm:$0xff] }
 0x52b   : > { %v3157_v63 = vadd.f32 %v3149_v43, %v3131_v56  ;;  %v3323_v4 = vld [vmem:[#allocation4 + $0x83] sm:$0xff]  ;;  %v3187_v27 = vadd.f32 %v9856_v16, %v3160_v55  ;;  %v3229_v1 = vmul.f32 %v7914_v20, %v3219_v7  ;;  %v3255_v42 = vmul.f32 %v9840_v52, %v3245_v53  ;;  %v9861_v7 = vld [vmem:[#allocation275_spill] sm:$0xff] }
 0x52c   : > { %v2924_v35 = vadd.f32 %v9857_v17, %v2898_v26  ;;  %v3537_v33 = vmul.f32 1.442695, %v3529_v47  ;;  %v3392_v18 = vadd.f32 %v3384_v60, %v3366_v13  ;;  %v3297_v11 = vld [vmem:[#allocation5 + $0x82] sm:$0xff]  ;;  %v3281_v34 = vmul.f32 %v7923_v54, %v3271_v21 }
 0x52d   : > { %v3184_v59 = vadd.f32 %v3176_v48, %v3157_v63  ;;  %v3349_v5 = vld [vmem:[#allocation5 + $0x83] sm:$0xff]  ;;  %v2968_v37 = vmul.f32 %v3323_v4, %v7788_v29  ;;  %v3214_v13 = vadd.f32 %v9861_v7, %v3187_v27  ;;  %v3307_v63 = vmul.f32 %v9844_v22, %v3297_v11  ;;  %v3248_v7 = vld [vmem:[#allocation5 + $0xb1] sm:$0xff] }
 0x52e   : > { %v9858_v56 = vld [vmem:[#allocation154_spill] sm:$0xff]  ;;  %v9859_v55 = vld [vmem:[#allocation269_spill] sm:$0xff]  ;;  %4816 = vpow2.f32 %v3537_v33  ;;  %v3418_v15 = vadd.f32 %v3410_v45, %v3392_v18  ;;  %v3333_v17 = vmul.f32 %v7926_v6, %v3323_v4  ;;  %v9863_v18 = vld [vmem:[#allocation200_spill] sm:$0xff] }
 0x52f   : > { %v2950_v43 = vadd.f32 %v9858_v56, %v2924_v35  ;;  %v2640_v40 = vadd.f32 %v9859_v55, %v2614_v61  ;;  %v3211_v26 = vadd.f32 %v3203_v36, %v3184_v59  ;;  %v3375_v49 = vld [vmem:[#allocation4 + $0x84] sm:$0xff]  ;;  %v3359_v35 = vmul.f32 %v9845_v30, %v3349_v5 }
 0x530   : > { %v3401_v60 = vld [vmem:[#allocation5 + $0x84] sm:$0xff]  ;;  %v3444_v25 = vadd.f32 %v3436_v46, %v3418_v15  ;;  %v3385_v61 = vmul.f32 %v9846_v9, %v3375_v49  ;;  %v3020_v27 = vmul.f32 %v3375_v49, %v7848_v8 }
 0x531   : > { %v9860_v48 = vld [vmem:[#allocation34_spill] sm:$0xff]  ;;  %v2976_v21 = vadd.f32 %v2968_v37, %v2950_v43  ;;  %v3237_v16 = vadd.f32 %v3229_v1, %v3211_v26  ;;  %v8216_v59 = vmul.f32 %v9847_v2, %v3401_v60  ;;  %v2666_v11 = vadd.f32 %v9863_v18, %v2640_v40  ;;  %v9865_v15 = vld [vmem:[#allocation146_spill] sm:$0xff] }
 0x532   : > { %v3005_v47 = vadd.f32 %v9860_v48, %v2979_v12  ;;  %v3427_v53 = vld [vmem:[#allocation4 + $0x85] sm:$0xff]  ;;  %v3470_v56 = vadd.f32 %v3462_v62, %v3444_v25  ;;  %v3046_v55 = vmul.f32 %v3401_v60, %v9772_v38  ;;  %v3317_v26 = vadd.f32 %v9865_v15, %v8168_v0  ;;  %v3222_v48 = vld [vmem:[#allocation4 + $0xb1] sm:$0xff] }
 0x533   : > { %v3453_v45 = vld [vmem:[#allocation5 + $0x85] sm:$0xff]  ;;  %v3263_v46 = vadd.f32 %v3255_v42, %v3237_v16  ;;  %v8222_v1 = vmul.f32 %v9851_v39, %v3427_v53  ;;  %v3072_v25 = vmul.f32 %v3427_v53, %v7888_v23  ;;  %v3274_v16 = vld [vmem:[#allocation4 + $0xb2] sm:$0xff] }
 0x534   : > { %v3479_v36 = vld [vmem:[#allocation4 + $0x86] sm:$0xff]  ;;  %v3496_v49 = vadd.f32 %v3488_v19, %v3470_v56  ;;  %v8231_v62 = vmul.f32 %v8036_v50, %v3453_v45  ;;  %v3343_v60 = vadd.f32 %v8135_v32, %v3317_v26  ;;  %v3232_v19 = vmul.f32 %v7914_v20, %v3222_v48 }
 0x535   : > { %v9862_v12 = vld [vmem:[#allocation186_spill] sm:$0xff]  ;;  %v9864_v5 = vld [vmem:[#allocation133_spill] sm:$0xff]  ;;  %v8234_v42 = vmul.f32 %v8149_v51, %v3479_v36  ;;  %v3098_v56 = vmul.f32 %v3453_v45, %v9776_v41  ;;  %v3284_v26 = vmul.f32 %v7923_v54, %v3274_v16  ;;  %v3124_v48 = vmul.f32 %v3479_v36, %v7895_v44  ;;  %v3167_v45 = vld [vmem:[#allocation4 + $0x90] sm:$0xff] }
 0x536   : > { %v3002_v33 = vadd.f32 %v9862_v12, %v2976_v21  ;;  %v3505_v4 = vld [vmem:[#allocation5 + $0x86] sm:$0xff]  ;;  %v8225_v43 = vadd.f32 %v9864_v5, %v3005_v47  ;;  %v3289_v21 = vadd.f32 %v3281_v34, %v3263_v46  ;;  %v3522_v0 = vadd.f32 %v8193_v31, %v3496_v49 }
 0x537   : > { %v8237_v40 = vmul.f32 %v8155_v24, %v3505_v4  ;;  %v3258_v34 = vmul.f32 %v9840_v52, %v3248_v7  ;;  %v9867_v46 = vld [vmem:[#allocation126_spill] sm:$0xff]  ;;  %v3240_v32 = vadd.f32 %v3232_v19, %v3214_v13  ;;  %v3387_v7 = vmul.f32 %v9846_v9, %v8041_v58 }
 0x538   : > { %v3028_v37 = vadd.f32 %v3020_v27, %v3002_v33  ;;  %v3315_v12 = vadd.f32 %v3307_v63, %v3289_v21  ;;  %v9866_v33 = vld [vmem:[#allocation210_spill] sm:$0xff]  ;;  %v3369_v5 = vadd.f32 %v9867_v46, %v3343_v60  ;;  %v3530_v53 = vsub.f32 0.0, %v3522_v0  ;;  %v3352_v0 = vld [vmem:[#allocation5 + $0xb3] sm:$0xff] }
 0x539   : > { %v2692_v27 = vadd.f32 %v9866_v33, %v2666_v11  ;;  %v3326_v11 = vld [vmem:[#allocation4 + $0xb3] sm:$0xff]  ;;  %v3150_v13 = vmul.f32 %v3505_v4, %v9777_v3  ;;  %v3177_v46 = vmul.f32 %v7907_v28, %v3167_v45 }
 0x53a   : > { %v3054_v47 = vadd.f32 %v3046_v55, %v3028_v37  ;;  %v3300_v37 = vld [vmem:[#allocation5 + $0xb2] sm:$0xff]  ;;  %v4817_v55 = vpop.eup %4816  ;;  %v3341_v15 = vadd.f32 %v3333_v17, %v3315_v12  ;;  %v3539_v49 = vmul.f32 1.442695, %v3530_v53  ;;  %v3395_v16 = vadd.f32 %v3387_v7, %v3369_v5 }
 0x53b   : > { %v3553_v31 = vadd.f32 1.0, %v4817_v55  ;;  %v3310_v60 = vmul.f32 %v9844_v22, %v3300_v37  ;;  %v3404_v12 = vld [vmem:[#allocation5 + $0xb4] sm:$0xff]  ;;  %v3336_v58 = vmul.f32 %v7926_v6, %v3326_v11  ;;  %v3362_v53 = vmul.f32 %v9845_v30, %v3352_v0 }
 0x53c   : > { %v3080_v18 = vadd.f32 %v3072_v25, %v3054_v47  ;;  %v3367_v21 = vadd.f32 %v3359_v35, %v3341_v15  ;;  %v3194_v47 = vld [vmem:[#allocation5 + $0x90] sm:$0xff]  ;;  %v3266_v25 = vadd.f32 %v3258_v34, %v3240_v32  ;;  %v9869_v32 = vld [vmem:[#allocation230_spill] sm:$0xff] }
 0x53d   : > { %4818 = vrcp.f32 %v3553_v31  ;;  %v3378_v33 = vld [vmem:[#allocation4 + $0xb4] sm:$0xff]  ;;  %v3204_v37 = vmul.f32 %v9834_v57, %v3194_v47 }
 0x53e   : > { %v3106_v63 = vadd.f32 %v3098_v56, %v3080_v18  ;;  %4820 = vpow2.f32 %v3539_v49  ;;  %v3393_v36 = vadd.f32 %v3385_v61, %v3367_v21  ;;  %v3292_v19 = vadd.f32 %v3284_v26, %v3266_v25  ;;  %v3430_v18 = vld [vmem:[#allocation4 + $0xb5] sm:$0xff] }
 0x53f   : > { %v9868_v35 = vld [vmem:[#allocation32_spill] sm:$0xff]  ;;  %v3049_v61 = vmul.f32 %v3404_v12, %v9772_v38  ;;  %v3421_v26 = vadd.f32 %v9869_v32, %v3395_v16  ;;  %v3388_v31 = vmul.f32 %v9846_v9, %v3378_v33  ;;  %v3170_v32 = vld [vmem:[#allocation4 + $0xc0] sm:$0xff] }
 0x540   : > { %v3132_v17 = vadd.f32 %v3124_v48, %v3106_v63  ;;  %v8255_v56 = vadd.f32 %v9868_v35, %v2692_v27  ;;  %v3419_v4 = vadd.f32 %v8216_v59, %v3393_v36  ;;  %v3220_v5 = vld [vmem:[#allocation4 + $0x91] sm:$0xff]  ;;  %v3318_v55 = vadd.f32 %v3310_v60, %v3292_v19 }
 0x541   : > { %v8264_v27 = vld [vmem:[#allocation5 + $0xb5] sm:$0xff]  ;;  %v3075_v48 = vmul.f32 %v3430_v18, %v7888_v23  ;;  %v3057_v21 = vadd.f32 %v3049_v61, %v8225_v43  ;;  %v3230_v25 = vmul.f32 %v7914_v20, %v3220_v5  ;;  %v3439_v60 = vmul.f32 %v9851_v39, %v8058_v14 }
 0x542   : > { %v3158_v34 = vadd.f32 %v3150_v13, %v3132_v17  ;;  %v8266_v63 = vld [vmem:[#allocation4 + $0xb6] sm:$0xff]  ;;  %v3445_v7 = vadd.f32 %v8222_v1, %v3419_v4  ;;  %v3344_v49 = vadd.f32 %v3336_v58, %v3318_v55  ;;  %v3101_v45 = vmul.f32 %v8264_v27, %v9776_v41 }
 0x543   : > { %v3246_v59 = vld [vmem:[#allocation5 + $0x91] sm:$0xff]  ;;  %v3414_v17 = vmul.f32 %v9847_v2, %v3404_v12  ;;  %v3083_v0 = vadd.f32 %v3075_v48, %v3057_v21  ;;  %v3127_v36 = vmul.f32 %v8266_v63, %v7895_v44  ;;  %v3447_v33 = vadd.f32 %v3439_v60, %v3421_v26 }
 0x544   : > { %v3185_v15 = vadd.f32 %v3177_v46, %v3158_v34  ;;  %v3272_v11 = vld [vmem:[#allocation4 + $0x92] sm:$0xff]  ;;  %v3471_v13 = vadd.f32 %v8231_v62, %v3445_v7  ;;  %v3370_v1 = vadd.f32 %v3362_v53, %v3344_v49  ;;  %v3256_v19 = vmul.f32 %v9840_v52, %v3246_v59  ;;  %v4853_v53 = vld [vmem:[#allocation5 + $0xa5] sm:$0xff] }
 0x545   : > { %v3298_v16 = vld [vmem:[#allocation5 + $0x92] sm:$0xff]  ;;  %v3282_v58 = vmul.f32 %v7923_v54, %v3272_v11  ;;  %v3109_v62 = vadd.f32 %v3101_v45, %v3083_v0  ;;  %v3465_v61 = vmul.f32 %v4853_v53, %v8036_v50  ;;  %v3180_v7 = vmul.f32 %v7907_v28, %v3170_v32  ;;  %v3197_v45 = vld [vmem:[#allocation5 + $0xc0] sm:$0xff] }
 0x546   : > { %v3212_v47 = vadd.f32 %v3204_v37, %v3185_v15  ;;  %v8282_v35 = vld [vmem:[#allocation5 + $0xb6] sm:$0xff]  ;;  %v3497_v14 = vadd.f32 %v8234_v42, %v3471_v13  ;;  %v3396_v46 = vadd.f32 %v3388_v31, %v3370_v1  ;;  %v3308_v55 = vmul.f32 %v9844_v22, %v3298_v16  ;;  %v3223_v1 = vld [vmem:[#allocation4 + $0xc1] sm:$0xff] }
 0x547   : > { %v3324_v34 = vld [vmem:[#allocation4 + $0x93] sm:$0xff]  ;;  %v3153_v37 = vmul.f32 %v8282_v35, %v9777_v3  ;;  %v4819_v4 = vpop.eup %4818  ;;  %v3440_v15 = vmul.f32 %v9851_v39, %v3430_v18  ;;  %v3135_v31 = vadd.f32 %v3127_v36, %v3109_v62  ;;  %v3473_v60 = vadd.f32 %v3465_v61, %v3447_v33 }
 0x548   : > { %v3238_v43 = vadd.f32 %v3230_v25, %v3212_v47  ;;  %v3350_v12 = vld [vmem:[#allocation5 + $0x93] sm:$0xff]  ;;  %v4821_v26 = vpop.eup %4820  ;;  %3579 = vperm.xlu0 %4716, %v4819_v4   ;;  %v3523_v42 = vadd.f32 %v8237_v40, %v3497_v14  ;;  %v3422_v48 = vadd.f32 %v3414_v17, %v3396_v46  ;;  %v3334_v49 = vmul.f32 %v7926_v6, %v3324_v34  ;;  %v3507_v34 = vld [vmem:[#allocation5 + $0xa6] sm:$0xff] }
 0x549   : > { %v3554_v59 = vadd.f32 1.0, %v4821_v26  ;;  %v3360_v21 = vmul.f32 %v9845_v30, %v3350_v12  ;;  %v3376_v25 = vld [vmem:[#allocation4 + $0x94] sm:$0xff]  ;;  %v3161_v18 = vadd.f32 %v3153_v37, %v3135_v31  ;;  %v3207_v13 = vmul.f32 %v9834_v57, %v3197_v45  ;;  %v3249_v46 = vld [vmem:[#allocation5 + $0xc1] sm:$0xff] }
 0x54a   : > { %v3264_v5 = vadd.f32 %v3256_v19, %v3238_v43  ;;  %v3531_v47 = vsub.f32 0.0, %v3523_v42  ;;  %v3448_v40 = vadd.f32 %v3440_v15, %v3422_v48  ;;  %v3466_v17 = vmul.f32 %v8036_v50, %v8264_v27  ;;  %v3402_v14 = vld [vmem:[#allocation5 + $0x94] sm:$0xff]  ;;  %v3275_v15 = vld [vmem:[#allocation4 + $0xc2] sm:$0xff] }
 0x54b   : > { %4822 = vrcp.f32 %v3554_v59  ;;  %v3491_v36 = vmul.f32 %v8149_v51, %v8060_v10  ;;  %v3188_v43 = vadd.f32 %v3180_v7, %v3161_v18  ;;  %v3233_v19 = vmul.f32 %v7914_v20, %v3223_v1  ;;  %v9870_v62 = vld [vmem:[#allocation95_spill] sm:$0xff]  ;;  %v9871_v42 = vld [vmem:[#allocation96_spill] sm:$0xff] }
 0x54c   : > { %v3290_v11 = vadd.f32 %v3282_v58, %v3264_v5  ;;  %v3541_v0 = vmul.f32 1.442695, %v3531_v47  ;;  %v3386_v33 = vmul.f32 %v9846_v9, %v3376_v25  ;;  %v3492_v12 = vmul.f32 %v8149_v51, %v8266_v63  ;;  %v3428_v4 = vld [vmem:[#allocation4 + $0x95] sm:$0xff] }
 0x54d   : > { %v2736_v37 = vmul.f32 %v8264_v27, %v9870_v62  ;;  %v3499_v5 = vadd.f32 %v3491_v36, %v3473_v60  ;;  %v3259_v10 = vmul.f32 %v9840_v52, %v3249_v46  ;;  %v3474_v61 = vadd.f32 %v3466_v17, %v3448_v40  ;;  %v9872_v47 = vld [vmem:[#allocation131_spill] sm:$0xff]  ;;  %v9873_v25 = vld [vmem:[#allocation232_spill] sm:$0xff] }
 0x54e   : > { %v3316_v16 = vadd.f32 %v3308_v55, %v3290_v11  ;;  %4824 = vpow2.f32 %v3541_v0  ;;  %v3215_v55 = vadd.f32 %v3207_v13, %v3188_v43  ;;  %v2788_v48 = vmul.f32 %v8282_v35, %v9871_v42  ;;  %v3454_v18 = vld [vmem:[#allocation5 + $0x95] sm:$0xff]  ;;  %v3327_v43 = vld [vmem:[#allocation4 + $0xc3] sm:$0xff] }
 0x54f   : > { %v2744_v26 = vadd.f32 %v2736_v37, %v8255_v56  ;;  %v3412_v63 = vmul.f32 %v9847_v2, %v3402_v14  ;;  %v3517_v31 = vmul.f32 %v8155_v24, %v3507_v34  ;;  %v3285_v27 = vmul.f32 %v7923_v54, %v3275_v15  ;;  %v3480_v0 = vld [vmem:[#allocation4 + $0x96] sm:$0xff] }
 0x550   : > { %v3342_v58 = vadd.f32 %v3334_v49, %v3316_v16  ;;  %v3241_v7 = vadd.f32 %v3233_v19, %v3215_v55  ;;  %v3438_v11 = vmul.f32 %v9851_v39, %v3428_v4  ;;  %v3301_v49 = vld [vmem:[#allocation5 + $0xc2] sm:$0xff]  ;;  %v2815_v60 = vmul.f32 %v3170_v32, %v9873_v25  ;;  %v3506_v4 = vld [vmem:[#allocation5 + $0x96] sm:$0xff] }
 0x551   : > { %v3525_v56 = vadd.f32 %v3517_v31, %v3499_v5  ;;  %v3518_v13 = vmul.f32 %v8155_v24, %v8282_v35  ;;  %v3311_v40 = vmul.f32 %v9844_v22, %v3301_v49  ;;  %v3500_v36 = vadd.f32 %v3492_v12, %v3474_v61  ;;  %v3353_v5 = vld [vmem:[#allocation5 + $0xc3] sm:$0xff] }
 0x552   : > { %v3368_v53 = vadd.f32 %v3360_v21, %v3342_v58  ;;  %v2770_v21 = vadd.f32 %v9872_v47, %v2744_v26  ;;  %v3267_v16 = vadd.f32 %v3259_v10, %v3241_v7  ;;  %v9874_v58 = vld [vmem:[#allocation97_spill] sm:$0xff]  ;;  %v3337_v34 = vmul.f32 %v7926_v6, %v3327_v43  ;;  %v9876_v31 = vld [vmem:[#allocation98_spill] sm:$0xff] }
 0x553   : > { %v3464_v37 = vmul.f32 %v8036_v50, %v3454_v18  ;;  %v9875_v55 = vld [vmem:[#allocation245_spill] sm:$0xff]  ;;  %v3533_v12 = vsub.f32 0.0, %v3525_v56  ;;  %v3363_v26 = vmul.f32 %v9845_v30, %v3353_v5  ;;  %v3526_v42 = vadd.f32 %v3518_v13, %v3500_v36  ;;  %v9877_v18 = vld [vmem:[#allocation220_spill] sm:$0xff] }
 0x554   : > { %v3394_v59 = vadd.f32 %v3386_v33, %v3368_v53  ;;  %v2796_v19 = vadd.f32 %v2788_v48, %v2770_v21  ;;  %v2842_v33 = vmul.f32 %v3197_v45, %v9874_v58  ;;  %v3293_v14 = vadd.f32 %v3285_v27, %v3267_v16  ;;  %v3379_v48 = vld [vmem:[#allocation4 + $0xc4] sm:$0xff] }
 0x555   : > { %v4823_v62 = vpop.eup %4822  ;;  %v2868_v10 = vmul.f32 %v3223_v1, %v9875_v55  ;;  %v3490_v53 = vmul.f32 %v8149_v51, %v3480_v0  ;;  %v2894_v7 = vmul.f32 %v3249_v46, %v9876_v31  ;;  %v3389_v47 = vmul.f32 %v9846_v9, %v3379_v48  ;;  %v3405_v25 = vld [vmem:[#allocation5 + $0xc4] sm:$0xff] }
 0x556   : > { %v3420_v17 = vadd.f32 %v3412_v63, %v3394_v59  ;;  %v2823_v35 = vadd.f32 %v2815_v60, %v2796_v19  ;;  %3584 = vperm.xlu1 %4717, %v4823_v62   ;;  %v3319_v61 = vadd.f32 %v3311_v40, %v3293_v14  ;;  %v3516_v59 = vmul.f32 %v8155_v24, %v3506_v4  ;;  %v3431_v19 = vld [vmem:[#allocation4 + $0xc5] sm:$0xff] }
 0x557   : > { %v2920_v56 = vmul.f32 %v3275_v15, %v9877_v18  ;;  %v3545_v16 = vmul.f32 1.442695, %v3533_v12  ;;  %v3415_v13 = vmul.f32 %v9847_v2, %v3405_v25  ;;  %v3534_v36 = vsub.f32 0.0, %v3526_v42  ;;  %v3457_v62 = vld [vmem:[#allocation5 + $0xc5] sm:$0xff] }
 0x558   : > { %v3446_v32 = vadd.f32 %v3438_v11, %v3420_v17  ;;  %v2850_v63 = vadd.f32 %v2842_v33, %v2823_v35  ;;  %v4825_v27 = vpop.eup %4824  ;;  %v3345_v11 = vadd.f32 %v3337_v34, %v3319_v61  ;;  %v9878_v17 = vld [vmem:[#allocation99_spill] sm:$0xff]  ;;  %v3441_v14 = vmul.f32 %v9851_v39, %v3431_v19 }
 0x559   : > { %v3555_v1 = vadd.f32 1.0, %v4825_v27  ;;  %v2946_v0 = vmul.f32 %v3301_v49, %v9878_v17  ;;  %v3467_v4 = vmul.f32 %v8036_v50, %v3457_v62  ;;  %v3547_v55 = vmul.f32 1.442695, %v3534_v36  ;;  %v3483_v49 = vld [vmem:[#allocation4 + $0xc6] sm:$0xff] }
 0x55a   : > { %v3472_v45 = vadd.f32 %v3464_v37, %v3446_v32  ;;  %v2876_v60 = vadd.f32 %v2868_v10, %v2850_v63  ;;  %v3371_v40 = vadd.f32 %v3363_v26, %v3345_v11  ;;  %v2972_v37 = vmul.f32 %v3327_v43, %v7788_v29 }
 0x55b   : > { %4826 = vrcp.f32 %v3555_v1  ;;  %v3493_v26 = vmul.f32 %v8149_v51, %v3483_v49  ;;  %v3024_v63 = vmul.f32 %v3379_v48, %v7848_v8  ;;  %v3128_v48 = vmul.f32 %v3483_v49, %v7895_v44 }
 0x55c   : > { %v3498_v21 = vadd.f32 %v3490_v53, %v3472_v45  ;;  %v2902_v58 = vadd.f32 %v2894_v7, %v2876_v60  ;;  %v3397_v33 = vadd.f32 %v3389_v47, %v3371_v40  ;;  %4828 = vpow2.f32 %v3545_v16  ;;  %v9879_v53 = vld [vmem:[#allocation100_spill] sm:$0xff]  ;;  %v3509_v45 = vld [vmem:[#allocation5 + $0xc6] sm:$0xff]  ;;  %v3171_v16 = vld [vmem:[#allocation4 + $0xd0] sm:$0xff] }
 0x55d   : > { %v2998_v12 = vmul.f32 %v3353_v5, %v9879_v53  ;;  %v3519_v29 = vmul.f32 %v8155_v24, %v3509_v45  ;;  %v3050_v7 = vmul.f32 %v3405_v25, %v9772_v38  ;;  %v3076_v5 = vmul.f32 %v3431_v19, %v7888_v23  ;;  %v3198_v23 = vld [vmem:[#allocation5 + $0xd0] sm:$0xff] }
 0x55e   : > { %v3524_v46 = vadd.f32 %v3516_v59, %v3498_v21  ;;  %v2928_v32 = vadd.f32 %v2920_v56, %v2902_v58  ;;  %v3423_v15 = vadd.f32 %v3415_v13, %v3397_v33  ;;  %v3102_v21 = vmul.f32 %v3457_v62, %v9776_v41  ;;  %v3224_v41 = vld [vmem:[#allocation4 + $0xd1] sm:$0xff] }
 0x55f   : > { %v3154_v38 = vmul.f32 %v3509_v45, %v9777_v3  ;;  %v3181_v36 = vmul.f32 %v7907_v28, %v3171_v16  ;;  %v3208_v58 = vmul.f32 %v9834_v57, %v3198_v23  ;;  %v3250_v33 = vld [vmem:[#allocation5 + $0xd1] sm:$0xff] }
 0x560   : > { %v3532_v34 = vsub.f32 0.0, %v3524_v46  ;;  %v2954_v10 = vadd.f32 %v2946_v0, %v2928_v32  ;;  %v3449_v61 = vadd.f32 %v3441_v14, %v3423_v15  ;;  %v3276_v3 = vld [vmem:[#allocation4 + $0xd2] sm:$0xff]  ;;  %v3260_v32 = vmul.f32 %v9840_v52, %v3250_v33 }
 0x561   : > { %v3286_v28 = vmul.f32 %v7923_v54, %v3276_v3  ;;  %v3354_v53 = vld [vmem:[#allocation5 + $0xd3] sm:$0xff] }
 0x562   : > { %v3543_v35 = vmul.f32 1.442695, %v3532_v34  ;;  %v2980_v42 = vadd.f32 %v2972_v37, %v2954_v10  ;;  %v3475_v31 = vadd.f32 %v3467_v4, %v3449_v61  ;;  %v3234_v34 = vmul.f32 %v7914_v20, %v3224_v41  ;;  %v3302_v37 = vld [vmem:[#allocation5 + $0xd2] sm:$0xff]  ;;  %v4750_v41 = vld [vmem:[%s9880_s30 + $0x60] ss:$16 sps:$4 sm:$0xff]  }
 0x563   : > { %v3312_v57 = vmul.f32 %v9844_v22, %v3302_v37  ;;  %v3380_v52 = vld [vmem:[#allocation4 + $0xd4] sm:$0xff]  ;;  %v3364_v45 = vmul.f32 %v9845_v30, %v3354_v53  ;;  %v4762_v37 = vld [vmem:[%s9880_s30 + $0xa0] ss:$16 sps:$4 sm:$0xff]  }
 0x564   : > { %4830 = vpow2.f32 %v3543_v35  ;;  %v3006_v43 = vadd.f32 %v2998_v12, %v2980_v42  ;;  %v3501_v27 = vadd.f32 %v3493_v26, %v3475_v31  ;;  %v3328_v35 = vld [vmem:[#allocation4 + $0xd3] sm:$0xff] }
 0x565   : > { %4832 = vpow2.f32 %v3547_v55  ;;  %v4827_v59 = vpop.eup %4826  ;;  %v3338_v12 = vmul.f32 %v7926_v6, %v3328_v35  ;;  %v3406_v42 = vld [vmem:[#allocation5 + $0xd4] sm:$0xff]  ;;  %v4768_v35 = vld [vmem:[%s9880_s30 + $0xc0] ss:$16 sps:$4 sm:$0xff]  }
 0x566   : > { %v3032_v11 = vadd.f32 %v3024_v63, %v3006_v43  ;;  %3589 = vperm.xlu1 %4717, %v4827_v59   ;;  %v3527_v47 = vadd.f32 %v3519_v29, %v3501_v27  ;;  %v4829_v60 = vpop.eup %4828  ;;  %v3390_v63 = vmul.f32 %v9846_v9, %v3380_v52  ;;  %v3432_v29 = vld [vmem:[#allocation4 + $0xd5] sm:$0xff]  ;;  %v3416_v43 = vmul.f32 %v9847_v2, %v3406_v42 }
 0x567   : > { %v3557_v17 = vadd.f32 1.0, %v4829_v60  ;;  %v4734_v6 = vld [vmem:[%s9880_s30 + $0x4] ss:$16 sps:$4 sm:$0xff]   ;;  %v4735_v30 = vld [vmem:[%s9880_s30 + $0x8] ss:$16 sps:$4 sm:$0xff]   ;;  %v3442_v2 = vmul.f32 %v9851_v39, %v3432_v29 }
 0x568   : > { %v3058_v1 = vadd.f32 %v3050_v7, %v3032_v11  ;;  %v3535_v18 = vsub.f32 0.0, %v3527_v47  ;;  %v4732_v7 = vld [vmem:[%s9880_s30] ss:$16 sps:$4 sm:$0xff]   ;;  %v3458_v27 = vld [vmem:[#allocation5 + $0xd5] sm:$0xff]  ;;  %3854 = vmatprep.subr.bf16.mxu0 %v4734_v6 }
 0x569   : > { %v4737_v9 = vld [vmem:[%s9880_s30 + $0xc] ss:$16 sps:$4 sm:$0xff]   ;;  %3855 = vmatpush1.bf16.msra.mxu0 %v4732_v7  ;;  %v4740_v60 = vld [vmem:[%s9880_s30 + $0x24] ss:$16 sps:$4 sm:$0xff]   ;;  %v4741_v39 = vld [vmem:[%s9880_s30 + $0x28] ss:$16 sps:$4 sm:$0xff]  }
 0x56a   : > { %v3084_v8 = vadd.f32 %v3076_v5, %v3058_v1  ;;  %v3549_v56 = vmul.f32 1.442695, %v3535_v18  ;;  %v3484_v11 = vld [vmem:[#allocation4 + $0xd6] sm:$0xff]  ;;  %3895 = vmatprep.subr.bf16.mxu1 %v4737_v9  ;;  %v3468_v1 = vmul.f32 %v8036_v50, %v3458_v27  ;;  %3856 = vmatprep.subr.bf16.mxu0 %v4740_v60  ;;  %v4758_v33 = vld [vmem:[%s9880_s30 + $0x84] ss:$16 sps:$4 sm:$0xff]  }
 0x56b   : > { %3896 = vmatpush1.bf16.msra.mxu1 %v4735_v30  ;;  %v3510_v18 = vld [vmem:[#allocation5 + $0xd6] sm:$0xff]  ;;  %v9883_v29 = vld [vmem:[#allocation22_spill] sm:$0xff] }
 0x56c   : > { %v3110_v13 = vadd.f32 %v3102_v21, %v3084_v8  ;;  %4834 = vpow2.f32 %v3549_v56  ;;  %v4738_v21 = vld [vmem:[%s9880_s30 + $0x20] ss:$16 sps:$4 sm:$0xff]   ;;  %v4743_v8 = vld [vmem:[%s9880_s30 + $0x2c] ss:$16 sps:$4 sm:$0xff]   ;;  %v3520_v16 = vmul.f32 %v8155_v24, %v3510_v18  ;;  %v4759_v3 = vld [vmem:[%s9880_s30 + $0x88] ss:$16 sps:$4 sm:$0xff]  }
 0x56d   : > { %3897 = vmatprep.subr.bf16.mxu1 %v4743_v8  ;;  %3857 = vmatpush1.bf16.msra.mxu0 %v4738_v21  ;;  %v4777_v53 = vld [vmem:[%s9880_s30 + $0xe8] ss:$16 sps:$4 sm:$0xff]  }
 0x56e   : > { %v4831_v40 = vpop.eup %4830  ;;  %v3136_v46 = vadd.f32 %v3128_v48, %v3110_v13  ;;  %v3494_v48 = vmul.f32 %v8149_v51, %v3484_v11  ;;  %v4746_v13 = vld [vmem:[%s9880_s30 + $0x44] ss:$16 sps:$4 sm:$0xff]   ;;  %v4749_v51 = vld [vmem:[%s9880_s30 + $0x4c] ss:$16 sps:$4 sm:$0xff]  }
 0x56f   : > { %v3556_v25 = vadd.f32 1.0, %v4831_v40  ;;  %v4833_v0 = vpop.eup %4832  ;;  %3898 = vmatpush1.bf16.msra.mxu1 %v4741_v39  ;;  %v4744_v40 = vld [vmem:[%s9880_s30 + $0x40] ss:$16 sps:$4 sm:$0xff]   ;;  %3858 = vmatprep.subr.bf16.mxu0 %v4746_v13 }
 0x570   : > { %v3162_v19 = vadd.f32 %v3154_v38, %v3136_v46  ;;  %v3558_v44 = vadd.f32 1.0, %v4833_v0  ;;  %v4747_v38 = vld [vmem:[%s9880_s30 + $0x48] ss:$16 sps:$4 sm:$0xff]   ;;  %3899 = vmatprep.subr.bf16.mxu1 %v4749_v51 }
 0x571   : > { %4836 = vrcp.f32 %v3556_v25  ;;  %3859 = vmatpush1.bf16.msra.mxu0 %v4744_v40  ;;  %v9884_v7 = vld [vmem:[#allocation25_spill] sm:$0xff]  ;;  %v9885_v27 = vld [vmem:[#allocation26_spill] sm:$0xff]  ;;  %v9886_v11 = vld [vmem:[#allocation27_spill] sm:$0xff] }
 0x572   : > { %4838 = vrcp.f32 %v3557_v17  ;;  %v3189_v14 = vadd.f32 %v3181_v36, %v3162_v19  ;;  %v4752_v19 = vld [vmem:[%s9880_s30 + $0x64] ss:$16 sps:$4 sm:$0xff]   ;;  %v9888_v8 = vld [vmem:[#allocation29_spill] sm:$0xff] }
 0x573   : > { %4840 = vrcp.f32 %v3558_v44  ;;  %3900 = vmatpush1.bf16.msra.mxu1 %v4747_v38  ;;  %v4755_v44 = vld [vmem:[%s9880_s30 + $0x6c] ss:$16 sps:$4 sm:$0xff]   ;;  %3860 = vmatprep.subr.bf16.mxu0 %v4752_v19 }
 0x574   : > { %v3216_v62 = vadd.f32 %v3208_v58, %v3189_v14  ;;  %v4753_v58 = vld [vmem:[%s9880_s30 + $0x68] ss:$16 sps:$4 sm:$0xff]   ;;  %v4761_v14 = vld [vmem:[%s9880_s30 + $0x8c] ss:$16 sps:$4 sm:$0xff]   ;;  %3901 = vmatprep.subr.bf16.mxu1 %v4755_v44  ;;  %v4788_v44 = vld [vmem:[%s9889_s16 + $0x50] sm:$0xff]  }
 0x575   : > { %3861 = vmatpush1.bf16.msra.mxu0 %v4750_v41  ;;  %v4785_v41 = vld [vmem:[%s9889_s16 + $0xc8] sm:$0xff]  }
 0x576   : > { %v3242_v15 = vadd.f32 %v3234_v34, %v3216_v62  ;;  %v4835_v4 = vpop.eup %4834  ;;  %v4756_v34 = vld [vmem:[%s9880_s30 + $0x80] ss:$16 sps:$4 sm:$0xff]   ;;  %3862 = vmatprep.subr.bf16.mxu0 %v4758_v33  ;;  %v4764_v62 = vld [vmem:[%s9880_s30 + $0xa4] ss:$16 sps:$4 sm:$0xff]   ;;  %v4786_v19 = vld [vmem:[%s9889_s16 + $0x8] sm:$0xff]  }
 0x577   : > { %v3559_v55 = vadd.f32 1.0, %v4835_v4  ;;  %3902 = vmatpush1.bf16.msra.mxu1 %v4753_v58  ;;  %v4773_v4 = vld [vmem:[%s9880_s30 + $0xcc] ss:$16 sps:$4 sm:$0xff]   ;;  %v4789_v33 = vld [vmem:[%s9889_s16 + $0xd0] sm:$0xff]  }
 0x578   : > { %v3268_v49 = vadd.f32 %v3260_v32, %v3242_v15  ;;  %3903 = vmatprep.subr.bf16.mxu1 %v4761_v14  ;;  %v4767_v32 = vld [vmem:[%s9880_s30 + $0xac] ss:$16 sps:$4 sm:$0xff]   ;;  %v4765_v15 = vld [vmem:[%s9880_s30 + $0xa8] ss:$16 sps:$4 sm:$0xff]   ;;  %v4790_v14 = vld [vmem:[%s9889_s16 + $0x10] sm:$0xff]  }
 0x579   : > { %4842 = vrcp.f32 %v3559_v55  ;;  %3863 = vmatpush1.bf16.msra.mxu0 %v4756_v34  ;;  %v4771_v55 = vld [vmem:[%s9880_s30 + $0xc8] ss:$16 sps:$4 sm:$0xff]   ;;  %v4791_v34 = vld [vmem:[%s9889_s16 + $0x90] sm:$0xff]  }
 0x57a   : > { %v3294_v20 = vadd.f32 %v3286_v28, %v3268_v49  ;;  %3864 = vmatprep.subr.bf16.mxu0 %v4764_v62  ;;  %v4770_v28 = vld [vmem:[%s9880_s30 + $0xc4] ss:$16 sps:$4 sm:$0xff]   ;;  %v4787_v58 = vld [vmem:[%s9889_s16 + $0x88] sm:$0xff]   ;;  %v4793_v62 = vld [vmem:[%s9889_s16 + $0xd8] sm:$0xff]  }
 0x57b   : > { %v4837_v10 = vpop.eup %4836  ;;  %3904 = vmatpush1.bf16.msra.mxu1 %v4759_v3  ;;  %v4776_v49 = vld [vmem:[%s9880_s30 + $0xe4] ss:$16 sps:$4 sm:$0xff]   ;;  %v4792_v3 = vld [vmem:[%s9889_s16 + $0x58] sm:$0xff]  }
 0x57c   : > { %3594 = vperm.xlu1 %4717, %v4837_v10   ;;  %v4839_v61 = vpop.eup %4838  ;;  %v3320_v26 = vadd.f32 %v3312_v57, %v3294_v20  ;;  %3905 = vmatprep.subr.bf16.mxu1 %v4767_v32  ;;  %v4779_v57 = vld [vmem:[%s9880_s30 + $0xec] ss:$16 sps:$4 sm:$0xff]   ;;  %v4774_v10 = vld [vmem:[%s9880_s30 + $0xe0] ss:$16 sps:$4 sm:$0xff]  }
 0x57d   : > { %v4841_v31 = vpop.eup %4840  ;;  %3865 = vmatpush1.bf16.msra.mxu0 %v4762_v37  ;;  %v4794_v32 = vld [vmem:[%s9889_s16 + $0x18] sm:$0xff]  }
 0x57e   : > { %v3346_v54 = vadd.f32 %v3338_v12, %v3320_v26  ;;  %3866 = vmatprep.subr.bf16.mxu0 %v4770_v28  ;;  %v4795_v37 = vld [vmem:[%s9889_s16 + $0x98] sm:$0xff]  }
 0x57f   : > { %3906 = vmatpush1.bf16.msra.mxu1 %v4765_v15  ;;  %v9890_v15 = vld [vmem:[#allocation17_spill] sm:$0xff] }
 0x580   : > { %3599 = vperm.xlu1 %4717, %v4839_v61   ;;  %v3372_v22 = vadd.f32 %v3364_v45, %v3346_v54  ;;  %3907 = vmatprep.subr.bf16.mxu1 %v4773_v4  ;;  %v9881_v45 = vld [vmem:[#allocation24_spill] sm:$0xff]  ;;  %v3844_v28 = vsub.s32 2, %v9890_v15  ;;  %v3672_v4 = vld [vmem:[%s9891_s0] sm:$0xf] }
 0x581   : > { %3867 = vmatpush1.bf16.msra.mxu0 %v4768_v35  ;;  %v3840_v35 = vsub.s32 1, %v9890_v15 }
 0x582   : > { %v3398_v59 = vadd.f32 %v3390_v63, %v3372_v22  ;;  %3868 = vmatprep.subr.bf16.mxu0 %v4776_v49  ;;  %v9882_v63 = vld [vmem:[#allocation23_spill] sm:$0xff] }
 0x583   : > { %v4843_v5 = vpop.eup %4842  ;;  %3908 = vmatpush1.bf16.msra.mxu1 %v4771_v55  ;;  %v3848_v55 = vsub.s32 3, %v9890_v15  ;;  %v9892_v49 = vld [vmem:[#allocation19_spill] sm:$0xff] }
 0x584   : > { %3604 = vperm.xlu1 %4717, %v4841_v31   ;;  %v3424_v47 = vadd.f32 %v3416_v43, %v3398_v59  ;;  %3909 = vmatprep.subr.bf16.mxu1 %v4779_v57  ;;  %v3837_v57 = vrot.slane %v3672_v4, %v9892_v49 }
 0x585   : > { %3869 = vmatpush1.bf16.msra.mxu0 %v4774_v10  ;;  %v3845_v10 = vrot.slane %v3672_v4, %v3844_v28 }
 0x586   : > { %v3450_v50 = vadd.f32 %v3442_v2, %v3424_v47 }
 0x587   : > { %3910 = vmatpush1.bf16.msra.mxu1 %v4777_v53  ;;  %v3841_v53 = vrot.slane %v3672_v4, %v3840_v35 }
 0x588   : > { %3609 = vperm.xlu1 %4717, %v4843_v5   ;;  %v3476_v56 = vadd.f32 %v3468_v1, %v3450_v50  ;;  %v9887_v1 = vld [vmem:[#allocation28_spill] sm:$0xff] }
 0x58a   : > { %v3502_v25 = vadd.f32 %v3494_v48, %v3476_v56 }
 0x58c   : > { %v3528_v24 = vadd.f32 %v3520_v16, %v3502_v25 }
 0x58e   : > { %v3536_v17 = vsub.f32 0.0, %v3528_v24 }
 0x590   : > { %v3551_v23 = vmul.f32 1.442695, %v3536_v17  ;;  %v4780_v17 = vld [vmem:[%s9889_s16 + $0x40] sm:$0xff]  }
 0x591   : > { %4596 = vmatprep.subr.bf16.mxu0 %v4780_v17  ;;  %v4811_v17 = vld [vmem:[%s9889_s16 + $0xb8] sm:$0xff]  }
 0x592   : > { %4844 = vpow2.f32 %v3551_v23  ;;  %v4781_v23 = vld [vmem:[%s9889_s16 + $0xc0] sm:$0xff]  }
 0x593   : > { %4618 = vmatprep.subr.bf16.mxu1 %v4781_v23 }
 0x59c   : > { %v4845_v0 = vpop.eup %4844 }
 0x59d   : > { %v3560_v46 = vadd.f32 1.0, %v4845_v0  ;;  %v4782_v0 = vld [vmem:[%s9889_s16] sm:$0xff]  }
 0x59f   : > { %4846 = vrcp.f32 %v3560_v46  ;;  %v4783_v46 = vld [vmem:[%s9889_s16 + $0x80] sm:$0xff]  }
 0x5a9   : > { %v4847_v36 = vpop.eup %4846 }
 0x5aa   : > { %3614 = vperm.xlu1 %4717, %v4847_v36   ;;  %v4784_v36 = vld [vmem:[%s9889_s16 + $0x48] sm:$0xff]  }
 0x5c7   : > { %v3580_v26 = vpop.permute.xlu0 %3579 }
 0x5c8   : > { %v3617_v31 = vmul.f32 %v3580_v26, %v9882_v63 }
 0x5d5   : > { %v3585_v20 = vpop.permute.xlu1 %3584 }
 0x5d6   : > { %v3618_v42 = vmul.f32 %v3585_v20, %v9881_v45  ;;  %v3849_v20 = vrot.slane %v3672_v4, %v3848_v55 }
 0x5d8   : > { %v3625_v43 = vadd.f32 %v3618_v42, %v3617_v31 }
 0x5e5   : > { %v3590_v12 = vpop.permute.xlu1 %3589 }
 0x5e6   : > { %v3619_v22 = vmul.f32 %v3590_v12, %v9883_v29 }
 0x5e8   : > { %v3626_v30 = vadd.f32 %v3625_v43, %v3619_v22 }
 0x5fb   : > { %v3595_v61 = vpop.permute.xlu1 %3594 }
 0x5fc   : > { %v3620_v6 = vmul.f32 %v3595_v61, %v9884_v7 }
 0x5fe   : > { %v3627_v2 = vadd.f32 %v3626_v30, %v3620_v6 }
 0x5ff   : > { %v3600_v52 = vpop.permute.xlu1 %3599 }
 0x600   : > { %v3621_v9 = vmul.f32 %v3600_v52, %v9885_v27 }
 0x602   : > { %v3628_v47 = vadd.f32 %v3627_v2, %v3621_v9 }
 0x603   : > { %v3605_v54 = vpop.permute.xlu1 %3604 }
 0x604   : > { %v3622_v5 = vmul.f32 %v3605_v54, %v9886_v11 }
 0x606   : > { %v3629_v60 = vadd.f32 %v3628_v47, %v3622_v5 }
 0x607   : > { %v3610_v59 = vpop.permute.xlu1 %3609 }
 0x608   : > { %v3623_v21 = vmul.f32 %v3610_v59, %v9887_v1 }
 0x60a   : > { %v3630_v18 = vadd.f32 %v3629_v60, %v3623_v21  ;;  %v4796_v21 = vld [vmem:[%s9889_s16 + $0x60] sm:$0xff]  }
 0x60b   : > { %v4797_v60 = vld [vmem:[%s9889_s16 + $0xe0] sm:$0xff]  }
 0x629   : > { %v3615_v39 = vpop.permute.xlu1 %3614 }
 0x62a   : > { %v3624_v50 = vmul.f32 %v3615_v39, %v9888_v8  ;;  %v4798_v39 = vld [vmem:[%s9889_s16 + $0x20] sm:$0xff]   ;;  %v4800_v8 = vld [vmem:[%s9889_s16 + $0x68] sm:$0xff]  }
 0x62c   : > { %v3631_v48 = vadd.f32 %v3630_v18, %v3624_v50  ;;  %v4799_v18 = vld [vmem:[%s9889_s16 + $0xa0] sm:$0xff]   ;;  %v4801_v50 = vld [vmem:[%s9889_s16 + $0xe8] sm:$0xff]  }
 0x62e   : > { %v3632_v56 = vrot.slane %v3631_v48, 4 }
 0x630   : > { %v3633_v16 = vadd.f32 %v3632_v56, %v3631_v48  ;;  %v4802_v48 = vld [vmem:[%s9889_s16 + $0x28] sm:$0xff]  }
 0x631   : > { %v4803_v56 = vld [vmem:[%s9889_s16 + $0xa8] sm:$0xff]  }
 0x632   : > { %v3634_v40 = vrot.slane %v3633_v16, 2 }
 0x634   : > { %v3635_v13 = vadd.f32 %v3634_v40, %v3633_v16  ;;  %v4804_v16 = vld [vmem:[%s9889_s16 + $0x70] sm:$0xff]  }
 0x635   : > { %v4805_v40 = vld [vmem:[%s9889_s16 + $0xf0] sm:$0xff]  }
 0x636   : > { %v3636_v38 = vrot.slane %v3635_v13, 1 }
 0x638   : > { %v3637_v51 = vadd.f32 %v3636_v38, %v3635_v13  ;;  %v4806_v13 = vld [vmem:[%s9889_s16 + $0x30] sm:$0xff]  }
 0x639   : > { %v4807_v38 = vld [vmem:[%s9889_s16 + $0xb0] sm:$0xff]  }
 0x63a   : > { %v3638_v25 = vmul.f32 0.015625, %v3637_v51  ;;  %v4808_v51 = vld [vmem:[%s9889_s16 + $0x78] sm:$0xff]  }
 0x63c   : > { %v3639_v24 = vpack.c.bf16 %v3638_v25, %v3638_v25  ;;  %v4809_v25 = vld [vmem:[%s9889_s16 + $0xf8] sm:$0xff]  }
 0x63e   : > { %3887 = vmatmul.mubr.bf16.vlgmr.msra.gmra.mrb[12].mxu0 %v3639_v24  ;;  %3928 = vmatmul.mubr.bf16.vlgmr.msra.gmra.mrb[4].mxu1 %v3639_v24  ;;  %v4810_v24 = vld [vmem:[%s9889_s16 + $0x38] sm:$0xff]  }
 0x63f   : > { %4597 = vmatpush3.bf16.msra.mxu0 %v4782_v0  ;;  %4619 = vmatpush3.bf16.msra.mxu1 %v4783_v46 }
 0x640   : > { %4598 = vmatprep.subr.bf16.mxu0 %v4784_v36  ;;  %4620 = vmatprep.subr.bf16.mxu1 %v4785_v41 }
 0x643   : > { %4599 = vmatpush3.bf16.msra.mxu0 %v4786_v19  ;;  %4621 = vmatpush3.bf16.msra.mxu1 %v4787_v58 }
 0x644   : > { %4600 = vmatprep.subr.bf16.mxu0 %v4788_v44  ;;  %4622 = vmatprep.subr.bf16.mxu1 %v4789_v33 }
 0x647   : > { %4601 = vmatpush3.bf16.msra.mxu0 %v4790_v14  ;;  %4623 = vmatpush3.bf16.msra.mxu1 %v4791_v34 }
 0x648   : > { %4602 = vmatprep.subr.bf16.mxu0 %v4792_v3  ;;  %4624 = vmatprep.subr.bf16.mxu1 %v4793_v62 }
 0x64b   : > { %4603 = vmatpush3.bf16.msra.mxu0 %v4794_v32  ;;  %4625 = vmatpush3.bf16.msra.mxu1 %v4795_v37 }
 0x64c   : > { %4604 = vmatprep.subr.bf16.mxu0 %v4796_v21  ;;  %4626 = vmatprep.subr.bf16.mxu1 %v4797_v60 }
 0x64f   : > { %4605 = vmatpush3.bf16.msra.mxu0 %v4798_v39  ;;  %4627 = vmatpush3.bf16.msra.mxu1 %v4799_v18 }
 0x650   : > { %4606 = vmatprep.subr.bf16.mxu0 %v4800_v8  ;;  %4628 = vmatprep.subr.bf16.mxu1 %v4801_v50 }
 0x653   : > { %4607 = vmatpush3.bf16.msra.mxu0 %v4802_v48  ;;  %4629 = vmatpush3.bf16.msra.mxu1 %v4803_v56 }
 0x654   : > { %4608 = vmatprep.subr.bf16.mxu0 %v4804_v16  ;;  %4630 = vmatprep.subr.bf16.mxu1 %v4805_v40 }
 0x657   : > { %4609 = vmatpush3.bf16.msra.mxu0 %v4806_v13  ;;  %4631 = vmatpush3.bf16.msra.mxu1 %v4807_v38 }
 0x658   : > { %4610 = vmatprep.subr.bf16.mxu0 %v4808_v51  ;;  %4632 = vmatprep.subr.bf16.mxu1 %v4809_v25 }
 0x65b   : > { %4611 = vmatpush3.bf16.msra.mxu0 %v4810_v24  ;;  %4633 = vmatpush3.bf16.msra.mxu1 %v4811_v17 }
 0x711   : > { %v3888_v12 = vpop.f32.mrb[12].mxu0  ;;  %v3929_v61 = vpop.f32.mrb[4].mxu1 }
 0x712   : > { %v3889_v52 = vadd.f32 %v3888_v12, %v3837_v57  ;;  %v3930_v26 = vadd.f32 %v3929_v61, %v3845_v10  ;;  %v3890_v45 = vpop.f32.mrb[13].mxu0  ;;  %v3931_v42 = vpop.f32.mrb[5].mxu1 }
 0x713   : > { %v3891_v54 = vadd.f32 %v3890_v45, %v3841_v53  ;;  %v3932_v63 = vadd.f32 %v3931_v42, %v3849_v20  ;;  %v3892_v31 = vpop.f32.mrb[14].mxu0  ;;  %v3933_v29 = vpop.f32.mrb[6].mxu1 }
 0x714   : > { %v3936_v22 = vmul.f32 %v3889_v52, %v3889_v52  ;;  %v3893_v43 = vpop.f32.mrb[15].mxu0  ;;  %v3934_v7 = vpop.f32.mrb[7].mxu1  ;;  %v3938_v6 = vmul.f32 %v3930_v26, %v3930_v26 }
 0x715   : > { %v3937_v30 = vmul.f32 %v3891_v54, %v3891_v54  ;;  %v3939_v59 = vmul.f32 %v3932_v63, %v3932_v63 }
 0x716   : > { %v3941_v27 = vsel %vm3940_vm6, %v3936_v22, 0.0  ;;  %v3944_v11 = vsel %vm3940_vm6, %v3938_v6, 0.0 }
 0x717   : > { %v3942_v9 = vsel %vm3940_vm6, %v3937_v30, 0.0  ;;  %v3946_v47 = vsel %vm3940_vm6, %v3939_v59, 0.0 }
 0x718   : > { %v3943_v2 = vadd.f32 %v3942_v9, %v3941_v27 }
 0x71a   : > { %v3945_v5 = vadd.f32 %v3944_v11, %v3943_v2 }
 0x71c   : > { %v3947_v1 = vadd.f32 %v3946_v47, %v3945_v5 }
 0x71e   : > { %3948 = vadd.xlane.f32.xlu1 %v3947_v1 }
 0x7ab   : > { %v3949_v23 = vpop.xlane.xlu1 %3948 }
 0x7ac   : > { %v3950_v0 = vadd.f32 1e-12, %v3949_v23 }
 0x7ae   : > { %4848 = vrsqrt.f32 %v3950_v0 }
 0x7b8   : > { %v4849_v46 = vpop.eup %4848 }
 0x7b9   : > { %v3953_v36 = vmul.f32 %v4849_v46, %v3891_v54  ;;  %v3955_v41 = vmul.f32 %v4849_v46, %v3932_v63  ;;  %v3952_v19 = vmul.f32 %v4849_v46, %v3889_v52  ;;  %v3954_v58 = vmul.f32 %v4849_v46, %v3930_v26 }
 0x7bb   : > { %v3957_v44 = vpack.c.bf16 %v3953_v36, %v3953_v36  ;;  %v3959_v33 = vpack.c.bf16 %v3955_v41, %v3955_v41  ;;  %v3956_v14 = vpack.c.bf16 %v3952_v19, %v3952_v19  ;;  %v3958_v34 = vpack.c.bf16 %v3954_v58, %v3954_v58 }
 0x7bd   : > { %4248 = vmatprep.mubr.bf16.mxu0 %v3957_v44  ;;  %4288 = vmatprep.mubr.bf16.mxu1 %v3959_v33 }
 0x7be   : > { %4249 = vmatmul.mubr.bf16.vlgmr.msra.gmra.mrb[16].mxu0 %v3956_v14  ;;  %4289 = vmatmul.mubr.bf16.vlgmr.msra.gmra.mrb[8].mxu1 %v3958_v34 }
 0x891   : > { %v4612_v3 = vpop.f32.mrb[16].mxu0  ;;  %v4634_v62 = vpop.f32.mrb[8].mxu1 }
 0x892   : > { %v4613_v32 = vpop.f32.mrb[17].mxu0  ;;  %v4635_v37 = vpop.f32.mrb[9].mxu1 }
 0x893   : > { %v4614_v15 = vadd.f32 %v4613_v32, %v4612_v3  ;;  %v4636_v28 = vadd.f32 %v4635_v37, %v4634_v62  ;;  %v4615_v4 = vpop.f32.mrb[18].mxu0  ;;  %v4637_v35 = vpop.f32.mrb[10].mxu1 }
 0x894   : > { %v4616_v55 = vpop.f32.mrb[19].mxu0  ;;  %v4638_v57 = vpop.f32.mrb[11].mxu1 }
 0x895   : > { %v4291_v10 = vadd.f32 %v4636_v28, %v4614_v15 }
 0x897   : > { %v4299_v53 = vrot.slane %v4291_v10, %v9892_v49 }
 0x899   : > { %4300 = vst [vmem:[%s454_s10] sm:$0xff] %v4299_v53 }
 0x89a PF: > { %s9895_s11 = sld [smem:[#allocation11_spill]]  ;;  %s9896_s23 = sld [smem:[#allocation10_spill]] }
 0x89b   : > { %s9897_s24 = sld [smem:[#allocation12_spill]] }
 0x8a0   : > { %s24_s25 = sadd.s32 1, %s9895_s11  }
 0x8a1   : > { %p21_p2 = scmp.ge.s32.totalorder %s24_s25, 4  }
 0x8a3   :  { %23 = sbr.rel (!%p21_p2) target bundleno = 16 (0x10), region = 124 }
 0x8aa   :  { %4320 = vsyncpa [#allocation8], 1 }
 0x8ab   :  { %4322 = vsyncpa [#allocation8 + $0x1], 1 }

</bundles_post_ra>
